<compile_context>
chip_gen: v5e
topology: v5e:2x2
jax: 0.10.0
libtpu: 0.0.40
codegen_flags: <defaults>
</compile_context>

<pallas_src>
import jax
import jax.numpy as jnp
from jax.experimental import pallas as pl
from jax.experimental.pallas import tpu as pltpu

INPUT_DIM = 16
HIDDEN = 32
FF = 64
N_HEADS = 4
DH = HIDDEN // N_HEADS
SEQ = 8
LN_EPS = 1e-5
WPAD = 128      # lane width of the packed parameter buffers (full lane tile)
B_TILE = 16     # sequences per grid step -> M = B_TILE*SEQ = 128 token rows


def _build_layouts():
    # Weight matrices: stacked along rows, padded to WPAD columns.
    w_shapes = [
        ("e_w1", INPUT_DIM, HIDDEN),
        ("e_w2", HIDDEN, HIDDEN),
        ("w_qkv", HIDDEN, 3 * HIDDEN),   # fused q|k|v projection
        ("wo", HIDDEN, HIDDEN),
        ("f_w1", HIDDEN, FF),
        ("f_w2", FF, HIDDEN),
        ("o_w1", HIDDEN, HIDDEN),
        ("o_w2", HIDDEN, INPUT_DIM),
    ]
    w_layout, off = {}, 0
    for name, r, c in w_shapes:
        w_layout[name] = (off, r, c)
        off += r                        # every r is a multiple of 8 -> aligned slices
    w_rows = off                        # 272

    # Biases / LayerNorm params: one row each, padded to WPAD columns.
    v_shapes = [
        ("e_b1", HIDDEN), ("e_g1", HIDDEN), ("e_be1", HIDDEN),
        ("e_b2", HIDDEN), ("e_g2", HIDDEN), ("e_be2", HIDDEN),
        ("b_qkv", 3 * HIDDEN), ("bo", HIDDEN),
        ("n1_g", HIDDEN), ("n1_b", HIDDEN),
        ("f_b1", FF), ("f_b2", HIDDEN),
        ("n2_g", HIDDEN), ("n2_b", HIDDEN),
        ("o_b1", HIDDEN), ("o_g1", HIDDEN), ("o_be1", HIDDEN),
        ("o_b2", INPUT_DIM), ("o_g2", INPUT_DIM), ("o_be2", INPUT_DIM),
    ]
    v_layout = {name: (i, c) for i, (name, c) in enumerate(v_shapes)}
    v_rows = ((len(v_shapes) + 7) // 8) * 8   # 24
    return w_layout, w_rows, v_layout, v_rows


_W_LAYOUT, _W_ROWS, _V_LAYOUT, _V_ROWS = _build_layouts()


def transformer_kernel(x_ref, mask_ref, w_ref, vec_ref, y_ref):
    # -- static carving of the packed parameter buffers (free ref slices) --
    def W(name):
        off, r, c = _W_LAYOUT[name]
        return w_ref[off:off + r, 0:c]

    def W_rows(name, r0, r1):
        off, _, c = _W_LAYOUT[name]
        return w_ref[off + r0:off + r1, 0:c]

    def V(name):
        i, c = _V_LAYOUT[name]
        return vec_ref[i:i + 1, 0:c]          # [1, c], broadcasts over rows

    def linear(v, wname, bname):
        return jnp.dot(v, W(wname), preferred_element_type=jnp.float32) + V(bname)

    def layer_norm(v, gname, bname):
        mu = jnp.mean(v, axis=-1, keepdims=True)
        d = v - mu
        var = jnp.mean(d * d, axis=-1, keepdims=True)   # two-pass variance
        return d * jax.lax.rsqrt(var + LN_EPS) * V(gname) + V(bname)

    x = x_ref[...]                            # [M, INPUT_DIM], M = B_TILE*SEQ
    m = x.shape[0]
    bt = m // SEQ                             # sequences in this tile (static)

    # ---- embedding MLP: (Linear -> LN -> ReLU -> Dropout) x2, dropout=id ----
    h = jnp.maximum(layer_norm(linear(x, "e_w1", "e_b1"), "e_g1", "e_be1"), 0.0)
    h = jnp.maximum(layer_norm(linear(h, "e_w2", "e_b2"), "e_g2", "e_be2"), 0.0)

    # ---- TransformerEncoderLayer (post-norm), self-attention ----
    # Single fused QKV matmul; q weights/bias were pre-scaled by 1/sqrt(DH).
    qkv = linear(h, "w_qkv", "b_qkv")         # [M, 3*HIDDEN]
    mask = mask_ref[...]                      # [SEQ, SEQ] additive float mask

    attn = None
    for hd in range(N_HEADS):                 # static 4-iteration loop
        lo = hd * DH
        # static lane slices + free leading-dim reshapes (no 3-D transposes)
        qh = qkv[:, lo:lo + DH].reshape(bt, SEQ, DH)
        kh = qkv[:, HIDDEN + lo:HIDDEN + lo + DH].reshape(bt, SEQ, DH)
        vh = qkv[:, 2 * HIDDEN + lo:2 * HIDDEN + lo + DH].reshape(bt, SEQ, DH)

        s = jnp.einsum("bqd,bkd->bqk", qh, kh,
                       preferred_element_type=jnp.float32)
        s = s + mask[None, :, :]
        s = s - jnp.max(s, axis=-1, keepdims=True)
        p = jnp.exp(s)
        p = p * pl.reciprocal(jnp.sum(p, axis=-1, keepdims=True), approx=True)
        a = jnp.einsum("bqk,bkd->bqd", p, vh,
                       preferred_element_type=jnp.float32).reshape(m, DH)
        # head-merge folded into W_o: head hd multiplies rows [lo, lo+DH) of W_o
        contrib = jnp.dot(a, W_rows("wo", lo, lo + DH),
                          preferred_element_type=jnp.float32)
        attn = contrib if attn is None else attn + contrib
    attn = attn + V("bo")

    h = layer_norm(h + attn, "n1_g", "n1_b")                   # norm1 (residual)

    ff = linear(jnp.maximum(linear(h, "f_w1", "f_b1"), 0.0), "f_w2", "f_b2")
    h = layer_norm(h + ff, "n2_g", "n2_b")                      # norm2

    # ---- output MLP: Linear -> LN -> ReLU -> Linear -> LN -> ReLU ----
    o = jnp.maximum(layer_norm(linear(h, "o_w1", "o_b1"), "o_g1", "o_be1"), 0.0)
    o = jnp.maximum(layer_norm(linear(o, "o_w2", "o_b2"), "o_g2", "o_be2"), 0.0)

    # TODO(synk): nn.Dropout layers are identity here (eval/inference mode);
    # training-mode stochastic dropout (pltpu.prng_*) is not implemented.
    y_ref[...] = o


@jax.jit
def custom_transformer(x, mask, w_packed, v_packed):
    """x: [B, SEQ, INPUT_DIM] independent sequences; mask: [SEQ, SEQ] additive."""
    B = x.shape[0]
    n_blocks = pl.cdiv(B, B_TILE)
    bp = n_blocks * B_TILE
    m_tile = B_TILE * SEQ

    x2d = x.reshape(B * SEQ, INPUT_DIM)
    if bp != B:                                   # pad batch to a tile multiple
        x2d = jnp.pad(x2d, ((0, (bp - B) * SEQ), (0, 0)))

    y2d = pl.pallas_call(
        transformer_kernel,
        out_shape=jax.ShapeDtypeStruct((bp * SEQ, INPUT_DIM), jnp.float32),
        grid=(n_blocks,),
        in_specs=[
            pl.BlockSpec((m_tile, INPUT_DIM), lambda b: (b, 0)),     # x tile
            pl.BlockSpec((SEQ, SEQ), lambda b: (0, 0)),              # mask (resident)
            pl.BlockSpec((_W_ROWS, WPAD), lambda b: (0, 0)),         # weights (resident)
            pl.BlockSpec((_V_ROWS, WPAD), lambda b: (0, 0)),         # vectors (resident)
        ],
        out_specs=pl.BlockSpec((m_tile, INPUT_DIM), lambda b: (b, 0)),
        compiler_params=pltpu.CompilerParams(
            dimension_semantics=("parallel",),        # shard grid across TCs (v7x)
            vmem_limit_bytes=32 * 1024 * 1024,        # explicit; tiles ~300 KB total
        ),
    )(x2d, mask, w_packed, v_packed)

    return y2d[: B * SEQ].reshape(B, SEQ, INPUT_DIM)


def pack_params(params):
    """Pack the parameter dict into two 128-lane-wide f32 buffers.

    Fuses wq/wk/wv (and biases) into one block and folds the 1/sqrt(head_dim)
    attention scale into the q projection.
    """
    scale = 1.0 / (DH ** 0.5)
    p = dict(params)
    p["w_qkv"] = jnp.concatenate([p["wq"] * scale, p["wk"], p["wv"]], axis=1)
    p["b_qkv"] = jnp.concatenate([p["bq"] * scale, p["bk"], p["bv"]], axis=1)

    w_buf = jnp.zeros((_W_ROWS, WPAD), jnp.float32)
    for name, (off, r, c) in _W_LAYOUT.items():
        w_buf = w_buf.at[off:off + r, 0:c].set(p[name])
    v_buf = jnp.zeros((_V_ROWS, WPAD), jnp.float32)
    for name, (i, c) in _V_LAYOUT.items():
        v_buf = v_buf.at[i, 0:c].set(p[name].reshape(c))
    return w_buf, v_buf


def init_params(key):
    """Deterministic synthetic parameters, shapes matching the PyTorch module."""
    keys = iter(jax.random.split(key, 32))

    def lin(fin, fout):
        w = jax.random.normal(next(keys), (fin, fout), jnp.float32) / jnp.sqrt(
            jnp.float32(fin))
        b = jax.random.normal(next(keys), (1, fout), jnp.float32) * 0.01
        return w, b

    def ln(f):
        return jnp.ones((1, f), jnp.float32), jnp.zeros((1, f), jnp.float32)

    p = {}
    p["e_w1"], p["e_b1"] = lin(INPUT_DIM, HIDDEN)
    p["e_g1"], p["e_be1"] = ln(HIDDEN)
    p["e_w2"], p["e_b2"] = lin(HIDDEN, HIDDEN)
    p["e_g2"], p["e_be2"] = ln(HIDDEN)
    p["wq"], p["bq"] = lin(HIDDEN, HIDDEN)
    p["wk"], p["bk"] = lin(HIDDEN, HIDDEN)
    p["wv"], p["bv"] = lin(HIDDEN, HIDDEN)
    p["wo"], p["bo"] = lin(HIDDEN, HIDDEN)
    p["n1_g"], p["n1_b"] = ln(HIDDEN)
    p["f_w1"], p["f_b1"] = lin(HIDDEN, FF)
    p["f_w2"], p["f_b2"] = lin(FF, HIDDEN)
    p["n2_g"], p["n2_b"] = ln(HIDDEN)
    p["o_w1"], p["o_b1"] = lin(HIDDEN, HIDDEN)
    p["o_g1"], p["o_be1"] = ln(HIDDEN)
    p["o_w2"], p["o_b2"] = lin(HIDDEN, INPUT_DIM)
    p["o_g2"], p["o_be2"] = ln(INPUT_DIM)
    return p


if __name__ == "__main__":
    key = jax.random.PRNGKey(0)
    k_x, k_p = jax.random.split(key)

    BATCH = 64                               # 64 sequences -> grid of 4 tiles
    x = jax.random.normal(k_x, (BATCH, SEQ, INPUT_DIM), jnp.float32)
    # causal additive float mask (PyTorch float attn_mask semantics)
    i = jnp.arange(SEQ)[:, None]
    j = jnp.arange(SEQ)[None, :]
    mask = jnp.where(j <= i, 0.0, -1e9).astype(jnp.float32)

    params = init_params(k_p)
    w_packed, v_packed = pack_params(params)

    y = custom_transformer(x, mask, w_packed, v_packed)
    jax.block_until_ready(y)
    assert y.shape == (BATCH, SEQ, INPUT_DIM) and y.dtype == jnp.float32
    print("KERNEL_OK")
</pallas_src>

<mosaic_0001>
module attributes {stable_mosaic.version = 11 : i64} {
  func.func @transformer_kernel(%arg0: i32, %arg1: memref<128x16xf32, #tpu.memory_space<vmem>>, %arg2: memref<8x8xf32, #tpu.memory_space<vmem>>, %arg3: memref<272x128xf32, #tpu.memory_space<vmem>>, %arg4: memref<24x128xf32, #tpu.memory_space<vmem>>, %arg5: memref<128x16xf32, #tpu.memory_space<vmem>>) attributes {dimension_semantics = [#tpu.dimension_semantics<parallel>], iteration_bounds = array<i64: 4>, scalar_prefetch = 0 : i64, scratch_operands = 0 : i64, tpu.core_type = #tpu.core_type<tc>, window_params = [{transform_indices = @transform_0, window_bounds = array<i64: 128, 16>}, {pipeline_mode = #tpu.pipeline_mode<synchronous>, transform_indices = @transform_1, window_bounds = array<i64: 8, 8>}, {pipeline_mode = #tpu.pipeline_mode<synchronous>, transform_indices = @transform_2, window_bounds = array<i64: 272, 128>}, {pipeline_mode = #tpu.pipeline_mode<synchronous>, transform_indices = @transform_3, window_bounds = array<i64: 24, 128>}, {transform_indices = @transform_4, window_bounds = array<i64: 128, 16>}]} {
    %c0 = arith.constant 0 : index
    %c0_0 = arith.constant 0 : index
    %0 = vector.load %arg1[%c0, %c0_0] : memref<128x16xf32, #tpu.memory_space<vmem>>, vector<128x16xf32>
    %c0_1 = arith.constant 0 : index
    %c0_2 = arith.constant 0 : index
    %1 = vector.load %arg3[%c0_1, %c0_2] : memref<272x128xf32, #tpu.memory_space<vmem>>, vector<16x32xf32>
    %cst = arith.constant dense<0.000000e+00> : vector<128x32xf32>
    %2 = tpu.matmul %0, %1, %cst {dimension_numbers = #tpu.dot_dimension_numbers<[1], [0], [0], [1], [0, 0, 1, 1], [], []>} : vector<128x16xf32>, vector<16x32xf32>, vector<128x32xf32> -> vector<128x32xf32>
    %c0_3 = arith.constant 0 : index
    %c0_4 = arith.constant 0 : index
    %3 = vector.load %arg4[%c0_3, %c0_4] : memref<24x128xf32, #tpu.memory_space<vmem>>, vector<1x32xf32>
    %4 = vector.broadcast %3 : vector<1x32xf32> to vector<128x32xf32>
    %5 = arith.addf %2, %4 : vector<128x32xf32>
    %cst_5 = arith.constant dense<0.000000e+00> : vector<128xf32>
    %6 = vector.multi_reduction <add>, %5, %cst_5 [1] : vector<128x32xf32> to vector<128xf32>
    %7 = vector.shape_cast %6 : vector<128xf32> to vector<128x1xf32>
    %cst_6 = arith.constant 3.200000e+01 : f32
    %8 = vector.broadcast %cst_6 : f32 to vector<128x1xf32>
    %9 = arith.divf %7, %8 : vector<128x1xf32>
    %10 = vector.broadcast %9 : vector<128x1xf32> to vector<128x32xf32>
    %11 = arith.subf %5, %10 : vector<128x32xf32>
    %12 = arith.mulf %11, %11 : vector<128x32xf32>
    %cst_7 = arith.constant dense<0.000000e+00> : vector<128xf32>
    %13 = vector.multi_reduction <add>, %12, %cst_7 [1] : vector<128x32xf32> to vector<128xf32>
    %14 = vector.shape_cast %13 : vector<128xf32> to vector<128x1xf32>
    %cst_8 = arith.constant 3.200000e+01 : f32
    %15 = vector.broadcast %cst_8 : f32 to vector<128x1xf32>
    %16 = arith.divf %14, %15 : vector<128x1xf32>
    %cst_9 = arith.constant 9.99999974E-6 : f32
    %17 = vector.broadcast %cst_9 : f32 to vector<128x1xf32>
    %18 = arith.addf %16, %17 : vector<128x1xf32>
    %19 = math.rsqrt %18 : vector<128x1xf32>
    %20 = vector.broadcast %19 : vector<128x1xf32> to vector<128x32xf32>
    %21 = arith.mulf %11, %20 : vector<128x32xf32>
    %c1 = arith.constant 1 : index
    %c0_10 = arith.constant 0 : index
    %22 = vector.load %arg4[%c1, %c0_10] : memref<24x128xf32, #tpu.memory_space<vmem>>, vector<1x32xf32>
    %23 = vector.broadcast %22 : vector<1x32xf32> to vector<128x32xf32>
    %24 = arith.mulf %21, %23 : vector<128x32xf32>
    %c2 = arith.constant 2 : index
    %c0_11 = arith.constant 0 : index
    %25 = vector.load %arg4[%c2, %c0_11] : memref<24x128xf32, #tpu.memory_space<vmem>>, vector<1x32xf32>
    %26 = vector.broadcast %25 : vector<1x32xf32> to vector<128x32xf32>
    %27 = arith.addf %24, %26 : vector<128x32xf32>
    %cst_12 = arith.constant 0.000000e+00 : f32
    %28 = vector.broadcast %cst_12 : f32 to vector<128x32xf32>
    %29 = arith.maximumf %27, %28 : vector<128x32xf32>
    %c16 = arith.constant 16 : index
    %c0_13 = arith.constant 0 : index
    %30 = vector.load %arg3[%c16, %c0_13] : memref<272x128xf32, #tpu.memory_space<vmem>>, vector<32x32xf32>
    %cst_14 = arith.constant dense<0.000000e+00> : vector<128x32xf32>
    %31 = tpu.matmul %29, %30, %cst_14 {dimension_numbers = #tpu.dot_dimension_numbers<[1], [0], [0], [1], [0, 0, 1, 1], [], []>} : vector<128x32xf32>, vector<32x32xf32>, vector<128x32xf32> -> vector<128x32xf32>
    %c3 = arith.constant 3 : index
    %c0_15 = arith.constant 0 : index
    %32 = vector.load %arg4[%c3, %c0_15] : memref<24x128xf32, #tpu.memory_space<vmem>>, vector<1x32xf32>
    %33 = vector.broadcast %32 : vector<1x32xf32> to vector<128x32xf32>
    %34 = arith.addf %31, %33 : vector<128x32xf32>
    %cst_16 = arith.constant dense<0.000000e+00> : vector<128xf32>
    %35 = vector.multi_reduction <add>, %34, %cst_16 [1] : vector<128x32xf32> to vector<128xf32>
    %36 = vector.shape_cast %35 : vector<128xf32> to vector<128x1xf32>
    %cst_17 = arith.constant 3.200000e+01 : f32
    %37 = vector.broadcast %cst_17 : f32 to vector<128x1xf32>
    %38 = arith.divf %36, %37 : vector<128x1xf32>
    %39 = vector.broadcast %38 : vector<128x1xf32> to vector<128x32xf32>
    %40 = arith.subf %34, %39 : vector<128x32xf32>
    %41 = arith.mulf %40, %40 : vector<128x32xf32>
    %cst_18 = arith.constant dense<0.000000e+00> : vector<128xf32>
    %42 = vector.multi_reduction <add>, %41, %cst_18 [1] : vector<128x32xf32> to vector<128xf32>
    %43 = vector.shape_cast %42 : vector<128xf32> to vector<128x1xf32>
    %cst_19 = arith.constant 3.200000e+01 : f32
    %44 = vector.broadcast %cst_19 : f32 to vector<128x1xf32>
    %45 = arith.divf %43, %44 : vector<128x1xf32>
    %cst_20 = arith.constant 9.99999974E-6 : f32
    %46 = vector.broadcast %cst_20 : f32 to vector<128x1xf32>
    %47 = arith.addf %45, %46 : vector<128x1xf32>
    %48 = math.rsqrt %47 : vector<128x1xf32>
    %49 = vector.broadcast %48 : vector<128x1xf32> to vector<128x32xf32>
    %50 = arith.mulf %40, %49 : vector<128x32xf32>
    %c4 = arith.constant 4 : index
    %c0_21 = arith.constant 0 : index
    %51 = vector.load %arg4[%c4, %c0_21] : memref<24x128xf32, #tpu.memory_space<vmem>>, vector<1x32xf32>
    %52 = vector.broadcast %51 : vector<1x32xf32> to vector<128x32xf32>
    %53 = arith.mulf %50, %52 : vector<128x32xf32>
    %c5 = arith.constant 5 : index
    %c0_22 = arith.constant 0 : index
    %54 = vector.load %arg4[%c5, %c0_22] : memref<24x128xf32, #tpu.memory_space<vmem>>, vector<1x32xf32>
    %55 = vector.broadcast %54 : vector<1x32xf32> to vector<128x32xf32>
    %56 = arith.addf %53, %55 : vector<128x32xf32>
    %cst_23 = arith.constant 0.000000e+00 : f32
    %57 = vector.broadcast %cst_23 : f32 to vector<128x32xf32>
    %58 = arith.maximumf %56, %57 : vector<128x32xf32>
    %c48 = arith.constant 48 : index
    %c0_24 = arith.constant 0 : index
    %59 = vector.load %arg3[%c48, %c0_24] : memref<272x128xf32, #tpu.memory_space<vmem>>, vector<32x96xf32>
    %cst_25 = arith.constant dense<0.000000e+00> : vector<128x96xf32>
    %60 = tpu.matmul %58, %59, %cst_25 {dimension_numbers = #tpu.dot_dimension_numbers<[1], [0], [0], [1], [0, 0, 1, 1], [], []>} : vector<128x32xf32>, vector<32x96xf32>, vector<128x96xf32> -> vector<128x96xf32>
    %c6 = arith.constant 6 : index
    %c0_26 = arith.constant 0 : index
    %61 = vector.load %arg4[%c6, %c0_26] : memref<24x128xf32, #tpu.memory_space<vmem>>, vector<1x96xf32>
    %62 = vector.broadcast %61 : vector<1x96xf32> to vector<128x96xf32>
    %63 = arith.addf %60, %62 : vector<128x96xf32>
    %c0_27 = arith.constant 0 : index
    %c0_28 = arith.constant 0 : index
    %64 = vector.load %arg2[%c0_27, %c0_28] : memref<8x8xf32, #tpu.memory_space<vmem>>, vector<8x8xf32>
    %65 = vector.extract_strided_slice %63 {offsets = [0, 0], sizes = [128, 8], strides = [1, 1]} : vector<128x96xf32> to vector<128x8xf32>
    %66 = vector.shape_cast %65 : vector<128x8xf32> to vector<16x8x8xf32>
    %67 = vector.extract_strided_slice %63 {offsets = [0, 32], sizes = [128, 8], strides = [1, 1]} : vector<128x96xf32> to vector<128x8xf32>
    %68 = vector.shape_cast %67 : vector<128x8xf32> to vector<16x8x8xf32>
    %69 = vector.extract_strided_slice %63 {offsets = [0, 64], sizes = [128, 8], strides = [1, 1]} : vector<128x96xf32> to vector<128x8xf32>
    %70 = vector.shape_cast %69 : vector<128x8xf32> to vector<16x8x8xf32>
    "tpu.trace_start"() <{level = 10 : i32, message = "bqd,bkd->bqk"}> : () -> ()
    %cst_29 = arith.constant dense<0.000000e+00> : vector<16x8x8xf32>
    %71 = tpu.matmul %66, %68, %cst_29 {dimension_numbers = #tpu.dot_dimension_numbers<[2], [2], [1], [1], [0, 0, 0, 1, 1, 1], [0], [0]>} : vector<16x8x8xf32>, vector<16x8x8xf32>, vector<16x8x8xf32> -> vector<16x8x8xf32>
    "tpu.trace_stop"() : () -> ()
    %72 = vector.shape_cast %64 : vector<8x8xf32> to vector<1x8x8xf32>
    %73 = vector.broadcast %72 : vector<1x8x8xf32> to vector<16x8x8xf32>
    %74 = arith.addf %71, %73 : vector<16x8x8xf32>
    %cst_30 = arith.constant dense<0xFF800000> : vector<16x8xf32>
    %75 = vector.multi_reduction <maximumf>, %74, %cst_30 [2] : vector<16x8x8xf32> to vector<16x8xf32>
    %76 = vector.shape_cast %75 : vector<16x8xf32> to vector<16x8x1xf32>
    %77 = vector.broadcast %76 : vector<16x8x1xf32> to vector<16x8x8xf32>
    %78 = arith.subf %74, %77 : vector<16x8x8xf32>
    %79 = math.exp %78 : vector<16x8x8xf32>
    %cst_31 = arith.constant dense<0.000000e+00> : vector<16x8xf32>
    %80 = vector.multi_reduction <add>, %79, %cst_31 [2] : vector<16x8x8xf32> to vector<16x8xf32>
    %81 = vector.shape_cast %80 : vector<16x8xf32> to vector<16x8x1xf32>
    %82 = tpu.reciprocal %81 {approx = true} : vector<16x8x1xf32> -> vector<16x8x1xf32>
    %83 = vector.broadcast %82 : vector<16x8x1xf32> to vector<16x8x8xf32>
    %84 = arith.mulf %79, %83 : vector<16x8x8xf32>
    "tpu.trace_start"() <{level = 10 : i32, message = "bqk,bkd->bqd"}> : () -> ()
    %cst_32 = arith.constant dense<0.000000e+00> : vector<16x8x8xf32>
    %85 = tpu.matmul %84, %70, %cst_32 {dimension_numbers = #tpu.dot_dimension_numbers<[2], [1], [1], [2], [0, 0, 0, 1, 1, 2], [0], [0]>} : vector<16x8x8xf32>, vector<16x8x8xf32>, vector<16x8x8xf32> -> vector<16x8x8xf32>
    "tpu.trace_stop"() : () -> ()
    %86 = vector.shape_cast %85 : vector<16x8x8xf32> to vector<128x8xf32>
    %c80 = arith.constant 80 : index
    %c0_33 = arith.constant 0 : index
    %87 = vector.load %arg3[%c80, %c0_33] : memref<272x128xf32, #tpu.memory_space<vmem>>, vector<8x32xf32>
    %cst_34 = arith.constant dense<0.000000e+00> : vector<128x32xf32>
    %88 = tpu.matmul %86, %87, %cst_34 {dimension_numbers = #tpu.dot_dimension_numbers<[1], [0], [0], [1], [0, 0, 1, 1], [], []>} : vector<128x8xf32>, vector<8x32xf32>, vector<128x32xf32> -> vector<128x32xf32>
    %89 = vector.extract_strided_slice %63 {offsets = [0, 8], sizes = [128, 8], strides = [1, 1]} : vector<128x96xf32> to vector<128x8xf32>
    %90 = vector.shape_cast %89 : vector<128x8xf32> to vector<16x8x8xf32>
    %91 = vector.extract_strided_slice %63 {offsets = [0, 40], sizes = [128, 8], strides = [1, 1]} : vector<128x96xf32> to vector<128x8xf32>
    %92 = vector.shape_cast %91 : vector<128x8xf32> to vector<16x8x8xf32>
    %93 = vector.extract_strided_slice %63 {offsets = [0, 72], sizes = [128, 8], strides = [1, 1]} : vector<128x96xf32> to vector<128x8xf32>
    %94 = vector.shape_cast %93 : vector<128x8xf32> to vector<16x8x8xf32>
    "tpu.trace_start"() <{level = 10 : i32, message = "bqd,bkd->bqk"}> : () -> ()
    %cst_35 = arith.constant dense<0.000000e+00> : vector<16x8x8xf32>
    %95 = tpu.matmul %90, %92, %cst_35 {dimension_numbers = #tpu.dot_dimension_numbers<[2], [2], [1], [1], [0, 0, 0, 1, 1, 1], [0], [0]>} : vector<16x8x8xf32>, vector<16x8x8xf32>, vector<16x8x8xf32> -> vector<16x8x8xf32>
    "tpu.trace_stop"() : () -> ()
    %96 = vector.shape_cast %64 : vector<8x8xf32> to vector<1x8x8xf32>
    %97 = vector.broadcast %96 : vector<1x8x8xf32> to vector<16x8x8xf32>
    %98 = arith.addf %95, %97 : vector<16x8x8xf32>
    %cst_36 = arith.constant dense<0xFF800000> : vector<16x8xf32>
    %99 = vector.multi_reduction <maximumf>, %98, %cst_36 [2] : vector<16x8x8xf32> to vector<16x8xf32>
    %100 = vector.shape_cast %99 : vector<16x8xf32> to vector<16x8x1xf32>
    %101 = vector.broadcast %100 : vector<16x8x1xf32> to vector<16x8x8xf32>
    %102 = arith.subf %98, %101 : vector<16x8x8xf32>
    %103 = math.exp %102 : vector<16x8x8xf32>
    %cst_37 = arith.constant dense<0.000000e+00> : vector<16x8xf32>
    %104 = vector.multi_reduction <add>, %103, %cst_37 [2] : vector<16x8x8xf32> to vector<16x8xf32>
    %105 = vector.shape_cast %104 : vector<16x8xf32> to vector<16x8x1xf32>
    %106 = tpu.reciprocal %105 {approx = true} : vector<16x8x1xf32> -> vector<16x8x1xf32>
    %107 = vector.broadcast %106 : vector<16x8x1xf32> to vector<16x8x8xf32>
    %108 = arith.mulf %103, %107 : vector<16x8x8xf32>
    "tpu.trace_start"() <{level = 10 : i32, message = "bqk,bkd->bqd"}> : () -> ()
    %cst_38 = arith.constant dense<0.000000e+00> : vector<16x8x8xf32>
    %109 = tpu.matmul %108, %94, %cst_38 {dimension_numbers = #tpu.dot_dimension_numbers<[2], [1], [1], [2], [0, 0, 0, 1, 1, 2], [0], [0]>} : vector<16x8x8xf32>, vector<16x8x8xf32>, vector<16x8x8xf32> -> vector<16x8x8xf32>
    "tpu.trace_stop"() : () -> ()
    %110 = vector.shape_cast %109 : vector<16x8x8xf32> to vector<128x8xf32>
    %c88 = arith.constant 88 : index
    %c0_39 = arith.constant 0 : index
    %111 = vector.load %arg3[%c88, %c0_39] : memref<272x128xf32, #tpu.memory_space<vmem>>, vector<8x32xf32>
    %cst_40 = arith.constant dense<0.000000e+00> : vector<128x32xf32>
    %112 = tpu.matmul %110, %111, %cst_40 {dimension_numbers = #tpu.dot_dimension_numbers<[1], [0], [0], [1], [0, 0, 1, 1], [], []>} : vector<128x8xf32>, vector<8x32xf32>, vector<128x32xf32> -> vector<128x32xf32>
    %113 = arith.addf %88, %112 : vector<128x32xf32>
    %114 = vector.extract_strided_slice %63 {offsets = [0, 16], sizes = [128, 8], strides = [1, 1]} : vector<128x96xf32> to vector<128x8xf32>
    %115 = vector.shape_cast %114 : vector<128x8xf32> to vector<16x8x8xf32>
    %116 = vector.extract_strided_slice %63 {offsets = [0, 48], sizes = [128, 8], strides = [1, 1]} : vector<128x96xf32> to vector<128x8xf32>
    %117 = vector.shape_cast %116 : vector<128x8xf32> to vector<16x8x8xf32>
    %118 = vector.extract_strided_slice %63 {offsets = [0, 80], sizes = [128, 8], strides = [1, 1]} : vector<128x96xf32> to vector<128x8xf32>
    %119 = vector.shape_cast %118 : vector<128x8xf32> to vector<16x8x8xf32>
    "tpu.trace_start"() <{level = 10 : i32, message = "bqd,bkd->bqk"}> : () -> ()
    %cst_41 = arith.constant dense<0.000000e+00> : vector<16x8x8xf32>
    %120 = tpu.matmul %115, %117, %cst_41 {dimension_numbers = #tpu.dot_dimension_numbers<[2], [2], [1], [1], [0, 0, 0, 1, 1, 1], [0], [0]>} : vector<16x8x8xf32>, vector<16x8x8xf32>, vector<16x8x8xf32> -> vector<16x8x8xf32>
    "tpu.trace_stop"() : () -> ()
    %121 = vector.shape_cast %64 : vector<8x8xf32> to vector<1x8x8xf32>
    %122 = vector.broadcast %121 : vector<1x8x8xf32> to vector<16x8x8xf32>
    %123 = arith.addf %120, %122 : vector<16x8x8xf32>
    %cst_42 = arith.constant dense<0xFF800000> : vector<16x8xf32>
    %124 = vector.multi_reduction <maximumf>, %123, %cst_42 [2] : vector<16x8x8xf32> to vector<16x8xf32>
    %125 = vector.shape_cast %124 : vector<16x8xf32> to vector<16x8x1xf32>
    %126 = vector.broadcast %125 : vector<16x8x1xf32> to vector<16x8x8xf32>
    %127 = arith.subf %123, %126 : vector<16x8x8xf32>
    %128 = math.exp %127 : vector<16x8x8xf32>
    %cst_43 = arith.constant dense<0.000000e+00> : vector<16x8xf32>
    %129 = vector.multi_reduction <add>, %128, %cst_43 [2] : vector<16x8x8xf32> to vector<16x8xf32>
    %130 = vector.shape_cast %129 : vector<16x8xf32> to vector<16x8x1xf32>
    %131 = tpu.reciprocal %130 {approx = true} : vector<16x8x1xf32> -> vector<16x8x1xf32>
    %132 = vector.broadcast %131 : vector<16x8x1xf32> to vector<16x8x8xf32>
    %133 = arith.mulf %128, %132 : vector<16x8x8xf32>
    "tpu.trace_start"() <{level = 10 : i32, message = "bqk,bkd->bqd"}> : () -> ()
    %cst_44 = arith.constant dense<0.000000e+00> : vector<16x8x8xf32>
    %134 = tpu.matmul %133, %119, %cst_44 {dimension_numbers = #tpu.dot_dimension_numbers<[2], [1], [1], [2], [0, 0, 0, 1, 1, 2], [0], [0]>} : vector<16x8x8xf32>, vector<16x8x8xf32>, vector<16x8x8xf32> -> vector<16x8x8xf32>
    "tpu.trace_stop"() : () -> ()
    %135 = vector.shape_cast %134 : vector<16x8x8xf32> to vector<128x8xf32>
    %c96 = arith.constant 96 : index
    %c0_45 = arith.constant 0 : index
    %136 = vector.load %arg3[%c96, %c0_45] : memref<272x128xf32, #tpu.memory_space<vmem>>, vector<8x32xf32>
    %cst_46 = arith.constant dense<0.000000e+00> : vector<128x32xf32>
    %137 = tpu.matmul %135, %136, %cst_46 {dimension_numbers = #tpu.dot_dimension_numbers<[1], [0], [0], [1], [0, 0, 1, 1], [], []>} : vector<128x8xf32>, vector<8x32xf32>, vector<128x32xf32> -> vector<128x32xf32>
    %138 = arith.addf %113, %137 : vector<128x32xf32>
    %139 = vector.extract_strided_slice %63 {offsets = [0, 24], sizes = [128, 8], strides = [1, 1]} : vector<128x96xf32> to vector<128x8xf32>
    %140 = vector.shape_cast %139 : vector<128x8xf32> to vector<16x8x8xf32>
    %141 = vector.extract_strided_slice %63 {offsets = [0, 56], sizes = [128, 8], strides = [1, 1]} : vector<128x96xf32> to vector<128x8xf32>
    %142 = vector.shape_cast %141 : vector<128x8xf32> to vector<16x8x8xf32>
    %143 = vector.extract_strided_slice %63 {offsets = [0, 88], sizes = [128, 8], strides = [1, 1]} : vector<128x96xf32> to vector<128x8xf32>
    %144 = vector.shape_cast %143 : vector<128x8xf32> to vector<16x8x8xf32>
    "tpu.trace_start"() <{level = 10 : i32, message = "bqd,bkd->bqk"}> : () -> ()
    %cst_47 = arith.constant dense<0.000000e+00> : vector<16x8x8xf32>
    %145 = tpu.matmul %140, %142, %cst_47 {dimension_numbers = #tpu.dot_dimension_numbers<[2], [2], [1], [1], [0, 0, 0, 1, 1, 1], [0], [0]>} : vector<16x8x8xf32>, vector<16x8x8xf32>, vector<16x8x8xf32> -> vector<16x8x8xf32>
    "tpu.trace_stop"() : () -> ()
    %146 = vector.shape_cast %64 : vector<8x8xf32> to vector<1x8x8xf32>
    %147 = vector.broadcast %146 : vector<1x8x8xf32> to vector<16x8x8xf32>
    %148 = arith.addf %145, %147 : vector<16x8x8xf32>
    %cst_48 = arith.constant dense<0xFF800000> : vector<16x8xf32>
    %149 = vector.multi_reduction <maximumf>, %148, %cst_48 [2] : vector<16x8x8xf32> to vector<16x8xf32>
    %150 = vector.shape_cast %149 : vector<16x8xf32> to vector<16x8x1xf32>
    %151 = vector.broadcast %150 : vector<16x8x1xf32> to vector<16x8x8xf32>
    %152 = arith.subf %148, %151 : vector<16x8x8xf32>
    %153 = math.exp %152 : vector<16x8x8xf32>
    %cst_49 = arith.constant dense<0.000000e+00> : vector<16x8xf32>
    %154 = vector.multi_reduction <add>, %153, %cst_49 [2] : vector<16x8x8xf32> to vector<16x8xf32>
    %155 = vector.shape_cast %154 : vector<16x8xf32> to vector<16x8x1xf32>
    %156 = tpu.reciprocal %155 {approx = true} : vector<16x8x1xf32> -> vector<16x8x1xf32>
    %157 = vector.broadcast %156 : vector<16x8x1xf32> to vector<16x8x8xf32>
    %158 = arith.mulf %153, %157 : vector<16x8x8xf32>
    "tpu.trace_start"() <{level = 10 : i32, message = "bqk,bkd->bqd"}> : () -> ()
    %cst_50 = arith.constant dense<0.000000e+00> : vector<16x8x8xf32>
    %159 = tpu.matmul %158, %144, %cst_50 {dimension_numbers = #tpu.dot_dimension_numbers<[2], [1], [1], [2], [0, 0, 0, 1, 1, 2], [0], [0]>} : vector<16x8x8xf32>, vector<16x8x8xf32>, vector<16x8x8xf32> -> vector<16x8x8xf32>
    "tpu.trace_stop"() : () -> ()
    %160 = vector.shape_cast %159 : vector<16x8x8xf32> to vector<128x8xf32>
    %c104 = arith.constant 104 : index
    %c0_51 = arith.constant 0 : index
    %161 = vector.load %arg3[%c104, %c0_51] : memref<272x128xf32, #tpu.memory_space<vmem>>, vector<8x32xf32>
    %cst_52 = arith.constant dense<0.000000e+00> : vector<128x32xf32>
    %162 = tpu.matmul %160, %161, %cst_52 {dimension_numbers = #tpu.dot_dimension_numbers<[1], [0], [0], [1], [0, 0, 1, 1], [], []>} : vector<128x8xf32>, vector<8x32xf32>, vector<128x32xf32> -> vector<128x32xf32>
    %163 = arith.addf %138, %162 : vector<128x32xf32>
    %c7 = arith.constant 7 : index
    %c0_53 = arith.constant 0 : index
    %164 = vector.load %arg4[%c7, %c0_53] : memref<24x128xf32, #tpu.memory_space<vmem>>, vector<1x32xf32>
    %165 = vector.broadcast %164 : vector<1x32xf32> to vector<128x32xf32>
    %166 = arith.addf %163, %165 : vector<128x32xf32>
    %167 = arith.addf %58, %166 : vector<128x32xf32>
    %cst_54 = arith.constant dense<0.000000e+00> : vector<128xf32>
    %168 = vector.multi_reduction <add>, %167, %cst_54 [1] : vector<128x32xf32> to vector<128xf32>
    %169 = vector.shape_cast %168 : vector<128xf32> to vector<128x1xf32>
    %cst_55 = arith.constant 3.200000e+01 : f32
    %170 = vector.broadcast %cst_55 : f32 to vector<128x1xf32>
    %171 = arith.divf %169, %170 : vector<128x1xf32>
    %172 = vector.broadcast %171 : vector<128x1xf32> to vector<128x32xf32>
    %173 = arith.subf %167, %172 : vector<128x32xf32>
    %174 = arith.mulf %173, %173 : vector<128x32xf32>
    %cst_56 = arith.constant dense<0.000000e+00> : vector<128xf32>
    %175 = vector.multi_reduction <add>, %174, %cst_56 [1] : vector<128x32xf32> to vector<128xf32>
    %176 = vector.shape_cast %175 : vector<128xf32> to vector<128x1xf32>
    %cst_57 = arith.constant 3.200000e+01 : f32
    %177 = vector.broadcast %cst_57 : f32 to vector<128x1xf32>
    %178 = arith.divf %176, %177 : vector<128x1xf32>
    %cst_58 = arith.constant 9.99999974E-6 : f32
    %179 = vector.broadcast %cst_58 : f32 to vector<128x1xf32>
    %180 = arith.addf %178, %179 : vector<128x1xf32>
    %181 = math.rsqrt %180 : vector<128x1xf32>
    %182 = vector.broadcast %181 : vector<128x1xf32> to vector<128x32xf32>
    %183 = arith.mulf %173, %182 : vector<128x32xf32>
    %c8 = arith.constant 8 : index
    %c0_59 = arith.constant 0 : index
    %184 = vector.load %arg4[%c8, %c0_59] : memref<24x128xf32, #tpu.memory_space<vmem>>, vector<1x32xf32>
    %185 = vector.broadcast %184 : vector<1x32xf32> to vector<128x32xf32>
    %186 = arith.mulf %183, %185 : vector<128x32xf32>
    %c9 = arith.constant 9 : index
    %c0_60 = arith.constant 0 : index
    %187 = vector.load %arg4[%c9, %c0_60] : memref<24x128xf32, #tpu.memory_space<vmem>>, vector<1x32xf32>
    %188 = vector.broadcast %187 : vector<1x32xf32> to vector<128x32xf32>
    %189 = arith.addf %186, %188 : vector<128x32xf32>
    %c112 = arith.constant 112 : index
    %c0_61 = arith.constant 0 : index
    %190 = vector.load %arg3[%c112, %c0_61] : memref<272x128xf32, #tpu.memory_space<vmem>>, vector<32x64xf32>
    %cst_62 = arith.constant dense<0.000000e+00> : vector<128x64xf32>
    %191 = tpu.matmul %189, %190, %cst_62 {dimension_numbers = #tpu.dot_dimension_numbers<[1], [0], [0], [1], [0, 0, 1, 1], [], []>} : vector<128x32xf32>, vector<32x64xf32>, vector<128x64xf32> -> vector<128x64xf32>
    %c10 = arith.constant 10 : index
    %c0_63 = arith.constant 0 : index
    %192 = vector.load %arg4[%c10, %c0_63] : memref<24x128xf32, #tpu.memory_space<vmem>>, vector<1x64xf32>
    %193 = vector.broadcast %192 : vector<1x64xf32> to vector<128x64xf32>
    %194 = arith.addf %191, %193 : vector<128x64xf32>
    %cst_64 = arith.constant 0.000000e+00 : f32
    %195 = vector.broadcast %cst_64 : f32 to vector<128x64xf32>
    %196 = arith.maximumf %194, %195 : vector<128x64xf32>
    %c144 = arith.constant 144 : index
    %c0_65 = arith.constant 0 : index
    %197 = vector.load %arg3[%c144, %c0_65] : memref<272x128xf32, #tpu.memory_space<vmem>>, vector<64x32xf32>
    %cst_66 = arith.constant dense<0.000000e+00> : vector<128x32xf32>
    %198 = tpu.matmul %196, %197, %cst_66 {dimension_numbers = #tpu.dot_dimension_numbers<[1], [0], [0], [1], [0, 0, 1, 1], [], []>} : vector<128x64xf32>, vector<64x32xf32>, vector<128x32xf32> -> vector<128x32xf32>
    %c11 = arith.constant 11 : index
    %c0_67 = arith.constant 0 : index
    %199 = vector.load %arg4[%c11, %c0_67] : memref<24x128xf32, #tpu.memory_space<vmem>>, vector<1x32xf32>
    %200 = vector.broadcast %199 : vector<1x32xf32> to vector<128x32xf32>
    %201 = arith.addf %198, %200 : vector<128x32xf32>
    %202 = arith.addf %189, %201 : vector<128x32xf32>
    %cst_68 = arith.constant dense<0.000000e+00> : vector<128xf32>
    %203 = vector.multi_reduction <add>, %202, %cst_68 [1] : vector<128x32xf32> to vector<128xf32>
    %204 = vector.shape_cast %203 : vector<128xf32> to vector<128x1xf32>
    %cst_69 = arith.constant 3.200000e+01 : f32
    %205 = vector.broadcast %cst_69 : f32 to vector<128x1xf32>
    %206 = arith.divf %204, %205 : vector<128x1xf32>
    %207 = vector.broadcast %206 : vector<128x1xf32> to vector<128x32xf32>
    %208 = arith.subf %202, %207 : vector<128x32xf32>
    %209 = arith.mulf %208, %208 : vector<128x32xf32>
    %cst_70 = arith.constant dense<0.000000e+00> : vector<128xf32>
    %210 = vector.multi_reduction <add>, %209, %cst_70 [1] : vector<128x32xf32> to vector<128xf32>
    %211 = vector.shape_cast %210 : vector<128xf32> to vector<128x1xf32>
    %cst_71 = arith.constant 3.200000e+01 : f32
    %212 = vector.broadcast %cst_71 : f32 to vector<128x1xf32>
    %213 = arith.divf %211, %212 : vector<128x1xf32>
    %cst_72 = arith.constant 9.99999974E-6 : f32
    %214 = vector.broadcast %cst_72 : f32 to vector<128x1xf32>
    %215 = arith.addf %213, %214 : vector<128x1xf32>
    %216 = math.rsqrt %215 : vector<128x1xf32>
    %217 = vector.broadcast %216 : vector<128x1xf32> to vector<128x32xf32>
    %218 = arith.mulf %208, %217 : vector<128x32xf32>
    %c12 = arith.constant 12 : index
    %c0_73 = arith.constant 0 : index
    %219 = vector.load %arg4[%c12, %c0_73] : memref<24x128xf32, #tpu.memory_space<vmem>>, vector<1x32xf32>
    %220 = vector.broadcast %219 : vector<1x32xf32> to vector<128x32xf32>
    %221 = arith.mulf %218, %220 : vector<128x32xf32>
    %c13 = arith.constant 13 : index
    %c0_74 = arith.constant 0 : index
    %222 = vector.load %arg4[%c13, %c0_74] : memref<24x128xf32, #tpu.memory_space<vmem>>, vector<1x32xf32>
    %223 = vector.broadcast %222 : vector<1x32xf32> to vector<128x32xf32>
    %224 = arith.addf %221, %223 : vector<128x32xf32>
    %c208 = arith.constant 208 : index
    %c0_75 = arith.constant 0 : index
    %225 = vector.load %arg3[%c208, %c0_75] : memref<272x128xf32, #tpu.memory_space<vmem>>, vector<32x32xf32>
    %cst_76 = arith.constant dense<0.000000e+00> : vector<128x32xf32>
    %226 = tpu.matmul %224, %225, %cst_76 {dimension_numbers = #tpu.dot_dimension_numbers<[1], [0], [0], [1], [0, 0, 1, 1], [], []>} : vector<128x32xf32>, vector<32x32xf32>, vector<128x32xf32> -> vector<128x32xf32>
    %c14 = arith.constant 14 : index
    %c0_77 = arith.constant 0 : index
    %227 = vector.load %arg4[%c14, %c0_77] : memref<24x128xf32, #tpu.memory_space<vmem>>, vector<1x32xf32>
    %228 = vector.broadcast %227 : vector<1x32xf32> to vector<128x32xf32>
    %229 = arith.addf %226, %228 : vector<128x32xf32>
    %cst_78 = arith.constant dense<0.000000e+00> : vector<128xf32>
    %230 = vector.multi_reduction <add>, %229, %cst_78 [1] : vector<128x32xf32> to vector<128xf32>
    %231 = vector.shape_cast %230 : vector<128xf32> to vector<128x1xf32>
    %cst_79 = arith.constant 3.200000e+01 : f32
    %232 = vector.broadcast %cst_79 : f32 to vector<128x1xf32>
    %233 = arith.divf %231, %232 : vector<128x1xf32>
    %234 = vector.broadcast %233 : vector<128x1xf32> to vector<128x32xf32>
    %235 = arith.subf %229, %234 : vector<128x32xf32>
    %236 = arith.mulf %235, %235 : vector<128x32xf32>
    %cst_80 = arith.constant dense<0.000000e+00> : vector<128xf32>
    %237 = vector.multi_reduction <add>, %236, %cst_80 [1] : vector<128x32xf32> to vector<128xf32>
    %238 = vector.shape_cast %237 : vector<128xf32> to vector<128x1xf32>
    %cst_81 = arith.constant 3.200000e+01 : f32
    %239 = vector.broadcast %cst_81 : f32 to vector<128x1xf32>
    %240 = arith.divf %238, %239 : vector<128x1xf32>
    %cst_82 = arith.constant 9.99999974E-6 : f32
    %241 = vector.broadcast %cst_82 : f32 to vector<128x1xf32>
    %242 = arith.addf %240, %241 : vector<128x1xf32>
    %243 = math.rsqrt %242 : vector<128x1xf32>
    %244 = vector.broadcast %243 : vector<128x1xf32> to vector<128x32xf32>
    %245 = arith.mulf %235, %244 : vector<128x32xf32>
    %c15 = arith.constant 15 : index
    %c0_83 = arith.constant 0 : index
    %246 = vector.load %arg4[%c15, %c0_83] : memref<24x128xf32, #tpu.memory_space<vmem>>, vector<1x32xf32>
    %247 = vector.broadcast %246 : vector<1x32xf32> to vector<128x32xf32>
    %248 = arith.mulf %245, %247 : vector<128x32xf32>
    %c16_84 = arith.constant 16 : index
    %c0_85 = arith.constant 0 : index
    %249 = vector.load %arg4[%c16_84, %c0_85] : memref<24x128xf32, #tpu.memory_space<vmem>>, vector<1x32xf32>
    %250 = vector.broadcast %249 : vector<1x32xf32> to vector<128x32xf32>
    %251 = arith.addf %248, %250 : vector<128x32xf32>
    %cst_86 = arith.constant 0.000000e+00 : f32
    %252 = vector.broadcast %cst_86 : f32 to vector<128x32xf32>
    %253 = arith.maximumf %251, %252 : vector<128x32xf32>
    %c240 = arith.constant 240 : index
    %c0_87 = arith.constant 0 : index
    %254 = vector.load %arg3[%c240, %c0_87] : memref<272x128xf32, #tpu.memory_space<vmem>>, vector<32x16xf32>
    %cst_88 = arith.constant dense<0.000000e+00> : vector<128x16xf32>
    %255 = tpu.matmul %253, %254, %cst_88 {dimension_numbers = #tpu.dot_dimension_numbers<[1], [0], [0], [1], [0, 0, 1, 1], [], []>} : vector<128x32xf32>, vector<32x16xf32>, vector<128x16xf32> -> vector<128x16xf32>
    %c17 = arith.constant 17 : index
    %c0_89 = arith.constant 0 : index
    %256 = vector.load %arg4[%c17, %c0_89] : memref<24x128xf32, #tpu.memory_space<vmem>>, vector<1x16xf32>
    %257 = vector.broadcast %256 : vector<1x16xf32> to vector<128x16xf32>
    %258 = arith.addf %255, %257 : vector<128x16xf32>
    %cst_90 = arith.constant dense<0.000000e+00> : vector<128xf32>
    %259 = vector.multi_reduction <add>, %258, %cst_90 [1] : vector<128x16xf32> to vector<128xf32>
    %260 = vector.shape_cast %259 : vector<128xf32> to vector<128x1xf32>
    %cst_91 = arith.constant 1.600000e+01 : f32
    %261 = vector.broadcast %cst_91 : f32 to vector<128x1xf32>
    %262 = arith.divf %260, %261 : vector<128x1xf32>
    %263 = vector.broadcast %262 : vector<128x1xf32> to vector<128x16xf32>
    %264 = arith.subf %258, %263 : vector<128x16xf32>
    %265 = arith.mulf %264, %264 : vector<128x16xf32>
    %cst_92 = arith.constant dense<0.000000e+00> : vector<128xf32>
    %266 = vector.multi_reduction <add>, %265, %cst_92 [1] : vector<128x16xf32> to vector<128xf32>
    %267 = vector.shape_cast %266 : vector<128xf32> to vector<128x1xf32>
    %cst_93 = arith.constant 1.600000e+01 : f32
    %268 = vector.broadcast %cst_93 : f32 to vector<128x1xf32>
    %269 = arith.divf %267, %268 : vector<128x1xf32>
    %cst_94 = arith.constant 9.99999974E-6 : f32
    %270 = vector.broadcast %cst_94 : f32 to vector<128x1xf32>
    %271 = arith.addf %269, %270 : vector<128x1xf32>
    %272 = math.rsqrt %271 : vector<128x1xf32>
    %273 = vector.broadcast %272 : vector<128x1xf32> to vector<128x16xf32>
    %274 = arith.mulf %264, %273 : vector<128x16xf32>
    %c18 = arith.constant 18 : index
    %c0_95 = arith.constant 0 : index
    %275 = vector.load %arg4[%c18, %c0_95] : memref<24x128xf32, #tpu.memory_space<vmem>>, vector<1x16xf32>
    %276 = vector.broadcast %275 : vector<1x16xf32> to vector<128x16xf32>
    %277 = arith.mulf %274, %276 : vector<128x16xf32>
    %c19 = arith.constant 19 : index
    %c0_96 = arith.constant 0 : index
    %278 = vector.load %arg4[%c19, %c0_96] : memref<24x128xf32, #tpu.memory_space<vmem>>, vector<1x16xf32>
    %279 = vector.broadcast %278 : vector<1x16xf32> to vector<128x16xf32>
    %280 = arith.addf %277, %279 : vector<128x16xf32>
    %cst_97 = arith.constant 0.000000e+00 : f32
    %281 = vector.broadcast %cst_97 : f32 to vector<128x16xf32>
    %282 = arith.maximumf %280, %281 : vector<128x16xf32>
    %c0_98 = arith.constant 0 : index
    %c0_99 = arith.constant 0 : index
    %283 = vector.load %arg5[%c0_98, %c0_99] : memref<128x16xf32, #tpu.memory_space<vmem>>, vector<128x16xf32>
    tpu.vector_store %arg5[%c0_98, %c0_99], %282 {strides = array<i32>} : memref<128x16xf32, #tpu.memory_space<vmem>>, vector<128x16xf32>,
    return
  }
  func.func @transform_0(%arg0: i32) -> (i32, i32) {
    %c0_i32 = arith.constant 0 : i32
    %c0_i32_0 = arith.constant 0 : i32
    return %arg0, %c0_i32 : i32, i32
  }
  func.func @transform_1(%arg0: i32) -> (i32, i32) {
    %c0_i32 = arith.constant 0 : i32
    %c0_i32_0 = arith.constant 0 : i32
    %c0_i32_1 = arith.constant 0 : i32
    return %c0_i32, %c0_i32_0 : i32, i32
  }
  func.func @transform_2(%arg0: i32) -> (i32, i32) {
    %c0_i32 = arith.constant 0 : i32
    %c0_i32_0 = arith.constant 0 : i32
    %c0_i32_1 = arith.constant 0 : i32
    return %c0_i32, %c0_i32_0 : i32, i32
  }
  func.func @transform_3(%arg0: i32) -> (i32, i32) {
    %c0_i32 = arith.constant 0 : i32
    %c0_i32_0 = arith.constant 0 : i32
    %c0_i32_1 = arith.constant 0 : i32
    return %c0_i32, %c0_i32_0 : i32, i32
  }
  func.func @transform_4(%arg0: i32) -> (i32, i32) {
    %c0_i32 = arith.constant 0 : i32
    %c0_i32_0 = arith.constant 0 : i32
    return %arg0, %c0_i32 : i32, i32
  }
}

</mosaic_0001>

<bundles_post_ra>
// kernel: custom_transformer.1
= control target key start
LH: loop header
LB: loop body
LE: loop exit
PB: predicated region body
PF: predicated region fallthrough
CT: control target
= control target key end

     0   :  { %s9320_s15 = smov 0   ;;  %s13353_s0 = inlined_call_operand.vmem [shape: f32[512,16], index: 0, kind: input, shape index: {}]   ;;  %s13354_s1 = inlined_call_operand.vmem [shape: f32[8,8], index: 1, kind: input, shape index: {}]   ;;  %s13355_s2 = inlined_call_operand.vmem [shape: f32[272,128], index: 2, kind: input, shape index: {}]   ;;  %s13356_s3 = inlined_call_operand.vmem [shape: f32[24,128], index: 3, kind: input, shape index: {}]   ;;  %s13357_s4 = inlined_call_operand.vmem [shape: f32[512,16], index: 4, kind: output, shape index: {}]  }
   0x1 LB: > { %s8233_s16 = sadd.s32 4294967295, %s9280_s15   ;;  %p8237_p0 = scmp.ge.s32.totalorder %s9280_s15, 1  ;;  %s9280_s15 = sphi %s9320_s15, %s14_s15  }
   0x2   : > { %p163_p1 = scmp.lt.s32.totalorder %s9280_s15, 5 }
   0x4   : > { %p164_p2 = pnand %p8237_p0, %p163_p1 }
   0x6   : > { %167 = sbr.rel (%p164_p2) target bundleno = 5356 (0x14ec), region = 36 }
   0xb   : > { %v218_v0 = vld [vmem:[%s13355_s2 + $0x8] sm:$0xff]  ;;  %v217_v1 = vld [vmem:[%s13355_s2] sm:$0xff]  ;;  %s8238_s21 = sshll.u32 %s8233_s16, 4  ;;  %vm221_vm0 = vcmask 130048   ;;  %vm335_vm1 = vcmask 261120   ;;  %v9282_v38 = vmov 32.0  }
   0xc   : > { %284 = vmatpush.msra.mxu0 %v218_v0  ;;  %p190_p3 = scmp.lt.s32.totalorder %s8238_s21, 63  ;;  %v9368_v13 = vld [vmem:[%s13356_s3] ss:$0 sm:$0xff]  ;;  %8820 = vrcp.f32 %v9282_v38  ;;  %s9283_s7 = smov 96  }
   0xd   : > { %s9284_s8 = smov 64   ;;  %s9285_s9 = smov 120  }
   0xe   : > { %285 = vmatpush.msra.mxu0 %v217_v1  ;;  %s13580_s21 = smov (!%p190_p3, %s8238_s21), 63  ;;  %s9286_s10 = smov 88  }
   0xf   : > { %s8239_s22 = sshll.u32 %s13580_s21, 3  ;;  %s9287_s11 = smov 80  }
  0x10   : > { %s9342_s25 = scalar_lea.vmem %s13353_s0, %s8239_s22  ;;  %s9288_s12 = smov 56  }
  0x11   : > { %v201_v2 = vld [vmem:[%s9342_s25] sm:$0xff]  ;;  %v202_v3 = vld [vmem:[%s9342_s25 + $0x8] sm:$0xff]  ;;  %v203_v4 = vld [vmem:[%s9342_s25 + $0x10] sm:$0xff]  ;;  %s9289_s13 = smov 112   ;;  %s9290_s17 = smov 48  }
  0x12   : > { %8242 = vmatmul.msk.f32.vlgmr.msra.gmra.mxu0 %vm221_vm0, %v201_v2  ;;  %v204_v5 = vld [vmem:[%s9342_s25 + $0x18] sm:$0xff]  ;;  %v205_v6 = vld [vmem:[%s9342_s25 + $0x20] sm:$0xff]  ;;  %v206_v7 = vld [vmem:[%s9342_s25 + $0x28] sm:$0xff]  ;;  %v8821_v39 = vpop.eup %8820  ;;  %s9291_s18 = smov 72   ;;  %s9292_s19 = smov 104  }
  0x13   : > { %v207_v8 = vld [vmem:[%s9342_s25 + $0x30] sm:$0xff]  ;;  %v208_v9 = vld [vmem:[%s9342_s25 + $0x38] sm:$0xff]  ;;  %v209_v10 = vld [vmem:[%s9342_s25 + $0x40] sm:$0xff]  ;;  %v385_v40 = vmul.f32 32.0, %v8821_v39  ;;  %vm389_vm2 = vweird.f32 %v8821_v39  ;;  %s9293_s26 = smov 40  }
  0x14   : > { %v210_v11 = vld [vmem:[%s9342_s25 + $0x48] sm:$0xff]  ;;  %v211_v12 = vld [vmem:[%s9342_s25 + $0x50] sm:$0xff]  ;;  %v212_v17 = vld [vmem:[%s9342_s25 + $0x58] sm:$0xff] }
  0x15   : > { %v213_v21 = vld [vmem:[%s9342_s25 + $0x60] sm:$0xff]  ;;  %v214_v25 = vld [vmem:[%s9342_s25 + $0x68] sm:$0xff]  ;;  %v215_v41 = vld [vmem:[%s9342_s25 + $0x70] sm:$0xff]  ;;  %v386_v42 = vsub.f32 1.0, %v385_v40 }
  0x16   : > { %v216_v44 = vld [vmem:[%s9342_s25 + $0x78] sm:$0xff] }
  0x17   : > { %v387_v43 = vmul.f32 %v8821_v39, %v386_v42  ;;  %v748_v42 = vld [vmem:[%s13355_s2 + $0x18] sm:$0xff] }
  0x19   : > { %v388_v45 = vadd.f32 %v8821_v39, %v387_v43  ;;  %v747_v43 = vld [vmem:[%s13355_s2 + $0x10] sm:$0xff] }
  0x1a   : > { %8243 = vmatmul.msk.f32.gmra.mxu0 %vm221_vm0, %v202_v3 }
  0x1b   : > { %v9404_v47 = vsel %vm389_vm2, %v8821_v39, %v388_v45 }
  0x1c   : > { %13409 = vst [vmem:[#allocation2_spill] sm:$0xff] %v9404_v47 }
  0x22   : > { %8244 = vmatmul.msk.f32.gmra.mxu0 %vm221_vm0, %v203_v4 }
  0x2a   : > { %8245 = vmatmul.msk.f32.gmra.mxu0 %vm221_vm0, %v204_v5 }
  0x32   : > { %8246 = vmatmul.msk.f32.gmra.mxu0 %vm221_vm0, %v205_v6 }
  0x3a   : > { %8247 = vmatmul.msk.f32.gmra.mxu0 %vm221_vm0, %v206_v7 }
  0x42   : > { %8248 = vmatmul.msk.f32.gmra.mxu0 %vm221_vm0, %v207_v8 }
  0x4a   : > { %8249 = vmatmul.msk.f32.gmra.mxu0 %vm221_vm0, %v208_v9 }
  0x52   : > { %8250 = vmatmul.msk.f32.gmra.mxu0 %vm221_vm0, %v209_v10 }
  0x5a   : > { %8251 = vmatmul.msk.f32.gmra.mxu0 %vm221_vm0, %v210_v11 }
  0x62   : > { %8252 = vmatmul.msk.f32.gmra.mxu0 %vm221_vm0, %v211_v12 }
  0x6a   : > { %8253 = vmatmul.msk.f32.gmra.mxu0 %vm221_vm0, %v212_v17 }
  0x72   : > { %8254 = vmatmul.msk.f32.gmra.mxu0 %vm221_vm0, %v213_v21 }
  0x7a   : > { %8255 = vmatmul.msk.f32.gmra.mxu0 %vm221_vm0, %v214_v25 }
  0x82   : > { %8256 = vmatmul.msk.f32.gmra.mxu0 %vm221_vm0, %v215_v41  ;;  %v749_v41 = vld [vmem:[%s13355_s2 + $0x20] sm:$0xff] }
  0x8a   : > { %8257 = vmatmul.msk.f32.gmra.mxu0 %vm221_vm0, %v216_v44 }
  0x8f   : > { %v287_v14 = vpop.f32.mrf.mxu0 }
  0x90   : > { %v288_v15 = vadd.f32 %v9368_v13, %v287_v14 }
  0x92   : > { %v336_v16 = vsel %vm335_vm1, %v288_v15, 0.0 }
  0x93   : > { %337 = vadd.xlane.f32.xlu0 %v336_v16 }
  0x97   : > { %v290_v18 = vpop.f32.mrf.mxu0 }
  0x98   : > { %v291_v19 = vadd.f32 %v9368_v13, %v290_v18 }
  0x9a   : > { %v339_v20 = vsel %vm335_vm1, %v291_v19, 0.0 }
  0x9b   : > { %340 = vadd.xlane.f32.xlu0 %v339_v20 }
  0x9f   : > { %v293_v22 = vpop.f32.mrf.mxu0 }
  0xa0   : > { %v294_v23 = vadd.f32 %v9368_v13, %v293_v22 }
  0xa2   : > { %v342_v24 = vsel %vm335_vm1, %v294_v23, 0.0 }
  0xa3   : > { %343 = vadd.xlane.f32.xlu1 %v342_v24 }
  0xa7   : > { %v296_v26 = vpop.f32.mrf.mxu0 }
  0xa8   : > { %v297_v27 = vadd.f32 %v9368_v13, %v296_v26 }
  0xaa   : > { %v345_v28 = vsel %vm335_vm1, %v297_v27, 0.0 }
  0xab   : > { %346 = vadd.xlane.f32.xlu1 %v345_v28 }
  0xaf   : > { %v299_v29 = vpop.f32.mrf.mxu0 }
  0xb0   : > { %v9386_v30 = vadd.f32 %v9368_v13, %v299_v29 }
  0xb2   : > { %v348_v31 = vsel %vm335_vm1, %v9386_v30, 0.0 }
  0xb3   : > { %349 = vadd.xlane.f32.xlu2 %v348_v31 }
  0xb7   : > { %v302_v32 = vpop.f32.mrf.mxu0 }
  0xb8   : > { %v9391_v33 = vadd.f32 %v9368_v13, %v302_v32 }
  0xba   : > { %v351_v34 = vsel %vm335_vm1, %v9391_v33, 0.0 }
  0xbb   : > { %352 = vadd.xlane.f32.xlu2 %v351_v34 }
  0xbf   : > { %v305_v35 = vpop.f32.mrf.mxu0 }
  0xc0   : > { %v9396_v36 = vadd.f32 %v9368_v13, %v305_v35 }
  0xc2   : > { %v354_v37 = vsel %vm335_vm1, %v9396_v36, 0.0 }
  0xc3   : > { %355 = vadd.xlane.f32.xlu1 %v354_v37 }
  0xc7   : > { %v308_v46 = vpop.f32.mrf.mxu0 }
  0xc8   : > { %v9414_v56 = vadd.f32 %v9368_v13, %v308_v46 }
  0xca   : > { %v357_v58 = vsel %vm335_vm1, %v9414_v56, 0.0 }
  0xcf   : > { %v311_v51 = vpop.f32.mrf.mxu0 }
  0xd0   : > { %v9425_v0 = vadd.f32 %v9368_v13, %v311_v51 }
  0xd2   : > { %v360_v3 = vsel %vm335_vm1, %v9425_v0, 0.0 }
  0xd7   : > { %v314_v60 = vpop.f32.mrf.mxu0 }
  0xd8   : > { %v9436_v8 = vadd.f32 %v9368_v13, %v314_v60 }
  0xda   : > { %v363_v10 = vsel %vm335_vm1, %v9436_v8, 0.0 }
  0xdf   : > { %v317_v6 = vpop.f32.mrf.mxu0 }
  0xe0   : > { %v9447_v16 = vadd.f32 %v9368_v13, %v317_v6 }
  0xe7   : > { %v320_v17 = vpop.f32.mrf.mxu0 }
  0xe8   : > { %v9459_v24 = vadd.f32 %v9368_v13, %v320_v17 }
  0xea   : > { %v369_v28 = vsel %vm335_vm1, %v9459_v24, 0.0 }
  0xef   : > { %v323_v26 = vpop.f32.mrf.mxu0 }
  0xf0   : > { %v9471_v32 = vadd.f32 %v9368_v13, %v323_v26  ;;  %v9529_v26 = vld [vmem:[%s13356_s3 + $0x2] ss:$0 sm:$0xff] }
  0xf2   : > { %v372_v34 = vsel %vm335_vm1, %v9471_v32, 0.0 }
  0xf7   : > { %v326_v37 = vpop.f32.mrf.mxu0 }
  0xf8   : > { %v9482_v39 = vadd.f32 %v9368_v13, %v326_v37 }
  0xfa   : > { %v375_v40 = vsel %vm335_vm1, %v9482_v39, 0.0 }
 0x106   : > { %v338_v48 = vpop.xlane.xlu0 %337 }
 0x107   : > { %v391_v49 = vmul.f32 %v9404_v47, %v338_v48 }
 0x109   : > { %v9407_v50 = vsub.f32 %v288_v15, %v391_v49 }
 0x10b   : > { %v423_v52 = vmul.f32 %v9407_v50, %v9407_v50 }
 0x10d   : > { %v439_v53 = vsel %vm335_vm1, %v423_v52, 0.0 }
 0x10e   : > { %440 = vadd.xlane.f32.xlu0 %v439_v53  ;;  %v341_v54 = vpop.xlane.xlu0 %340 }
 0x10f   : > { %v392_v55 = vmul.f32 %v9404_v47, %v341_v54 }
 0x111   : > { %v9416_v57 = vsub.f32 %v291_v19, %v392_v55  ;;  %v366_v19 = vsel %vm335_vm1, %v9447_v16, 0.0 }
 0x113   : > { %v424_v59 = vmul.f32 %v9416_v57, %v9416_v57 }
 0x115   : > { %v442_v61 = vsel %vm335_vm1, %v424_v59, 0.0  ;;  %v329_v59 = vpop.f32.mrf.mxu0 }
 0x116   : > { %v344_v62 = vpop.xlane.xlu1 %343  ;;  %358 = vadd.xlane.f32.xlu0 %v357_v58  ;;  %443 = vadd.xlane.f32.xlu2 %v442_v61 }
 0x117   : > { %v393_v63 = vmul.f32 %v9404_v47, %v344_v62 }
 0x119   : > { %v9427_v1 = vsub.f32 %v294_v23, %v393_v63 }
 0x11b   : > { %v425_v2 = vmul.f32 %v9427_v1, %v9427_v1 }
 0x11d   : > { %v445_v4 = vsel %vm335_vm1, %v425_v2, 0.0 }
 0x11e   : > { %446 = vadd.xlane.f32.xlu1 %v445_v4  ;;  %v347_v5 = vpop.xlane.xlu1 %346  ;;  %361 = vadd.xlane.f32.xlu2 %v360_v3 }
 0x11f   : > { %v394_v7 = vmul.f32 %v9404_v47, %v347_v5 }
 0x121   : > { %v9438_v9 = vsub.f32 %v297_v27, %v394_v7 }
 0x123   : > { %v426_v11 = vmul.f32 %v9438_v9, %v9438_v9 }
 0x125   : > { %v448_v12 = vsel %vm335_vm1, %v426_v11, 0.0 }
 0x126   : > { %v350_v14 = vpop.xlane.xlu2 %349  ;;  %364 = vadd.xlane.f32.xlu1 %v363_v10  ;;  %449 = vadd.xlane.f32.xlu0 %v448_v12 }
 0x127   : > { %v395_v15 = vmul.f32 %v9404_v47, %v350_v14 }
 0x129   : > { %v9450_v18 = vsub.f32 %v9386_v30, %v395_v15 }
 0x12b   : > { %v427_v20 = vmul.f32 %v9450_v18, %v9450_v18 }
 0x12d   : > { %v451_v21 = vsel %vm335_vm1, %v427_v20, 0.0 }
 0x12e   : > { %v353_v22 = vpop.xlane.xlu2 %352  ;;  %367 = vadd.xlane.f32.xlu0 %v366_v19  ;;  %452 = vadd.xlane.f32.xlu2 %v451_v21  ;;  %v9522_v19 = vld [vmem:[%s13356_s3 + $0x1] ss:$0 sm:$0xff]  ;;  %v332_v21 = vpop.f32.mrf.mxu0 }
 0x12f   : > { %v396_v23 = vmul.f32 %v9404_v47, %v353_v22 }
 0x131   : > { %v9462_v25 = vsub.f32 %v9391_v33, %v396_v23 }
 0x133   : > { %v428_v27 = vmul.f32 %v9462_v25, %v9462_v25 }
 0x135   : > { %v454_v29 = vsel %vm335_vm1, %v428_v27, 0.0 }
 0x136   : > { %455 = vadd.xlane.f32.xlu1 %v454_v29  ;;  %v356_v30 = vpop.xlane.xlu1 %355  ;;  %370 = vadd.xlane.f32.xlu2 %v369_v28 }
 0x137   : > { %v397_v31 = vmul.f32 %v9404_v47, %v356_v30 }
 0x139   : > { %v9474_v33 = vsub.f32 %v9396_v36, %v397_v31  ;;  %v750_v36 = vld [vmem:[%s13355_s2 + $0x28] sm:$0xff] }
 0x13a   : > { %813 = vmatpush.msra.mxu1 %v750_v36 }
 0x13b   : > { %v429_v35 = vmul.f32 %v9474_v33, %v9474_v33 }
 0x13c   : > { %814 = vmatpush.msra.mxu1 %v749_v41 }
 0x13d   : > { %v457_v38 = vsel %vm335_vm1, %v429_v35, 0.0 }
 0x13e   : > { %373 = vadd.xlane.f32.xlu1 %v372_v34  ;;  %458 = vadd.xlane.f32.xlu0 %v457_v38  ;;  %v9534_v34 = vadd.f32 %v9368_v13, %v332_v21 }
 0x13f   : > { %815 = vmatpush.msra.mxu1 %v748_v42 }
 0x141   : > { %816 = vmatpush.msra.mxu1 %v747_v43 }
 0x146   : > { %376 = vadd.xlane.f32.xlu0 %v375_v40 }
 0x181   : > { %v441_v44 = vpop.xlane.xlu0 %440 }
 0x182   : > { %v487_v45 = vmul.f32 %v441_v44, %v9404_v47  ;;  %v381_v44 = vsel %vm335_vm1, %v9534_v34, 0.0 }
 0x184   : > { %v503_v46 = vadd.f32 1e-05, %v487_v45 }
 0x186   : > { %8822 = vrsqrt.f32 %v503_v46  ;;  %vm525_vm4 = vweird.f32 %v503_v46 }
 0x189   : > { %v444_v48 = vpop.xlane.xlu2 %443  ;;  %v359_v49 = vpop.xlane.xlu0 %358 }
 0x18a   : > { %v488_v51 = vmul.f32 %v444_v48, %v9404_v47  ;;  %v398_v52 = vmul.f32 %v9404_v47, %v359_v49 }
 0x18c   : > { %v8823_v53 = vpop.eup %8822  ;;  %v504_v54 = vadd.f32 1e-05, %v488_v51  ;;  %v9502_v55 = vsub.f32 %v9414_v56, %v398_v52  ;;  %v9510_v56 = vadd.f32 %v9368_v13, %v329_v59 }
 0x18d   : > { %v520_v58 = vmul.f32 %v8823_v53, %v503_v46  ;;  %vm526_vm3 = vweird.f32 %v8823_v53 }
 0x18e   : > { %8824 = vrsqrt.f32 %v504_v54  ;;  %v430_v60 = vmul.f32 %v9502_v55, %v9502_v55  ;;  %vm527_vm5 = vmor %vm525_vm4, %vm526_vm3  ;;  %v378_v17 = vsel %vm335_vm1, %v9510_v56, 0.0  ;;  %vm535_vm7 = vweird.f32 %v504_v54 }
 0x18f   : > { %v521_v61 = vmul.f32 %v8823_v53, %v520_v58 }
 0x190   : > { %v460_v62 = vsel %vm335_vm1, %v430_v60, 0.0 }
 0x191   : > { %v522_v63 = vmul.f32 0.5, %v521_v61  ;;  %v447_v2 = vpop.xlane.xlu1 %446  ;;  %v362_v3 = vpop.xlane.xlu2 %361  ;;  %461 = vadd.xlane.f32.xlu2 %v460_v62 }
 0x192   : > { %v489_v4 = vmul.f32 %v447_v2, %v9404_v47  ;;  %v399_v5 = vmul.f32 %v9404_v47, %v362_v3 }
 0x193   : > { %v523_v6 = vsub.f32 1.5, %v522_v63 }
 0x194   : > { %v8825_v7 = vpop.eup %8824  ;;  %v505_v10 = vadd.f32 1e-05, %v489_v4  ;;  %v9513_v11 = vsub.f32 %v9425_v0, %v399_v5 }
 0x195   : > { %v524_v12 = vmul.f32 %v8823_v53, %v523_v6  ;;  %v530_v14 = vmul.f32 %v8825_v7, %v504_v54  ;;  %vm536_vm6 = vweird.f32 %v8825_v7 }
 0x196   : > { %8826 = vrsqrt.f32 %v505_v10  ;;  %v431_v15 = vmul.f32 %v9513_v11, %v9513_v11  ;;  %vm537_vm8 = vmor %vm535_vm7, %vm536_vm6  ;;  %vm545_vm10 = vweird.f32 %v505_v10 }
 0x197   : > { %v531_v20 = vmul.f32 %v8825_v7, %v530_v14  ;;  %v528_v0 = vsel %vm527_vm5, %v8823_v53, %v524_v12 }
 0x198   : > { %v463_v22 = vsel %vm335_vm1, %v431_v15, 0.0  ;;  %v679_v23 = vmul.f32 %v528_v0, %v9407_v50 }
 0x199   : > { %v532_v27 = vmul.f32 0.5, %v531_v20  ;;  %v365_v28 = vpop.xlane.xlu1 %364  ;;  %464 = vadd.xlane.f32.xlu1 %v463_v22  ;;  %379 = vadd.xlane.f32.xlu2 %v378_v17  ;;  %v450_v29 = vpop.xlane.xlu0 %449 }
 0x19a   : > { %v400_v30 = vmul.f32 %v9404_v47, %v365_v28  ;;  %v490_v31 = vmul.f32 %v450_v29, %v9404_v47  ;;  %v697_v35 = vmul.f32 %v9522_v19, %v679_v23 }
 0x19b   : > { %v533_v50 = vsub.f32 1.5, %v532_v27 }
 0x19c   : > { %v8827_v37 = vpop.eup %8826  ;;  %v9538_v38 = vsub.f32 %v9436_v8, %v400_v30  ;;  %v506_v40 = vadd.f32 1e-05, %v490_v31  ;;  %v715_v36 = vadd.f32 %v9529_v26, %v697_v35 }
 0x19d   : > { %v534_v41 = vmul.f32 %v8825_v7, %v533_v50  ;;  %v540_v42 = vmul.f32 %v8827_v37, %v505_v10  ;;  %vm546_vm9 = vweird.f32 %v8827_v37 }
 0x19e   : > { %8828 = vrsqrt.f32 %v506_v40  ;;  %v731_v43 = vmax.f32 %v715_v36, 0.0  ;;  %v432_v13 = vmul.f32 %v9538_v38, %v9538_v38  ;;  %vm547_vm11 = vmor %vm545_vm10, %vm546_vm9  ;;  %vm555_vm13 = vweird.f32 %v506_v40 }
 0x19f   : > { %v541_v45 = vmul.f32 %v8827_v37, %v540_v42  ;;  %v538_v46 = vsel %vm537_vm8, %v8825_v7, %v534_v41 }
 0x1a0   : > { %8258 = vmatmul.msk.f32.vlgmr.msra.gmra.mxu1 %vm335_vm1, %v731_v43  ;;  %v466_v8 = vsel %vm335_vm1, %v432_v13, 0.0  ;;  %v680_v48 = vmul.f32 %v538_v46, %v9416_v57 }
 0x1a1   : > { %v542_v49 = vmul.f32 0.5, %v541_v45  ;;  %467 = vadd.xlane.f32.xlu0 %v466_v8  ;;  %382 = vadd.xlane.f32.xlu1 %v381_v44  ;;  %v453_v51 = vpop.xlane.xlu2 %452  ;;  %v368_v52 = vpop.xlane.xlu0 %367 }
 0x1a2   : > { %v491_v53 = vmul.f32 %v453_v51, %v9404_v47  ;;  %v401_v54 = vmul.f32 %v9404_v47, %v368_v52  ;;  %v698_v58 = vmul.f32 %v9522_v19, %v680_v48 }
 0x1a3   : > { %v543_v59 = vsub.f32 1.5, %v542_v49 }
 0x1a4   : > { %v8829_v60 = vpop.eup %8828  ;;  %v507_v61 = vadd.f32 1e-05, %v491_v53  ;;  %v9552_v62 = vsub.f32 %v9447_v16, %v401_v54  ;;  %v716_v57 = vadd.f32 %v9529_v26, %v698_v58 }
 0x1a5   : > { %v544_v63 = vmul.f32 %v8827_v37, %v543_v59  ;;  %v550_v2 = vmul.f32 %v8829_v60, %v506_v40  ;;  %vm556_vm12 = vweird.f32 %v8829_v60 }
 0x1a6   : > { %8830 = vrsqrt.f32 %v507_v61  ;;  %v732_v3 = vmax.f32 %v716_v57, 0.0  ;;  %v433_v4 = vmul.f32 %v9552_v62, %v9552_v62  ;;  %vm557_vm14 = vmor %vm555_vm13, %vm556_vm12  ;;  %vm565_vm2 = vweird.f32 %v507_v61 }
 0x1a7   : > { %v551_v5 = vmul.f32 %v8829_v60, %v550_v2  ;;  %v548_v6 = vsel %vm547_vm11, %v8827_v37, %v544_v63 }
 0x1a8   : > { %8259 = vmatmul.msk.f32.gmra.mxu1 %vm335_vm1, %v732_v3  ;;  %v469_v7 = vsel %vm335_vm1, %v433_v4, 0.0  ;;  %v681_v16 = vmul.f32 %v548_v6, %v9427_v1 }
 0x1a9   : > { %v552_v12 = vmul.f32 0.5, %v551_v5  ;;  %v456_v14 = vpop.xlane.xlu1 %455  ;;  %v371_v15 = vpop.xlane.xlu2 %370  ;;  %470 = vadd.xlane.f32.xlu2 %v469_v7 }
 0x1aa   : > { %v492_v10 = vmul.f32 %v456_v14, %v9404_v47  ;;  %v402_v17 = vmul.f32 %v9404_v47, %v371_v15  ;;  %v699_v20 = vmul.f32 %v9522_v19, %v681_v16 }
 0x1ab   : > { %v553_v21 = vsub.f32 1.5, %v552_v12 }
 0x1ac   : > { %v8831_v0 = vpop.eup %8830  ;;  %v508_v22 = vadd.f32 1e-05, %v492_v10  ;;  %v9564_v23 = vsub.f32 %v9459_v24, %v402_v17  ;;  %v717_v27 = vadd.f32 %v9529_v26, %v699_v20 }
 0x1ad   : > { %v554_v1 = vmul.f32 %v8829_v60, %v553_v21  ;;  %v560_v28 = vmul.f32 %v8831_v0, %v507_v61  ;;  %vm566_vm15 = vweird.f32 %v8831_v0 }
 0x1ae   : > { %8832 = vrsqrt.f32 %v508_v22  ;;  %v733_v29 = vmax.f32 %v717_v27, 0.0  ;;  %v434_v30 = vmul.f32 %v9564_v23, %v9564_v23  ;;  %vm567_vm3 = vmor %vm565_vm2, %vm566_vm15  ;;  %vm575_vm5 = vweird.f32 %v508_v22 }
 0x1af   : > { %v561_v31 = vmul.f32 %v8831_v0, %v560_v28  ;;  %v558_v35 = vsel %vm557_vm14, %v8829_v60, %v554_v1 }
 0x1b0   : > { %8260 = vmatmul.msk.f32.gmra.mxu1 %vm335_vm1, %v733_v29  ;;  %v472_v50 = vsel %vm335_vm1, %v434_v30, 0.0  ;;  %v682_v24 = vmul.f32 %v558_v35, %v9438_v9 }
 0x1b1   : > { %v562_v37 = vmul.f32 0.5, %v561_v31  ;;  %v374_v36 = vpop.xlane.xlu1 %373  ;;  %473 = vadd.xlane.f32.xlu0 %v472_v50  ;;  %v459_v41 = vpop.xlane.xlu0 %458 }
 0x1b2   : > { %v403_v40 = vmul.f32 %v9404_v47, %v374_v36  ;;  %v493_v42 = vmul.f32 %v459_v41, %v9404_v47  ;;  %v700_v43 = vmul.f32 %v9522_v19, %v682_v24 }
 0x1b3   : > { %v563_v13 = vsub.f32 1.5, %v562_v37 }
 0x1b4   : > { %v8833_v44 = vpop.eup %8832  ;;  %v9576_v45 = vsub.f32 %v9471_v32, %v403_v40  ;;  %v509_v46 = vadd.f32 1e-05, %v493_v42  ;;  %v718_v8 = vadd.f32 %v9529_v26, %v700_v43 }
 0x1b5   : > { %v564_v9 = vmul.f32 %v8831_v0, %v563_v13  ;;  %v570_v48 = vmul.f32 %v8833_v44, %v508_v22  ;;  %vm576_vm4 = vweird.f32 %v8833_v44 }
 0x1b6   : > { %8834 = vrsqrt.f32 %v509_v46  ;;  %v734_v49 = vmax.f32 %v718_v8, 0.0  ;;  %v435_v51 = vmul.f32 %v9576_v45, %v9576_v45  ;;  %vm577_vm6 = vmor %vm575_vm5, %vm576_vm4  ;;  %vm585_vm8 = vweird.f32 %v509_v46 }
 0x1b7   : > { %v571_v52 = vmul.f32 %v8833_v44, %v570_v48  ;;  %v568_v53 = vsel %vm567_vm3, %v8831_v0, %v564_v9 }
 0x1b8   : > { %8261 = vmatmul.msk.f32.gmra.mxu1 %vm335_vm1, %v734_v49  ;;  %v475_v54 = vsel %vm335_vm1, %v435_v51, 0.0  ;;  %v683_v32 = vmul.f32 %v568_v53, %v9450_v18 }
 0x1b9   : > { %v572_v58 = vmul.f32 0.5, %v571_v52  ;;  %476 = vadd.xlane.f32.xlu1 %v475_v54  ;;  %v377_v59 = vpop.xlane.xlu0 %376 }
 0x1ba   : > { %v404_v60 = vmul.f32 %v9404_v47, %v377_v59  ;;  %v701_v61 = vmul.f32 %v9522_v19, %v683_v32 }
 0x1bb   : > { %v573_v57 = vsub.f32 1.5, %v572_v58  ;;  %v9621_v58 = vld [vmem:[%s13356_s3 + $0x3] ss:$0 sm:$0xff] }
 0x1bc   : > { %v8835_v63 = vpop.eup %8834  ;;  %v9587_v2 = vsub.f32 %v9482_v39, %v404_v60  ;;  %v719_v3 = vadd.f32 %v9529_v26, %v701_v61 }
 0x1bd   : > { %v574_v4 = vmul.f32 %v8833_v44, %v573_v57  ;;  %v580_v5 = vmul.f32 %v8835_v63, %v509_v46  ;;  %vm586_vm7 = vweird.f32 %v8835_v63 }
 0x1be   : > { %v735_v18 = vmax.f32 %v719_v3, 0.0  ;;  %v436_v6 = vmul.f32 %v9587_v2, %v9587_v2  ;;  %vm587_vm9 = vmor %vm585_vm8, %vm586_vm7 }
 0x1bf   : > { %v581_v7 = vmul.f32 %v8835_v63, %v580_v5  ;;  %v578_v16 = vsel %vm577_vm6, %v8833_v44, %v574_v4 }
 0x1c0   : > { %8262 = vmatmul.msk.f32.gmra.mxu1 %vm335_vm1, %v735_v18  ;;  %v478_v12 = vsel %vm335_vm1, %v436_v6, 0.0  ;;  %v684_v14 = vmul.f32 %v578_v16, %v9462_v25 }
 0x1c1   : > { %v582_v39 = vmul.f32 0.5, %v581_v7  ;;  %479 = vadd.xlane.f32.xlu2 %v478_v12 }
 0x1c2   : > { %v702_v15 = vmul.f32 %v9522_v19, %v684_v14 }
 0x1c3   : > { %v583_v10 = vsub.f32 1.5, %v582_v39 }
 0x1c4   : > { %v720_v17 = vadd.f32 %v9529_v26, %v702_v15 }
 0x1c5   : > { %v584_v20 = vmul.f32 %v8835_v63, %v583_v10 }
 0x1c6   : > { %v736_v21 = vmax.f32 %v720_v17, 0.0 }
 0x1c7   : > { %v588_v0 = vsel %vm587_vm9, %v8835_v63, %v584_v20 }
 0x1c8   : > { %8263 = vmatmul.msk.f32.gmra.mxu1 %vm335_vm1, %v736_v21  ;;  %v685_v22 = vmul.f32 %v588_v0, %v9474_v33 }
 0x1ca   : > { %v703_v27 = vmul.f32 %v9522_v19, %v685_v22 }
 0x1cc   : > { %v721_v25 = vadd.f32 %v9529_v26, %v703_v27 }
 0x1ce   : > { %v737_v1 = vmax.f32 %v721_v25, 0.0 }
 0x1d0   : > { %8264 = vmatmul.msk.f32.gmra.mxu1 %vm335_vm1, %v737_v1 }
 0x204   : > { %v462_v28 = vpop.xlane.xlu2 %461 }
 0x205   : > { %v494_v29 = vmul.f32 %v462_v28, %v9404_v47 }
 0x207   : > { %v510_v30 = vadd.f32 1e-05, %v494_v29 }
 0x209   : > { %8836 = vrsqrt.f32 %v510_v30  ;;  %vm595_vm11 = vweird.f32 %v510_v30 }
 0x20c   : > { %v465_v31 = vpop.xlane.xlu1 %464  ;;  %v380_v35 = vpop.xlane.xlu2 %379 }
 0x20d   : > { %v495_v50 = vmul.f32 %v465_v31, %v9404_v47  ;;  %v405_v24 = vmul.f32 %v9404_v47, %v380_v35 }
 0x20f   : > { %v8837_v37 = vpop.eup %8836  ;;  %v511_v33 = vadd.f32 1e-05, %v495_v50  ;;  %v9606_v36 = vsub.f32 %v9510_v56, %v405_v24 }
 0x210   : > { %v590_v41 = vmul.f32 %v8837_v37, %v510_v30  ;;  %vm596_vm10 = vweird.f32 %v8837_v37 }
 0x211   : > { %8838 = vrsqrt.f32 %v511_v33  ;;  %v437_v40 = vmul.f32 %v9606_v36, %v9606_v36  ;;  %vm597_vm12 = vmor %vm595_vm11, %vm596_vm10  ;;  %vm605_vm14 = vweird.f32 %v511_v33 }
 0x212   : > { %v591_v42 = vmul.f32 %v8837_v37, %v590_v41 }
 0x213   : > { %v481_v43 = vsel %vm335_vm1, %v437_v40, 0.0 }
 0x214   : > { %v592_v13 = vmul.f32 0.5, %v591_v42  ;;  %v383_v44 = vpop.xlane.xlu1 %382  ;;  %482 = vadd.xlane.f32.xlu0 %v481_v43  ;;  %v468_v46 = vpop.xlane.xlu0 %467 }
 0x215   : > { %v406_v8 = vmul.f32 %v9404_v47, %v383_v44  ;;  %v496_v9 = vmul.f32 %v468_v46, %v9404_v47 }
 0x216   : > { %v593_v48 = vsub.f32 1.5, %v592_v13 }
 0x217   : > { %v8839_v56 = vpop.eup %8838  ;;  %v9614_v49 = vsub.f32 %v9534_v34, %v406_v8  ;;  %v512_v51 = vadd.f32 1e-05, %v496_v9 }
 0x218   : > { %v594_v52 = vmul.f32 %v8837_v37, %v593_v48  ;;  %v600_v53 = vmul.f32 %v8839_v56, %v511_v33  ;;  %vm606_vm13 = vweird.f32 %v8839_v56 }
 0x219   : > { %8840 = vrsqrt.f32 %v512_v51  ;;  %v438_v54 = vmul.f32 %v9614_v49, %v9614_v49  ;;  %vm607_vm15 = vmor %vm605_vm14, %vm606_vm13  ;;  %vm615_vm3 = vweird.f32 %v512_v51 }
 0x21a   : > { %v601_v32 = vmul.f32 %v8839_v56, %v600_v53  ;;  %v598_v59 = vsel %vm597_vm12, %v8837_v37, %v594_v52 }
 0x21b   : > { %v484_v60 = vsel %vm335_vm1, %v438_v54, 0.0  ;;  %v686_v34 = vmul.f32 %v598_v59, %v9502_v55 }
 0x21c   : > { %v602_v61 = vmul.f32 0.5, %v601_v32  ;;  %485 = vadd.xlane.f32.xlu1 %v484_v60  ;;  %v471_v57 = vpop.xlane.xlu2 %470 }
 0x21d   : > { %v497_v63 = vmul.f32 %v471_v57, %v9404_v47  ;;  %v818_v3 = vpop.f32.mrf.mxu1  ;;  %v704_v4 = vmul.f32 %v9522_v19, %v686_v34 }
 0x21e   : > { %v603_v5 = vsub.f32 1.5, %v602_v61  ;;  %v9628_v18 = vadd.f32 %v9621_v58, %v818_v3 }
 0x21f   : > { %v8841_v6 = vpop.eup %8840  ;;  %v513_v7 = vadd.f32 1e-05, %v497_v63  ;;  %v722_v16 = vadd.f32 %v9529_v26, %v704_v4 }
 0x220   : > { %v604_v12 = vmul.f32 %v8839_v56, %v603_v5  ;;  %v610_v55 = vmul.f32 %v8841_v6, %v512_v51  ;;  %v866_v14 = vsel %vm335_vm1, %v9628_v18, 0.0  ;;  %vm616_vm2 = vweird.f32 %v8841_v6 }
 0x221   : > { %8842 = vrsqrt.f32 %v513_v7  ;;  %867 = vadd.xlane.f32.xlu2 %v866_v14  ;;  %v738_v39 = vmax.f32 %v722_v16, 0.0  ;;  %vm617_vm4 = vmor %vm615_vm3, %vm616_vm2  ;;  %vm625_vm6 = vweird.f32 %v513_v7 }
 0x222   : > { %v611_v15 = vmul.f32 %v8841_v6, %v610_v55  ;;  %v608_v10 = vsel %vm607_vm15, %v8839_v56, %v604_v12 }
 0x223   : > { %8265 = vmatmul.msk.f32.gmra.mxu1 %vm335_vm1, %v738_v39  ;;  %v687_v17 = vmul.f32 %v608_v10, %v9513_v11 }
 0x224   : > { %v612_v20 = vmul.f32 0.5, %v611_v15  ;;  %v474_v21 = vpop.xlane.xlu0 %473 }
 0x225   : > { %v498_v0 = vmul.f32 %v474_v21, %v9404_v47  ;;  %v821_v22 = vpop.f32.mrf.mxu1  ;;  %v705_v27 = vmul.f32 %v9522_v19, %v687_v17 }
 0x226   : > { %v613_v25 = vsub.f32 1.5, %v612_v20  ;;  %v9638_v1 = vadd.f32 %v9621_v58, %v821_v22 }
 0x227   : > { %v8843_v28 = vpop.eup %8842  ;;  %v514_v29 = vadd.f32 1e-05, %v498_v0  ;;  %v723_v30 = vadd.f32 %v9529_v26, %v705_v27 }
 0x228   : > { %v614_v31 = vmul.f32 %v8841_v6, %v613_v25  ;;  %v620_v35 = vmul.f32 %v8843_v28, %v513_v7  ;;  %v869_v11 = vsel %vm335_vm1, %v9638_v1, 0.0  ;;  %vm626_vm5 = vweird.f32 %v8843_v28 }
 0x229   : > { %8844 = vrsqrt.f32 %v514_v29  ;;  %870 = vadd.xlane.f32.xlu0 %v869_v11  ;;  %v739_v50 = vmax.f32 %v723_v30, 0.0  ;;  %vm627_vm7 = vmor %vm625_vm6, %vm626_vm5  ;;  %vm635_vm9 = vweird.f32 %v514_v29 }
 0x22a   : > { %v621_v24 = vmul.f32 %v8843_v28, %v620_v35  ;;  %v618_v37 = vsel %vm617_vm4, %v8841_v6, %v614_v31 }
 0x22b   : > { %8266 = vmatmul.msk.f32.gmra.mxu1 %vm335_vm1, %v739_v50  ;;  %v688_v33 = vmul.f32 %v618_v37, %v9538_v38 }
 0x22c   : > { %v622_v41 = vmul.f32 0.5, %v621_v24  ;;  %v477_v40 = vpop.xlane.xlu1 %476 }
 0x22d   : > { %v499_v42 = vmul.f32 %v477_v40, %v9404_v47  ;;  %v824_v43 = vpop.f32.mrf.mxu1  ;;  %v706_v13 = vmul.f32 %v9522_v19, %v688_v33 }
 0x22e   : > { %v623_v44 = vsub.f32 1.5, %v622_v41  ;;  %v9648_v46 = vadd.f32 %v9621_v58, %v824_v43 }
 0x22f   : > { %v8845_v8 = vpop.eup %8844  ;;  %v515_v9 = vadd.f32 1e-05, %v499_v42  ;;  %v724_v48 = vadd.f32 %v9529_v26, %v706_v13 }
 0x230   : > { %v624_v56 = vmul.f32 %v8843_v28, %v623_v44  ;;  %v630_v51 = vmul.f32 %v8845_v8, %v514_v29  ;;  %v872_v38 = vsel %vm335_vm1, %v9648_v46, 0.0  ;;  %vm636_vm8 = vweird.f32 %v8845_v8 }
 0x231   : > { %8846 = vrsqrt.f32 %v515_v9  ;;  %873 = vadd.xlane.f32.xlu1 %v872_v38  ;;  %v740_v52 = vmax.f32 %v724_v48, 0.0  ;;  %vm637_vm10 = vmor %vm635_vm9, %vm636_vm8  ;;  %vm645_vm12 = vweird.f32 %v515_v9 }
 0x232   : > { %v631_v53 = vmul.f32 %v8845_v8, %v630_v51  ;;  %v628_v54 = vsel %vm627_vm7, %v8843_v28, %v624_v56 }
 0x233   : > { %8267 = vmatmul.msk.f32.gmra.mxu1 %vm335_vm1, %v740_v52  ;;  %v689_v32 = vmul.f32 %v628_v54, %v9552_v62 }
 0x234   : > { %v632_v59 = vmul.f32 0.5, %v631_v53  ;;  %v480_v60 = vpop.xlane.xlu2 %479 }
 0x235   : > { %v500_v34 = vmul.f32 %v480_v60, %v9404_v47  ;;  %v827_v61 = vpop.f32.mrf.mxu1  ;;  %v707_v57 = vmul.f32 %v9522_v19, %v689_v32 }
 0x236   : > { %v633_v63 = vsub.f32 1.5, %v632_v59  ;;  %v9658_v3 = vadd.f32 %v9621_v58, %v827_v61 }
 0x237   : > { %v8847_v4 = vpop.eup %8846  ;;  %v516_v5 = vadd.f32 1e-05, %v500_v34  ;;  %v725_v6 = vadd.f32 %v9529_v26, %v707_v57 }
 0x238   : > { %v634_v7 = vmul.f32 %v8845_v8, %v633_v63  ;;  %v640_v16 = vmul.f32 %v8847_v4, %v515_v9  ;;  %v875_v62 = vsel %vm335_vm1, %v9658_v3, 0.0  ;;  %vm646_vm11 = vweird.f32 %v8847_v4 }
 0x239   : > { %8848 = vrsqrt.f32 %v516_v5  ;;  %876 = vadd.xlane.f32.xlu2 %v875_v62  ;;  %v741_v12 = vmax.f32 %v725_v6, 0.0  ;;  %vm647_vm13 = vmor %vm645_vm12, %vm646_vm11  ;;  %vm655_vm15 = vweird.f32 %v516_v5 }
 0x23a   : > { %v641_v55 = vmul.f32 %v8847_v4, %v640_v16  ;;  %v638_v14 = vsel %vm637_vm10, %v8845_v8, %v634_v7 }
 0x23b   : > { %8268 = vmatmul.msk.f32.gmra.mxu1 %vm335_vm1, %v741_v12  ;;  %v690_v39 = vmul.f32 %v638_v14, %v9564_v23 }
 0x23c   : > { %v642_v15 = vmul.f32 0.5, %v641_v55 }
 0x23d   : > { %v830_v10 = vpop.f32.mrf.mxu1  ;;  %v708_v17 = vmul.f32 %v9522_v19, %v690_v39 }
 0x23e   : > { %v643_v20 = vsub.f32 1.5, %v642_v15  ;;  %v9667_v21 = vadd.f32 %v9621_v58, %v830_v10 }
 0x23f   : > { %v8849_v0 = vpop.eup %8848  ;;  %v726_v22 = vadd.f32 %v9529_v26, %v708_v17 }
 0x240   : > { %v644_v27 = vmul.f32 %v8847_v4, %v643_v20  ;;  %v650_v25 = vmul.f32 %v8849_v0, %v516_v5  ;;  %v878_v28 = vsel %vm335_vm1, %v9667_v21, 0.0  ;;  %vm656_vm14 = vweird.f32 %v8849_v0 }
 0x241   : > { %879 = vadd.xlane.f32.xlu0 %v878_v28  ;;  %v742_v23 = vmax.f32 %v726_v22, 0.0  ;;  %vm657_vm2 = vmor %vm655_vm15, %vm656_vm14 }
 0x242   : > { %v651_v29 = vmul.f32 %v8849_v0, %v650_v25  ;;  %v648_v30 = vsel %vm647_vm13, %v8847_v4, %v644_v27 }
 0x243   : > { %8269 = vmatmul.msk.f32.gmra.mxu1 %vm335_vm1, %v742_v23  ;;  %v691_v31 = vmul.f32 %v648_v30, %v9576_v45 }
 0x244   : > { %v652_v35 = vmul.f32 0.5, %v651_v29 }
 0x245   : > { %v833_v11 = vpop.f32.mrf.mxu1  ;;  %v709_v50 = vmul.f32 %v9522_v19, %v691_v31 }
 0x246   : > { %v653_v24 = vsub.f32 1.5, %v652_v35  ;;  %v9676_v37 = vadd.f32 %v9621_v58, %v833_v11 }
 0x247   : > { %v727_v33 = vadd.f32 %v9529_v26, %v709_v50 }
 0x248   : > { %v654_v41 = vmul.f32 %v8849_v0, %v653_v24  ;;  %v881_v40 = vsel %vm335_vm1, %v9676_v37, 0.0 }
 0x249   : > { %882 = vadd.xlane.f32.xlu1 %v881_v40  ;;  %v743_v42 = vmax.f32 %v727_v33, 0.0 }
 0x24a   : > { %v658_v45 = vsel %vm657_vm2, %v8849_v0, %v654_v41 }
 0x24b   : > { %8270 = vmatmul.msk.f32.gmra.mxu1 %vm335_vm1, %v743_v42  ;;  %v692_v43 = vmul.f32 %v658_v45, %v9587_v2 }
 0x24d   : > { %v836_v13 = vpop.f32.mrf.mxu1  ;;  %v710_v44 = vmul.f32 %v9522_v19, %v692_v43 }
 0x24e   : > { %v9685_v8 = vadd.f32 %v9621_v58, %v836_v13 }
 0x24f   : > { %v728_v9 = vadd.f32 %v9529_v26, %v710_v44 }
 0x250   : > { %v884_v48 = vsel %vm335_vm1, %v9685_v8, 0.0 }
 0x251   : > { %885 = vadd.xlane.f32.xlu2 %v884_v48  ;;  %v744_v56 = vmax.f32 %v728_v9, 0.0 }
 0x253   : > { %8271 = vmatmul.msk.f32.gmra.mxu1 %vm335_vm1, %v744_v56 }
 0x287   : > { %v483_v51 = vpop.xlane.xlu0 %482 }
 0x288   : > { %v501_v38 = vmul.f32 %v483_v51, %v9404_v47 }
 0x28a   : > { %v517_v52 = vadd.f32 1e-05, %v501_v38 }
 0x28c   : > { %8850 = vrsqrt.f32 %v517_v52  ;;  %vm665_vm4 = vweird.f32 %v517_v52 }
 0x28f   : > { %v486_v2 = vpop.xlane.xlu1 %485 }
 0x290   : > { %v502_v53 = vmul.f32 %v486_v2, %v9404_v47 }
 0x292   : > { %v8851_v54 = vpop.eup %8850  ;;  %v518_v32 = vadd.f32 1e-05, %v502_v53 }
 0x293   : > { %v660_v59 = vmul.f32 %v8851_v54, %v517_v52  ;;  %vm666_vm3 = vweird.f32 %v8851_v54 }
 0x294   : > { %8852 = vrsqrt.f32 %v518_v32  ;;  %v868_v60 = vpop.xlane.xlu2 %867  ;;  %vm667_vm5 = vmor %vm665_vm4, %vm666_vm3  ;;  %vm675_vm7 = vweird.f32 %v518_v32 }
 0x295   : > { %v661_v34 = vmul.f32 %v8851_v54, %v660_v59  ;;  %v914_v61 = vmul.f32 %v868_v60, %v9404_v47 }
 0x297   : > { %v662_v57 = vmul.f32 0.5, %v661_v34  ;;  %v9695_v63 = vsub.f32 %v9628_v18, %v914_v61 }
 0x299   : > { %v663_v4 = vsub.f32 1.5, %v662_v57  ;;  %v946_v5 = vmul.f32 %v9695_v63, %v9695_v63 }
 0x29a   : > { %v8853_v6 = vpop.eup %8852 }
 0x29b   : > { %v664_v7 = vmul.f32 %v8851_v54, %v663_v4  ;;  %v670_v16 = vmul.f32 %v8853_v6, %v518_v32  ;;  %v962_v62 = vsel %vm335_vm1, %v946_v5, 0.0  ;;  %vm676_vm6 = vweird.f32 %v8853_v6 }
 0x29c   : > { %963 = vadd.xlane.f32.xlu0 %v962_v62  ;;  %v871_v12 = vpop.xlane.xlu0 %870  ;;  %vm677_vm8 = vmor %vm675_vm7, %vm676_vm6 }
 0x29d   : > { %v671_v55 = vmul.f32 %v8853_v6, %v670_v16  ;;  %v915_v14 = vmul.f32 %v871_v12, %v9404_v47  ;;  %v668_v39 = vsel %vm667_vm5, %v8851_v54, %v664_v7 }
 0x29e   : > { %v693_v18 = vmul.f32 %v668_v39, %v9606_v36 }
 0x29f   : > { %v672_v15 = vmul.f32 0.5, %v671_v55  ;;  %v9703_v10 = vsub.f32 %v9638_v1, %v915_v14 }
 0x2a0   : > { %v839_v17 = vpop.f32.mrf.mxu1  ;;  %v711_v20 = vmul.f32 %v9522_v19, %v693_v18  ;;  %v1273_v18 = vld [vmem:[%s13355_s2 + $0x48] sm:$0xff] }
 0x2a1   : > { %v673_v0 = vsub.f32 1.5, %v672_v15  ;;  %v9707_v22 = vadd.f32 %v9621_v58, %v839_v17  ;;  %v947_v27 = vmul.f32 %v9703_v10, %v9703_v10  ;;  %1336 = vmatpush.msrb.mxu1 %v1273_v18  ;;  %8612 = vmatpush.msra.mxu2 %v1273_v18  ;;  %v1272_v15 = vld [vmem:[%s13355_s2 + $0x40] sm:$0xff]  ;;  %v1271_v17 = vld [vmem:[%s13355_s2 + $0x38] sm:$0xff] }
 0x2a2   : > { %v729_v25 = vadd.f32 %v9529_v26, %v711_v20  ;;  %8613 = vmatpush.msra.mxu3 %v1273_v18  ;;  %v1270_v20 = vld [vmem:[%s13355_s2 + $0x30] sm:$0xff] }
 0x2a3   : > { %v674_v28 = vmul.f32 %v8853_v6, %v673_v0  ;;  %v887_v36 = vsel %vm335_vm1, %v9707_v22, 0.0  ;;  %v965_v1 = vsel %vm335_vm1, %v947_v27, 0.0  ;;  %1337 = vmatpush.msrb.mxu1 %v1272_v15  ;;  %8614 = vmatpush.msra.mxu2 %v1272_v15 }
 0x2a4   : > { %v874_v23 = vpop.xlane.xlu1 %873  ;;  %888 = vadd.xlane.f32.xlu2 %v887_v36  ;;  %966 = vadd.xlane.f32.xlu1 %v965_v1  ;;  %v745_v29 = vmax.f32 %v729_v25, 0.0 }
 0x2a5   : > { %v916_v30 = vmul.f32 %v874_v23, %v9404_v47  ;;  %v678_v31 = vsel %vm677_vm8, %v8853_v6, %v674_v28  ;;  %8615 = vmatpush.msra.mxu3 %v1272_v15  ;;  %1338 = vmatpush.msrb.mxu1 %v1271_v17 }
 0x2a6   : > { %8272 = vmatmul.msk.f32.gmra.mxu1 %vm335_vm1, %v745_v29  ;;  %v694_v35 = vmul.f32 %v678_v31, %v9614_v49  ;;  %8616 = vmatpush.msra.mxu2 %v1271_v17 }
 0x2a7   : > { %v9719_v11 = vsub.f32 %v9648_v46, %v916_v30  ;;  %8617 = vmatpush.msra.mxu3 %v1271_v17  ;;  %1339 = vmatpush.msrb.mxu1 %v1270_v20 }
 0x2a8   : > { %v842_v50 = vpop.f32.mrf.mxu1  ;;  %v712_v24 = vmul.f32 %v9522_v19, %v694_v35  ;;  %8618 = vmatpush.msra.mxu2 %v1270_v20 }
 0x2a9   : > { %v9723_v33 = vadd.f32 %v9621_v58, %v842_v50  ;;  %v948_v41 = vmul.f32 %v9719_v11, %v9719_v11  ;;  %8619 = vmatpush.msra.mxu3 %v1270_v20 }
 0x2aa   : > { %v730_v40 = vadd.f32 %v9529_v26, %v712_v24 }
 0x2ab   : > { %v968_v42 = vsel %vm335_vm1, %v948_v41, 0.0  ;;  %v890_v45 = vsel %vm335_vm1, %v9723_v33, 0.0 }
 0x2ac   : > { %969 = vadd.xlane.f32.xlu0 %v968_v42  ;;  %v877_v49 = vpop.xlane.xlu2 %876  ;;  %891 = vadd.xlane.f32.xlu1 %v890_v45  ;;  %v746_v46 = vmax.f32 %v730_v40, 0.0 }
 0x2ad   : > { %v917_v43 = vmul.f32 %v877_v49, %v9404_v47 }
 0x2ae   : > { %8273 = vmatmul.msk.f32.gmra.mxu1 %vm335_vm1, %v746_v46 }
 0x2af   : > { %v9734_v19 = vsub.f32 %v9658_v3, %v917_v43 }
 0x2b0   : > { %v845_v13 = vpop.f32.mrf.mxu1 }
 0x2b1   : > { %v9737_v44 = vadd.f32 %v9621_v58, %v845_v13  ;;  %v949_v26 = vmul.f32 %v9734_v19, %v9734_v19 }
 0x2b3   : > { %v971_v9 = vsel %vm335_vm1, %v949_v26, 0.0  ;;  %v893_v48 = vsel %vm335_vm1, %v9737_v44, 0.0 }
 0x2b4   : > { %972 = vadd.xlane.f32.xlu2 %v971_v9  ;;  %894 = vadd.xlane.f32.xlu0 %v893_v48  ;;  %v880_v56 = vpop.xlane.xlu0 %879 }
 0x2b5   : > { %v918_v51 = vmul.f32 %v880_v56, %v9404_v47 }
 0x2b7   : > { %v9746_v3 = vsub.f32 %v9667_v21, %v918_v51 }
 0x2b8   : > { %v848_v38 = vpop.f32.mrf.mxu1 }
 0x2b9   : > { %v9749_v52 = vadd.f32 %v9621_v58, %v848_v38  ;;  %v950_v2 = vmul.f32 %v9746_v3, %v9746_v3 }
 0x2bb   : > { %v896_v53 = vsel %vm335_vm1, %v9749_v52, 0.0  ;;  %v974_v54 = vsel %vm335_vm1, %v950_v2, 0.0  ;;  %v9819_v2 = vld [vmem:[%s13356_s3 + $0x4] ss:$0 sm:$0xff] }
 0x2bc   : > { %v883_v32 = vpop.xlane.xlu1 %882  ;;  %897 = vadd.xlane.f32.xlu2 %v896_v53  ;;  %975 = vadd.xlane.f32.xlu1 %v974_v54 }
 0x2bd   : > { %v919_v59 = vmul.f32 %v883_v32, %v9404_v47 }
 0x2bf   : > { %v9758_v21 = vsub.f32 %v9676_v37, %v919_v59 }
 0x2c0   : > { %v851_v60 = vpop.f32.mrf.mxu1 }
 0x2c1   : > { %v9761_v34 = vadd.f32 %v9621_v58, %v851_v60  ;;  %v951_v61 = vmul.f32 %v9758_v21, %v9758_v21  ;;  %v9828_v60 = vld [vmem:[%s13356_s3 + $0x5] ss:$0 sm:$0xff] }
 0x2c3   : > { %v977_v57 = vsel %vm335_vm1, %v951_v61, 0.0  ;;  %v899_v4 = vsel %vm335_vm1, %v9761_v34, 0.0 }
 0x2c4   : > { %v886_v5 = vpop.xlane.xlu2 %885  ;;  %978 = vadd.xlane.f32.xlu0 %v977_v57  ;;  %900 = vadd.xlane.f32.xlu1 %v899_v4 }
 0x2c5   : > { %v920_v6 = vmul.f32 %v886_v5, %v9404_v47 }
 0x2c7   : > { %v9770_v37 = vsub.f32 %v9685_v8, %v920_v6 }
 0x2c8   : > { %v854_v7 = vpop.f32.mrf.mxu1 }
 0x2c9   : > { %v9773_v16 = vadd.f32 %v9621_v58, %v854_v7  ;;  %v952_v62 = vmul.f32 %v9770_v37, %v9770_v37 }
 0x2cb   : > { %v980_v12 = vsel %vm335_vm1, %v952_v62, 0.0  ;;  %v902_v55 = vsel %vm335_vm1, %v9773_v16, 0.0 }
 0x2cc   : > { %981 = vadd.xlane.f32.xlu2 %v980_v12  ;;  %903 = vadd.xlane.f32.xlu0 %v902_v55 }
 0x2d0   : > { %v857_v14 = vpop.f32.mrf.mxu1 }
 0x2d1   : > { %v9781_v39 = vadd.f32 %v9621_v58, %v857_v14 }
 0x2d3   : > { %v905_v8 = vsel %vm335_vm1, %v9781_v39, 0.0 }
 0x2d4   : > { %906 = vadd.xlane.f32.xlu2 %v905_v8 }
 0x30f   : > { %v964_v0 = vpop.xlane.xlu0 %963 }
 0x310   : > { %v1010_v27 = vmul.f32 %v964_v0, %v9404_v47 }
 0x312   : > { %v1026_v25 = vadd.f32 1e-05, %v1010_v27 }
 0x314   : > { %8854 = vrsqrt.f32 %v1026_v25  ;;  %vm1048_vm10 = vweird.f32 %v1026_v25 }
 0x317   : > { %v889_v28 = vpop.xlane.xlu2 %888  ;;  %v967_v36 = vpop.xlane.xlu1 %966 }
 0x318   : > { %v921_v1 = vmul.f32 %v889_v28, %v9404_v47  ;;  %v1011_v23 = vmul.f32 %v967_v36, %v9404_v47 }
 0x31a   : > { %v8855_v29 = vpop.eup %8854  ;;  %v9801_v30 = vsub.f32 %v9707_v22, %v921_v1  ;;  %v1027_v31 = vadd.f32 1e-05, %v1011_v23 }
 0x31b   : > { %v1043_v35 = vmul.f32 %v8855_v29, %v1026_v25  ;;  %vm1049_vm9 = vweird.f32 %v8855_v29 }
 0x31c   : > { %8856 = vrsqrt.f32 %v1027_v31  ;;  %v953_v50 = vmul.f32 %v9801_v30, %v9801_v30  ;;  %vm1050_vm11 = vmor %vm1048_vm10, %vm1049_vm9  ;;  %vm1058_vm13 = vweird.f32 %v1027_v31 }
 0x31d   : > { %v1044_v24 = vmul.f32 %v8855_v29, %v1043_v35 }
 0x31e   : > { %v983_v41 = vsel %vm335_vm1, %v953_v50, 0.0 }
 0x31f   : > { %v1045_v40 = vmul.f32 0.5, %v1044_v24  ;;  %v892_v42 = vpop.xlane.xlu1 %891  ;;  %984 = vadd.xlane.f32.xlu1 %v983_v41  ;;  %v970_v45 = vpop.xlane.xlu0 %969 }
 0x320   : > { %v922_v49 = vmul.f32 %v892_v42, %v9404_v47  ;;  %v1012_v46 = vmul.f32 %v970_v45, %v9404_v47 }
 0x321   : > { %v1046_v43 = vsub.f32 1.5, %v1045_v40 }
 0x322   : > { %v8857_v22 = vpop.eup %8856  ;;  %v9809_v13 = vsub.f32 %v9723_v33, %v922_v49  ;;  %v1028_v26 = vadd.f32 1e-05, %v1012_v46 }
 0x323   : > { %v1047_v9 = vmul.f32 %v8855_v29, %v1046_v43  ;;  %v1053_v48 = vmul.f32 %v8857_v22, %v1027_v31  ;;  %v860_v56 = vpop.f32.mrf.mxu1  ;;  %vm1059_vm12 = vweird.f32 %v8857_v22 }
 0x324   : > { %8858 = vrsqrt.f32 %v1028_v26  ;;  %v9812_v51 = vadd.f32 %v9621_v58, %v860_v56  ;;  %v954_v38 = vmul.f32 %v9809_v13, %v9809_v13  ;;  %vm1060_vm14 = vmor %vm1058_vm13, %vm1059_vm12  ;;  %vm1068_vm2 = vweird.f32 %v1028_v26 }
 0x325   : > { %v1051_v33 = vsel %vm1050_vm11, %v8855_v29, %v1047_v9  ;;  %v1054_v53 = vmul.f32 %v8857_v22, %v1053_v48 }
 0x326   : > { %v1202_v54 = vmul.f32 %v1051_v33, %v9695_v63  ;;  %v986_v32 = vsel %vm335_vm1, %v954_v38, 0.0  ;;  %v908_v59 = vsel %vm335_vm1, %v9812_v51, 0.0 }
 0x327   : > { %v1055_v61 = vmul.f32 0.5, %v1054_v53  ;;  %v973_v57 = vpop.xlane.xlu2 %972  ;;  %987 = vadd.xlane.f32.xlu0 %v986_v32  ;;  %909 = vadd.xlane.f32.xlu1 %v908_v59  ;;  %v895_v4 = vpop.xlane.xlu0 %894 }
 0x328   : > { %v1013_v5 = vmul.f32 %v973_v57, %v9404_v47  ;;  %v923_v6 = vmul.f32 %v895_v4, %v9404_v47  ;;  %v1220_v63 = vmul.f32 %v9819_v2, %v1202_v54 }
 0x329   : > { %v1056_v7 = vsub.f32 1.5, %v1055_v61 }
 0x32a   : > { %v8859_v62 = vpop.eup %8858  ;;  %v1029_v12 = vadd.f32 1e-05, %v1013_v5  ;;  %v9834_v55 = vsub.f32 %v9737_v44, %v923_v6  ;;  %v9837_v14 = vadd.f32 %v9828_v60, %v1220_v63 }
 0x32b   : > { %v1057_v8 = vmul.f32 %v8857_v22, %v1056_v7  ;;  %v1063_v18 = vmul.f32 %v8859_v62, %v1028_v26  ;;  %v863_v15 = vpop.f32.mrf.mxu1  ;;  %vm1069_vm15 = vweird.f32 %v8859_v62 }
 0x32c   : > { %13410 = vst [vmem:[#allocation3_spill] sm:$0xff] %v9837_v14  ;;  %8860 = vrsqrt.f32 %v1029_v12  ;;  %v9840_v17 = vadd.f32 %v9621_v58, %v863_v15  ;;  %v13373_v20 = vmax.f32 %v9837_v14, 0.0  ;;  %v955_v27 = vmul.f32 %v9834_v55, %v9834_v55  ;;  %vm1070_vm3 = vmor %vm1068_vm2, %vm1069_vm15 }
 0x32d   : > { %v1064_v0 = vmul.f32 %v8859_v62, %v1063_v18  ;;  %v1061_v44 = vsel %vm1060_vm14, %v8857_v22, %v1057_v8  ;;  %vm1078_vm5 = vweird.f32 %v1029_v12 }
 0x32e   : > { %8274 = vmatmul.msk.f32.vlgmr.msrb.gmra.mxu1 %vm335_vm1, %v13373_v20  ;;  %v911_v25 = vsel %vm335_vm1, %v9840_v17, 0.0  ;;  %v1203_v28 = vmul.f32 %v1061_v44, %v9703_v10  ;;  %v989_v23 = vsel %vm335_vm1, %v955_v27, 0.0 }
 0x32f   : > { %v1065_v36 = vmul.f32 0.5, %v1064_v0  ;;  %v898_v1 = vpop.xlane.xlu2 %897  ;;  %912 = vadd.xlane.f32.xlu0 %v911_v25  ;;  %v976_v58 = vpop.xlane.xlu1 %975  ;;  %990 = vadd.xlane.f32.xlu2 %v989_v23 }
 0x330   : > { %v924_v29 = vmul.f32 %v898_v1, %v9404_v47  ;;  %v1014_v31 = vmul.f32 %v976_v58, %v9404_v47  ;;  %v1221_v35 = vmul.f32 %v9819_v2, %v1203_v28 }
 0x331   : > { %v1066_v50 = vsub.f32 1.5, %v1065_v36 }
 0x332   : > { %v8861_v24 = vpop.eup %8860  ;;  %v9856_v41 = vsub.f32 %v9749_v52, %v924_v29  ;;  %v1030_v10 = vadd.f32 1e-05, %v1014_v31  ;;  %v9859_v40 = vadd.f32 %v9828_v60, %v1221_v35 }
 0x333   : > { %v1067_v42 = vmul.f32 %v8859_v62, %v1066_v50  ;;  %v1073_v45 = vmul.f32 %v8861_v24, %v1029_v12  ;;  %vm1079_vm4 = vweird.f32 %v8861_v24 }
 0x334   : > { %13411 = vst [vmem:[#allocation4_spill] sm:$0xff] %v9859_v40  ;;  %8862 = vrsqrt.f32 %v1030_v10  ;;  %v13372_v49 = vmax.f32 %v9859_v40, 0.0  ;;  %v956_v46 = vmul.f32 %v9856_v41, %v9856_v41  ;;  %vm1080_vm6 = vmor %vm1078_vm5, %vm1079_vm4  ;;  %vm1088_vm8 = vweird.f32 %v1030_v10 }
 0x335   : > { %v1074_v43 = vmul.f32 %v8861_v24, %v1073_v45  ;;  %v1071_v22 = vsel %vm1070_vm3, %v8859_v62, %v1067_v42 }
 0x336   : > { %8275 = vmatmul.msk.f32.vlgmr.msra.gmra.mxu2 %vm335_vm1, %v13372_v49  ;;  %v992_v52 = vsel %vm335_vm1, %v956_v46, 0.0  ;;  %v1204_v9 = vmul.f32 %v1071_v22, %v9719_v11 }
 0x337   : > { %v1075_v48 = vmul.f32 0.5, %v1074_v43  ;;  %993 = vadd.xlane.f32.xlu1 %v992_v52  ;;  %v901_v26 = vpop.xlane.xlu1 %900  ;;  %v979_v56 = vpop.xlane.xlu0 %978 }
 0x338   : > { %v925_v38 = vmul.f32 %v901_v26, %v9404_v47  ;;  %v1015_v33 = vmul.f32 %v979_v56, %v9404_v47  ;;  %v1222_v53 = vmul.f32 %v9819_v2, %v1204_v9 }
 0x339   : > { %v1076_v54 = vsub.f32 1.5, %v1075_v48 }
 0x33a   : > { %v8863_v32 = vpop.eup %8862  ;;  %v9873_v59 = vsub.f32 %v9761_v34, %v925_v38  ;;  %v1031_v61 = vadd.f32 1e-05, %v1015_v33  ;;  %v9876_v57 = vadd.f32 %v9828_v60, %v1222_v53 }
 0x33b   : > { %v1077_v11 = vmul.f32 %v8861_v24, %v1076_v54  ;;  %v1083_v4 = vmul.f32 %v8863_v32, %v1030_v10  ;;  %vm1089_vm7 = vweird.f32 %v8863_v32 }
 0x33c   : > { %13412 = vst [vmem:[#allocation5_spill] sm:$0xff] %v9876_v57  ;;  %8864 = vrsqrt.f32 %v1031_v61  ;;  %v13371_v5 = vmax.f32 %v9876_v57, 0.0  ;;  %v957_v6 = vmul.f32 %v9873_v59, %v9873_v59  ;;  %vm1090_vm9 = vmor %vm1088_vm8, %vm1089_vm7  ;;  %vm1098_vm11 = vweird.f32 %v1031_v61 }
 0x33d   : > { %v1084_v63 = vmul.f32 %v8863_v32, %v1083_v4  ;;  %v1081_v7 = vsel %vm1080_vm6, %v8861_v24, %v1077_v11 }
 0x33e   : > { %8276 = vmatmul.msk.f32.gmra.mxu2 %vm335_vm1, %v13371_v5  ;;  %v995_v34 = vsel %vm335_vm1, %v957_v6, 0.0  ;;  %v1205_v62 = vmul.f32 %v1081_v7, %v9734_v19 }
 0x33f   : > { %v1085_v8 = vmul.f32 0.5, %v1084_v63  ;;  %v982_v12 = vpop.xlane.xlu2 %981  ;;  %996 = vadd.xlane.f32.xlu2 %v995_v34  ;;  %v904_v18 = vpop.xlane.xlu0 %903 }
 0x340   : > { %v1016_v15 = vmul.f32 %v982_v12, %v9404_v47  ;;  %v926_v0 = vmul.f32 %v904_v18, %v9404_v47  ;;  %v1223_v27 = vmul.f32 %v9819_v2, %v1205_v62 }
 0x341   : > { %v1086_v44 = vsub.f32 1.5, %v1085_v8 }
 0x342   : > { %v8865_v25 = vpop.eup %8864  ;;  %v1032_v28 = vadd.f32 1e-05, %v1016_v15  ;;  %v9890_v36 = vsub.f32 %v9773_v16, %v926_v0  ;;  %v9893_v1 = vadd.f32 %v9828_v60, %v1223_v27 }
 0x343   : > { %v1087_v19 = vmul.f32 %v8863_v32, %v1086_v44  ;;  %v1093_v58 = vmul.f32 %v8865_v25, %v1031_v61  ;;  %vm1099_vm10 = vweird.f32 %v8865_v25 }
 0x344   : > { %13413 = vst [vmem:[#allocation6_spill] sm:$0xff] %v9893_v1  ;;  %8866 = vrsqrt.f32 %v1032_v28  ;;  %v13370_v23 = vmax.f32 %v9893_v1, 0.0  ;;  %v958_v29 = vmul.f32 %v9890_v36, %v9890_v36  ;;  %vm1100_vm12 = vmor %vm1098_vm11, %vm1099_vm10  ;;  %vm1108_vm14 = vweird.f32 %v1032_v28 }
 0x345   : > { %v1094_v31 = vmul.f32 %v8865_v25, %v1093_v58  ;;  %v1091_v35 = vsel %vm1090_vm9, %v8863_v32, %v1087_v19 }
 0x346   : > { %8277 = vmatmul.msk.f32.gmra.mxu2 %vm335_vm1, %v13370_v23  ;;  %v998_v16 = vsel %vm335_vm1, %v958_v29, 0.0  ;;  %v1206_v50 = vmul.f32 %v1091_v35, %v9746_v3 }
 0x347   : > { %v1095_v24 = vmul.f32 0.5, %v1094_v31  ;;  %v907_v10 = vpop.xlane.xlu2 %906  ;;  %999 = vadd.xlane.f32.xlu0 %v998_v16 }
 0x348   : > { %v927_v42 = vmul.f32 %v907_v10, %v9404_v47  ;;  %v1224_v45 = vmul.f32 %v9819_v2, %v1206_v50 }
 0x349   : > { %v1096_v46 = vsub.f32 1.5, %v1095_v24 }
 0x34a   : > { %v8867_v43 = vpop.eup %8866  ;;  %v9906_v22 = vsub.f32 %v9781_v39, %v927_v42  ;;  %v9909_v52 = vadd.f32 %v9828_v60, %v1224_v45 }
 0x34b   : > { %v1097_v9 = vmul.f32 %v8865_v25, %v1096_v46  ;;  %v1103_v48 = vmul.f32 %v8867_v43, %v1032_v28  ;;  %vm1109_vm13 = vweird.f32 %v8867_v43 }
 0x34c   : > { %13414 = vst [vmem:[#allocation7_spill] sm:$0xff] %v9909_v52  ;;  %v13369_v3 = vmax.f32 %v9909_v52, 0.0  ;;  %v959_v26 = vmul.f32 %v9906_v22, %v9906_v22  ;;  %vm1110_vm15 = vmor %vm1108_vm14, %vm1109_vm13 }
 0x34d   : > { %v1104_v56 = vmul.f32 %v8867_v43, %v1103_v48  ;;  %v1101_v38 = vsel %vm1100_vm12, %v8865_v25, %v1097_v9 }
 0x34e   : > { %8278 = vmatmul.msk.f32.gmra.mxu2 %vm335_vm1, %v13369_v3  ;;  %v1001_v39 = vsel %vm335_vm1, %v959_v26, 0.0  ;;  %v1207_v33 = vmul.f32 %v1101_v38, %v9758_v21  ;;  %v9955_v26 = vld [vmem:[%s13356_s3 + $0x6] ss:$0 sm:$0xff] }
 0x34f   : > { %v1105_v53 = vmul.f32 0.5, %v1104_v56  ;;  %1002 = vadd.xlane.f32.xlu1 %v1001_v39 }
 0x350   : > { %v1225_v54 = vmul.f32 %v9819_v2, %v1207_v33 }
 0x351   : > { %v1106_v32 = vsub.f32 1.5, %v1105_v53 }
 0x352   : > { %v9921_v61 = vadd.f32 %v9828_v60, %v1225_v54 }
 0x353   : > { %v1107_v11 = vmul.f32 %v8867_v43, %v1106_v32 }
 0x354   : > { %13415 = vst [vmem:[#allocation8_spill] sm:$0xff] %v9921_v61  ;;  %v13368_v4 = vmax.f32 %v9921_v61, 0.0 }
 0x355   : > { %v1111_v6 = vsel %vm1110_vm15, %v8867_v43, %v1107_v11 }
 0x356   : > { %8279 = vmatmul.msk.f32.gmra.mxu2 %vm335_vm1, %v13368_v4  ;;  %v1208_v21 = vmul.f32 %v1111_v6, %v9770_v37 }
 0x358   : > { %v1226_v63 = vmul.f32 %v9819_v2, %v1208_v21 }
 0x35a   : > { %v9930_v7 = vadd.f32 %v9828_v60, %v1226_v63 }
 0x35c   : > { %13416 = vst [vmem:[#allocation9_spill] sm:$0xff] %v9930_v7  ;;  %v13367_v34 = vmax.f32 %v9930_v7, 0.0 }
 0x35e   : > { %8280 = vmatmul.msk.f32.gmra.mxu2 %vm335_vm1, %v13367_v34 }
 0x392   : > { %v985_v62 = vpop.xlane.xlu1 %984 }
 0x393   : > { %v1017_v8 = vmul.f32 %v985_v62, %v9404_v47 }
 0x395   : > { %v1033_v12 = vadd.f32 1e-05, %v1017_v8 }
 0x397   : > { %8868 = vrsqrt.f32 %v1033_v12  ;;  %vm1118_vm3 = vweird.f32 %v1033_v12 }
 0x39a   : > { %v910_v18 = vpop.xlane.xlu1 %909  ;;  %v988_v15 = vpop.xlane.xlu0 %987 }
 0x39b   : > { %v928_v37 = vmul.f32 %v910_v18, %v9404_v47  ;;  %v1018_v0 = vmul.f32 %v988_v15, %v9404_v47 }
 0x39d   : > { %v8869_v27 = vpop.eup %8868  ;;  %v9940_v44 = vsub.f32 %v9812_v51, %v928_v37  ;;  %v1034_v25 = vadd.f32 1e-05, %v1018_v0 }
 0x39e   : > { %v1113_v28 = vmul.f32 %v8869_v27, %v1033_v12  ;;  %vm1119_vm2 = vweird.f32 %v8869_v27 }
 0x39f   : > { %8870 = vrsqrt.f32 %v1034_v25  ;;  %v960_v19 = vmul.f32 %v9940_v44, %v9940_v44  ;;  %vm1120_vm4 = vmor %vm1118_vm3, %vm1119_vm2  ;;  %vm1128_vm6 = vweird.f32 %v1034_v25 }
 0x3a0   : > { %v1114_v58 = vmul.f32 %v8869_v27, %v1113_v28 }
 0x3a1   : > { %v1004_v29 = vsel %vm335_vm1, %v960_v19, 0.0 }
 0x3a2   : > { %v1115_v31 = vmul.f32 0.5, %v1114_v58  ;;  %1005 = vadd.xlane.f32.xlu2 %v1004_v29  ;;  %v913_v35 = vpop.xlane.xlu0 %912  ;;  %v991_v16 = vpop.xlane.xlu2 %990 }
 0x3a3   : > { %v929_v50 = vmul.f32 %v913_v35, %v9404_v47  ;;  %v1019_v51 = vmul.f32 %v991_v16, %v9404_v47 }
 0x3a4   : > { %v1116_v24 = vsub.f32 1.5, %v1115_v31 }
 0x3a5   : > { %v8871_v10 = vpop.eup %8870  ;;  %v9948_v42 = vsub.f32 %v9840_v17, %v929_v50  ;;  %v1035_v43 = vadd.f32 1e-05, %v1019_v51 }
 0x3a6   : > { %v1117_v45 = vmul.f32 %v8869_v27, %v1116_v24  ;;  %v1123_v46 = vmul.f32 %v8871_v10, %v1034_v25  ;;  %vm1129_vm5 = vweird.f32 %v8871_v10 }
 0x3a7   : > { %v961_v9 = vmul.f32 %v9948_v42, %v9948_v42  ;;  %8872 = vrsqrt.f32 %v1035_v43  ;;  %vm1130_vm7 = vmor %vm1128_vm6, %vm1129_vm5  ;;  %vm1138_vm9 = vweird.f32 %v1035_v43 }
 0x3a8   : > { %v1124_v48 = vmul.f32 %v8871_v10, %v1123_v46  ;;  %v1121_v56 = vsel %vm1120_vm4, %v8869_v27, %v1117_v45 }
 0x3a9   : > { %v1007_v38 = vsel %vm335_vm1, %v961_v9, 0.0  ;;  %v1209_v17 = vmul.f32 %v1121_v56, %v9801_v30 }
 0x3aa   : > { %v1125_v39 = vmul.f32 0.5, %v1124_v48  ;;  %v994_v33 = vpop.xlane.xlu1 %993  ;;  %1008 = vadd.xlane.f32.xlu0 %v1007_v38 }
 0x3ab   : > { %v1020_v53 = vmul.f32 %v994_v33, %v9404_v47  ;;  %v1341_v54 = vpop.f32.mrf.mxu1  ;;  %v1227_v32 = vmul.f32 %v9819_v2, %v1209_v17 }
 0x3ac   : > { %v1126_v11 = vsub.f32 1.5, %v1125_v39  ;;  %v9962_v6 = vadd.f32 %v9955_v26, %v1341_v54 }
 0x3ad   : > { %v1036_v21 = vadd.f32 1e-05, %v1020_v53  ;;  %v9965_v63 = vadd.f32 %v9828_v60, %v1227_v32  ;;  %v8873_v62 = vpop.eup %8872 }
 0x3ae   : > { %v1127_v8 = vmul.f32 %v8871_v10, %v1126_v11  ;;  %1391 = vrot.lane.b32.xlu1 %v9962_v6, %s9283_s7  ;;  %v1133_v30 = vmul.f32 %v8873_v62, %v1035_v43  ;;  %vm1139_vm8 = vweird.f32 %v8873_v62 }
 0x3af   : > { %13417 = vst [vmem:[#allocation10_spill] sm:$0xff] %v9965_v63  ;;  %8874 = vrsqrt.f32 %v1036_v21  ;;  %v13366_v12 = vmax.f32 %v9965_v63, 0.0  ;;  %vm1140_vm10 = vmor %vm1138_vm9, %vm1139_vm8  ;;  %vm1148_vm12 = vweird.f32 %v1036_v21  ;;  %vm1393_vm9 = vcmask 64512  }
 0x3b0   : > { %v1131_v18 = vsel %vm1130_vm7, %v8871_v10, %v1127_v8  ;;  %v1134_v15 = vmul.f32 %v8873_v62, %v1133_v30 }
 0x3b1   : > { %v1210_v37 = vmul.f32 %v1131_v18, %v9809_v13  ;;  %8281 = vmatmul.msk.f32.vlgmr.msra.gmra.mxu3 %vm335_vm1, %v13366_v12 }
 0x3b2   : > { %v997_v0 = vpop.xlane.xlu2 %996  ;;  %v1135_v27 = vmul.f32 0.5, %v1134_v15 }
 0x3b3   : > { %v1021_v25 = vmul.f32 %v997_v0, %v9404_v47  ;;  %v1228_v28 = vmul.f32 %v9819_v2, %v1210_v37 }
 0x3b4   : > { %v1136_v58 = vsub.f32 1.5, %v1135_v27 }
 0x3b5   : > { %v8875_v19 = vpop.eup %8874  ;;  %v1037_v29 = vadd.f32 1e-05, %v1021_v25  ;;  %v9977_v31 = vadd.f32 %v9828_v60, %v1228_v28 }
 0x3b6   : > { %v1143_v35 = vmul.f32 %v8875_v19, %v1036_v21  ;;  %v1137_v16 = vmul.f32 %v8873_v62, %v1136_v58  ;;  %vm1149_vm11 = vweird.f32 %v8875_v19 }
 0x3b7   : > { %13418 = vst [vmem:[#allocation11_spill] sm:$0xff] %v9977_v31  ;;  %8876 = vrsqrt.f32 %v1037_v29  ;;  %v13365_v13 = vmax.f32 %v9977_v31, 0.0  ;;  %vm1150_vm13 = vmor %vm1148_vm12, %vm1149_vm11  ;;  %vm1158_vm15 = vweird.f32 %v1037_v29 }
 0x3b8   : > { %v1144_v50 = vmul.f32 %v8875_v19, %v1143_v35  ;;  %v1141_v51 = vsel %vm1140_vm10, %v8873_v62, %v1137_v16 }
 0x3b9   : > { %v1344_v24 = vpop.f32.mrf.mxu2  ;;  %8282 = vmatmul.msk.f32.gmra.mxu3 %vm335_vm1, %v13365_v13  ;;  %v1211_v9 = vmul.f32 %v1141_v51, %v9834_v55 }
 0x3ba   : > { %v1145_v10 = vmul.f32 0.5, %v1144_v50  ;;  %v9981_v45 = vadd.f32 %v9955_v26, %v1344_v24  ;;  %v1000_v46 = vpop.xlane.xlu0 %999 }
 0x3bb   : > { %v1022_v43 = vmul.f32 %v1000_v46, %v9404_v47  ;;  %v1229_v56 = vmul.f32 %v9819_v2, %v1211_v9 }
 0x3bc   : > { %13419 = vst [vmem:[#allocation12_spill] sm:$0xff] %v9981_v45  ;;  %v1146_v48 = vsub.f32 1.5, %v1145_v10  ;;  %1419 = vrot.lane.b32.xlu2 %v9981_v45, %s9283_s7 }
 0x3bd   : > { %v8877_v38 = vpop.eup %8876  ;;  %v1038_v17 = vadd.f32 1e-05, %v1022_v43  ;;  %v9992_v53 = vadd.f32 %v9828_v60, %v1229_v56 }
 0x3be   : > { %v1147_v39 = vmul.f32 %v8875_v19, %v1146_v48  ;;  %v1153_v33 = vmul.f32 %v8877_v38, %v1037_v29  ;;  %vm1159_vm14 = vweird.f32 %v8877_v38 }
 0x3bf   : > { %13420 = vst [vmem:[#allocation13_spill] sm:$0xff] %v9992_v53  ;;  %8878 = vrsqrt.f32 %v1038_v17  ;;  %v13364_v54 = vmax.f32 %v9992_v53, 0.0  ;;  %vm1160_vm2 = vmor %vm1158_vm15, %vm1159_vm14  ;;  %vm1168_vm4 = vweird.f32 %v1038_v17 }
 0x3c0   : > { %v1154_v55 = vmul.f32 %v8877_v38, %v1153_v33  ;;  %v1151_v32 = vsel %vm1150_vm13, %v8875_v19, %v1147_v39 }
 0x3c1   : > { %v1347_v11 = vpop.f32.mrf.mxu2  ;;  %v1212_v62 = vmul.f32 %v1151_v32, %v9856_v41  ;;  %8283 = vmatmul.msk.f32.gmra.mxu3 %vm335_vm1, %v13364_v54 }
 0x3c2   : > { %v1155_v8 = vmul.f32 0.5, %v1154_v55  ;;  %v9997_v30 = vadd.f32 %v9955_v26, %v1347_v11  ;;  %v1003_v21 = vpop.xlane.xlu1 %1002 }
 0x3c3   : > { %v1023_v18 = vmul.f32 %v1003_v21, %v9404_v47  ;;  %v1230_v15 = vmul.f32 %v9819_v2, %v1212_v62 }
 0x3c4   : > { %v1156_v37 = vsub.f32 1.5, %v1155_v8  ;;  %1446 = vrot.lane.b32.xlu0 %v9997_v30, %s9283_s7 }
 0x3c5   : > { %v8879_v0 = vpop.eup %8878  ;;  %v1039_v41 = vadd.f32 1e-05, %v1023_v18  ;;  %v10007_v27 = vadd.f32 %v9828_v60, %v1230_v15 }
 0x3c6   : > { %v1157_v25 = vmul.f32 %v8877_v38, %v1156_v37  ;;  %v1163_v28 = vmul.f32 %v8879_v0, %v1038_v17  ;;  %vm1169_vm3 = vweird.f32 %v8879_v0 }
 0x3c7   : > { %13421 = vst [vmem:[#allocation14_spill] sm:$0xff] %v10007_v27  ;;  %8880 = vrsqrt.f32 %v1039_v41  ;;  %v13363_v19 = vmax.f32 %v10007_v27, 0.0  ;;  %vm1170_vm5 = vmor %vm1168_vm4, %vm1169_vm3  ;;  %vm1178_vm7 = vweird.f32 %v1039_v41 }
 0x3c8   : > { %v1164_v58 = vmul.f32 %v8879_v0, %v1163_v28  ;;  %v1161_v35 = vsel %vm1160_vm2, %v8877_v38, %v1157_v25 }
 0x3c9   : > { %v1350_v16 = vpop.f32.mrf.mxu2  ;;  %v1213_v50 = vmul.f32 %v1161_v35, %v9873_v59  ;;  %8284 = vmatmul.msk.f32.gmra.mxu3 %vm335_vm1, %v13363_v19 }
 0x3ca   : > { %v1165_v24 = vmul.f32 0.5, %v1164_v58  ;;  %v10012_v51 = vadd.f32 %v9955_v26, %v1350_v16 }
 0x3cb   : > { %v1231_v29 = vmul.f32 %v9819_v2, %v1213_v50 }
 0x3cc   : > { %13422 = vst [vmem:[#allocation15_spill] sm:$0xff] %v10012_v51  ;;  %v1166_v10 = vsub.f32 1.5, %v1165_v24  ;;  %1473 = vrot.lane.b32.xlu2 %v10012_v51, %s9283_s7 }
 0x3cd   : > { %v8881_v46 = vpop.eup %8880  ;;  %v10021_v9 = vadd.f32 %v9828_v60, %v1231_v29 }
 0x3ce   : > { %v1167_v59 = vmul.f32 %v8879_v0, %v1166_v10  ;;  %v1173_v43 = vmul.f32 %v8881_v46, %v1039_v41  ;;  %vm1179_vm6 = vweird.f32 %v8881_v46 }
 0x3cf   : > { %13423 = vst [vmem:[#allocation16_spill] sm:$0xff] %v10021_v9  ;;  %v13362_v48 = vmax.f32 %v10021_v9, 0.0  ;;  %vm1180_vm8 = vmor %vm1178_vm7, %vm1179_vm6 }
 0x3d0   : > { %v1174_v56 = vmul.f32 %v8881_v46, %v1173_v43  ;;  %v1171_v38 = vsel %vm1170_vm5, %v8879_v0, %v1167_v59 }
 0x3d1   : > { %v1353_v39 = vpop.f32.mrf.mxu2  ;;  %v1214_v33 = vmul.f32 %v1171_v38, %v9890_v36  ;;  %8285 = vmatmul.msk.f32.gmra.mxu3 %vm335_vm1, %v13362_v48 }
 0x3d2   : > { %v1175_v55 = vmul.f32 0.5, %v1174_v56  ;;  %v10026_v32 = vadd.f32 %v9955_v26, %v1353_v39 }
 0x3d3   : > { %v1232_v11 = vmul.f32 %v9819_v2, %v1214_v33 }
 0x3d4   : > { %v1176_v17 = vsub.f32 1.5, %v1175_v55  ;;  %1500 = vrot.lane.b32.xlu1 %v10026_v32, %s9283_s7 }
 0x3d5   : > { %v10035_v62 = vadd.f32 %v9828_v60, %v1232_v11 }
 0x3d6   : > { %v1177_v8 = vmul.f32 %v8881_v46, %v1176_v17 }
 0x3d7   : > { %13424 = vst [vmem:[#allocation17_spill] sm:$0xff] %v10035_v62  ;;  %v13361_v36 = vmax.f32 %v10035_v62, 0.0 }
 0x3d8   : > { %v1181_v21 = vsel %vm1180_vm8, %v8881_v46, %v1177_v8 }
 0x3d9   : > { %v1356_v18 = vpop.f32.mrf.mxu2  ;;  %v1215_v15 = vmul.f32 %v1181_v21, %v9906_v22  ;;  %8286 = vmatmul.msk.f32.gmra.mxu3 %vm335_vm1, %v13361_v36 }
 0x3da   : > { %v10040_v37 = vadd.f32 %v9955_v26, %v1356_v18 }
 0x3db   : > { %v1233_v0 = vmul.f32 %v9819_v2, %v1215_v15 }
 0x3dc   : > { %1527 = vrot.lane.b32.xlu0 %v10040_v37, %s9283_s7 }
 0x3dd   : > { %v10049_v41 = vadd.f32 %v9828_v60, %v1233_v0 }
 0x3df   : > { %13425 = vst [vmem:[#allocation18_spill] sm:$0xff] %v10049_v41  ;;  %v13360_v25 = vmax.f32 %v10049_v41, 0.0 }
 0x3e1   : > { %v1359_v28 = vpop.f32.mrf.mxu2  ;;  %8287 = vmatmul.msk.f32.gmra.mxu3 %vm335_vm1, %v13360_v25 }
 0x3e2   : > { %v10053_v22 = vadd.f32 %v9955_v26, %v1359_v28 }
 0x3e4   : > { %1554 = vrot.lane.b32.xlu2 %v10053_v22, %s9283_s7 }
 0x415   : > { %v1006_v58 = vpop.xlane.xlu2 %1005 }
 0x416   : > { %v1024_v35 = vmul.f32 %v1006_v58, %v9404_v47 }
 0x418   : > { %v1040_v16 = vadd.f32 1e-05, %v1024_v35 }
 0x41a   : > { %8882 = vrsqrt.f32 %v1040_v16  ;;  %vm1188_vm11 = vweird.f32 %v1040_v16 }
 0x41d   : > { %v1009_v50 = vpop.xlane.xlu0 %1008  ;;  %v1420_v43 = vpop.permute.xlu2 %1419 }
 0x41e   : > { %v1025_v24 = vmul.f32 %v1009_v50, %v9404_v47 }
 0x420   : > { %v8883_v29 = vpop.eup %8882  ;;  %v1041_v10 = vadd.f32 1e-05, %v1025_v24  ;;  %v1392_v46 = vpop.permute.xlu1 %1391 }
 0x421   : > { %v1183_v59 = vmul.f32 %v8883_v29, %v1040_v16  ;;  %8290 = vmatpush.xpose.msk.msrb.mxu3 %vm1393_vm9, %v1392_v46  ;;  %vm1189_vm10 = vweird.f32 %v8883_v29 }
 0x422   : > { %8884 = vrsqrt.f32 %v1041_v10  ;;  %vm1190_vm12 = vmor %vm1188_vm11, %vm1189_vm10  ;;  %vm1198_vm14 = vweird.f32 %v1041_v10 }
 0x423   : > { %v1184_v56 = vmul.f32 %v8883_v29, %v1183_v59 }
 0x425   : > { %8292 = vmatpush.xpose.msk.msra.mxu3 %vm1393_vm9, %v1420_v43  ;;  %v1185_v38 = vmul.f32 0.5, %v1184_v56 }
 0x426   : > { %v1474_v56 = vpop.permute.xlu2 %1473 }
 0x427   : > { %v1186_v39 = vsub.f32 1.5, %v1185_v38 }
 0x428   : > { %v8885_v33 = vpop.eup %8884 }
 0x429   : > { %v1187_v55 = vmul.f32 %v8883_v29, %v1186_v39  ;;  %v1193_v11 = vmul.f32 %v8885_v33, %v1041_v10  ;;  %vm1199_vm13 = vweird.f32 %v8885_v33 }
 0x42a   : > { %vm1200_vm15 = vmor %vm1198_vm14, %vm1199_vm13 }
 0x42b   : > { %v1194_v17 = vmul.f32 %v8885_v33, %v1193_v11  ;;  %v1191_v8 = vsel %vm1190_vm12, %v8883_v29, %v1187_v55 }
 0x42c   : > { %v1216_v21 = vmul.f32 %v1191_v8, %v9940_v44 }
 0x42d   : > { %v1195_v18 = vmul.f32 0.5, %v1194_v17 }
 0x42e   : > { %v1234_v15 = vmul.f32 %v9819_v2, %v1216_v21 }
 0x42f   : > { %v1196_v0 = vsub.f32 1.5, %v1195_v18 }
 0x430   : > { %v10067_v28 = vadd.f32 %v9828_v60, %v1234_v15 }
 0x431   : > { %v1197_v58 = vmul.f32 %v8885_v33, %v1196_v0 }
 0x432   : > { %13426 = vst [vmem:[#allocation19_spill] sm:$0xff] %v10067_v28  ;;  %v13359_v35 = vmax.f32 %v10067_v28, 0.0 }
 0x433   : > { %v1201_v16 = vsel %vm1200_vm15, %v8885_v33, %v1197_v58 }
 0x434   : > { %8288 = vmatmul.msk.f32.gmra.mxu3 %vm335_vm1, %v13359_v35  ;;  %v1217_v44 = vmul.f32 %v1201_v16, %v9948_v42  ;;  %v1362_v50 = vpop.f32.mrf.mxu3  ;;  %v8670_v35 = vpack.i.bf16 %v9997_v30, %v10012_v51 }
 0x435   : > { %v10075_v24 = vadd.f32 %v9955_v26, %v1362_v50  ;;  %v10168_v50 = vpack.i.bf16 %v10040_v37, %v9981_v45 }
 0x436   : > { %v1235_v29 = vmul.f32 %v9819_v2, %v1217_v44  ;;  %v1447_v2 = vpop.permute.xlu0 %1446 }
 0x437   : > { %1581 = vrot.lane.b32.xlu1 %v10075_v24, %s9283_s7  ;;  %v8645_v18 = vpack.i.bf16 %v10075_v24, %v10012_v51  ;;  %13429 = vst [vmem:[#allocation22_spill] sm:$0xff] %v10168_v50 }
 0x438   : > { %v10081_v10 = vadd.f32 %v9828_v60, %v1235_v29 }
 0x43a   : > { %13427 = vst [vmem:[#allocation20_spill] sm:$0xff] %v10081_v10  ;;  %v13358_v46 = vmax.f32 %v10081_v10, 0.0 }
 0x43c   : > { %8289 = vmatmul.msk.f32.gmra.mxu3 %vm335_vm1, %v13358_v46  ;;  %v1365_v59 = vpop.f32.mrf.mxu3 }
 0x43d   : > { %v10088_v42 = vadd.f32 %v9955_v26, %v1365_v59 }
 0x43e   : > { %v1555_v15 = vpop.permute.xlu2 %1554 }
 0x43f   : > { %1608 = vrot.lane.b32.xlu0 %v10088_v42, %s9283_s7 }
 0x444   : > { %8291 = vmatmul.msk.f32.vlgmr.msrb.gmra.mxu3 %vm1393_vm9, %v9962_v6  ;;  %v1368_v43 = vpop.f32.mrf.mxu3 }
 0x445   : > { %8294 = vmatpush.xpose.msk.msrb.mxu3 %vm1393_vm9, %v1447_v2  ;;  %v10096_v60 = vadd.f32 %v9955_v26, %v1368_v43 }
 0x446   : > { %v1501_v33 = vpop.permute.xlu1 %1500 }
 0x447   : > { %1635 = vrot.lane.b32.xlu2 %v10096_v60, %s9283_s7 }
 0x44c   : > { %8293 = vmatmul.msk.f32.vlgmr.msra.gmra.mxu3 %vm1393_vm9, %v9981_v45  ;;  %v1371_v38 = vpop.f32.mrf.mxu3 }
 0x44d   : > { %8296 = vmatpush.xpose.msk.msra.mxu3 %vm1393_vm9, %v1474_v56  ;;  %v10104_v39 = vadd.f32 %v9955_v26, %v1371_v38 }
 0x44e   : > { %v1528_v17 = vpop.permute.xlu0 %1527 }
 0x44f   : > { %1662 = vrot.lane.b32.xlu1 %v10104_v39, %s9283_s7 }
 0x454   : > { %8295 = vmatmul.msk.f32.vlgmr.msrb.gmra.mxu3 %vm1393_vm9, %v9997_v30  ;;  %v1374_v55 = vpop.f32.mrf.mxu3 }
 0x455   : > { %8298 = vmatpush.xpose.msk.msrb.mxu3 %vm1393_vm9, %v1501_v33  ;;  %v10112_v11 = vadd.f32 %v9955_v26, %v1374_v55 }
 0x457   : > { %1689 = vrot.lane.b32.xlu0 %v10112_v11, %s9283_s7  ;;  %v8650_v16 = vpack.i.bf16 %v10112_v11, %v9997_v30  ;;  %v8680_v54 = vpack.i.bf16 %v10104_v39, %v10112_v11 }
 0x45c   : > { %8297 = vmatmul.msk.f32.vlgmr.msra.gmra.mxu3 %vm1393_vm9, %v10012_v51  ;;  %v1377_v8 = vpop.f32.mrf.mxu3 }
 0x45d   : > { %8300 = vmatpush.xpose.msk.msra.mxu3 %vm1393_vm9, %v1528_v17  ;;  %v10120_v21 = vadd.f32 %v9955_v26, %v1377_v8 }
 0x45f   : > { %8646 = vrot.lane.b32.xlu0 %v8645_v18, %s9284_s8  ;;  %1716 = vrot.lane.b32.xlu2 %v10120_v21, %s9283_s7 }
 0x464   : > { %8299 = vmatmul.msk.f32.vlgmr.msrb.gmra.mxu3 %vm1393_vm9, %v10026_v32  ;;  %v1380_v0 = vpop.f32.mrf.mxu3 }
 0x465   : > { %8302 = vmatpush.xpose.msk.msrb.mxu3 %vm1393_vm9, %v1555_v15  ;;  %v10131_v58 = vadd.f32 %v9955_v26, %v1380_v0 }
 0x467   : > { %2500 = vrot.lane.b32.xlu0 %v10012_v51, %s9285_s9  ;;  %1743 = vrot.lane.b32.xlu1 %v10131_v58, %s9283_s7  ;;  %v10158_v44 = vpack.i.bf16 %v10131_v58, %v10096_v60 }
 0x468   : > { %2502 = vrot.lane.b32.xlu2 %v10012_v51, %s9286_s10 }
 0x469   : > { %13428 = vst [vmem:[#allocation21_spill] sm:$0xff] %v10158_v44 }
 0x46c   : > { %8301 = vmatmul.msk.f32.vlgmr.msra.gmra.mxu3 %vm1393_vm9, %v10040_v37 }
 0x46f   : > { %8651 = vrot.lane.b32.xlu1 %v8650_v16, %s9284_s8 }
 0x470   : > { %2614 = vrot.lane.b32.xlu2 %v10075_v24, %s9286_s10 }
 0x474   : > { %8303 = vmatmul.msk.f32.vlgmr.msrb.gmra.mxu3 %vm1393_vm9, %v10053_v22 }
 0x477   : > { %2612 = vrot.lane.b32.xlu1 %v10075_v24, %s9285_s9 }
 0x478   : > { %2474 = vrot.lane.b32.xlu2 %v9997_v30, %s9286_s10 }
 0x47f   : > { %2698 = vrot.lane.b32.xlu1 %v10104_v39, %s9286_s10 }
 0x480   : > { %2726 = vrot.lane.b32.xlu2 %v10112_v11, %s9286_s10 }
 0x487   : > { %8661 = vrot.lane.b32.xlu1 %v10158_v44, %s9284_s8 }
 0x488   : > { %2724 = vrot.lane.b32.xlu2 %v10112_v11, %s9285_s9 }
 0x490   : > { %2696 = vrot.lane.b32.xlu2 %v10104_v39, %s9285_s9 }
 0x498   : > { %8656 = vrot.lane.b32.xlu2 %v10168_v50, %s9284_s8 }
 0x4a0   : > { %2444 = vrot.lane.b32.xlu2 %v9981_v45, %s9285_s9 }
 0x4a1   : > { %v1636_v2 = vpop.permute.xlu2 %1635 }
 0x4a9   : > { %v1582_v29 = vpop.permute.xlu1 %1581 }
 0x4aa   : > { %8304 = vmatpush.xpose.msk.msra.mxu3 %vm1393_vm9, %v1582_v29 }
 0x4ad   : > { %8305 = vmatmul.msk.f32.vlgmr.msra.gmra.mxu3 %vm1393_vm9, %v10075_v24 }
 0x4b1   : > { %v1609_v59 = vpop.permute.xlu0 %1608 }
 0x4b2   : > { %8306 = vmatpush.xpose.msk.msrb.mxu3 %vm1393_vm9, %v1609_v59 }
 0x4b5   : > { %8307 = vmatmul.msk.f32.vlgmr.msrb.gmra.mxu3 %vm1393_vm9, %v10088_v42 }
 0x4b6   : > { %8308 = vmatpush.xpose.msk.msra.mxu3 %vm1393_vm9, %v1636_v2 }
 0x4b7   : > { %v1383_v43 = vpop.f32.mrf.mxu3 }
 0x4b8   : > { %v10182_v56 = vadd.f32 %v9955_v26, %v1383_v43 }
 0x4b9   : > { %v1717_v33 = vpop.permute.xlu2 %1716 }
 0x4ba   : > { %13430 = vst [vmem:[#allocation23_spill] sm:$0xff] %v10182_v56  ;;  %1770 = vrot.lane.b32.xlu0 %v10182_v56, %s9283_s7  ;;  %2810 = vrot.lane.b32.xlu1 %v10182_v56, %s9286_s10  ;;  %v8665_v38 = vpack.i.bf16 %v10182_v56, %v10104_v39 }
 0x4bc   : > { %8666 = vrot.lane.b32.xlu2 %v8665_v38, %s9284_s8 }
 0x4bd   : > { %8309 = vmatmul.msk.f32.vlgmr.msra.gmra.mxu3 %vm1393_vm9, %v10096_v60 }
 0x4bf   : > { %v1386_v55 = vpop.f32.mrf.mxu3 }
 0x4c0   : > { %v10194_v17 = vadd.f32 %v9955_v26, %v1386_v55 }
 0x4c1   : > { %v1663_v8 = vpop.permute.xlu1 %1662 }
 0x4c2   : > { %2472 = vrot.lane.b32.xlu0 %v9997_v30, %s9285_s9  ;;  %2782 = vrot.lane.b32.xlu1 %v10131_v58, %s9286_s10  ;;  %v10205_v18 = vpop.permute.xlu2 %2502  ;;  %v8690_v0 = vpack.i.bf16 %v10182_v56, %v10194_v17 }
 0x4c3   : > { %8310 = vmatpush.xpose.msk.msrb.mxu3 %vm1393_vm9, %v1663_v8 }
 0x4c4   : > { %1797 = vrot.lane.b32.xlu2 %v10194_v17, %s9283_s7 }
 0x4c6   : > { %8311 = vmatmul.msk.f32.vlgmr.msrb.gmra.mxu3 %vm1393_vm9, %v10104_v39 }
 0x4c7   : > { %v10207_v15 = vpop.f32.mrf.mxu3 }
 0x4c9   : > { %v1690_v26 = vpop.permute.xlu0 %1689 }
 0x4ca   : > { %2586 = vrot.lane.b32.xlu0 %v10053_v22, %s9286_s10  ;;  %3769 = vrot.lane.b32.xlu1 %v10012_v51, %s9287_s11  ;;  %v10221_v16 = vpop.permute.xlu2 %2614 }
 0x4cb   : > { %8312 = vmatpush.xpose.msk.msra.mxu3 %vm1393_vm9, %v1690_v26 }
 0x4cc   : > { %2558 = vrot.lane.b32.xlu2 %v10040_v37, %s9286_s10 }
 0x4ce   : > { %8313 = vmatmul.msk.f32.vlgmr.msra.gmra.mxu3 %vm1393_vm9, %v10112_v11 }
 0x4cf   : > { %8314 = vmatpush.xpose.msk.msrb.mxu3 %vm1393_vm9, %v1717_v33  ;;  %v1442_v43 = vpop.f32.mrf.mxu3 }
 0x4d1   : > { %v8647_v29 = vpop.permute.xlu0 %8646 }
 0x4d2   : > { %2584 = vrot.lane.b32.xlu0 %v10053_v22, %s9285_s9  ;;  %8691 = vrot.lane.b32.xlu1 %v8690_v0, %s9288_s12  ;;  %v8649_v59 = vunpack.i.h.bf16 %v8647_v29  ;;  %v8648_v2 = vunpack.i.l.bf16 %v8647_v29  ;;  %v10233_v33 = vpop.permute.xlu2 %2474 }
 0x4d4   : > { %2670 = vrot.lane.b32.xlu2 %v10096_v60, %s9286_s10  ;;  %2098 = vmatpush.msrb.mxu2 %v8648_v2 }
 0x4d6   : > { %8315 = vmatmul.msk.f32.vlgmr.msrb.gmra.mxu3 %vm1393_vm9, %v10120_v21  ;;  %2202 = vmatpush.msra.mxu2 %v8649_v59 }
 0x4d7   : > { %v1469_v55 = vpop.f32.mrf.mxu3 }
 0x4d9   : > { %v1744_v38 = vpop.permute.xlu1 %1743 }
 0x4da   : > { %2446 = vrot.lane.b32.xlu0 %v9981_v45, %s9286_s10  ;;  %8316 = vmatpush.xpose.msk.msra.mxu3 %vm1393_vm9, %v1744_v38  ;;  %v10246_v0 = vpop.permute.xlu2 %2726  ;;  %v8685_v38 = vpack.i.bf16 %v10194_v17, %v10053_v22 }
 0x4dc   : > { %2780 = vrot.lane.b32.xlu2 %v10131_v58, %s9285_s9 }
 0x4de   : > { %8317 = vmatmul.msk.f32.vlgmr.msra.gmra.mxu3 %vm1393_vm9, %v10131_v58 }
 0x4df   : > { %v1496_v29 = vpop.f32.mrf.mxu3 }
 0x4e1   : > { %v10239_v8 = vpop.permute.xlu1 %8651 }
 0x4e2   : > { %2808 = vrot.lane.b32.xlu0 %v10182_v56, %s9285_s9  ;;  %v8653_v26 = vunpack.i.l.bf16 %v10239_v8  ;;  %v10252_v59 = vpop.permute.xlu2 %2724 }
 0x4e3   : > { %13431 = vst [vmem:[#allocation24_spill] sm:$0xff] %v10252_v59 }
 0x4e4   : > { %3711 = vrot.lane.b32.xlu2 %v9981_v45, %s9289_s13  ;;  %2072 = vmatpush.msra.mxu1 %v8653_v26  ;;  %v10264_v26 = vld [vmem:[%s13354_s1] sm:$0xff] }
 0x4e5   : > { %v10267_v46 = vadd.f32 %v1496_v29, %v10264_v26  ;;  %v8675_v29 = vpack.i.bf16 %v10053_v22, %v10075_v24  ;;  %v10310_v34 = vadd.f32 %v1442_v43, %v10264_v26  ;;  %v10321_v5 = vadd.f32 %v1469_v55, %v10264_v26 }
 0x4e7   : > { %v10254_v2 = vpop.f32.mrf.mxu3  ;;  %v1832_v36 = vsel %vm1393_vm9, %v10267_v46, -inf  ;;  %v1826_v3 = vsel %vm1393_vm9, %v10310_v34, -inf  ;;  %v1829_v49 = vsel %vm1393_vm9, %v10321_v5, -inf }
 0x4ea   : > { %2556 = vrot.lane.b32.xlu0 %v10040_v37, %s9285_s9  ;;  %v10271_v25 = vpop.permute.xlu2 %2696 }
 0x4eb   : > { %13432 = vst [vmem:[#allocation25_spill] sm:$0xff] %v10271_v25 }
 0x4ec   : > { %3767 = vrot.lane.b32.xlu2 %v10012_v51, %s9289_s13 }
 0x4ef   : > { %v1550_v48 = vpop.f32.mrf.mxu3 }
 0x4f2   : > { %2668 = vrot.lane.b32.xlu0 %v10096_v60, %s9285_s9 }
 0x4f4   : > { %8686 = vrot.lane.b32.xlu2 %v8685_v38, %s9284_s8  ;;  %v10279_v38 = vadd.f32 %v1550_v48, %v10264_v26 }
 0x4f6   : > { %v1838_v19 = vsel %vm1393_vm9, %v10279_v38, -inf }
 0x4f7   : > { %v1577_v4 = vpop.f32.mrf.mxu3 }
 0x4fa   : > { %8671 = vrot.lane.b32.xlu0 %v8670_v35, %s9288_s12  ;;  %v8657_v35 = vpop.permute.xlu2 %8656 }
 0x4fc   : > { %2838 = vrot.lane.b32.xlu2 %v10194_v17, %s9286_s10  ;;  %1833 = vmax.xlane.f32.xlu1 %v1832_v36 }
 0x502   : > { %8676 = vrot.lane.b32.xlu0 %v8675_v29, %s9288_s12  ;;  %v10289_v13 = vpop.permute.xlu2 %2444  ;;  %v10299_v29 = vadd.f32 %v10207_v15, %v10264_v26 }
 0x504   : > { %1839 = vmax.xlane.f32.xlu1 %v1838_v19  ;;  %v10303_v19 = vpop.permute.xlu0 %2500 }
 0x50a   : > { %8681 = vrot.lane.b32.xlu0 %v8680_v54, %s9288_s12  ;;  %v1823_v54 = vsel %vm1393_vm9, %v10299_v29, -inf }
 0x512   : > { %3713 = vrot.lane.b32.xlu0 %v9981_v45, %s9287_s11 }
 0x516   : > { %v10293_v48 = vpop.permute.xlu2 %8666 }
 0x51a   : > { %3685 = vrot.lane.b32.xlu0 %v9962_v6, %s9287_s11 }
 0x51e   : > { %v1798_v36 = vpop.permute.xlu2 %1797 }
 0x522   : > { %3683 = vrot.lane.b32.xlu0 %v9962_v6, %s9289_s13 }
 0x525   : > { %1824 = vmax.xlane.f32.xlu2 %v1823_v54  ;;  %v8658_v54 = vunpack.i.l.bf16 %v8657_v35 }
 0x526   : > { %v10307_v12 = vpop.permute.xlu2 %2558 }
 0x52a   : > { %2836 = vrot.lane.b32.xlu0 %v10194_v17, %s9285_s9 }
 0x52c   : > { %v1771_v15 = vpop.permute.xlu0 %1770 }
 0x52d   : > { %1827 = vmax.xlane.f32.xlu2 %v1826_v3  ;;  %8318 = vmatpush.xpose.msk.msrb.mxu3 %vm1393_vm9, %v1771_v15  ;;  %v8659_v15 = vunpack.i.h.bf16 %v8657_v35 }
 0x52e   : > { %v10317_v23 = vpop.permute.xlu2 %2670 }
 0x530   : > { %8319 = vmatmul.msk.f32.vlgmr.msrb.gmra.mxu3 %vm1393_vm9, %v10182_v56  ;;  %v1604_v43 = vpop.f32.mrf.mxu3 }
 0x531   : > { %8320 = vmatpush.xpose.msk.msra.mxu3 %vm1393_vm9, %v1798_v36  ;;  %v10374_v7 = vadd.f32 %v1604_v43, %v10264_v26 }
 0x534   : > { %v10333_v55 = vpop.permute.xlu0 %2472 }
 0x535   : > { %2046 = vmatpush.msrb.mxu3 %v8658_v54  ;;  %1830 = vmax.xlane.f32.xlu2 %v1829_v49 }
 0x536   : > { %v10327_v3 = vpop.permute.xlu2 %2780 }
 0x538   : > { %8321 = vmatmul.msk.f32.vlgmr.msra.gmra.mxu3 %vm1393_vm9, %v10194_v17  ;;  %v10331_v36 = vpop.f32.mrf.mxu3 }
 0x539   : > { %2150 = vmatpush.msra.mxu3 %v8659_v15  ;;  %v10350_v15 = vadd.f32 %v10254_v2, %v10264_v26  ;;  %v10363_v2 = vadd.f32 %v1577_v4, %v10264_v26  ;;  %v1844_v4 = vsel %vm1393_vm9, %v10374_v7, -inf }
 0x53b   : > { %13435 = vst [vmem:[#allocation28_spill] sm:$0xff] %v10350_v15 }
 0x53c   : > { %v10339_v54 = vpop.permute.xlu0 %2586 }
 0x53e   : > { %v10335_v20 = vpop.permute.xlu2 %3711 }
 0x53f   : > { %13433 = vst [vmem:[#allocation26_spill] sm:$0xff] %v10335_v20 }
 0x540   : > { %v1658_v10 = vpop.f32.mrf.mxu3 }
 0x544   : > { %v10353_v27 = vpop.permute.xlu0 %2584 }
 0x546   : > { %v10337_v28 = vpop.permute.xlu2 %3767 }
 0x547   : > { %13434 = vst [vmem:[#allocation27_spill] sm:$0xff] %v10337_v28 }
 0x549   : > { %v1685_v41 = vpop.f32.mrf.mxu3 }
 0x54a   : > { %v10342_v49 = vadd.f32 %v1685_v41, %v10264_v26  ;;  %v1835_v41 = vsel %vm1393_vm9, %v10350_v15, -inf }
 0x54c   : > { %v1853_v35 = vsel %vm1393_vm9, %v10342_v49, -inf  ;;  %v10367_v63 = vpop.permute.xlu0 %2446 }
 0x54d   : > { %1854 = vmax.xlane.f32.xlu1 %v1853_v35 }
 0x54e   : > { %v10346_v62 = vpop.permute.xlu2 %8686 }
 0x54f   : > { %v8688_v9 = vunpack.i.l.bf16 %v10346_v62 }
 0x551   : > { %v1712_v53 = vpop.f32.mrf.mxu3  ;;  %2176 = vmatpush.msrb.mxu1 %v8688_v9  ;;  %v1841_v9 = vsel %vm1393_vm9, %v10363_v2, -inf }
 0x552   : > { %v10356_v31 = vadd.f32 %v1712_v53, %v10264_v26  ;;  %v10371_v53 = vpop.permute.xlu1 %2612 }
 0x553   : > { %13437 = vst [vmem:[#allocation30_spill] sm:$0xff] %v10371_v53 }
 0x554   : > { %1836 = vmax.xlane.f32.xlu0 %v1835_v41  ;;  %v1856_v35 = vsel %vm1393_vm9, %v10356_v31, -inf  ;;  %v10383_v52 = vpop.permute.xlu0 %2808 }
 0x555   : > { %1857 = vmax.xlane.f32.xlu1 %v1856_v35  ;;  %13438 = vst [vmem:[#allocation31_spill] sm:$0xff] %v10383_v52 }
 0x556   : > { %v10408_v20 = vpop.permute.xlu2 %2838 }
 0x557   : > { %13441 = vst [vmem:[#allocation34_spill] sm:$0xff] %v10408_v20 }
 0x559   : > { %v10365_v47 = vpop.f32.mrf.mxu3 }
 0x55a   : > { %13436 = vst [vmem:[#allocation29_spill] sm:$0xff] %v10365_v47  ;;  %v10388_v1 = vpop.permute.xlu1 %2698 }
 0x55c   : > { %1842 = vmax.xlane.f32.xlu0 %v1841_v9  ;;  %v10386_v9 = vadd.f32 %v1658_v10, %v10264_v26 }
 0x55e   : > { %v1850_v43 = vsel %vm1393_vm9, %v10386_v9, -inf }
 0x561   : > { %v1766_v41 = vpop.f32.mrf.mxu3 }
 0x562   : > { %v10377_v61 = vadd.f32 %v1766_v41, %v10264_v26  ;;  %v10392_v41 = vpop.permute.xlu0 %2556  ;;  %v10394_v57 = vpop.permute.xlu1 %8661 }
 0x564   : > { %1845 = vmax.xlane.f32.xlu0 %v1844_v4  ;;  %v1862_v35 = vsel %vm1393_vm9, %v10377_v61, -inf }
 0x565   : > { %1863 = vmax.xlane.f32.xlu2 %v1862_v35 }
 0x56a   : > { %v10396_v4 = vpop.permute.xlu0 %2668  ;;  %v10398_v40 = vpop.permute.xlu1 %2810 }
 0x56c   : > { %1851 = vmax.xlane.f32.xlu0 %v1850_v43 }
 0x572   : > { %v10400_v14 = vpop.permute.xlu0 %8671  ;;  %v10402_v35 = vpop.permute.xlu1 %2782 }
 0x57a   : > { %v10404_v10 = vpop.permute.xlu0 %8676  ;;  %v10406_v28 = vpop.permute.xlu1 %3769 }
 0x57b   : > { %13439 = vst [vmem:[#allocation32_spill] sm:$0xff] %v10404_v10 }
 0x57c   : > { %13440 = vst [vmem:[#allocation33_spill] sm:$0xff] %v10406_v28 }
 0x582   : > { %v10410_v51 = vpop.permute.xlu0 %8681  ;;  %v10412_v43 = vpop.permute.xlu1 %8691 }
 0x583   : > { %13442 = vst [vmem:[#allocation35_spill] sm:$0xff] %v10410_v51 }
 0x584   : > { %13443 = vst [vmem:[#allocation36_spill] sm:$0xff] %v10412_v43 }
 0x58a   : > { %v1834_v44 = vpop.xlane.xlu1 %1833  ;;  %v10416_v47 = vpop.permute.xlu0 %3713 }
 0x58b   : > { %13444 = vst [vmem:[#allocation37_spill] sm:$0xff] %v10416_v47 }
 0x592   : > { %v1840_v52 = vpop.xlane.xlu1 %1839  ;;  %v10421_v28 = vpop.permute.xlu0 %3685 }
 0x593   : > { %13445 = vst [vmem:[#allocation38_spill] sm:$0xff] %v10421_v28  ;;  %v1876_v43 = vsub.f32 %v10279_v38, %v1840_v52 }
 0x595   : > { %v1897_v10 = vmul.f32 1.442695, %v1876_v43 }
 0x598   : > { %v10414_v45 = vpop.xlane.xlu2 %1824 }
 0x5a0   : > { %v1828_v50 = vpop.xlane.xlu2 %1827 }
 0x5a1   : > { %v1872_v56 = vsub.f32 %v10310_v34, %v1828_v50  ;;  %v10429_v34 = vpop.permute.xlu0 %3683 }
 0x5a2   : > { %13446 = vst [vmem:[#allocation39_spill] sm:$0xff] %v10429_v34 }
 0x5a3   : > { %v1889_v15 = vmul.f32 1.442695, %v1872_v56 }
 0x5a5   : > { %8886 = vpow2.f32 %v1889_v15 }
 0x5a6   : > { %8888 = vpow2.f32 %v1897_v10 }
 0x5a8   : > { %v1831_v20 = vpop.xlane.xlu2 %1830 }
 0x5a9   : > { %v1873_v50 = vsub.f32 %v10321_v5, %v1831_v20  ;;  %v10444_v5 = vpop.permute.xlu0 %2836 }
 0x5aa   : > { %13447 = vst [vmem:[#allocation40_spill] sm:$0xff] %v10444_v5 }
 0x5ab   : > { %v10419_v59 = vpop.eup %8886  ;;  %v1891_v15 = vmul.f32 1.442695, %v1873_v50 }
 0x5ac   : > { %v1922_v51 = vsel %vm1393_vm9, %v10419_v59, 0.0  ;;  %v10434_v28 = vpop.eup %8888 }
 0x5ad   : > { %1923 = vadd.xlane.f32.xlu1 %v1922_v51  ;;  %v1874_v51 = vsub.f32 %v10267_v46, %v1834_v44  ;;  %8890 = vpow2.f32 %v1891_v15  ;;  %v1934_v20 = vsel %vm1393_vm9, %v10434_v28, 0.0 }
 0x5af   : > { %v1893_v10 = vmul.f32 1.442695, %v1874_v51 }
 0x5b1   : > { %8892 = vpow2.f32 %v1893_v10 }
 0x5b3   : > { %v1793_v25 = vpop.f32.mrf.mxu3 }
 0x5b4   : > { %v10427_v47 = vadd.f32 %v1793_v25, %v10264_v26 }
 0x5b6   : > { %v1865_v56 = vsel %vm1393_vm9, %v10427_v47, -inf }
 0x5b7   : > { %1866 = vmax.xlane.f32.xlu0 %v1865_v56  ;;  %v10447_v56 = vpop.eup %8890 }
 0x5b8   : > { %v1925_v44 = vsel %vm1393_vm9, %v10447_v56, 0.0 }
 0x5bb   : > { %v1820_v52 = vpop.f32.mrf.mxu3 }
 0x5bc   : > { %v10438_v38 = vadd.f32 %v1820_v52, %v10264_v26  ;;  %v10453_v52 = vpop.eup %8892 }
 0x5be   : > { %v1868_v25 = vsel %vm1393_vm9, %v10438_v38, -inf }
 0x5bf   : > { %1869 = vmax.xlane.f32.xlu2 %v1868_v25  ;;  %1935 = vadd.xlane.f32.xlu0 %v1934_v20 }
 0x5c0   : > { %v1855_v43 = vpop.xlane.xlu1 %1854 }
 0x5c1   : > { %v1881_v50 = vsub.f32 %v10342_v49, %v1855_v43  ;;  %v1928_v49 = vsel %vm1393_vm9, %v10453_v52, 0.0 }
 0x5c3   : > { %v1907_v46 = vmul.f32 1.442695, %v1881_v50 }
 0x5c5   : > { %8894 = vpow2.f32 %v1907_v46 }
 0x5c7   : > { %1926 = vadd.xlane.f32.xlu2 %v1925_v44  ;;  %v10451_v15 = vpop.xlane.xlu0 %1836 }
 0x5c8   : > { %13448 = vst [vmem:[#allocation41_spill] sm:$0xff] %v10451_v15 }
 0x5cb   : > { %v10455_v34 = vpop.eup %8894 }
 0x5cc   : > { %v1949_v51 = vsel %vm1393_vm9, %v10455_v34, 0.0 }
 0x5cd   : > { %1950 = vadd.xlane.f32.xlu0 %v1949_v51 }
 0x5cf   : > { %1929 = vadd.xlane.f32.xlu2 %v1928_v49  ;;  %v1843_v25 = vpop.xlane.xlu0 %1842  ;;  %v1858_v49 = vpop.xlane.xlu1 %1857 }
 0x5d0   : > { %v1877_v20 = vsub.f32 %v10363_v2, %v1843_v25 }
 0x5d2   : > { %v1899_v10 = vmul.f32 1.442695, %v1877_v20 }
 0x5d4   : > { %8896 = vpow2.f32 %v1899_v10 }
 0x5d7   : > { %v1846_v43 = vpop.xlane.xlu0 %1845 }
 0x5d8   : > { %v1864_v50 = vpop.xlane.xlu2 %1863  ;;  %v1878_v46 = vsub.f32 %v10374_v7, %v1846_v43  ;;  %v1882_v7 = vsub.f32 %v10356_v31, %v1858_v49 }
 0x5d9   : > { %v1884_v44 = vsub.f32 %v10377_v61, %v1864_v50 }
 0x5da   : > { %v10464_v15 = vpop.eup %8896  ;;  %v1901_v5 = vmul.f32 1.442695, %v1878_v46 }
 0x5db   : > { %v1913_v53 = vmul.f32 1.442695, %v1884_v44  ;;  %v1937_v51 = vsel %vm1393_vm9, %v10464_v15, 0.0  ;;  %v10494_v44 = vpack.i.bf16 %v10026_v32, %v9962_v6 }
 0x5dc   : > { %8898 = vpow2.f32 %v1901_v5  ;;  %1938 = vadd.xlane.f32.xlu2 %v1937_v51 }
 0x5dd   : > { %8900 = vpow2.f32 %v1913_v53  ;;  %v1909_v53 = vmul.f32 1.442695, %v1882_v7  ;;  %13449 = vst [vmem:[#allocation42_spill] sm:$0xff] %v10494_v44 }
 0x5df   : > { %v1852_v2 = vpop.xlane.xlu0 %1851 }
 0x5e0   : > { %v1880_v25 = vsub.f32 %v10386_v9, %v1852_v2 }
 0x5e2   : > { %v10469_v20 = vpop.eup %8898  ;;  %v1905_v10 = vmul.f32 1.442695, %v1880_v25  ;;  %v8663_v25 = vunpack.i.l.bf16 %v10394_v57 }
 0x5e3   : > { %v10472_v61 = vpop.eup %8900  ;;  %v1940_v43 = vsel %vm1393_vm9, %v10469_v20, 0.0 }
 0x5e4   : > { %8902 = vpow2.f32 %v1905_v10  ;;  %v1958_v5 = vsel %vm1393_vm9, %v10472_v61, 0.0  ;;  %1941 = vadd.xlane.f32.xlu1 %v1940_v43 }
 0x5e5   : > { %1959 = vadd.xlane.f32.xlu0 %v1958_v5  ;;  %8904 = vpow2.f32 %v1909_v53 }
 0x5ea   : > { %v10478_v50 = vpop.eup %8902 }
 0x5eb   : > { %v1946_v9 = vsel %vm1393_vm9, %v10478_v50, 0.0  ;;  %v10482_v31 = vpop.eup %8904 }
 0x5ec   : > { %1947 = vadd.xlane.f32.xlu1 %v1946_v9  ;;  %v1952_v46 = vsel %vm1393_vm9, %v10482_v31, 0.0 }
 0x5f4   : > { %3739 = vrot.lane.b32.xlu2 %v9997_v30, %s9289_s13  ;;  %1953 = vadd.xlane.f32.xlu1 %v1952_v46 }
 0x5f9   : > { %3851 = vrot.lane.b32.xlu0 %v10053_v22, %s9289_s13 }
 0x5fc   : > { %3823 = vrot.lane.b32.xlu2 %v10040_v37, %s9289_s13 }
 0x601   : > { %8696 = vrot.lane.b32.xlu0 %v10494_v44, %s9284_s8 }
 0x604   : > { %3795 = vrot.lane.b32.xlu2 %v10026_v32, %s9289_s13 }
 0x609   : > { %3993 = vrot.lane.b32.xlu0 %v10112_v11, %s9287_s11 }
 0x60d   : > { %3741 = vrot.lane.b32.xlu1 %v9997_v30, %s9287_s11 }
 0x611   : > { %3991 = vrot.lane.b32.xlu0 %v10112_v11, %s9289_s13 }
 0x619   : > { %3963 = vrot.lane.b32.xlu0 %v10104_v39, %s9289_s13 }
 0x620   : > { %v1924_v51 = vpop.xlane.xlu1 %1923 }
 0x621   : > { %8906 = vrcp.f32 %v1924_v51  ;;  %4049 = vrot.lane.b32.xlu0 %v10131_v58, %s9287_s11 }
 0x627   : > { %v8907_v49 = vpop.eup %8906 }
 0x628   : > { %v1984_v2 = vmul.f32 %v8907_v49, %v10419_v59 }
 0x629   : > { %4047 = vrot.lane.b32.xlu0 %v10131_v58, %s9289_s13 }
 0x62a   : > { %8323 = vmatmul.msk.f32.vlgmr.msrb.gmra.mxu3 %vm1393_vm9, %v1984_v2  ;;  %v1867_v7 = vpop.xlane.xlu0 %1866 }
 0x62b   : > { %2254 = vmatpush.msrb.mxu3 %v8663_v25  ;;  %v1885_v10 = vsub.f32 %v10427_v47, %v1867_v7  ;;  %v8664_v25 = vunpack.i.h.bf16 %v10394_v57 }
 0x62d   : > { %v1915_v43 = vmul.f32 1.442695, %v1885_v10 }
 0x62f   : > { %8908 = vpow2.f32 %v1915_v43 }
 0x631   : > { %4019 = vrot.lane.b32.xlu0 %v10120_v21, %s9289_s13 }
 0x632   : > { %v1870_v5 = vpop.xlane.xlu2 %1869  ;;  %v1936_v53 = vpop.xlane.xlu0 %1935 }
 0x633   : > { %v1886_v59 = vsub.f32 %v10438_v38, %v1870_v5  ;;  %8910 = vrcp.f32 %v1936_v53  ;;  %v8668_v53 = vunpack.i.l.bf16 %v10293_v48 }
 0x635   : > { %v10519_v9 = vpop.eup %8908  ;;  %v1917_v46 = vmul.f32 1.442695, %v1886_v59  ;;  %v8654_v59 = vunpack.i.h.bf16 %v10239_v8 }
 0x636   : > { %v1961_v51 = vsel %vm1393_vm9, %v10519_v9, 0.0 }
 0x637   : > { %8912 = vpow2.f32 %v1917_v46  ;;  %1962 = vadd.xlane.f32.xlu1 %v1961_v51 }
 0x639   : > { %v8911_v49 = vpop.eup %8910  ;;  %4103 = vrot.lane.b32.xlu0 %v10194_v17, %s9289_s13 }
 0x63a   : > { %v1988_v47 = vmul.f32 %v8911_v49, %v10434_v28  ;;  %v1927_v2 = vpop.xlane.xlu2 %1926 }
 0x63b   : > { %8914 = vrcp.f32 %v1927_v2 }
 0x63c   : > { %8327 = vmatmul.msk.f32.vlgmr.msra.gmra.mxu3 %vm1393_vm9, %v1988_v47 }
 0x63d   : > { %v10528_v38 = vpop.eup %8912  ;;  %2358 = vmatpush.msra.mxu3 %v8664_v25 }
 0x63e   : > { %v1964_v7 = vsel %vm1393_vm9, %v10528_v38, 0.0 }
 0x63f   : > { %1965 = vadd.xlane.f32.xlu2 %v1964_v7 }
 0x641   : > { %v8915_v10 = vpop.eup %8914 }
 0x642   : > { %v1985_v43 = vmul.f32 %v8915_v10, %v10447_v56  ;;  %v1930_v5 = vpop.xlane.xlu2 %1929  ;;  %v1951_v56 = vpop.xlane.xlu0 %1950  ;;  %v8689_v10 = vunpack.i.h.bf16 %v10346_v62 }
 0x643   : > { %8916 = vrcp.f32 %v1930_v5 }
 0x644   : > { %8324 = vmatmul.msk.f32.vlgmr.msra.gmra.mxu1 %vm1393_vm9, %v1985_v43 }
 0x645   : > { %2280 = vmatpush.msra.mxu1 %v8668_v53 }
 0x649   : > { %v8917_v57 = vpop.eup %8916 }
 0x64a   : > { %v1986_v28 = vmul.f32 %v8917_v57, %v10453_v52  ;;  %v8669_v52 = vunpack.i.h.bf16 %v10293_v48 }
 0x64c   : > { %8325 = vmatmul.msk.f32.vlgmr.msrb.gmra.mxu2 %vm1393_vm9, %v1986_v28 }
 0x64d   : > { %2306 = vmatpush.msrb.mxu2 %v8654_v59 }
 0x64f   : > { %v1939_v46 = vpop.xlane.xlu2 %1938 }
 0x650   : > { %8918 = vrcp.f32 %v1939_v46  ;;  %3825 = vrot.lane.b32.xlu1 %v10040_v37, %s9287_s11 }
 0x651   : > { %8920 = vrcp.f32 %v1951_v56 }
 0x656   : > { %v8919_v51 = vpop.eup %8918 }
 0x657   : > { %v1989_v49 = vmul.f32 %v8919_v51, %v10464_v15  ;;  %3879 = vrot.lane.b32.xlu2 %v10075_v24, %s9289_s13  ;;  %v1942_v47 = vpop.xlane.xlu1 %1941  ;;  %v8921_v8 = vpop.eup %8920 }
 0x658   : > { %8922 = vrcp.f32 %v1942_v47  ;;  %3797 = vrot.lane.b32.xlu1 %v10026_v32, %s9287_s11  ;;  %v1993_v25 = vmul.f32 %v8921_v8, %v10455_v34  ;;  %v1960_v48 = vpop.xlane.xlu0 %1959 }
 0x659   : > { %8328 = vmatmul.msk.f32.vlgmr.msrb.gmra.mxu1 %vm1393_vm9, %v1989_v49 }
 0x65a   : > { %2384 = vmatpush.msrb.mxu1 %v8669_v52 }
 0x65e   : > { %v8923_v2 = vpop.eup %8922 }
 0x65f   : > { %v1990_v7 = vmul.f32 %v8923_v2, %v10469_v20  ;;  %v1948_v15 = vpop.xlane.xlu1 %1947 }
 0x660   : > { %8924 = vrcp.f32 %v1948_v15  ;;  %3881 = vrot.lane.b32.xlu1 %v10075_v24, %s9287_s11 }
 0x661   : > { %8329 = vmatmul.msk.f32.vlgmr.msra.gmra.mxu2 %vm1393_vm9, %v1990_v7  ;;  %8332 = vmatmul.msk.f32.vlgmr.msra.gmra.mxu1 %vm1393_vm9, %v1993_v25  ;;  %8926 = vrcp.f32 %v1960_v48 }
 0x662   : > { %2410 = vmatpush.msra.mxu2 %v8689_v10  ;;  %8342 = vmatpush.xpose.msk.msra.mxu1 %vm1393_vm9, %v10233_v33  ;;  %v1871_v33 = vsub.f32 %v10299_v29, %v10414_v45 }
 0x664   : > { %v1887_v28 = vmul.f32 1.442695, %v1871_v33  ;;  %v13465_v33 = vld [vmem:[#allocation41_spill] sm:$0xff] }
 0x666   : > { %v8925_v43 = vpop.eup %8924 }
 0x667   : > { %v1992_v34 = vmul.f32 %v8925_v43, %v10478_v50  ;;  %v1954_v20 = vpop.xlane.xlu1 %1953  ;;  %v8927_v5 = vpop.eup %8926 }
 0x668   : > { %8928 = vrcp.f32 %v1954_v20  ;;  %3853 = vrot.lane.b32.xlu1 %v10053_v22, %s9287_s11  ;;  %v1996_v57 = vmul.f32 %v8927_v5, %v10472_v61 }
 0x669   : > { %8331 = vmatmul.msk.f32.vlgmr.msrb.gmra.mxu3 %vm1393_vm9, %v1992_v34  ;;  %8930 = vpow2.f32 %v1887_v28 }
 0x66a   : > { %8340 = vmatpush.xpose.msk.msrb.mxu3 %vm1393_vm9, %v10367_v63 }
 0x66b   : > { %v10562_v62 = vpop.permute.xlu0 %3851 }
 0x66c   : > { %13450 = vst [vmem:[#allocation43_spill] sm:$0xff] %v10562_v62 }
 0x66e   : > { %v8929_v53 = vpop.eup %8928 }
 0x66f   : > { %v1994_v50 = vmul.f32 %v8929_v53, %v10482_v31  ;;  %v8931_v61 = vpop.eup %8930 }
 0x670   : > { %3937 = vrot.lane.b32.xlu1 %v10096_v60, %s9287_s11 }
 0x671   : > { %8333 = vmatmul.msk.f32.vlgmr.msrb.gmra.mxu2 %vm1393_vm9, %v1994_v50  ;;  %8335 = vmatmul.msk.f32.vlgmr.msra.gmra.mxu3 %vm1393_vm9, %v1996_v57  ;;  %v13466_v57 = vld [vmem:[#allocation28_spill] sm:$0xff] }
 0x672   : > { %8344 = vmatpush.xpose.msk.msrb.mxu2 %vm1393_vm9, %v10205_v18  ;;  %8348 = vmatpush.xpose.msk.msra.mxu3 %vm1393_vm9, %v10307_v12  ;;  %v1919_v18 = vsel %vm1393_vm9, %v8931_v61, 0.0  ;;  %v1875_v50 = vsub.f32 %v13466_v57, %v13465_v33  ;;  %v13469_v33 = vld [vmem:[#allocation23_spill] sm:$0xff] }
 0x673   : > { %v8697_v63 = vpop.permute.xlu0 %8696 }
 0x674   : > { %v8699_v45 = vunpack.i.h.bf16 %v8697_v63  ;;  %v8698_v29 = vunpack.i.l.bf16 %v8697_v63  ;;  %v1895_v28 = vmul.f32 1.442695, %v1875_v50 }
 0x676   : > { %2020 = vmatpush.msrb.mxu0 %v8698_v29 }
 0x678   : > { %2124 = vmatpush.msra.mxu0 %v8699_v45  ;;  %3935 = vrot.lane.b32.xlu1 %v10096_v60, %s9289_s13 }
 0x679   : > { %8341 = vmatmul.msk.f32.vlgmr.msrb.gmra.mxu3 %vm1393_vm9, %v10289_v13 }
 0x67a   : > { %8356 = vmatpush.xpose.msk.msrb.mxu3 %vm1393_vm9, %v10317_v23  ;;  %v10595_v23 = vpop.permute.xlu2 %3739 }
 0x67f   : > { %v10603_v13 = vpop.permute.xlu1 %3741 }
 0x680   : > { %1920 = vadd.xlane.f32.xlu2 %v1919_v18  ;;  %3909 = vrot.lane.b32.xlu1 %v10088_v42, %s9287_s11 }
 0x681   : > { %8349 = vmatmul.msk.f32.vlgmr.msra.gmra.mxu3 %vm1393_vm9, %v10392_v41 }
 0x682   : > { %8364 = vmatpush.xpose.msk.msra.mxu3 %vm1393_vm9, %v10402_v35  ;;  %v10599_v12 = vpop.permute.xlu2 %3823 }
 0x688   : > { %3907 = vrot.lane.b32.xlu1 %v10088_v42, %s9289_s13 }
 0x689   : > { %8357 = vmatmul.msk.f32.vlgmr.msrb.gmra.mxu3 %vm1393_vm9, %v10396_v4 }
 0x68a   : > { %v10607_v41 = vpop.permute.xlu2 %3795 }
 0x68b   : > { %13451 = vst [vmem:[#allocation44_spill] sm:$0xff] %v10607_v41 }
 0x691   : > { %8365 = vmatmul.msk.f32.vlgmr.msra.gmra.mxu3 %vm1393_vm9, %v10327_v3  ;;  %v10611_v3 = vadd.f32 %v10331_v36, %v10264_v26  ;;  %v8674_v36 = vunpack.i.h.bf16 %v10400_v14 }
 0x693   : > { %v1847_v31 = vsel %vm1393_vm9, %v10611_v3, -inf }
 0x698   : > { %3965 = vrot.lane.b32.xlu2 %v10104_v39, %s9287_s11 }
 0x6a0   : > { %4021 = vrot.lane.b32.xlu2 %v10120_v21, %s9287_s11 }
 0x6a8   : > { %4105 = vrot.lane.b32.xlu2 %v10194_v17, %s9287_s11 }
 0x6aa   : > { %v1963_v4 = vpop.xlane.xlu1 %1962 }
 0x6ab   : > { %8932 = vrcp.f32 %v1963_v4 }
 0x6ad   : > { %v10654_v8 = vpop.f32.mrf.mxu3 }
 0x6b1   : > { %v8933_v35 = vpop.eup %8932 }
 0x6b2   : > { %v1997_v59 = vmul.f32 %v8933_v35, %v10519_v9  ;;  %v1966_v46 = vpop.xlane.xlu2 %1965  ;;  %1848 = vmax.xlane.f32.xlu1 %v1847_v31 }
 0x6b3   : > { %8934 = vrcp.f32 %v1966_v46 }
 0x6b4   : > { %8336 = vmatmul.msk.f32.vlgmr.msrb.gmra.mxu1 %vm1393_vm9, %v1997_v59 }
 0x6b5   : > { %8350 = vmatpush.xpose.msk.msrb.mxu1 %vm1393_vm9, %v10339_v54 }
 0x6b9   : > { %v8935_v56 = vpop.eup %8934 }
 0x6ba   : > { %v1998_v51 = vmul.f32 %v8935_v56, %v10528_v38  ;;  %v13458_v38 = vld [vmem:[#allocation40_spill] sm:$0xff]  ;;  %v10651_v49 = vpop.permute.xlu2 %3879 }
 0x6bc   : > { %8337 = vmatmul.msk.f32.vlgmr.msra.gmra.mxu2 %vm1393_vm9, %v1998_v51  ;;  %8343 = vmatmul.msk.f32.vlgmr.msra.gmra.mxu1 %vm1393_vm9, %v10333_v55  ;;  %v13452_v55 = vld [vmem:[#allocation30_spill] sm:$0xff] }
 0x6bd   : > { %8352 = vmatpush.xpose.msk.msra.mxu2 %vm1393_vm9, %v10221_v16  ;;  %8358 = vmatpush.xpose.msk.msra.mxu1 %vm1393_vm9, %v10388_v1  ;;  %v13453_v16 = vld [vmem:[#allocation25_spill] sm:$0xff]  ;;  %v13454_v1 = vld [vmem:[#allocation34_spill] sm:$0xff] }
 0x6bf   : > { %v10658_v25 = vpop.f32.mrf.mxu3 }
 0x6c1   : > { %v10656_v2 = vpop.f32.mrf.mxu1 }
 0x6c2   : > { %v10666_v48 = vpop.permute.xlu1 %3825 }
 0x6c4   : > { %8345 = vmatmul.msk.f32.vlgmr.msrb.gmra.mxu2 %vm1393_vm9, %v10303_v19  ;;  %8351 = vmatmul.msk.f32.vlgmr.msrb.gmra.mxu1 %vm1393_vm9, %v10353_v27  ;;  %v8673_v27 = vunpack.i.l.bf16 %v10400_v14  ;;  %v13455_v19 = vld [vmem:[#allocation32_spill] sm:$0xff] }
 0x6c5   : > { %8360 = vmatpush.xpose.msk.msrb.mxu2 %vm1393_vm9, %v10246_v0  ;;  %8366 = vmatpush.xpose.msk.msrb.mxu1 %vm1393_vm9, %v10398_v40  ;;  %v8679_v54 = vunpack.i.h.bf16 %v13455_v19  ;;  %v13456_v0 = vld [vmem:[#allocation24_spill] sm:$0xff]  ;;  %v13457_v40 = vld [vmem:[#allocation31_spill] sm:$0xff]  ;;  %v8678_v9 = vunpack.i.l.bf16 %v13455_v19 }
 0x6ca   : > { %v10676_v53 = vpop.permute.xlu1 %3797 }
 0x6cc   : > { %8353 = vmatmul.msk.f32.vlgmr.msra.gmra.mxu2 %vm1393_vm9, %v13452_v55  ;;  %8359 = vmatmul.msk.f32.vlgmr.msra.gmra.mxu1 %vm1393_vm9, %v13453_v16 }
 0x6cd   : > { %8368 = vmatpush.xpose.msk.msra.mxu2 %vm1393_vm9, %v13454_v1  ;;  %3113 = vmatpush.msra.mxu1 %v8674_v36 }
 0x6cf   : > { %v10664_v10 = vpop.f32.mrf.mxu2 }
 0x6d2   : > { %v10685_v18 = vpop.permute.xlu1 %3881 }
 0x6d4   : > { %8361 = vmatmul.msk.f32.vlgmr.msrb.gmra.mxu2 %vm1393_vm9, %v13456_v0  ;;  %8367 = vmatmul.msk.f32.vlgmr.msrb.gmra.mxu1 %vm1393_vm9, %v13457_v40 }
 0x6d5   : > { %3139 = vmatpush.msrb.mxu2 %v8673_v27  ;;  %3217 = vmatpush.msrb.mxu1 %v8679_v54 }
 0x6d6   : > { %v10660_v7 = vpop.f32.mrf.mxu1 }
 0x6d7   : > { %13459 = vst [vmem:[#allocation30_spill] sm:$0xff] %v10660_v7 }
 0x6da   : > { %v10700_v55 = vpop.permute.xlu1 %3853 }
 0x6dc   : > { %8369 = vmatmul.msk.f32.vlgmr.msra.gmra.mxu2 %vm1393_vm9, %v13458_v38 }
 0x6dd   : > { %3243 = vmatpush.msra.mxu2 %v8678_v9 }
 0x6de   : > { %v10668_v43 = vpop.f32.mrf.mxu1 }
 0x6df   : > { %13461 = vst [vmem:[#allocation34_spill] sm:$0xff] %v10668_v43 }
 0x6e2   : > { %v10712_v40 = vpop.permute.xlu1 %3937 }
 0x6e4   : > { %v10672_v20 = vpop.f32.mrf.mxu2 }
 0x6e5   : > { %13463 = vst [vmem:[#allocation24_spill] sm:$0xff] %v10672_v20 }
 0x6ea   : > { %v10724_v57 = vpop.permute.xlu1 %3935 }
 0x6ec   : > { %v10662_v15 = vpop.f32.mrf.mxu3 }
 0x6ed   : > { %13460 = vst [vmem:[#allocation25_spill] sm:$0xff] %v10662_v15 }
 0x6f3   : > { %v1921_v47 = vpop.xlane.xlu2 %1920 }
 0x6f4   : > { %8936 = vrcp.f32 %v1921_v47  ;;  %v10670_v34 = vpop.f32.mrf.mxu3  ;;  %v10680_v63 = vpop.f32.mrf.mxu2 }
 0x6f5   : > { %13462 = vst [vmem:[#allocation32_spill] sm:$0xff] %v10670_v34  ;;  %8938 = vpow2.f32 %v1895_v28 }
 0x6f6   : > { %13467 = vst [vmem:[#allocation40_spill] sm:$0xff] %v10680_v63 }
 0x6fa   : > { %v8937_v14 = vpop.eup %8936 }
 0x6fb   : > { %v1983_v52 = vmul.f32 %v8937_v14, %v8931_v61  ;;  %v10691_v31 = vpop.eup %8938 }
 0x6fc   : > { %v2469_v45 = vpop.f32.mrf.mxu3  ;;  %v1931_v36 = vsel %vm1393_vm9, %v10691_v31, 0.0 }
 0x6fd   : > { %8322 = vmatmul.msk.f32.vlgmr.msrb.gmra.mxu0 %vm1393_vm9, %v1983_v52 }
 0x704   : > { %v2581_v59 = vpop.f32.mrf.mxu3 }
 0x705   : > { %v10703_v1 = vadd.f32 %v2581_v59, %v10264_v26 }
 0x707   : > { %v2879_v0 = vsel %vm1393_vm9, %v10703_v1, -inf }
 0x70c   : > { %v2693_v54 = vpop.f32.mrf.mxu3 }
 0x70d   : > { %v10715_v9 = vadd.f32 %v2693_v54, %v10264_v26 }
 0x70f   : > { %v2891_v47 = vsel %vm1393_vm9, %v10715_v9, -inf }
 0x714   : > { %v2805_v14 = vpop.f32.mrf.mxu3 }
 0x715   : > { %v10720_v52 = vadd.f32 %v2805_v14, %v10264_v26 }
 0x717   : > { %v2903_v50 = vsel %vm1393_vm9, %v10720_v52, -inf }
 0x731   : > { %v10674_v5 = vpop.f32.mrf.mxu1 }
 0x732   : > { %13464 = vst [vmem:[#allocation31_spill] sm:$0xff] %v10674_v5  ;;  %v10787_v5 = vpack.i.bf16 %v10120_v21, %v10088_v42 }
 0x734   : > { %13475 = vst [vmem:[#allocation46_spill] sm:$0xff] %v10787_v5 }
 0x739   : > { %v2497_v29 = vpop.f32.mrf.mxu1 }
 0x73a   : > { %v10683_v61 = vadd.f32 %v2497_v29, %v10264_v26 }
 0x73c   : > { %v2870_v4 = vsel %vm1393_vm9, %v10683_v61, -inf }
 0x73d   : > { %2871 = vmax.xlane.f32.xlu2 %v2870_v4  ;;  %v10731_v4 = vpop.permute.xlu1 %3909 }
 0x73e   : > { %13470 = vst [vmem:[#allocation28_spill] sm:$0xff] %v10731_v4 }
 0x73f   : > { %v10689_v35 = vpop.f32.mrf.mxu2 }
 0x740   : > { %13468 = vst [vmem:[#allocation41_spill] sm:$0xff] %v10689_v35 }
 0x741   : > { %v2609_v46 = vpop.f32.mrf.mxu1 }
 0x742   : > { %v10694_v56 = vadd.f32 %v2609_v46, %v10264_v26 }
 0x744   : > { %v2882_v51 = vsel %vm1393_vm9, %v10694_v56, -inf }
 0x745   : > { %2883 = vmax.xlane.f32.xlu0 %v2882_v51  ;;  %1932 = vadd.xlane.f32.xlu2 %v1931_v36  ;;  %v10737_v46 = vpop.permute.xlu1 %3907 }
 0x746   : > { %13471 = vst [vmem:[#allocation23_spill] sm:$0xff] %v10737_v46 }
 0x747   : > { %v2525_v16 = vpop.f32.mrf.mxu2 }
 0x748   : > { %v10706_v27 = vadd.f32 %v2525_v16, %v10264_v26 }
 0x749   : > { %v2721_v38 = vpop.f32.mrf.mxu1 }
 0x74a   : > { %v2873_v19 = vsel %vm1393_vm9, %v10706_v27, -inf  ;;  %v10748_v14 = vadd.f32 %v2721_v38, %v10264_v26 }
 0x74b   : > { %2874 = vmax.xlane.f32.xlu1 %v2873_v19  ;;  %v10741_v19 = vadd.f32 %v2469_v45, %v10264_v26 }
 0x74d   : > { %2880 = vmax.xlane.f32.xlu2 %v2879_v0  ;;  %v1849_v51 = vpop.xlane.xlu1 %1848  ;;  %v2867_v54 = vsel %vm1393_vm9, %v10741_v19, -inf }
 0x74e   : > { %v1879_v36 = vsub.f32 %v10611_v3, %v1849_v51  ;;  %v2894_v3 = vsel %vm1393_vm9, %v10748_v14, -inf }
 0x750   : > { %v1903_v16 = vmul.f32 1.442695, %v1879_v36  ;;  %v10763_v36 = vpop.permute.xlu2 %3965 }
 0x751   : > { %v2833_v28 = vpop.f32.mrf.mxu1 }
 0x752   : > { %v10729_v29 = vadd.f32 %v2833_v28, %v10264_v26  ;;  %8940 = vpow2.f32 %v1903_v16  ;;  %v13472_v28 = vld [vmem:[#allocation29_spill] sm:$0xff] }
 0x753   : > { %13473 = vst [vmem:[#allocation29_spill] sm:$0xff] %v10763_v36 }
 0x754   : > { %v2906_v59 = vsel %vm1393_vm9, %v10729_v29, -inf }
 0x755   : > { %2892 = vmax.xlane.f32.xlu2 %v2891_v47  ;;  %v2637_v47 = vpop.f32.mrf.mxu2 }
 0x756   : > { %v10755_v45 = vadd.f32 %v2637_v47, %v10264_v26 }
 0x758   : > { %v10745_v0 = vpop.eup %8940  ;;  %v2885_v38 = vsel %vm1393_vm9, %v10755_v45, -inf }
 0x759   : > { %4075 = vrot.lane.b32.xlu0 %v13469_v33, %s9289_s13 }
 0x75d   : > { %2904 = vmax.xlane.f32.xlu2 %v2903_v50  ;;  %v1943_v50 = vsel %vm1393_vm9, %v10745_v0, 0.0  ;;  %v2749_v51 = vpop.f32.mrf.mxu2 }
 0x764   : > { %4077 = vrot.lane.b32.xlu1 %v13469_v33, %s9287_s11 }
 0x765   : > { %2907 = vmax.xlane.f32.xlu2 %v2906_v59  ;;  %v10759_v59 = vadd.f32 %v13472_v28, %v10264_v26 }
 0x767   : > { %v1859_v16 = vsel %vm1393_vm9, %v10759_v59, -inf }
 0x783   : > { %2868 = vmax.xlane.f32.xlu0 %v2867_v54  ;;  %v10768_v54 = vadd.f32 %v2749_v51, %v10264_v26 }
 0x785   : > { %v2897_v47 = vsel %vm1393_vm9, %v10768_v54, -inf }
 0x78b   : > { %1944 = vadd.xlane.f32.xlu0 %v1943_v50  ;;  %v2861_v50 = vpop.f32.mrf.mxu2 }
 0x78c   : > { %v10775_v28 = vadd.f32 %v2861_v50, %v10264_v26 }
 0x78e   : > { %2895 = vmax.xlane.f32.xlu1 %v2894_v3  ;;  %v10772_v3 = vpop.permute.xlu2 %4021  ;;  %v2909_v44 = vsel %vm1393_vm9, %v10775_v28, -inf }
 0x78f   : > { %13474 = vst [vmem:[#allocation45_spill] sm:$0xff] %v10772_v3 }
 0x793   : > { %2886 = vmax.xlane.f32.xlu0 %v2885_v38  ;;  %v10777_v38 = vpop.permute.xlu0 %3993 }
 0x796   : > { %1860 = vmax.xlane.f32.xlu1 %v1859_v16  ;;  %v10781_v35 = vpop.permute.xlu2 %4105 }
 0x79b   : > { %2898 = vmax.xlane.f32.xlu0 %v2897_v47  ;;  %v10783_v51 = vpop.permute.xlu0 %3991 }
 0x7a3   : > { %2910 = vmax.xlane.f32.xlu0 %v2909_v44  ;;  %v10789_v47 = vpop.permute.xlu0 %3963 }
 0x7a4   : > { %13476 = vst [vmem:[#allocation47_spill] sm:$0xff] %v10789_v47 }
 0x7ab   : > { %v10793_v34 = vpop.permute.xlu0 %4049 }
 0x7b0   : > { %v2872_v16 = vpop.xlane.xlu2 %2871 }
 0x7b1   : > { %v2914_v43 = vsub.f32 %v10683_v61, %v2872_v16 }
 0x7b3   : > { %v10797_v63 = vpop.permute.xlu0 %4047  ;;  %v2932_v15 = vmul.f32 1.442695, %v2914_v43 }
 0x7b7   : > { %8701 = vrot.lane.b32.xlu0 %v10787_v5, %s9284_s8  ;;  %s13206_s8 = scalar_lea.vmem %s13357_s4, %s8239_s22 }
 0x7b8   : > { %v1933_v26 = vpop.xlane.xlu2 %1932 }
 0x7b9   : > { %8942 = vrcp.f32 %v1933_v26 }
 0x7ba   : > { %8944 = vpow2.f32 %v2932_v15 }
 0x7bb   : > { %v10800_v3 = vpop.permute.xlu0 %4019 }
 0x7bc   : > { %13477 = vst [vmem:[#allocation48_spill] sm:$0xff] %v10800_v3 }
 0x7be   : > { %v2875_v47 = vpop.xlane.xlu1 %2874 }
 0x7bf   : > { %v8943_v50 = vpop.eup %8942  ;;  %v2915_v5 = vsub.f32 %v10706_v27, %v2875_v47 }
 0x7c0   : > { %v1987_v44 = vmul.f32 %v8943_v50, %v10691_v31  ;;  %v10803_v26 = vpop.eup %8944  ;;  %v2881_v27 = vpop.xlane.xlu2 %2880 }
 0x7c1   : > { %v2934_v46 = vmul.f32 1.442695, %v2915_v5  ;;  %v2966_v31 = vsel %vm1393_vm9, %v10803_v26, 0.0  ;;  %v2917_v47 = vsub.f32 %v10703_v1, %v2881_v27 }
 0x7c2   : > { %8326 = vmatmul.msk.f32.vlgmr.msra.gmra.mxu0 %vm1393_vm9, %v1987_v44 }
 0x7c3   : > { %v10805_v20 = vpop.permute.xlu0 %4103  ;;  %8946 = vpow2.f32 %v2934_v46  ;;  %v2938_v3 = vmul.f32 1.442695, %v2917_v47 }
 0x7c9   : > { %v10809_v50 = vpop.eup %8946 }
 0x7ca   : > { %v2969_v43 = vsel %vm1393_vm9, %v10809_v50, 0.0 }
 0x7cb   : > { %v2884_v61 = vpop.xlane.xlu0 %2883 }
 0x7cc   : > { %v2918_v7 = vsub.f32 %v10694_v56, %v2884_v61 }
 0x7d3   : > { %v10813_v15 = vpop.permute.xlu0 %4075 }
 0x7d4   : > { %13478 = vst [vmem:[#allocation49_spill] sm:$0xff] %v10813_v15 }
 0x7d6   : > { %v10817_v46 = vpop.permute.xlu1 %4077 }
 0x7d7   : > { %13479 = vst [vmem:[#allocation50_spill] sm:$0xff] %v10817_v46 }
 0x7e1   : > { %2967 = vadd.xlane.f32.xlu0 %v2966_v31  ;;  %v2893_v31 = vpop.xlane.xlu2 %2892 }
 0x7e2   : > { %v2921_v47 = vsub.f32 %v10715_v9, %v2893_v31 }
 0x7e9   : > { %2970 = vadd.xlane.f32.xlu0 %v2969_v43  ;;  %v2905_v1 = vpop.xlane.xlu2 %2904 }
 0x7f6   : > { %v2869_v5 = vpop.xlane.xlu0 %2868 }
 0x7f7   : > { %v2913_v16 = vsub.f32 %v10741_v19, %v2869_v5  ;;  %v2940_v19 = vmul.f32 1.442695, %v2918_v7  ;;  %v2946_v7 = vmul.f32 1.442695, %v2921_v47 }
 0x7f9   : > { %v2930_v44 = vmul.f32 1.442695, %v2913_v16 }
 0x7fb   : > { %8948 = vpow2.f32 %v2930_v44  ;;  %v2925_v44 = vsub.f32 %v10720_v52, %v2905_v1 }
 0x7fc   : > { %8950 = vpow2.f32 %v2938_v3 }
 0x7fd   : > { %8952 = vpow2.f32 %v2940_v19  ;;  %v2954_v4 = vmul.f32 1.442695, %v2925_v44 }
 0x7fe   : > { %v1945_v36 = vpop.xlane.xlu0 %1944 }
 0x801   : > { %v10819_v62 = vpop.eup %8948  ;;  %v10822_v43 = vpop.xlane.xlu1 %2895 }
 0x802   : > { %v2963_v15 = vsel %vm1393_vm9, %v10819_v62, 0.0  ;;  %v10826_v5 = vpop.eup %8950 }
 0x803   : > { %2964 = vadd.xlane.f32.xlu1 %v2963_v15  ;;  %v2975_v46 = vsel %vm1393_vm9, %v10826_v5, 0.0 }
 0x806   : > { %v2887_v27 = vpop.xlane.xlu0 %2886 }
 0x807   : > { %v2919_v16 = vsub.f32 %v10755_v45, %v2887_v27  ;;  %v10834_v45 = vpop.eup %8952 }
 0x809   : > { %v2942_v56 = vmul.f32 1.442695, %v2919_v16  ;;  %v1861_v3 = vpop.xlane.xlu1 %1860 }
 0x80a   : > { %v1883_v61 = vsub.f32 %v10759_v59, %v1861_v3  ;;  %v2978_v59 = vsel %vm1393_vm9, %v10834_v45, 0.0 }
 0x80b   : > { %8954 = vpow2.f32 %v2942_v56  ;;  %2976 = vadd.xlane.f32.xlu1 %v2975_v46 }
 0x80c   : > { %v1911_v15 = vmul.f32 1.442695, %v1883_v61 }
 0x80e   : > { %8956 = vpow2.f32 %v1911_v15  ;;  %v2899_v41 = vpop.xlane.xlu0 %2898 }
 0x80f   : > { %8958 = vpow2.f32 %v2946_v7  ;;  %v2923_v52 = vsub.f32 %v10768_v54, %v2899_v41 }
 0x810   : > { %8960 = vpow2.f32 %v2954_v4 }
 0x811   : > { %v10836_v9 = vpop.eup %8954  ;;  %v2950_v19 = vmul.f32 1.442695, %v2923_v52 }
 0x812   : > { %v2981_v31 = vsel %vm1393_vm9, %v10836_v9, 0.0 }
 0x813   : > { %2979 = vadd.xlane.f32.xlu1 %v2978_v59  ;;  %2982 = vadd.xlane.f32.xlu0 %v2981_v31  ;;  %8962 = vpow2.f32 %v2950_v19  ;;  %v10874_v19 = vpack.i.bf16 %v10040_v37, %v10026_v32 }
 0x814   : > { %v10843_v46 = vpop.eup %8956 }
 0x815   : > { %v1955_v1 = vsel %vm1393_vm9, %v10843_v46, 0.0  ;;  %v10847_v27 = vpop.eup %8958 }
 0x816   : > { %v2911_v16 = vpop.xlane.xlu0 %2910  ;;  %1956 = vadd.xlane.f32.xlu2 %v1955_v1  ;;  %v10849_v4 = vpop.eup %8960  ;;  %v2987_v54 = vsel %vm1393_vm9, %v10847_v27, 0.0  ;;  %v2922_v1 = vsub.f32 %v10748_v14, %v10822_v43  ;;  %v13484_v43 = vld [vmem:[#allocation15_spill] sm:$0xff] }
 0x817   : > { %v2927_v41 = vsub.f32 %v10775_v28, %v2911_v16  ;;  %v2999_v47 = vsel %vm1393_vm9, %v10849_v4, 0.0  ;;  %v10884_v16 = vpack.i.bf16 %v10131_v58, %v10120_v21 }
 0x819   : > { %v2958_v44 = vmul.f32 1.442695, %v2927_v41  ;;  %v10856_v56 = vpop.eup %8962  ;;  %v2948_v41 = vmul.f32 1.442695, %v2922_v1 }
 0x81a   : > { %v2993_v3 = vsel %vm1393_vm9, %v10856_v56, 0.0 }
 0x81b   : > { %2988 = vadd.xlane.f32.xlu1 %v2987_v54  ;;  %3000 = vadd.xlane.f32.xlu0 %v2999_v47  ;;  %8964 = vpow2.f32 %v2958_v44  ;;  %v13483_v54 = vld [vmem:[#allocation12_spill] sm:$0xff]  ;;  %v2908_v44 = vpop.xlane.xlu2 %2907 }
 0x81c   : > { %8966 = vrcp.f32 %v1945_v36  ;;  %v13480_v36 = vld [vmem:[#allocation22_spill] sm:$0xff]  ;;  %v10890_v47 = vpack.i.bf16 %v13483_v54, %v9962_v6 }
 0x81d   : > { %13482 = vst [vmem:[#allocation22_spill] sm:$0xff] %v10884_v16  ;;  %8968 = vpow2.f32 %v2948_v41 }
 0x821   : > { %v10860_v61 = vpop.eup %8964 }
 0x822   : > { %v8967_v28 = vpop.eup %8966  ;;  %v3005_v59 = vsel %vm1393_vm9, %v10860_v61, 0.0 }
 0x823   : > { %2994 = vadd.xlane.f32.xlu1 %v2993_v3  ;;  %v1991_v31 = vmul.f32 %v8967_v28, %v10745_v0  ;;  %v13481_v0 = vld [vmem:[#allocation21_spill] sm:$0xff]  ;;  %v2926_v3 = vsub.f32 %v10729_v29, %v2908_v44  ;;  %v10899_v28 = vpack.i.bf16 %v13484_v43, %v9997_v30 }
 0x825   : > { %v2956_v14 = vmul.f32 1.442695, %v2926_v3 }
 0x829   : > { %v8702_v7 = vpop.permute.xlu0 %8701 }
 0x82a   : > { %v8704_v15 = vunpack.i.h.bf16 %v8702_v7  ;;  %v8703_v52 = vunpack.i.l.bf16 %v8702_v7  ;;  %v10901_v7 = vpop.eup %8968 }
 0x82b   : > { %3006 = vadd.xlane.f32.xlu1 %v3005_v59  ;;  %v2990_v29 = vsel %vm1393_vm9, %v10901_v7, 0.0 }
 0x82c   : > { %2228 = vmatpush.msrb.mxu0 %v8703_v52 }
 0x82d   : > { %8330 = vmatmul.msk.f32.vlgmr.msrb.gmra.mxu0 %vm1393_vm9, %v1991_v31 }
 0x82e   : > { %2332 = vmatpush.msra.mxu0 %v8704_v15  ;;  %8706 = vrot.lane.b32.xlu2 %v13480_v36, %s9288_s12 }
 0x82f   : > { %2530 = vrot.lane.b32.xlu0 %v10026_v32, %s9286_s10 }
 0x837   : > { %2642 = vrot.lane.b32.xlu0 %v10088_v42, %s9286_s10 }
 0x83f   : > { %8726 = vrot.lane.b32.xlu0 %v10874_v19, %s9290_s17 }
 0x844   : > { %8711 = vrot.lane.b32.xlu1 %v13481_v0, %s9288_s12  ;;  %v13485_v0 = vld [vmem:[#allocation35_spill] sm:$0xff] }
 0x845   : > { %v8684_v1 = vunpack.i.h.bf16 %v13485_v0  ;;  %v8683_v3 = vunpack.i.l.bf16 %v13485_v0 }
 0x847   : > { %8746 = vrot.lane.b32.xlu0 %v10884_v16, %s9290_s17 }
 0x84c   : > { %8716 = vrot.lane.b32.xlu1 %v10890_v47, %s9290_s17 }
 0x84f   : > { %4855 = vrot.lane.b32.xlu0 %v9962_v6, %s9291_s18 }
 0x854   : > { %v2968_v15 = vpop.xlane.xlu0 %2967  ;;  %8721 = vrot.lane.b32.xlu1 %v10899_v28, %s9290_s17 }
 0x855   : > { %8970 = vrcp.f32 %v2968_v15 }
 0x856   : > { %8972 = vpow2.f32 %v2956_v14  ;;  %v10929_v14 = vpack.i.bf16 %v10112_v11, %v10104_v39 }
 0x857   : > { %4853 = vrot.lane.b32.xlu0 %v9962_v6, %s9292_s19  ;;  %2991 = vadd.xlane.f32.xlu2 %v2990_v29 }
 0x858   : > { %13486 = vst [vmem:[#allocation21_spill] sm:$0xff] %v10929_v14 }
 0x85b   : > { %v8971_v52 = vpop.eup %8970 }
 0x85c   : > { %v10909_v59 = vpop.eup %8972  ;;  %v3026_v31 = vmul.f32 %v8971_v52, %v10803_v26  ;;  %2754 = vrot.lane.b32.xlu1 %v10120_v21, %s9286_s10  ;;  %v2971_v36 = vpop.xlane.xlu0 %2970 }
 0x85d   : > { %8974 = vrcp.f32 %v2971_v36  ;;  %v3002_v41 = vsel %vm1393_vm9, %v10909_v59, 0.0 }
 0x85e   : > { %8372 = vmatmul.msk.f32.vlgmr.msra.gmra.mxu1 %vm1393_vm9, %v3026_v31 }
 0x85f   : > { %3321 = vmatpush.msra.mxu1 %v8684_v1  ;;  %4911 = vrot.lane.b32.xlu0 %v9997_v30, %s9291_s18 }
 0x860   : > { %3003 = vadd.xlane.f32.xlu2 %v3002_v41 }
 0x863   : > { %v8975_v44 = vpop.eup %8974 }
 0x864   : > { %v3027_v26 = vmul.f32 %v8975_v44, %v10809_v50  ;;  %2752 = vrot.lane.b32.xlu1 %v10120_v21, %s9285_s9 }
 0x866   : > { %8373 = vmatmul.msk.f32.vlgmr.msrb.gmra.mxu2 %vm1393_vm9, %v3027_v26 }
 0x867   : > { %3347 = vmatpush.msrb.mxu2 %v8683_v3  ;;  %4881 = vrot.lane.b32.xlu0 %v13483_v54, %s9292_s19 }
 0x86c   : > { %8741 = vrot.lane.b32.xlu1 %v10929_v14, %s9290_s17 }
 0x86f   : > { %4939 = vrot.lane.b32.xlu0 %v13484_v43, %s9291_s18 }
 0x874   : > { %4883 = vrot.lane.b32.xlu1 %v13483_v54, %s9291_s18 }
 0x876   : > { %v2965_v50 = vpop.xlane.xlu1 %2964 }
 0x877   : > { %4995 = vrot.lane.b32.xlu0 %v10040_v37, %s9291_s18 }
 0x878   : > { %2418 = vrot.lane.b32.xlu2 %v9962_v6, %s9286_s10 }
 0x87c   : > { %4967 = vrot.lane.b32.xlu1 %v10026_v32, %s9291_s18 }
 0x87e   : > { %v2977_v15 = vpop.xlane.xlu1 %2976 }
 0x87f   : > { %5023 = vrot.lane.b32.xlu0 %v10053_v22, %s9291_s18 }
 0x880   : > { %2416 = vrot.lane.b32.xlu2 %v9962_v6, %s9285_s9 }
 0x884   : > { %4993 = vrot.lane.b32.xlu1 %v10040_v37, %s9292_s19  ;;  %v13487_v37 = vld [vmem:[#allocation36_spill] sm:$0xff] }
 0x885   : > { %v8693_v41 = vunpack.i.l.bf16 %v13487_v37  ;;  %v8694_v3 = vunpack.i.h.bf16 %v13487_v37  ;;  %v13489_v37 = vld [vmem:[#allocation37_spill] sm:$0xff] }
 0x886   : > { %v2983_v54 = vpop.xlane.xlu0 %2982  ;;  %v2980_v29 = vpop.xlane.xlu1 %2979 }
 0x887   : > { %8976 = vrcp.f32 %v2983_v54  ;;  %5051 = vrot.lane.b32.xlu0 %v10075_v24, %s9291_s18 }
 0x888   : > { %8978 = vrcp.f32 %v2980_v29  ;;  %2528 = vrot.lane.b32.xlu2 %v10026_v32, %s9285_s9 }
 0x889   : > { %8980 = vrcp.f32 %v2965_v50  ;;  %v1957_v52 = vpop.xlane.xlu2 %1956 }
 0x88a   : > { %8982 = vrcp.f32 %v1957_v52 }
 0x88b   : > { %8984 = vrcp.f32 %v2977_v15 }
 0x88d   : > { %v8977_v31 = vpop.eup %8976 }
 0x88e   : > { %v8979_v36 = vpop.eup %8978  ;;  %v3031_v6 = vmul.f32 %v8977_v31, %v10836_v9  ;;  %v2989_v0 = vpop.xlane.xlu1 %2988 }
 0x88f   : > { %v8981_v1 = vpop.eup %8980  ;;  %v3030_v44 = vmul.f32 %v8979_v36, %v10834_v45  ;;  %5049 = vrot.lane.b32.xlu0 %v10075_v24, %s9292_s19 }
 0x890   : > { %v8983_v26 = vpop.eup %8982  ;;  %2640 = vrot.lane.b32.xlu2 %v10088_v42, %s9285_s9  ;;  %8377 = vmatmul.msk.f32.vlgmr.msra.gmra.mxu2 %vm1393_vm9, %v3031_v6  ;;  %v3025_v29 = vmul.f32 %v8981_v1, %v10819_v62  ;;  %v3001_v62 = vpop.xlane.xlu0 %3000 }
 0x891   : > { %v1995_v50 = vmul.f32 %v8983_v26, %v10843_v46  ;;  %8376 = vmatmul.msk.f32.vlgmr.msrb.gmra.mxu1 %vm1393_vm9, %v3030_v44  ;;  %3451 = vmatpush.msra.mxu2 %v8693_v41  ;;  %v8707_v9 = vpop.permute.xlu2 %8706  ;;  %v10969_v46 = vpack.i.bf16 %v10075_v24, %v10053_v22  ;;  %v8985_v15 = vpop.eup %8984  ;;  %v10980_v24 = vpack.i.bf16 %v10096_v60, %v10088_v42  ;;  %v13490_v26 = vld [vmem:[#allocation33_spill] sm:$0xff] }
 0x892   : > { %3425 = vmatpush.msrb.mxu1 %v8694_v3  ;;  %v8709_v45 = vunpack.i.h.bf16 %v8707_v9  ;;  %v8708_v54 = vunpack.i.l.bf16 %v8707_v9  ;;  %v3029_v31 = vmul.f32 %v8985_v15, %v10826_v5  ;;  %v13493_v15 = vld [vmem:[#allocation38_spill] sm:$0xff] }
 0x893   : > { %8334 = vmatmul.msk.f32.vlgmr.msra.gmra.mxu0 %vm1393_vm9, %v1995_v50  ;;  %13488 = vst [vmem:[#allocation12_spill] sm:$0xff] %v10980_v24  ;;  %v13491_v50 = vld [vmem:[#allocation26_spill] sm:$0xff] }
 0x894   : > { %3087 = vmatpush.msrb.mxu3 %v8708_v54 }
 0x895   : > { %8371 = vmatmul.msk.f32.vlgmr.msrb.gmra.mxu3 %vm1393_vm9, %v3025_v29 }
 0x896   : > { %3191 = vmatpush.msra.mxu3 %v8709_v45  ;;  %v2995_v52 = vpop.xlane.xlu1 %2994 }
 0x897   : > { %8986 = vrcp.f32 %v2995_v52  ;;  %5107 = vrot.lane.b32.xlu0 %v10096_v60, %s9291_s18 }
 0x898   : > { %8731 = vrot.lane.b32.xlu2 %v10969_v46, %s9290_s17 }
 0x89d   : > { %v8987_v36 = vpop.eup %8986  ;;  %8375 = vmatmul.msk.f32.vlgmr.msra.gmra.mxu3 %vm1393_vm9, %v3029_v31 }
 0x89e   : > { %v3035_v6 = vmul.f32 %v8987_v36, %v10856_v56  ;;  %v3007_v1 = vpop.xlane.xlu1 %3006  ;;  %v8750_v56 = vpack.i.bf16 %v10194_v17, %v13469_v33  ;;  %v13496_v36 = vld [vmem:[#allocation28_spill] sm:$0xff] }
 0x89f   : > { %8988 = vrcp.f32 %v3007_v1 }
 0x8a0   : > { %8736 = vrot.lane.b32.xlu2 %v10980_v24, %s9290_s17  ;;  %8381 = vmatmul.msk.f32.vlgmr.msrb.gmra.mxu2 %vm1393_vm9, %v3035_v6  ;;  %8990 = vrcp.f32 %v2989_v0  ;;  %v13492_v0 = vld [vmem:[#allocation27_spill] sm:$0xff]  ;;  %v13497_v6 = vld [vmem:[#allocation30_spill] sm:$0xff] }
 0x8a1   : > { %8420 = vmatpush.xpose.msk.msrb.mxu2 %vm1393_vm9, %v13489_v37  ;;  %v10987_v5 = vpop.permute.xlu0 %2530  ;;  %8992 = vrcp.f32 %v3001_v62  ;;  %v13501_v37 = vld [vmem:[#allocation23_spill] sm:$0xff] }
 0x8a5   : > { %v8989_v41 = vpop.eup %8988 }
 0x8a6   : > { %v3039_v44 = vmul.f32 %v8989_v41, %v10860_v61  ;;  %v8991_v9 = vpop.eup %8990 }
 0x8a7   : > { %v3033_v52 = vmul.f32 %v8991_v9, %v10847_v27  ;;  %v8993_v27 = vpop.eup %8992  ;;  %v13506_v9 = vld [vmem:[#allocation48_spill] sm:$0xff] }
 0x8a8   : > { %8751 = vrot.lane.b32.xlu2 %v8750_v56, %s9290_s17  ;;  %8385 = vmatmul.msk.f32.vlgmr.msra.gmra.mxu2 %vm1393_vm9, %v3039_v44  ;;  %v13503_v44 = vld [vmem:[#allocation47_spill] sm:$0xff]  ;;  %v13504_v56 = vld [vmem:[#allocation50_spill] sm:$0xff] }
 0x8a9   : > { %8424 = vmatpush.xpose.msk.msra.mxu2 %vm1393_vm9, %v13490_v26  ;;  %v10996_v3 = vpop.permute.xlu0 %2642  ;;  %v13505_v26 = vld [vmem:[#allocation25_spill] sm:$0xff] }
 0x8b0   : > { %4909 = vrot.lane.b32.xlu2 %v9997_v30, %s9292_s19  ;;  %8421 = vmatmul.msk.f32.vlgmr.msrb.gmra.mxu2 %vm1393_vm9, %v13491_v50 }
 0x8b1   : > { %8428 = vmatpush.xpose.msk.msrb.mxu2 %vm1393_vm9, %v10666_v48  ;;  %v11004_v61 = vpop.permute.xlu0 %8726  ;;  %v2415_v48 = vld [vmem:[%s13355_s2 + $0x50] sm:$0xff] }
 0x8b6   : > { %v8712_v45 = vpop.permute.xlu1 %8711 }
 0x8b7   : > { %v8714_v54 = vunpack.i.h.bf16 %v8712_v45  ;;  %v8713_v29 = vunpack.i.l.bf16 %v8712_v45  ;;  %v13507_v45 = vld [vmem:[#allocation34_spill] sm:$0xff] }
 0x8b8   : > { %4937 = vrot.lane.b32.xlu2 %v13484_v43, %s9292_s19  ;;  %8425 = vmatmul.msk.f32.vlgmr.msra.gmra.mxu2 %vm1393_vm9, %v13492_v0  ;;  %v3037_v43 = vmul.f32 %v8993_v27, %v10849_v4  ;;  %v2022_v4 = vpop.f32.mrf.mxu0  ;;  %v13508_v0 = vld [vmem:[#allocation49_spill] sm:$0xff] }
 0x8b9   : > { %8432 = vmatpush.xpose.msk.msra.mxu2 %vm1393_vm9, %v10685_v18  ;;  %v11013_v30 = vpop.permute.xlu0 %8746  ;;  %3295 = vmatpush.msrb.mxu3 %v8713_v29 }
 0x8ba   : > { %8379 = vmatmul.msk.f32.vlgmr.msrb.gmra.mxu3 %vm1393_vm9, %v3033_v52 }
 0x8bb   : > { %3399 = vmatpush.msra.mxu3 %v8714_v54 }
 0x8bd   : > { %3633 = vmatpush.msrb.mxu3 %v2415_v48  ;;  %v13509_v48 = vld [vmem:[#allocation40_spill] sm:$0xff] }
 0x8be   : > { %v8717_v62 = vpop.permute.xlu1 %8716 }
 0x8bf   : > { %v8718_v50 = vunpack.i.l.bf16 %v8717_v62 }
 0x8c0   : > { %4965 = vrot.lane.b32.xlu2 %v10026_v32, %s9292_s19  ;;  %8429 = vmatmul.msk.f32.vlgmr.msrb.gmra.mxu2 %vm1393_vm9, %v10599_v12 }
 0x8c1   : > { %8436 = vmatpush.xpose.msk.msrb.mxu2 %vm1393_vm9, %v10712_v40  ;;  %v4856_v18 = vpop.permute.xlu0 %4855 }
 0x8c2   : > { %8383 = vmatmul.msk.f32.vlgmr.msra.gmra.mxu3 %vm1393_vm9, %v3037_v43 }
 0x8c3   : > { %8482 = vmatpush.xpose.msk.msra.mxu3 %vm1393_vm9, %v4856_v18 }
 0x8c8   : > { %5021 = vrot.lane.b32.xlu2 %v10053_v22, %s9292_s19  ;;  %8433 = vmatmul.msk.f32.vlgmr.msra.gmra.mxu2 %vm1393_vm9, %v10651_v49 }
 0x8c9   : > { %8440 = vmatpush.xpose.msk.msra.mxu2 %vm1393_vm9, %v10777_v38  ;;  %v11034_v32 = vpop.permute.xlu0 %4853 }
 0x8ca   : > { %v2992_v12 = vpop.xlane.xlu2 %2991  ;;  %8402 = vmatmul.msk.f32.vlgmr.msrb.gmra.mxu3 %vm1393_vm9, %v2022_v4 }
 0x8cb   : > { %8994 = vrcp.f32 %v2992_v12 }
 0x8d0   : > { %5079 = vrot.lane.b32.xlu2 %v10088_v42, %s9291_s18  ;;  %8437 = vmatmul.msk.f32.vlgmr.msrb.gmra.mxu2 %vm1393_vm9, %v10724_v57 }
 0x8d1   : > { %v8995_v22 = vpop.eup %8994  ;;  %8444 = vmatpush.xpose.msk.msrb.mxu2 %vm1393_vm9, %v10793_v34  ;;  %v11043_v49 = vpop.permute.xlu0 %4911 }
 0x8d2   : > { %v3034_v40 = vmul.f32 %v8995_v22, %v10901_v7  ;;  %8403 = vmatmul.msk.f32.gmra.mxu3 %vm1393_vm9, %v10654_v8 }
 0x8d3   : > { %v3004_v38 = vpop.xlane.xlu2 %3003 }
 0x8d4   : > { %8996 = vrcp.f32 %v3004_v38  ;;  %8380 = vmatmul.msk.f32.vlgmr.msra.gmra.mxu1 %vm1393_vm9, %v3034_v40  ;;  %v13512_v40 = vld [vmem:[#allocation32_spill] sm:$0xff] }
 0x8d5   : > { %8418 = vmatpush.xpose.msk.msra.mxu1 %vm1393_vm9, %v13493_v15 }
 0x8d8   : > { %5077 = vrot.lane.b32.xlu2 %v10088_v42, %s9292_s19  ;;  %8441 = vmatmul.msk.f32.vlgmr.msra.gmra.mxu2 %vm1393_vm9, %v10783_v51  ;;  %v8719_v42 = vunpack.i.h.bf16 %v8717_v62  ;;  %v11146_v62 = vld [vmem:[%s13354_s1] sm:$0xff] }
 0x8d9   : > { %8448 = vmatpush.xpose.msk.msra.mxu2 %vm1393_vm9, %v10781_v35  ;;  %v11057_v34 = vpop.permute.xlu0 %4881 }
 0x8da   : > { %v8997_v8 = vpop.eup %8996  ;;  %8404 = vmatmul.msk.f32.gmra.mxu3 %vm1393_vm9, %v10656_v2  ;;  %v8722_v2 = vpop.permute.xlu1 %8721 }
 0x8db   : > { %v3038_v57 = vmul.f32 %v8997_v8, %v10909_v59  ;;  %v2419_v7 = vpop.permute.xlu2 %2418  ;;  %v13494_v59 = vld [vmem:[#allocation39_spill] sm:$0xff]  ;;  %v8723_v29 = vunpack.i.l.bf16 %v8722_v2 }
 0x8dc   : > { %8338 = vmatpush.xpose.msk.msrb.mxu0 %vm1393_vm9, %v2419_v7  ;;  %v13513_v7 = vld [vmem:[#allocation31_spill] sm:$0xff] }
 0x8dd   : > { %8384 = vmatmul.msk.f32.vlgmr.msrb.gmra.mxu1 %vm1393_vm9, %v3038_v57 }
 0x8de   : > { %8422 = vmatpush.xpose.msk.msrb.mxu1 %vm1393_vm9, %v10603_v13  ;;  %v8724_v13 = vunpack.i.h.bf16 %v8722_v2  ;;  %v11159_v2 = vpop.f32.mrf.mxu1 }
 0x8e0   : > { %8346 = vmatpush.xpose.msk.msra.mxu0 %vm1393_vm9, %v10987_v5  ;;  %8445 = vmatmul.msk.f32.vlgmr.msrb.gmra.mxu2 %vm1393_vm9, %v10797_v63  ;;  %v2126_v63 = vpop.f32.mrf.mxu0  ;;  %v13502_v5 = vld [vmem:[#allocation45_spill] sm:$0xff] }
 0x8e1   : > { %4354 = vmatpush.msrb.mxu2 %v8719_v42  ;;  %v4940_v35 = vpop.permute.xlu0 %4939 }
 0x8e2   : > { %8405 = vmatmul.msk.f32.gmra.mxu3 %vm1393_vm9, %v10664_v10  ;;  %v2755_v31 = vpop.permute.xlu1 %2754 }
 0x8e3   : > { %v2417_v51 = vpop.permute.xlu2 %2416  ;;  %8488 = vmatpush.xpose.msk.msrb.mxu3 %vm1393_vm9, %v4940_v35 }
 0x8e4   : > { %8339 = vmatmul.msk.f32.vlgmr.msrb.gmra.mxu0 %vm1393_vm9, %v2417_v51  ;;  %v13514_v51 = vld [vmem:[#allocation41_spill] sm:$0xff] }
 0x8e5   : > { %8354 = vmatpush.xpose.msk.msrb.mxu0 %vm1393_vm9, %v10996_v3  ;;  %8419 = vmatmul.msk.f32.vlgmr.msra.gmra.mxu1 %vm1393_vm9, %v13494_v59 }
 0x8e6   : > { %8426 = vmatpush.xpose.msk.msra.mxu1 %vm1393_vm9, %v10676_v53  ;;  %v13495_v53 = vld [vmem:[#allocation44_spill] sm:$0xff] }
 0x8e8   : > { %8449 = vmatmul.msk.f32.vlgmr.msra.gmra.mxu2 %vm1393_vm9, %v10805_v20  ;;  %v2230_v41 = vpop.f32.mrf.mxu0 }
 0x8e9   : > { %4406 = vmatpush.msra.mxu2 %v8724_v13  ;;  %v11116_v3 = vpop.f32.mrf.mxu2  ;;  %v11134_v4 = vpop.permute.xlu0 %4995 }
 0x8ea   : > { %8406 = vmatmul.msk.f32.gmra.mxu3 %vm1393_vm9, %v2126_v63  ;;  %v2753_v1 = vpop.permute.xlu1 %2752 }
 0x8eb   : > { %v2529_v10 = vpop.permute.xlu2 %2528 }
 0x8ec   : > { %8347 = vmatmul.msk.f32.vlgmr.msra.gmra.mxu0 %vm1393_vm9, %v2529_v10 }
 0x8ed   : > { %8362 = vmatpush.xpose.msk.msra.mxu0 %vm1393_vm9, %v2755_v31  ;;  %8423 = vmatmul.msk.f32.vlgmr.msrb.gmra.mxu1 %vm1393_vm9, %v10595_v23  ;;  %v13498_v23 = vld [vmem:[#allocation43_spill] sm:$0xff] }
 0x8ee   : > { %8430 = vmatpush.xpose.msk.msrb.mxu1 %vm1393_vm9, %v10700_v55  ;;  %v13499_v55 = vld [vmem:[#allocation29_spill] sm:$0xff] }
 0x8f1   : > { %v5024_v15 = vpop.permute.xlu0 %5023 }
 0x8f2   : > { %8407 = vmatmul.msk.f32.gmra.mxu3 %vm1393_vm9, %v10658_v25  ;;  %v13500_v25 = vld [vmem:[#allocation24_spill] sm:$0xff] }
 0x8f3   : > { %v2641_v20 = vpop.permute.xlu2 %2640 }
 0x8f4   : > { %8355 = vmatmul.msk.f32.vlgmr.msrb.gmra.mxu0 %vm1393_vm9, %v2641_v20 }
 0x8f5   : > { %8427 = vmatmul.msk.f32.vlgmr.msra.gmra.mxu1 %vm1393_vm9, %v13495_v53 }
 0x8f6   : > { %8434 = vmatpush.xpose.msk.msra.mxu1 %vm1393_vm9, %v13496_v36 }
 0x8f9   : > { %v11157_v35 = vpop.permute.xlu0 %5051 }
 0x8fa   : > { %8408 = vmatmul.msk.f32.gmra.mxu3 %vm1393_vm9, %v13497_v6 }
 0x8fb   : > { %v11124_v52 = vpop.permute.xlu2 %8731 }
 0x8fc   : > { %8363 = vmatmul.msk.f32.vlgmr.msra.gmra.mxu0 %vm1393_vm9, %v2753_v1 }
 0x8fd   : > { %8431 = vmatmul.msk.f32.vlgmr.msrb.gmra.mxu1 %vm1393_vm9, %v13498_v23 }
 0x8fe   : > { %8438 = vmatpush.xpose.msk.msrb.mxu1 %vm1393_vm9, %v13499_v55 }
 0x901   : > { %v11163_v13 = vpop.permute.xlu0 %5049 }
 0x902   : > { %8409 = vmatmul.msk.f32.gmra.mxu3 %vm1393_vm9, %v13500_v25 }
 0x903   : > { %v11132_v43 = vpop.permute.xlu2 %8736 }
 0x905   : > { %8435 = vmatmul.msk.f32.vlgmr.msra.gmra.mxu1 %vm1393_vm9, %v13501_v37 }
 0x906   : > { %8442 = vmatpush.xpose.msk.msra.mxu1 %vm1393_vm9, %v13502_v5 }
 0x909   : > { %v5108_v20 = vpop.permute.xlu0 %5107 }
 0x90a   : > { %8410 = vmatmul.msk.f32.gmra.mxu3 %vm1393_vm9, %v2230_v41 }
 0x90b   : > { %v11139_v22 = vpop.permute.xlu2 %8751 }
 0x90d   : > { %8439 = vmatmul.msk.f32.vlgmr.msrb.gmra.mxu1 %vm1393_vm9, %v13503_v44 }
 0x90e   : > { %8446 = vmatpush.xpose.msk.msrb.mxu1 %vm1393_vm9, %v13504_v56  ;;  %v11165_v63 = vpop.f32.mrf.mxu1 }
 0x910   : > { %v2334_v18 = vpop.f32.mrf.mxu0 }
 0x912   : > { %8411 = vmatmul.msk.f32.gmra.mxu3 %vm1393_vm9, %v13505_v26 }
 0x913   : > { %v11122_v54 = vpop.f32.mrf.mxu2  ;;  %v11155_v42 = vpop.permute.xlu2 %4909 }
 0x915   : > { %8443 = vmatmul.msk.f32.vlgmr.msra.gmra.mxu1 %vm1393_vm9, %v13506_v9 }
 0x916   : > { %4328 = vmatpush.msra.mxu1 %v8718_v50 }
 0x91a   : > { %8412 = vmatmul.msk.f32.gmra.mxu3 %vm1393_vm9, %v13507_v45 }
 0x91b   : > { %v4938_v59 = vpop.permute.xlu2 %4937 }
 0x91d   : > { %8447 = vmatmul.msk.f32.vlgmr.msrb.gmra.mxu1 %vm1393_vm9, %v13508_v0 }
 0x91e   : > { %4380 = vmatpush.msrb.mxu1 %v8723_v29 }
 0x922   : > { %8413 = vmatmul.msk.f32.gmra.mxu3 %vm1393_vm9, %v13509_v48 }
 0x923   : > { %v11130_v27 = vpop.f32.mrf.mxu2  ;;  %v11170_v10 = vpop.permute.xlu2 %4965 }
 0x924   : > { %13510 = vst [vmem:[#allocation15_spill] sm:$0xff] %v11130_v27 }
 0x92a   : > { %8414 = vmatmul.msk.f32.gmra.mxu3 %vm1393_vm9, %v2334_v18 }
 0x92b   : > { %v11137_v12 = vpop.f32.mrf.mxu2  ;;  %v5022_v53 = vpop.permute.xlu2 %5021 }
 0x92c   : > { %13511 = vst [vmem:[#allocation35_spill] sm:$0xff] %v11137_v12 }
 0x932   : > { %8415 = vmatmul.msk.f32.gmra.mxu3 %vm1393_vm9, %v13512_v40 }
 0x933   : > { %v3736_v38 = vpop.f32.mrf.mxu2 }
 0x934   : > { %v11149_v8 = vadd.f32 %v11146_v62, %v3736_v38 }
 0x936   : > { %v4134_v57 = vsel %vm1393_vm9, %v11149_v8, -inf }
 0x937   : > { %4135 = vmax.xlane.f32.xlu2 %v4134_v57 }
 0x93a   : > { %8416 = vmatmul.msk.f32.gmra.mxu3 %vm1393_vm9, %v13513_v7 }
 0x93b   : > { %v3792_v41 = vpop.f32.mrf.mxu2 }
 0x93c   : > { %v11202_v50 = vadd.f32 %v11146_v62, %v3792_v41 }
 0x93e   : > { %v4140_v0 = vsel %vm1393_vm9, %v11202_v50, -inf }
 0x942   : > { %8417 = vmatmul.msk.f32.gmra.mxu3 %vm1393_vm9, %v13514_v51 }
 0x943   : > { %v3848_v9 = vpop.f32.mrf.mxu2 }
 0x944   : > { %v11212_v18 = vadd.f32 %v11146_v62, %v3848_v9 }
 0x946   : > { %v4146_v7 = vsel %vm1393_vm9, %v11212_v18, -inf }
 0x94a   : > { %8483 = vmatmul.msk.f32.vlgmr.msra.gmra.mxu3 %vm1393_vm9, %v11034_v32 }
 0x94b   : > { %8494 = vmatpush.xpose.msk.msra.mxu3 %vm1393_vm9, %v5024_v15  ;;  %v3904_v15 = vpop.f32.mrf.mxu2 }
 0x94c   : > { %v11222_v51 = vadd.f32 %v11146_v62, %v3904_v15 }
 0x94f   : > { %5105 = vrot.lane.b32.xlu2 %v10096_v60, %s9292_s19 }
 0x951   : > { %v11174_v31 = vpop.f32.mrf.mxu1 }
 0x952   : > { %13515 = vst [vmem:[#allocation36_spill] sm:$0xff] %v11174_v31  ;;  %8489 = vmatmul.msk.f32.vlgmr.msrb.gmra.mxu3 %vm1393_vm9, %v4938_v59 }
 0x953   : > { %8500 = vmatpush.xpose.msk.msrb.mxu3 %vm1393_vm9, %v5108_v20 }
 0x95a   : > { %v11178_v36 = vpop.f32.mrf.mxu1  ;;  %8495 = vmatmul.msk.f32.vlgmr.msra.gmra.mxu3 %vm1393_vm9, %v5022_v53  ;;  %v4152_v53 = vsel %vm1393_vm9, %v11222_v51, -inf }
 0x95b   : > { %13516 = vst [vmem:[#allocation37_spill] sm:$0xff] %v11178_v36 }
 0x961   : > { %v2441_v32 = vpop.f32.mrf.mxu0 }
 0x962   : > { %v11182_v6 = vadd.f32 %v11146_v62, %v2441_v32  ;;  %v3708_v1 = vpop.f32.mrf.mxu1 }
 0x963   : > { %v11187_v23 = vadd.f32 %v11146_v62, %v3708_v1  ;;  %v3960_v1 = vpop.f32.mrf.mxu2 }
 0x964   : > { %v2864_v60 = vsel %vm1393_vm9, %v11182_v6, -inf }
 0x965   : > { %2865 = vmax.xlane.f32.xlu1 %v2864_v60  ;;  %v4131_v37 = vsel %vm1393_vm9, %v11187_v23, -inf  ;;  %v11232_v60 = vadd.f32 %v11146_v62, %v3960_v1 }
 0x96a   : > { %v3764_v55 = vpop.f32.mrf.mxu1 }
 0x96b   : > { %v11190_v25 = vadd.f32 %v11146_v62, %v3764_v55 }
 0x96d   : > { %4132 = vmax.xlane.f32.xlu1 %v4131_v37  ;;  %v4137_v5 = vsel %vm1393_vm9, %v11190_v25, -inf }
 0x96e   : > { %4138 = vmax.xlane.f32.xlu0 %v4137_v5  ;;  %v4158_v5 = vsel %vm1393_vm9, %v11232_v60, -inf }
 0x972   : > { %v3820_v44 = vpop.f32.mrf.mxu1 }
 0x973   : > { %v11197_v56 = vadd.f32 %v11146_v62, %v3820_v44  ;;  %v11241_v44 = vpop.permute.xlu2 %5079 }
 0x975   : > { %v4143_v26 = vsel %vm1393_vm9, %v11197_v56, -inf }
 0x976   : > { %4144 = vmax.xlane.f32.xlu0 %v4143_v26 }
 0x97a   : > { %v3876_v45 = vpop.f32.mrf.mxu1 }
 0x97b   : > { %v11205_v29 = vadd.f32 %v11146_v62, %v3876_v45  ;;  %v4016_v45 = vpop.f32.mrf.mxu2 }
 0x97d   : > { %v4149_v48 = vsel %vm1393_vm9, %v11205_v29, -inf }
 0x97e   : > { %4141 = vmax.xlane.f32.xlu0 %v4140_v0  ;;  %4150 = vmax.xlane.f32.xlu2 %v4149_v48  ;;  %v11249_v48 = vadd.f32 %v11146_v62, %v4016_v45 }
 0x980   : > { %v4164_v15 = vsel %vm1393_vm9, %v11249_v48, -inf }
 0x982   : > { %v3932_v40 = vpop.f32.mrf.mxu1 }
 0x983   : > { %v11215_v38 = vadd.f32 %v11146_v62, %v3932_v40  ;;  %v11251_v40 = vpop.permute.xlu2 %5077 }
 0x985   : > { %v4155_v57 = vsel %vm1393_vm9, %v11215_v38, -inf }
 0x986   : > { %4156 = vmax.xlane.f32.xlu1 %v4155_v57  ;;  %4147 = vmax.xlane.f32.xlu0 %v4146_v7  ;;  %v4072_v57 = vpop.f32.mrf.mxu2 }
 0x987   : > { %v11258_v7 = vadd.f32 %v11146_v62, %v4072_v57 }
 0x98a   : > { %v3988_v59 = vpop.f32.mrf.mxu1 }
 0x98b   : > { %v11225_v20 = vadd.f32 %v11146_v62, %v3988_v59 }
 0x98d   : > { %v4161_v32 = vsel %vm1393_vm9, %v11225_v20, -inf }
 0x98e   : > { %4153 = vmax.xlane.f32.xlu1 %v4152_v53  ;;  %4162 = vmax.xlane.f32.xlu0 %v4161_v32  ;;  %v4170_v53 = vsel %vm1393_vm9, %v11258_v7, -inf  ;;  %v11262_v32 = vpop.permute.xlu1 %8741 }
 0x992   : > { %v4044_v55 = vpop.f32.mrf.mxu1 }
 0x993   : > { %v11235_v37 = vadd.f32 %v11146_v62, %v4044_v55 }
 0x995   : > { %v4167_v41 = vsel %vm1393_vm9, %v11235_v37, -inf }
 0x996   : > { %4159 = vmax.xlane.f32.xlu1 %v4158_v5  ;;  %4168 = vmax.xlane.f32.xlu2 %v4167_v41  ;;  %v11265_v55 = vpop.permute.xlu1 %4883  ;;  %v4128_v5 = vpop.f32.mrf.mxu2 }
 0x99a   : > { %v4100_v26 = vpop.f32.mrf.mxu1 }
 0x99b   : > { %v11244_v9 = vadd.f32 %v11146_v62, %v4100_v26  ;;  %v11270_v26 = vadd.f32 %v11146_v62, %v4128_v5 }
 0x99d   : > { %v4173_v0 = vsel %vm1393_vm9, %v11244_v9, -inf  ;;  %v4176_v45 = vsel %vm1393_vm9, %v11270_v26, -inf }
 0x99e   : > { %4174 = vmax.xlane.f32.xlu1 %v4173_v0  ;;  %v11267_v41 = vpop.permute.xlu1 %4967 }
 0x9a2   : > { %5135 = vrot.lane.b32.xlu0 %v10104_v39, %s9291_s18 }
 0x9a6   : > { %4165 = vmax.xlane.f32.xlu1 %v4164_v15  ;;  %v11274_v0 = vpop.permute.xlu1 %4993 }
 0x9aa   : > { %v4136_v59 = vpop.xlane.xlu2 %4135 }
 0x9ae   : > { %4171 = vmax.xlane.f32.xlu1 %v4170_v53 }
 0x9b2   : > { %v5106_v1 = vpop.permute.xlu2 %5105 }
 0x9b3   : > { %8501 = vmatmul.msk.f32.vlgmr.msrb.gmra.mxu3 %vm1393_vm9, %v5106_v1 }
 0x9cc   : > { %4177 = vmax.xlane.f32.xlu0 %v4176_v45  ;;  %v4180_v45 = vsub.f32 %v11149_v8, %v4136_v59 }
 0x9d8   : > { %v11276_v15 = vpop.xlane.xlu1 %2865 }
 0x9e0   : > { %v4133_v57 = vpop.xlane.xlu1 %4132 }
 0x9e1   : > { %v4179_v53 = vsub.f32 %v11187_v23, %v4133_v57  ;;  %v4139_v1 = vpop.xlane.xlu0 %4138  ;;  %v4197_v23 = vmul.f32 1.442695, %v4180_v45  ;;  %v11286_v57 = vpop.f32.mrf.mxu3 }
 0x9e2   : > { %v4181_v12 = vsub.f32 %v11190_v25, %v4139_v1 }
 0x9e3   : > { %v4195_v16 = vmul.f32 1.442695, %v4179_v53 }
 0x9e4   : > { %v4199_v24 = vmul.f32 1.442695, %v4181_v12 }
 0x9e5   : > { %8998 = vpow2.f32 %v4195_v16 }
 0x9e6   : > { %9000 = vpow2.f32 %v4199_v24 }
 0x9e9   : > { %v4145_v36 = vpop.xlane.xlu0 %4144 }
 0x9ea   : > { %v4183_v5 = vsub.f32 %v11197_v56, %v4145_v36 }
 0x9eb   : > { %v11281_v27 = vpop.eup %8998 }
 0x9ec   : > { %v4203_v31 = vmul.f32 1.442695, %v4183_v5  ;;  %v4227_v14 = vsel %vm1393_vm9, %v11281_v27, 0.0  ;;  %v11288_v25 = vpop.eup %9000  ;;  %v11300_v5 = vpop.f32.mrf.mxu3 }
 0x9ed   : > { %4228 = vadd.xlane.f32.xlu1 %v4227_v14  ;;  %v4233_v59 = vsel %vm1393_vm9, %v11288_v25, 0.0 }
 0x9ee   : > { %9002 = vpow2.f32 %v4203_v31 }
 0x9ef   : > { %9004 = vpow2.f32 %v4197_v23 }
 0x9f1   : > { %v4142_v16 = vpop.xlane.xlu0 %4141  ;;  %v4151_v12 = vpop.xlane.xlu2 %4150 }
 0x9f2   : > { %v4182_v36 = vsub.f32 %v11202_v50, %v4142_v16  ;;  %v4185_v56 = vsub.f32 %v11205_v29, %v4151_v12 }
 0x9f4   : > { %v11292_v8 = vpop.eup %9002  ;;  %v4201_v24 = vmul.f32 1.442695, %v4182_v36  ;;  %v4207_v31 = vmul.f32 1.442695, %v4185_v56 }
 0x9f5   : > { %4234 = vadd.xlane.f32.xlu1 %v4233_v59  ;;  %v4239_v14 = vsel %vm1393_vm9, %v11292_v8, 0.0  ;;  %v11298_v53 = vpop.eup %9004 }
 0x9f6   : > { %9006 = vpow2.f32 %v4201_v24  ;;  %4240 = vadd.xlane.f32.xlu0 %v4239_v14  ;;  %v4230_v12 = vsel %vm1393_vm9, %v11298_v53, 0.0  ;;  %v11312_v14 = vpop.f32.mrf.mxu3 }
 0x9f7   : > { %9008 = vpow2.f32 %v4207_v31 }
 0x9f9   : > { %v4148_v1 = vpop.xlane.xlu0 %4147  ;;  %v4157_v50 = vpop.xlane.xlu1 %4156 }
 0x9fa   : > { %v4184_v29 = vsub.f32 %v11212_v18, %v4148_v1  ;;  %v4187_v45 = vsub.f32 %v11215_v38, %v4157_v50 }
 0x9fc   : > { %v11304_v23 = vpop.eup %9006  ;;  %v4205_v16 = vmul.f32 1.442695, %v4184_v29  ;;  %v4211_v56 = vmul.f32 1.442695, %v4187_v45 }
 0x9fd   : > { %4231 = vadd.xlane.f32.xlu1 %v4230_v12  ;;  %v4236_v36 = vsel %vm1393_vm9, %v11304_v23, 0.0  ;;  %v11310_v24 = vpop.eup %9008 }
 0x9fe   : > { %9010 = vpow2.f32 %v4205_v16  ;;  %4237 = vadd.xlane.f32.xlu2 %v4236_v36  ;;  %v4245_v29 = vsel %vm1393_vm9, %v11310_v24, 0.0 }
 0x9ff   : > { %9012 = vpow2.f32 %v4211_v56 }
 0xa01   : > { %v4163_v59 = vpop.xlane.xlu0 %4162  ;;  %v4154_v18 = vpop.xlane.xlu1 %4153 }
 0xa02   : > { %v4186_v38 = vsub.f32 %v11222_v51, %v4154_v18  ;;  %v4189_v31 = vsub.f32 %v11225_v20, %v4163_v59  ;;  %v11325_v20 = vpop.f32.mrf.mxu3 }
 0xa03   : > { %13517 = vst [vmem:[#allocation33_spill] sm:$0xff] %v11325_v20 }
 0xa04   : > { %v11316_v1 = vpop.eup %9010  ;;  %v4209_v50 = vmul.f32 1.442695, %v4186_v38  ;;  %v4215_v16 = vmul.f32 1.442695, %v4189_v31 }
 0xa05   : > { %4246 = vadd.xlane.f32.xlu1 %v4245_v29  ;;  %v4242_v45 = vsel %vm1393_vm9, %v11316_v1, 0.0  ;;  %v11322_v12 = vpop.eup %9012 }
 0xa06   : > { %4243 = vadd.xlane.f32.xlu2 %v4242_v45  ;;  %9014 = vpow2.f32 %v4209_v50  ;;  %v4251_v38 = vsel %vm1393_vm9, %v11322_v12, 0.0 }
 0xa07   : > { %9016 = vpow2.f32 %v4215_v16 }
 0xa09   : > { %v4169_v36 = vpop.xlane.xlu2 %4168  ;;  %v4160_v51 = vpop.xlane.xlu1 %4159 }
 0xa0a   : > { %v4191_v56 = vsub.f32 %v11235_v37, %v4169_v36  ;;  %v4188_v18 = vsub.f32 %v11232_v60, %v4160_v51 }
 0xa0c   : > { %v4219_v59 = vmul.f32 1.442695, %v4191_v56  ;;  %v11330_v29 = vpop.eup %9014  ;;  %v4213_v50 = vmul.f32 1.442695, %v4188_v18 }
 0xa0d   : > { %4252 = vadd.xlane.f32.xlu1 %v4251_v38  ;;  %v4248_v31 = vsel %vm1393_vm9, %v11330_v29, 0.0  ;;  %v11334_v45 = vpop.eup %9016 }
 0xa0e   : > { %9018 = vpow2.f32 %v4219_v59  ;;  %4249 = vadd.xlane.f32.xlu2 %v4248_v31  ;;  %v4257_v51 = vsel %vm1393_vm9, %v11334_v45, 0.0  ;;  %v11343_v59 = vpop.f32.mrf.mxu3 }
 0xa0f   : > { %9020 = vpow2.f32 %v4213_v50  ;;  %13518 = vst [vmem:[#allocation26_spill] sm:$0xff] %v11343_v59 }
 0xa11   : > { %v4175_v37 = vpop.xlane.xlu1 %4174 }
 0xa12   : > { %v4193_v16 = vsub.f32 %v11244_v9, %v4175_v37 }
 0xa14   : > { %v11337_v36 = vpop.eup %9018  ;;  %v4223_v60 = vmul.f32 1.442695, %v4193_v16 }
 0xa15   : > { %4258 = vadd.xlane.f32.xlu1 %v4257_v51  ;;  %v4263_v56 = vsel %vm1393_vm9, %v11337_v36, 0.0  ;;  %v11345_v38 = vpop.eup %9020 }
 0xa16   : > { %9022 = vpow2.f32 %v4223_v60  ;;  %4264 = vadd.xlane.f32.xlu0 %v4263_v56  ;;  %v4254_v37 = vsel %vm1393_vm9, %v11345_v38, 0.0  ;;  %v11354_v51 = vpop.f32.mrf.mxu3 }
 0xa19   : > { %v4166_v18 = vpop.xlane.xlu1 %4165 }
 0xa1a   : > { %v4190_v9 = vsub.f32 %v11249_v48, %v4166_v18 }
 0xa1c   : > { %v11348_v31 = vpop.eup %9022  ;;  %v4217_v50 = vmul.f32 1.442695, %v4190_v9 }
 0xa1d   : > { %v4269_v16 = vsel %vm1393_vm9, %v11348_v31, 0.0 }
 0xa1e   : > { %9024 = vpow2.f32 %v4217_v50  ;;  %4255 = vadd.xlane.f32.xlu0 %v4254_v37  ;;  %4270 = vadd.xlane.f32.xlu1 %v4269_v16  ;;  %v11361_v9 = vpop.f32.mrf.mxu3  ;;  %v11369_v16 = vpop.permute.xlu0 %5135 }
 0xa1f   : > { %13519 = vst [vmem:[#allocation27_spill] sm:$0xff] %v11361_v9 }
 0xa21   : > { %v4172_v60 = vpop.xlane.xlu1 %4171 }
 0xa22   : > { %v4192_v56 = vsub.f32 %v11258_v7, %v4172_v60 }
 0xa24   : > { %v11357_v59 = vpop.eup %9024  ;;  %v4221_v48 = vmul.f32 1.442695, %v4192_v56 }
 0xa25   : > { %v4260_v18 = vsel %vm1393_vm9, %v11357_v59, 0.0 }
 0xa26   : > { %9026 = vpow2.f32 %v4221_v48  ;;  %4261 = vadd.xlane.f32.xlu2 %v4260_v18  ;;  %v11367_v37 = vpop.f32.mrf.mxu3 }
 0xa27   : > { %13520 = vst [vmem:[#allocation38_spill] sm:$0xff] %v11367_v37  ;;  %v8728_v37 = vunpack.i.l.bf16 %v11004_v61 }
 0xa2c   : > { %v11363_v20 = vpop.eup %9026 }
 0xa2d   : > { %v4266_v50 = vsel %vm1393_vm9, %v11363_v20, 0.0 }
 0xa2e   : > { %4267 = vadd.xlane.f32.xlu0 %v4266_v50  ;;  %v11373_v7 = vpop.f32.mrf.mxu3 }
 0xa2f   : > { %13521 = vst [vmem:[#allocation39_spill] sm:$0xff] %v11373_v7 }
 0xa36   : > { %v11382_v18 = vpop.f32.mrf.mxu3 }
 0xa37   : > { %5191 = vrot.lane.b32.xlu1 %v10120_v21, %s9291_s18  ;;  %13522 = vst [vmem:[#allocation44_spill] sm:$0xff] %v11382_v18  ;;  %v2553_v18 = vpop.f32.mrf.mxu0 }
 0xa3f   : > { %v4178_v60 = vpop.xlane.xlu0 %4177  ;;  %5247 = vrot.lane.b32.xlu1 %v13469_v33, %s9291_s18  ;;  %v2665_v9 = vpop.f32.mrf.mxu0 }
 0xa40   : > { %v4194_v56 = vsub.f32 %v11270_v26, %v4178_v60  ;;  %v13523_v26 = vld [vmem:[#allocation42_spill] sm:$0xff]  ;;  %v11392_v60 = vpop.f32.mrf.mxu3 }
 0xa41   : > { %13524 = vst [vmem:[#allocation28_spill] sm:$0xff] %v11392_v60 }
 0xa42   : > { %v4225_v48 = vmul.f32 1.442695, %v4194_v56  ;;  %5133 = vrot.lane.b32.xlu0 %v10104_v39, %s9292_s19 }
 0xa44   : > { %9028 = vpow2.f32 %v4225_v48 }
 0xa47   : > { %5217 = vrot.lane.b32.xlu1 %v10131_v58, %s9292_s19 }
 0xa48   : > { %v11398_v39 = vpop.f32.mrf.mxu3 }
 0xa49   : > { %13525 = vst [vmem:[#allocation30_spill] sm:$0xff] %v11398_v39 }
 0xa4a   : > { %v11384_v50 = vpop.eup %9028  ;;  %5161 = vrot.lane.b32.xlu0 %v10112_v11, %s9292_s19 }
 0xa4b   : > { %v4272_v7 = vsel %vm1393_vm9, %v11384_v50, 0.0 }
 0xa4c   : > { %4273 = vadd.xlane.f32.xlu2 %v4272_v7 }
 0xa4f   : > { %8756 = vrot.lane.b32.xlu1 %v13523_v26, %s9288_s12 }
 0xa50   : > { %v11402_v48 = vpop.f32.mrf.mxu3 }
 0xa51   : > { %13526 = vst [vmem:[#allocation43_spill] sm:$0xff] %v11402_v48  ;;  %v8733_v48 = vunpack.i.l.bf16 %v11124_v52 }
 0xa52   : > { %5189 = vrot.lane.b32.xlu0 %v10120_v21, %s9292_s19 }
 0xa5a   : > { %5219 = vrot.lane.b32.xlu0 %v10131_v58, %s9291_s18 }
 0xa60   : > { %v4229_v56 = vpop.xlane.xlu1 %4228 }
 0xa61   : > { %9030 = vrcp.f32 %v4229_v56  ;;  %v11407_v56 = vpop.f32.mrf.mxu3 }
 0xa62   : > { %13527 = vst [vmem:[#allocation29_spill] sm:$0xff] %v11407_v56 }
 0xa64   : > { %5163 = vrot.lane.b32.xlu2 %v10112_v11, %s9291_s18 }
 0xa67   : > { %v9031_v7 = vpop.eup %9030 }
 0xa68   : > { %v4291_v26 = vmul.f32 %v9031_v7, %v11281_v27  ;;  %v4235_v60 = vpop.xlane.xlu1 %4234  ;;  %v2912_v7 = vsub.f32 %v11182_v6, %v11276_v15  ;;  %v8729_v6 = vunpack.i.h.bf16 %v11004_v61  ;;  %v8738_v15 = vunpack.i.l.bf16 %v11132_v43 }
 0xa69   : > { %9032 = vrcp.f32 %v4235_v60  ;;  %v4241_v21 = vpop.xlane.xlu0 %4240 }
 0xa6a   : > { %8450 = vmatmul.msk.f32.vlgmr.msra.gmra.mxu1 %vm1393_vm9, %v4291_v26  ;;  %9034 = vrcp.f32 %v4241_v21  ;;  %v2928_v26 = vmul.f32 1.442695, %v2912_v7  ;;  %v8743_v7 = vunpack.i.l.bf16 %v11262_v32 }
 0xa6b   : > { %4432 = vmatpush.msra.mxu1 %v8728_v37  ;;  %v11415_v37 = vadd.f32 %v11146_v62, %v2665_v9  ;;  %v11423_v9 = vpop.f32.mrf.mxu3 }
 0xa6f   : > { %v9033_v58 = vpop.eup %9032 }
 0xa70   : > { %v4293_v11 = vmul.f32 %v9033_v58, %v11288_v25  ;;  %v4232_v39 = vpop.xlane.xlu1 %4231  ;;  %v9035_v60 = vpop.eup %9034 }
 0xa71   : > { %9036 = vrcp.f32 %v4232_v39  ;;  %v4238_v27 = vpop.xlane.xlu2 %4237  ;;  %v4295_v25 = vmul.f32 %v9035_v60, %v11292_v8  ;;  %v2888_v39 = vsel %vm1393_vm9, %v11415_v37, -inf  ;;  %v8734_v60 = vunpack.i.h.bf16 %v11124_v52 }
 0xa72   : > { %8452 = vmatmul.msk.f32.vlgmr.msrb.gmra.mxu1 %vm1393_vm9, %v4293_v11  ;;  %9038 = vrcp.f32 %v4238_v27 }
 0xa73   : > { %4484 = vmatpush.msrb.mxu1 %v8733_v48 }
 0xa77   : > { %v9037_v21 = vpop.eup %9036 }
 0xa78   : > { %v4292_v58 = vmul.f32 %v9037_v21, %v11298_v53  ;;  %v4247_v56 = vpop.xlane.xlu1 %4246  ;;  %v9039_v8 = vpop.eup %9038 }
 0xa79   : > { %9040 = vrcp.f32 %v4247_v56  ;;  %2889 = vmax.xlane.f32.xlu1 %v2888_v39  ;;  %v4244_v48 = vpop.xlane.xlu2 %4243  ;;  %v4294_v61 = vmul.f32 %v9039_v8, %v11304_v23  ;;  %v11437_v21 = vpop.f32.mrf.mxu3 }
 0xa7a   : > { %9042 = vpow2.f32 %v2928_v26  ;;  %8451 = vmatmul.msk.f32.vlgmr.msrb.gmra.mxu2 %vm1393_vm9, %v4292_v58  ;;  %8454 = vmatmul.msk.f32.vlgmr.msra.gmra.mxu1 %vm1393_vm9, %v4295_v25  ;;  %v11440_v58 = vadd.f32 %v11146_v62, %v2553_v18 }
 0xa7b   : > { %4458 = vmatpush.msrb.mxu2 %v8729_v6  ;;  %4536 = vmatpush.msra.mxu1 %v8738_v15  ;;  %9044 = vrcp.f32 %v4244_v48  ;;  %v8748_v15 = vunpack.i.l.bf16 %v11013_v30  ;;  %v8739_v48 = vunpack.i.h.bf16 %v11132_v43 }
 0xa7c   : > { %v2876_v18 = vsel %vm1393_vm9, %v11440_v58, -inf }
 0xa7f   : > { %v9041_v53 = vpop.eup %9040 }
 0xa80   : > { %v11427_v11 = vpop.eup %9042  ;;  %v4297_v56 = vmul.f32 %v9041_v53, %v11310_v24  ;;  %v4253_v27 = vpop.xlane.xlu1 %4252 }
 0xa81   : > { %9046 = vrcp.f32 %v4253_v27  ;;  %v2960_v26 = vsel %vm1393_vm9, %v11427_v11, 0.0  ;;  %v4250_v23 = vpop.xlane.xlu2 %4249  ;;  %v9045_v24 = vpop.eup %9044  ;;  %v8753_v27 = vunpack.i.l.bf16 %v11139_v22 }
 0xa82   : > { %8453 = vmatmul.msk.f32.vlgmr.msra.gmra.mxu2 %vm1393_vm9, %v4294_v61  ;;  %8456 = vmatmul.msk.f32.vlgmr.msrb.gmra.mxu1 %vm1393_vm9, %v4297_v56  ;;  %9048 = vrcp.f32 %v4250_v23  ;;  %v4296_v52 = vmul.f32 %v9045_v24, %v11316_v1  ;;  %v11450_v1 = vpop.f32.mrf.mxu3  ;;  %v8744_v56 = vunpack.i.h.bf16 %v11262_v32 }
 0xa83   : > { %4510 = vmatpush.msra.mxu2 %v8734_v60  ;;  %4588 = vmatpush.msrb.mxu1 %v8743_v7 }
 0xa84   : > { %2961 = vadd.xlane.f32.xlu0 %v2960_v26 }
 0xa87   : > { %v9047_v25 = vpop.eup %9046 }
 0xa88   : > { %v4299_v39 = vmul.f32 %v9047_v25, %v11322_v12  ;;  %v4259_v6 = vpop.xlane.xlu1 %4258  ;;  %v9049_v53 = vpop.eup %9048  ;;  %v8749_v25 = vunpack.i.h.bf16 %v11013_v30 }
 0xa89   : > { %9050 = vrcp.f32 %v4259_v6  ;;  %v4265_v8 = vpop.xlane.xlu0 %4264  ;;  %v4298_v61 = vmul.f32 %v9049_v53, %v11330_v29 }
 0xa8a   : > { %8455 = vmatmul.msk.f32.vlgmr.msrb.gmra.mxu2 %vm1393_vm9, %v4296_v52  ;;  %8458 = vmatmul.msk.f32.vlgmr.msra.gmra.mxu1 %vm1393_vm9, %v4299_v39  ;;  %9052 = vrcp.f32 %v4265_v8  ;;  %v11458_v24 = vpop.f32.mrf.mxu3 }
 0xa8b   : > { %4562 = vmatpush.msrb.mxu2 %v8739_v48  ;;  %4640 = vmatpush.msra.mxu1 %v8748_v15 }
 0xa8d   : > { %2877 = vmax.xlane.f32.xlu2 %v2876_v18 }
 0xa8f   : > { %v9051_v12 = vpop.eup %9050 }
 0xa90   : > { %v4301_v43 = vmul.f32 %v9051_v12, %v11334_v45  ;;  %v9053_v26 = vpop.eup %9052 }
 0xa91   : > { %v4256_v7 = vpop.xlane.xlu0 %4255  ;;  %v4271_v60 = vpop.xlane.xlu1 %4270  ;;  %v4303_v29 = vmul.f32 %v9053_v26, %v11337_v36 }
 0xa92   : > { %9054 = vrcp.f32 %v4256_v7  ;;  %8457 = vmatmul.msk.f32.vlgmr.msra.gmra.mxu2 %vm1393_vm9, %v4298_v61  ;;  %8460 = vmatmul.msk.f32.vlgmr.msrb.gmra.mxu1 %vm1393_vm9, %v4301_v43  ;;  %v11472_v48 = vpop.f32.mrf.mxu3 }
 0xa93   : > { %4614 = vmatpush.msra.mxu2 %v8744_v56  ;;  %4692 = vmatpush.msrb.mxu1 %v8753_v27  ;;  %9056 = vrcp.f32 %v4271_v60 }
 0xa98   : > { %v9055_v23 = vpop.eup %9054  ;;  %5273 = vrot.lane.b32.xlu0 %v10194_v17, %s9292_s19 }
 0xa99   : > { %v4300_v32 = vmul.f32 %v9055_v23, %v11345_v38  ;;  %v4262_v45 = vpop.xlane.xlu2 %4261  ;;  %v9057_v52 = vpop.eup %9056  ;;  %v8754_v38 = vunpack.i.h.bf16 %v11139_v22 }
 0xa9a   : > { %9058 = vrcp.f32 %v4262_v45  ;;  %8462 = vmatmul.msk.f32.vlgmr.msra.gmra.mxu1 %vm1393_vm9, %v4303_v29  ;;  %v4305_v36 = vmul.f32 %v9057_v52, %v11348_v31  ;;  %v11487_v22 = vpop.f32.mrf.mxu3  ;;  %v2777_v31 = vpop.f32.mrf.mxu0 }
 0xa9b   : > { %8484 = vmatpush.xpose.msk.msra.mxu1 %vm1393_vm9, %v11265_v55  ;;  %8459 = vmatmul.msk.f32.vlgmr.msrb.gmra.mxu2 %vm1393_vm9, %v4300_v32 }
 0xa9c   : > { %4666 = vmatpush.msrb.mxu2 %v8749_v25 }
 0xaa0   : > { %v9059_v39 = vpop.eup %9058 }
 0xaa1   : > { %v4302_v6 = vmul.f32 %v9059_v39, %v11357_v59  ;;  %v4268_v15 = vpop.xlane.xlu0 %4267 }
 0xaa2   : > { %9060 = vrcp.f32 %v4268_v15  ;;  %8464 = vmatmul.msk.f32.vlgmr.msrb.gmra.mxu1 %vm1393_vm9, %v4305_v36 }
 0xaa3   : > { %8490 = vmatpush.xpose.msk.msrb.mxu1 %vm1393_vm9, %v11267_v41  ;;  %8461 = vmatmul.msk.f32.vlgmr.msra.gmra.mxu2 %vm1393_vm9, %v4302_v6 }
 0xaa4   : > { %4718 = vmatpush.msra.mxu2 %v8754_v38 }
 0xaa5   : > { %5245 = vrot.lane.b32.xlu2 %v13469_v33, %s9292_s19 }
 0xaa8   : > { %v9061_v30 = vpop.eup %9060 }
 0xaa9   : > { %v4304_v55 = vmul.f32 %v9061_v30, %v11363_v20  ;;  %v5192_v59 = vpop.permute.xlu1 %5191  ;;  %v4878_v20 = vpop.f32.mrf.mxu3 }
 0xaaa   : > { %8485 = vmatmul.msk.f32.vlgmr.msra.gmra.mxu1 %vm1393_vm9, %v11057_v34  ;;  %8506 = vmatpush.xpose.msk.msra.mxu3 %vm1393_vm9, %v5192_v59  ;;  %v11543_v52 = vadd.f32 %v11146_v62, %v4878_v20 }
 0xaab   : > { %8496 = vmatpush.xpose.msk.msra.mxu1 %vm1393_vm9, %v11157_v35  ;;  %8463 = vmatmul.msk.f32.vlgmr.msrb.gmra.mxu2 %vm1393_vm9, %v4304_v55 }
 0xaac   : > { %8486 = vmatpush.xpose.msk.msrb.mxu2 %vm1393_vm9, %v11043_v49  ;;  %v11500_v49 = vadd.f32 %v11146_v62, %v2777_v31  ;;  %v5301_v6 = vsel %vm1393_vm9, %v11543_v52, -inf }
 0xaad   : > { %5275 = vrot.lane.b32.xlu2 %v10194_v17, %s9291_s18 }
 0xab1   : > { %v5248_v41 = vpop.permute.xlu1 %5247  ;;  %v4962_v53 = vpop.f32.mrf.mxu3 }
 0xab2   : > { %8491 = vmatmul.msk.f32.vlgmr.msrb.gmra.mxu1 %vm1393_vm9, %v11170_v10  ;;  %v2900_v10 = vsel %vm1393_vm9, %v11500_v49, -inf }
 0xab3   : > { %8502 = vmatpush.xpose.msk.msrb.mxu1 %vm1393_vm9, %v11369_v16 }
 0xab4   : > { %v5134_v34 = vpop.permute.xlu0 %5133 }
 0xab9   : > { %v5218_v35 = vpop.permute.xlu1 %5217  ;;  %v5046_v60 = vpop.f32.mrf.mxu3 }
 0xaba   : > { %8497 = vmatmul.msk.f32.vlgmr.msra.gmra.mxu1 %vm1393_vm9, %v11163_v13  ;;  %v11506_v13 = vadd.f32 %v11146_v62, %v4962_v53  ;;  %v11516_v23 = vadd.f32 %v11146_v62, %v5046_v60 }
 0xabc   : > { %v5162_v8 = vpop.permute.xlu0 %5161  ;;  %v5310_v7 = vsel %vm1393_vm9, %v11506_v13, -inf }
 0xabf   : > { %v4274_v18 = vpop.xlane.xlu2 %4273 }
 0xac0   : > { %9062 = vrcp.f32 %v4274_v18 }
 0xac1   : > { %v8757_v12 = vpop.permute.xlu1 %8756 }
 0xac2   : > { %v8759_v61 = vunpack.i.h.bf16 %v8757_v12  ;;  %v8758_v16 = vunpack.i.l.bf16 %v8757_v12  ;;  %2901 = vmax.xlane.f32.xlu0 %v2900_v10  ;;  %8503 = vmatmul.msk.f32.vlgmr.msrb.gmra.mxu1 %vm1393_vm9, %v5134_v34 }
 0xac4   : > { %v5190_v43 = vpop.permute.xlu0 %5189  ;;  %3061 = vmatpush.msrb.mxu0 %v8758_v16 }
 0xac5   : > { %8507 = vmatmul.msk.f32.vlgmr.msra.gmra.mxu3 %vm1393_vm9, %v5190_v43 }
 0xac6   : > { %3165 = vmatpush.msra.mxu0 %v8759_v61  ;;  %v9063_v56 = vpop.eup %9062 }
 0xac7   : > { %v4306_v27 = vmul.f32 %v9063_v56, %v11384_v50  ;;  %v5319_v50 = vsel %vm1393_vm9, %v11516_v23, -inf }
 0xac9   : > { %8465 = vmatmul.msk.f32.vlgmr.msra.gmra.mxu2 %vm1393_vm9, %v4306_v27 }
 0xaca   : > { %8492 = vmatpush.xpose.msk.msra.mxu2 %vm1393_vm9, %v11134_v4  ;;  %5311 = vmax.xlane.f32.xlu0 %v5310_v7  ;;  %v5164_v4 = vpop.permute.xlu2 %5163  ;;  %v5130_v7 = vpop.f32.mrf.mxu3 }
 0xacc   : > { %v5220_v26 = vpop.permute.xlu0 %5219 }
 0xacd   : > { %8508 = vmatpush.xpose.msk.msra.mxu1 %vm1393_vm9, %v5220_v26 }
 0xad0   : > { %8509 = vmatmul.msk.f32.vlgmr.msra.gmra.mxu1 %vm1393_vm9, %v5218_v35 }
 0xad1   : > { %8487 = vmatmul.msk.f32.vlgmr.msrb.gmra.mxu2 %vm1393_vm9, %v11155_v42 }
 0xad2   : > { %8498 = vmatpush.xpose.msk.msrb.mxu2 %vm1393_vm9, %v11241_v44  ;;  %5320 = vmax.xlane.f32.xlu0 %v5319_v50 }
 0xad9   : > { %8493 = vmatmul.msk.f32.vlgmr.msra.gmra.mxu2 %vm1393_vm9, %v11274_v0 }
 0xada   : > { %8504 = vmatpush.xpose.msk.msra.mxu2 %vm1393_vm9, %v5164_v4 }
 0xae1   : > { %8499 = vmatmul.msk.f32.vlgmr.msrb.gmra.mxu2 %vm1393_vm9, %v11251_v40 }
 0xae2   : > { %8510 = vmatpush.xpose.msk.msrb.mxu2 %vm1393_vm9, %v5248_v41 }
 0xae7   : > { %v11534_v32 = vpop.f32.mrf.mxu1 }
 0xae9   : > { %8505 = vmatmul.msk.f32.vlgmr.msra.gmra.mxu2 %vm1393_vm9, %v5162_v8  ;;  %v13528_v8 = vld [vmem:[#allocation46_spill] sm:$0xff] }
 0xaec   : > { %v2890_v42 = vpop.xlane.xlu1 %2889 }
 0xaed   : > { %v2920_v29 = vsub.f32 %v11415_v37, %v2890_v42  ;;  %v11586_v42 = vadd.f32 %v11146_v62, %v5130_v7 }
 0xaef   : > { %v2944_v44 = vmul.f32 1.442695, %v2920_v29  ;;  %v11538_v0 = vpop.f32.mrf.mxu1 }
 0xaf1   : > { %9064 = vpow2.f32 %v2944_v44 }
 0xaf7   : > { %v11536_v45 = vpop.eup %9064  ;;  %v2962_v25 = vpop.xlane.xlu0 %2961 }
 0xaf8   : > { %9066 = vrcp.f32 %v2962_v25  ;;  %v2984_v40 = vsel %vm1393_vm9, %v11536_v45, 0.0  ;;  %v11550_v38 = vpop.f32.mrf.mxu1 }
 0xaf9   : > { %2985 = vadd.xlane.f32.xlu1 %v2984_v40 }
 0xafd   : > { %v11555_v41 = vpop.f32.mrf.mxu2 }
 0xafe   : > { %v9067_v39 = vpop.eup %9066 }
 0xaff   : > { %v3024_v37 = vmul.f32 %v9067_v39, %v11427_v11 }
 0xb00   : > { %v2878_v36 = vpop.xlane.xlu2 %2877  ;;  %v11557_v11 = vpop.f32.mrf.mxu1 }
 0xb01   : > { %v2916_v15 = vsub.f32 %v11440_v58, %v2878_v36  ;;  %8370 = vmatmul.msk.f32.vlgmr.msrb.gmra.mxu0 %vm1393_vm9, %v3024_v37  ;;  %5302 = vmax.xlane.f32.xlu1 %v5301_v6 }
 0xb03   : > { %v2936_v30 = vmul.f32 1.442695, %v2916_v15 }
 0xb05   : > { %9068 = vpow2.f32 %v2936_v30  ;;  %v11563_v35 = vpop.f32.mrf.mxu2 }
 0xb08   : > { %v5246_v55 = vpop.permute.xlu2 %5245  ;;  %v11565_v31 = vpop.f32.mrf.mxu1 }
 0xb09   : > { %8511 = vmatmul.msk.f32.vlgmr.msrb.gmra.mxu2 %vm1393_vm9, %v5246_v55 }
 0xb0a   : > { %v5274_v20 = vpop.permute.xlu0 %5273 }
 0xb0b   : > { %v11553_v59 = vpop.eup %9068 }
 0xb0c   : > { %v2972_v34 = vsel %vm1393_vm9, %v11553_v59, 0.0 }
 0xb0d   : > { %2973 = vadd.xlane.f32.xlu2 %v2972_v34  ;;  %v11569_v18 = vpop.f32.mrf.mxu2 }
 0xb10   : > { %v5276_v58 = vpop.permute.xlu2 %5275  ;;  %v11571_v53 = vpop.f32.mrf.mxu1 }
 0xb11   : > { %8512 = vmatpush.xpose.msk.msrb.mxu3 %vm1393_vm9, %v5276_v58 }
 0xb14   : > { %8513 = vmatmul.msk.f32.vlgmr.msrb.gmra.mxu3 %vm1393_vm9, %v5274_v20 }
 0xb15   : > { %v11573_v12 = vpop.f32.mrf.mxu2 }
 0xb18   : > { %v11575_v10 = vpop.f32.mrf.mxu1 }
 0xb1a   : > { %8761 = vrot.lane.b32.xlu1 %v13528_v8, %s9288_s12 }
 0xb1e   : > { %v11577_v61 = vpop.f32.mrf.mxu2 }
 0xb20   : > { %v11579_v16 = vpop.f32.mrf.mxu1 }
 0xb26   : > { %v11582_v26 = vpop.f32.mrf.mxu2 }
 0xb28   : > { %v4906_v50 = vpop.f32.mrf.mxu1 }
 0xb29   : > { %v11595_v40 = vadd.f32 %v11146_v62, %v4906_v50 }
 0xb2b   : > { %v5304_v36 = vsel %vm1393_vm9, %v11595_v40, -inf }
 0xb30   : > { %v4990_v37 = vpop.f32.mrf.mxu1 }
 0xb31   : > { %v11606_v15 = vadd.f32 %v11146_v62, %v4990_v37 }
 0xb33   : > { %v5313_v55 = vsel %vm1393_vm9, %v11606_v15, -inf }
 0xb35   : > { %v2902_v43 = vpop.xlane.xlu0 %2901 }
 0xb36   : > { %v2924_v56 = vsub.f32 %v11500_v49, %v2902_v43  ;;  %v5328_v49 = vsel %vm1393_vm9, %v11586_v42, -inf }
 0xb38   : > { %v2952_v27 = vmul.f32 1.442695, %v2924_v56  ;;  %v5074_v34 = vpop.f32.mrf.mxu1 }
 0xb39   : > { %v11613_v58 = vadd.f32 %v11146_v62, %v5074_v34 }
 0xb3a   : > { %9070 = vpow2.f32 %v2952_v27 }
 0xb3b   : > { %v5322_v20 = vsel %vm1393_vm9, %v11613_v58, -inf }
 0xb3d   : > { %v5312_v60 = vpop.xlane.xlu0 %5311 }
 0xb3e   : > { %v5352_v4 = vsub.f32 %v11506_v13, %v5312_v60  ;;  %v11599_v13 = vpop.f32.mrf.mxu2 }
 0xb40   : > { %v11588_v29 = vpop.eup %9070  ;;  %v5371_v44 = vmul.f32 1.442695, %v5352_v4 }
 0xb41   : > { %v2996_v25 = vsel %vm1393_vm9, %v11588_v29, 0.0 }
 0xb42   : > { %9072 = vpow2.f32 %v5371_v44  ;;  %2997 = vadd.xlane.f32.xlu2 %v2996_v25 }
 0xb44   : > { %5329 = vmax.xlane.f32.xlu1 %v5328_v49 }
 0xb48   : > { %v11597_v39 = vpop.eup %9072 }
 0xb49   : > { %v5406_v6 = vsel %vm1393_vm9, %v11597_v39, 0.0 }
 0xb4a   : > { %5305 = vmax.xlane.f32.xlu2 %v5304_v36 }
 0xb4c   : > { %5407 = vadd.xlane.f32.xlu1 %v5406_v6  ;;  %v11608_v30 = vpop.f32.mrf.mxu2 }
 0xb52   : > { %5314 = vmax.xlane.f32.xlu2 %v5313_v55 }
 0xb54   : > { %v4934_v8 = vpop.f32.mrf.mxu2 }
 0xb55   : > { %v11618_v43 = vadd.f32 %v11146_v62, %v4934_v8 }
 0xb57   : > { %v5307_v56 = vsel %vm1393_vm9, %v11618_v43, -inf }
 0xb5a   : > { %5323 = vmax.xlane.f32.xlu2 %v5322_v20 }
 0xb5c   : > { %v5018_v4 = vpop.f32.mrf.mxu2 }
 0xb62   : > { %5308 = vmax.xlane.f32.xlu2 %v5307_v56 }
 0xb64   : > { %v5102_v37 = vpop.f32.mrf.mxu2 }
 0xb65   : > { %8776 = vrot.lane.b32.xlu1 %v10874_v19, %s9293_s26 }
 0xb6c   : > { %v2986_v27 = vpop.xlane.xlu1 %2985  ;;  %v5186_v8 = vpop.f32.mrf.mxu2 }
 0xb74   : > { %v5303_v7 = vpop.xlane.xlu1 %5302 }
 0xb75   : > { %v5349_v60 = vsub.f32 %v11543_v52, %v5303_v7  ;;  %v11633_v52 = vadd.f32 %v11146_v62, %v5018_v4  ;;  %v11642_v62 = vld [vmem:[%s13354_s1] sm:$0xff]  ;;  %v5158_v7 = vpop.f32.mrf.mxu1 }
 0xb77   : > { %v5365_v50 = vmul.f32 1.442695, %v5349_v60  ;;  %v5316_v20 = vsel %vm1393_vm9, %v11633_v52, -inf }
 0xb79   : > { %9074 = vpow2.f32 %v5365_v50  ;;  %v5214_v50 = vpop.f32.mrf.mxu3 }
 0xb7a   : > { %8766 = vrot.lane.b32.xlu2 %v10890_v47, %s9293_s26  ;;  %v11658_v4 = vadd.f32 %v11642_v62, %v5214_v50 }
 0xb7f   : > { %v11627_v44 = vpop.eup %9074 }
 0xb80   : > { %v2974_v25 = vpop.xlane.xlu2 %2973  ;;  %v5397_v49 = vsel %vm1393_vm9, %v11627_v44, 0.0 }
 0xb81   : > { %9076 = vrcp.f32 %v2974_v25  ;;  %5398 = vadd.xlane.f32.xlu0 %v5397_v49  ;;  %v5321_v25 = vpop.xlane.xlu0 %5320  ;;  %v5337_v49 = vsel %vm1393_vm9, %v11658_v4, -inf }
 0xb82   : > { %9078 = vrcp.f32 %v2986_v27 }
 0xb87   : > { %v9077_v19 = vpop.eup %9076 }
 0xb88   : > { %v3028_v36 = vmul.f32 %v9077_v19, %v11553_v59  ;;  %v9079_v6 = vpop.eup %9078  ;;  %v11645_v59 = vadd.f32 %v11642_v62, %v5186_v8  ;;  %v5242_v19 = vpop.f32.mrf.mxu1 }
 0xb89   : > { %v3032_v56 = vmul.f32 %v9079_v6, %v11536_v45  ;;  %v11653_v45 = vadd.f32 %v11642_v62, %v5158_v7 }
 0xb8a   : > { %8374 = vmatmul.msk.f32.vlgmr.msra.gmra.mxu0 %vm1393_vm9, %v3028_v36  ;;  %v5334_v27 = vsel %vm1393_vm9, %v11645_v59, -inf  ;;  %v5355_v36 = vsub.f32 %v11516_v23, %v5321_v25 }
 0xb8b   : > { %v5331_v60 = vsel %vm1393_vm9, %v11653_v45, -inf }
 0xb8c   : > { %v8762_v47 = vpop.permute.xlu1 %8761  ;;  %v5377_v6 = vmul.f32 1.442695, %v5355_v36  ;;  %v3063_v36 = vpop.f32.mrf.mxu0 }
 0xb8d   : > { %v8764_v55 = vunpack.i.h.bf16 %v8762_v47  ;;  %v8763_v34 = vunpack.i.l.bf16 %v8762_v47  ;;  %v11667_v47 = vadd.f32 %v11642_v62, %v5242_v19 }
 0xb8e   : > { %9080 = vpow2.f32 %v5377_v6 }
 0xb8f   : > { %5317 = vmax.xlane.f32.xlu1 %v5316_v20  ;;  %3269 = vmatpush.msrb.mxu0 %v8763_v34  ;;  %v5270_v34 = vpop.f32.mrf.mxu2 }
 0xb90   : > { %v11672_v8 = vadd.f32 %v11642_v62, %v5270_v34 }
 0xb91   : > { %3373 = vmatpush.msra.mxu0 %v8764_v55  ;;  %v5340_v55 = vsel %vm1393_vm9, %v11667_v47, -inf }
 0xb92   : > { %8378 = vmatmul.msk.f32.vlgmr.msrb.gmra.mxu0 %vm1393_vm9, %v3032_v56  ;;  %v5343_v56 = vsel %vm1393_vm9, %v11672_v8, -inf }
 0xb95   : > { %8771 = vrot.lane.b32.xlu0 %v10899_v28, %s9293_s26  ;;  %v3456_v28 = vld [vmem:[%s13355_s2 + $0x58] sm:$0xff] }
 0xb96   : > { %3520 = vmatpush.msrb.mxu0 %v3456_v28 }
 0xb97   : > { %5335 = vmax.xlane.f32.xlu1 %v5334_v27  ;;  %v11676_v27 = vpop.eup %9080 }
 0xb98   : > { %v5415_v28 = vsel %vm1393_vm9, %v11676_v27, 0.0 }
 0xba3   : > { %5332 = vmax.xlane.f32.xlu2 %v5331_v60 }
 0xbab   : > { %5338 = vmax.xlane.f32.xlu2 %v5337_v49  ;;  %v11684_v49 = vadd.f32 %v11642_v62, %v5102_v37 }
 0xbb3   : > { %5341 = vmax.xlane.f32.xlu2 %v5340_v55 }
 0xbb5   : > { %v2998_v20 = vpop.xlane.xlu2 %2997 }
 0xbb6   : > { %9082 = vrcp.f32 %v2998_v20 }
 0xbb7   : > { %v5330_v20 = vpop.xlane.xlu1 %5329 }
 0xbbb   : > { %5344 = vmax.xlane.f32.xlu2 %v5343_v56 }
 0xbbc   : > { %v9083_v23 = vpop.eup %9082 }
 0xbbd   : > { %v3036_v7 = vmul.f32 %v9083_v23, %v11588_v29  ;;  %v5306_v60 = vpop.xlane.xlu2 %5305  ;;  %v5325_v29 = vsel %vm1393_vm9, %v11684_v49, -inf }
 0xbbe   : > { %v5350_v50 = vsub.f32 %v11595_v40, %v5306_v60 }
 0xbbf   : > { %5416 = vadd.xlane.f32.xlu0 %v5415_v28  ;;  %8382 = vmatmul.msk.f32.vlgmr.msra.gmra.mxu0 %vm1393_vm9, %v3036_v7  ;;  %v5408_v60 = vpop.xlane.xlu1 %5407 }
 0xbc0   : > { %v5367_v25 = vmul.f32 1.442695, %v5350_v50 }
 0xbc2   : > { %9084 = vpow2.f32 %v5367_v25 }
 0xbc5   : > { %v5315_v19 = vpop.xlane.xlu2 %5314 }
 0xbc6   : > { %v5353_v6 = vsub.f32 %v11606_v15, %v5315_v19 }
 0xbc7   : > { %5326 = vmax.xlane.f32.xlu0 %v5325_v29  ;;  %8386 = vmatmul.msk.f32.vlgmr.msrb.gmra.mxu0 %vm1393_vm9, %v3063_v36 }
 0xbc8   : > { %v11690_v40 = vpop.eup %9084  ;;  %v5373_v55 = vmul.f32 1.442695, %v5353_v6 }
 0xbc9   : > { %v5400_v34 = vsel %vm1393_vm9, %v11690_v40, 0.0 }
 0xbca   : > { %9086 = vpow2.f32 %v5373_v55  ;;  %5401 = vadd.xlane.f32.xlu2 %v5400_v34 }
 0xbcd   : > { %v5324_v37 = vpop.xlane.xlu2 %5323 }
 0xbce   : > { %v5356_v56 = vsub.f32 %v11613_v58, %v5324_v37 }
 0xbcf   : > { %8387 = vmatmul.msk.f32.gmra.mxu0 %vm1393_vm9, %v11286_v57 }
 0xbd0   : > { %v11697_v15 = vpop.eup %9086  ;;  %v5379_v23 = vmul.f32 1.442695, %v5356_v56 }
 0xbd1   : > { %v5409_v7 = vsel %vm1393_vm9, %v11697_v15, 0.0 }
 0xbd2   : > { %9088 = vpow2.f32 %v5379_v23  ;;  %5410 = vadd.xlane.f32.xlu0 %v5409_v7  ;;  %v5358_v7 = vsub.f32 %v11586_v42, %v5330_v20 }
 0xbd5   : > { %v5309_v50 = vpop.xlane.xlu2 %5308 }
 0xbd6   : > { %v5351_v28 = vsub.f32 %v11618_v43, %v5309_v50 }
 0xbd7   : > { %8388 = vmatmul.msk.f32.gmra.mxu0 %vm1393_vm9, %v11159_v2  ;;  %v8777_v19 = vpop.permute.xlu1 %8776 }
 0xbd8   : > { %v11704_v25 = vpop.eup %9088  ;;  %v5369_v58 = vmul.f32 1.442695, %v5351_v28  ;;  %v8778_v55 = vunpack.i.l.bf16 %v8777_v19 }
 0xbd9   : > { %v5418_v57 = vsel %vm1393_vm9, %v11704_v25, 0.0 }
 0xbda   : > { %9090 = vpow2.f32 %v5369_v58  ;;  %5419 = vadd.xlane.f32.xlu1 %v5418_v57 }
 0xbdd   : > { %v8767_v36 = vpop.permute.xlu2 %8766 }
 0xbde   : > { %v8769_v6 = vunpack.i.h.bf16 %v8767_v36  ;;  %v8768_v29 = vunpack.i.l.bf16 %v8767_v36 }
 0xbdf   : > { %8389 = vmatmul.msk.f32.gmra.mxu0 %vm1393_vm9, %v11116_v3 }
 0xbe0   : > { %v11710_v43 = vpop.eup %9090  ;;  %5498 = vmatpush.msrb.mxu1 %v8768_v29  ;;  %5524 = vmatpush.msra.mxu2 %v8769_v6  ;;  %v8779_v29 = vunpack.i.h.bf16 %v8777_v19  ;;  %v5298_v19 = vpop.f32.mrf.mxu3 }
 0xbe1   : > { %v5403_v2 = vsel %vm1393_vm9, %v11710_v43, 0.0 }
 0xbe2   : > { %5602 = vmatpush.msrb.mxu2 %v8778_v55  ;;  %5404 = vadd.xlane.f32.xlu0 %v5403_v2  ;;  %v11738_v55 = vadd.f32 %v11642_v62, %v5298_v19 }
 0xbf4   : > { %v5399_v34 = vpop.xlane.xlu0 %5398 }
 0xbf5   : > { %9092 = vrcp.f32 %v5399_v34 }
 0xbf6   : > { %8781 = vrot.lane.b32.xlu0 %v10969_v46, %s9293_s26  ;;  %9094 = vrcp.f32 %v5408_v60  ;;  %v5383_v46 = vmul.f32 1.442695, %v5358_v7 }
 0xbfb   : > { %v9093_v37 = vpop.eup %9092 }
 0xbfc   : > { %v5461_v56 = vmul.f32 %v9093_v37, %v11627_v44  ;;  %v9095_v28 = vpop.eup %9094 }
 0xbfd   : > { %v5464_v44 = vmul.f32 %v9095_v28, %v11597_v39 }
 0xbfe   : > { %8514 = vmatmul.msk.f32.vlgmr.msrb.gmra.mxu1 %vm1393_vm9, %v5461_v56 }
 0xc02   : > { %v5318_v3 = vpop.xlane.xlu1 %5317 }
 0xc03   : > { %v5354_v23 = vsub.f32 %v11633_v52, %v5318_v3 }
 0xc05   : > { %v5375_v50 = vmul.f32 1.442695, %v5354_v23 }
 0xc07   : > { %9096 = vpow2.f32 %v5375_v50  ;;  %v3167_v58 = vpop.f32.mrf.mxu0  ;;  %v8772_v57 = vpop.permute.xlu0 %8771 }
 0xc08   : > { %v8774_v36 = vunpack.i.h.bf16 %v8772_v57  ;;  %v8773_v6 = vunpack.i.l.bf16 %v8772_v57  ;;  %8390 = vmatmul.msk.f32.gmra.mxu0 %vm1393_vm9, %v3167_v58  ;;  %9098 = vpow2.f32 %v5383_v46 }
 0xc0a   : > { %5550 = vmatpush.msra.mxu3 %v8773_v6  ;;  %5576 = vmatpush.msra.mxu1 %v8774_v36  ;;  %v13530_v36 = vld [vmem:[#allocation36_spill] sm:$0xff] }
 0xc0b   : > { %8517 = vmatmul.msk.f32.vlgmr.msra.gmra.mxu1 %vm1393_vm9, %v5464_v44 }
 0xc0c   : > { %5628 = vmatpush.msrb.mxu3 %v8779_v29 }
 0xc0d   : > { %v11723_v52 = vpop.eup %9096 }
 0xc0e   : > { %v5412_v42 = vsel %vm1393_vm9, %v11723_v52, 0.0  ;;  %v11729_v20 = vpop.eup %9098 }
 0xc0f   : > { %5413 = vadd.xlane.f32.xlu1 %v5412_v42  ;;  %v5424_v39 = vsel %vm1393_vm9, %v11729_v20, 0.0  ;;  %v3271_v3 = vpop.f32.mrf.mxu0  ;;  %v13531_v42 = vld [vmem:[#allocation15_spill] sm:$0xff] }
 0xc10   : > { %8391 = vmatmul.msk.f32.gmra.mxu0 %vm1393_vm9, %v11300_v5  ;;  %v5346_v5 = vsel %vm1393_vm9, %v11738_v55, -inf }
 0xc16   : > { %v11731_v60 = vpop.xlane.xlu2 %5332 }
 0xc17   : > { %5425 = vadd.xlane.f32.xlu1 %v5424_v39  ;;  %v4723_v39 = vld [vmem:[%s13355_s2 + $0x60] sm:$0xff] }
 0xc18   : > { %8392 = vmatmul.msk.f32.gmra.mxu0 %vm1393_vm9, %v11165_v63 }
 0xc19   : > { %4787 = vmatpush.msra.mxu0 %v4723_v39 }
 0xc1e   : > { %v5339_v2 = vpop.xlane.xlu2 %5338 }
 0xc1f   : > { %v5361_v34 = vsub.f32 %v11658_v4, %v5339_v2 }
 0xc20   : > { %5347 = vmax.xlane.f32.xlu0 %v5346_v5  ;;  %8393 = vmatmul.msk.f32.gmra.mxu0 %vm1393_vm9, %v11122_v54  ;;  %v13529_v54 = vld [vmem:[#allocation21_spill] sm:$0xff] }
 0xc21   : > { %v5389_v37 = vmul.f32 1.442695, %v5361_v34  ;;  %v5336_v34 = vpop.xlane.xlu1 %5335 }
 0xc23   : > { %9100 = vpow2.f32 %v5389_v37 }
 0xc26   : > { %v5342_v56 = vpop.xlane.xlu2 %5341 }
 0xc27   : > { %v5362_v23 = vsub.f32 %v11667_v47, %v5342_v56 }
 0xc28   : > { %8394 = vmatmul.msk.f32.gmra.mxu0 %vm1393_vm9, %v3271_v3  ;;  %v5360_v3 = vsub.f32 %v11645_v59, %v5336_v34  ;;  %v13533_v59 = vld [vmem:[#allocation37_spill] sm:$0xff] }
 0xc29   : > { %v11747_v63 = vpop.eup %9100  ;;  %v5391_v62 = vmul.f32 1.442695, %v5362_v23 }
 0xc2a   : > { %v5433_v4 = vsel %vm1393_vm9, %v11747_v63, 0.0 }
 0xc2b   : > { %9102 = vpow2.f32 %v5391_v62  ;;  %5434 = vadd.xlane.f32.xlu0 %v5433_v4  ;;  %v5387_v62 = vmul.f32 1.442695, %v5360_v3 }
 0xc2e   : > { %v5345_v7 = vpop.xlane.xlu2 %5344 }
 0xc2f   : > { %v5363_v50 = vsub.f32 %v11672_v8, %v5345_v7 }
 0xc30   : > { %8791 = vrot.lane.b32.xlu1 %v13529_v54, %s9293_s26  ;;  %8395 = vmatmul.msk.f32.gmra.mxu0 %vm1393_vm9, %v11312_v14 }
 0xc31   : > { %v11756_v47 = vpop.eup %9102  ;;  %v5393_v28 = vmul.f32 1.442695, %v5363_v50 }
 0xc32   : > { %v5417_v58 = vpop.xlane.xlu0 %5416  ;;  %v5436_v57 = vsel %vm1393_vm9, %v11756_v47, 0.0 }
 0xc33   : > { %9104 = vpow2.f32 %v5393_v28  ;;  %5437 = vadd.xlane.f32.xlu0 %v5436_v57  ;;  %v13534_v57 = vld [vmem:[#allocation12_spill] sm:$0xff] }
 0xc38   : > { %8396 = vmatmul.msk.f32.gmra.mxu0 %vm1393_vm9, %v13530_v36  ;;  %v13535_v36 = vld [vmem:[#allocation35_spill] sm:$0xff] }
 0xc39   : > { %v11762_v6 = vpop.eup %9104 }
 0xc3a   : > { %v5327_v8 = vpop.xlane.xlu0 %5326  ;;  %v5439_v46 = vsel %vm1393_vm9, %v11762_v6, 0.0 }
 0xc3b   : > { %v5357_v14 = vsub.f32 %v11684_v49, %v5327_v8  ;;  %5440 = vadd.xlane.f32.xlu0 %v5439_v46 }
 0xc3c   : > { %v3375_v56 = vpop.f32.mrf.mxu0 }
 0xc3d   : > { %v5381_v44 = vmul.f32 1.442695, %v5357_v14  ;;  %v5402_v29 = vpop.xlane.xlu2 %5401 }
 0xc3e   : > { %9106 = vrcp.f32 %v5402_v29 }
 0xc3f   : > { %9108 = vpow2.f32 %v5381_v44 }
 0xc40   : > { %8397 = vmatmul.msk.f32.gmra.mxu0 %vm1393_vm9, %v13531_v42 }
 0xc44   : > { %v9107_v19 = vpop.eup %9106 }
 0xc45   : > { %v11772_v2 = vpop.eup %9108  ;;  %v5462_v5 = vmul.f32 %v9107_v19, %v11690_v40  ;;  %v5411_v49 = vpop.xlane.xlu0 %5410  ;;  %v13532_v40 = vld [vmem:[#allocation33_spill] sm:$0xff] }
 0xc46   : > { %9110 = vrcp.f32 %v5411_v49  ;;  %v5421_v37 = vsel %vm1393_vm9, %v11772_v2, 0.0 }
 0xc47   : > { %8515 = vmatmul.msk.f32.vlgmr.msra.gmra.mxu2 %vm1393_vm9, %v5462_v5  ;;  %5422 = vadd.xlane.f32.xlu2 %v5421_v37  ;;  %9112 = vpow2.f32 %v5387_v62  ;;  %v11827_v5 = vpop.f32.mrf.mxu0 }
 0xc48   : > { %8398 = vmatmul.msk.f32.gmra.mxu0 %vm1393_vm9, %v3375_v56 }
 0xc4c   : > { %v9111_v23 = vpop.eup %9110 }
 0xc4d   : > { %v5465_v4 = vmul.f32 %v9111_v23, %v11697_v15  ;;  %v11786_v50 = vpop.eup %9112  ;;  %v5420_v28 = vpop.xlane.xlu1 %5419 }
 0xc4e   : > { %v5430_v54 = vsel %vm1393_vm9, %v11786_v50, 0.0 }
 0xc4f   : > { %5867 = vrot.lane.b32.xlu0 %v10194_v17, %s9293_s26  ;;  %8518 = vmatmul.msk.f32.vlgmr.msrb.gmra.mxu2 %vm1393_vm9, %v5465_v4  ;;  %v11837_v49 = vpop.f32.mrf.mxu0 }
 0xc50   : > { %8399 = vmatmul.msk.f32.gmra.mxu0 %vm1393_vm9, %v13532_v40 }
 0xc55   : > { %v5405_v7 = vpop.xlane.xlu0 %5404 }
 0xc56   : > { %9114 = vrcp.f32 %v5405_v7 }
 0xc57   : > { %9116 = vrcp.f32 %v5417_v58  ;;  %v13536_v58 = vld [vmem:[#allocation22_spill] sm:$0xff] }
 0xc58   : > { %8400 = vmatmul.msk.f32.gmra.mxu0 %vm1393_vm9, %v13533_v59  ;;  %9118 = vrcp.f32 %v5420_v28 }
 0xc5a   : > { %5431 = vadd.xlane.f32.xlu1 %v5430_v54 }
 0xc5c   : > { %v9115_v15 = vpop.eup %9114 }
 0xc5d   : > { %v5463_v17 = vmul.f32 %v9115_v15, %v11710_v43  ;;  %v9117_v8 = vpop.eup %9116 }
 0xc5e   : > { %v9119_v46 = vpop.eup %9118  ;;  %v5467_v43 = vmul.f32 %v9117_v8, %v11676_v27 }
 0xc5f   : > { %8786 = vrot.lane.b32.xlu2 %v13534_v57, %s9293_s26  ;;  %8516 = vmatmul.msk.f32.vlgmr.msra.gmra.mxu3 %vm1393_vm9, %v5463_v17  ;;  %v5468_v42 = vmul.f32 %v9119_v46, %v11704_v25 }
 0xc60   : > { %8401 = vmatmul.msk.f32.gmra.mxu0 %vm1393_vm9, %v13535_v36 }
 0xc68   : > { %v8782_v14 = vpop.permute.xlu0 %8781  ;;  %8466 = vmatmul.msk.f32.vlgmr.msra.gmra.mxu0 %vm1393_vm9, %v11534_v32  ;;  %v5359_v32 = vsub.f32 %v11653_v45, %v11731_v60 }
 0xc69   : > { %v8784_v44 = vunpack.i.h.bf16 %v8782_v14  ;;  %v8783_v29 = vunpack.i.l.bf16 %v8782_v14 }
 0xc6a   : > { %v5385_v27 = vmul.f32 1.442695, %v5359_v32 }
 0xc6b   : > { %5654 = vmatpush.msrb.mxu1 %v8783_v29  ;;  %5680 = vmatpush.msra.mxu2 %v8784_v44 }
 0xc6c   : > { %8520 = vmatmul.msk.f32.vlgmr.msrb.gmra.mxu1 %vm1393_vm9, %v5467_v43  ;;  %8521 = vmatmul.msk.f32.vlgmr.msra.gmra.mxu2 %vm1393_vm9, %v5468_v42  ;;  %9120 = vpow2.f32 %v5385_v27 }
 0xc70   : > { %8467 = vmatmul.msk.f32.gmra.mxu0 %vm1393_vm9, %v11555_v41 }
 0xc72   : > { %v11814_v39 = vpop.eup %9120 }
 0xc73   : > { %8796 = vrot.lane.b32.xlu1 %v13536_v58, %s9293_s26  ;;  %v5427_v41 = vsel %vm1393_vm9, %v11814_v39, 0.0 }
 0xc78   : > { %8468 = vmatmul.msk.f32.gmra.mxu0 %vm1393_vm9, %v11538_v0 }
 0xc80   : > { %8469 = vmatmul.msk.f32.gmra.mxu0 %vm1393_vm9, %v11563_v35 }
 0xc82   : > { %v5414_v25 = vpop.xlane.xlu1 %5413 }
 0xc83   : > { %9122 = vrcp.f32 %v5414_v25 }
 0xc88   : > { %5428 = vadd.xlane.f32.xlu2 %v5427_v41  ;;  %8470 = vmatmul.msk.f32.gmra.mxu0 %vm1393_vm9, %v11550_v38 }
 0xc89   : > { %v9123_v45 = vpop.eup %9122 }
 0xc8a   : > { %v5466_v60 = vmul.f32 %v9123_v45, %v11723_v52  ;;  %v5426_v34 = vpop.xlane.xlu1 %5425 }
 0xc8c   : > { %8519 = vmatmul.msk.f32.vlgmr.msrb.gmra.mxu3 %vm1393_vm9, %v5466_v60 }
 0xc90   : > { %8471 = vmatmul.msk.f32.gmra.mxu0 %vm1393_vm9, %v11569_v18 }
 0xc93   : > { %v5348_v0 = vpop.xlane.xlu0 %5347 }
 0xc94   : > { %v5364_v35 = vsub.f32 %v11738_v55, %v5348_v0 }
 0xc96   : > { %v5395_v19 = vmul.f32 1.442695, %v5364_v35 }
 0xc98   : > { %9124 = vpow2.f32 %v5395_v19  ;;  %8472 = vmatmul.msk.f32.gmra.mxu0 %vm1393_vm9, %v11557_v11  ;;  %v11841_v11 = vpop.f32.mrf.mxu0 }
 0xc99   : > { %9126 = vrcp.f32 %v5426_v34 }
 0xc9e   : > { %v11829_v38 = vpop.eup %9124  ;;  %v5435_v40 = vpop.xlane.xlu0 %5434 }
 0xc9f   : > { %v5442_v52 = vsel %vm1393_vm9, %v11829_v38, 0.0  ;;  %v9127_v37 = vpop.eup %9126 }
 0xca0   : > { %5841 = vrot.lane.b32.xlu2 %v13469_v33, %s9293_s26  ;;  %5443 = vadd.xlane.f32.xlu1 %v5442_v52  ;;  %v11847_v33 = vpop.f32.mrf.mxu0 }
 0xca1   : > { %8473 = vmatmul.msk.f32.gmra.mxu0 %vm1393_vm9, %v11573_v12 }
 0xca2   : > { %v8792_v18 = vpop.permute.xlu1 %8791 }
 0xca3   : > { %v8793_v55 = vunpack.i.l.bf16 %v8792_v18 }
 0xca5   : > { %5758 = vmatpush.msrb.mxu2 %v8793_v55 }
 0xca6   : > { %v5438_v54 = vpop.xlane.xlu0 %5437 }
 0xca8   : > { %v11851_v3 = vpop.f32.mrf.mxu0 }
 0xca9   : > { %8474 = vmatmul.msk.f32.gmra.mxu0 %vm1393_vm9, %v11565_v31 }
 0xcae   : > { %v5441_v15 = vpop.xlane.xlu0 %5440 }
 0xcb1   : > { %8475 = vmatmul.msk.f32.gmra.mxu0 %vm1393_vm9, %v11577_v61  ;;  %v5470_v61 = vmul.f32 %v9127_v37, %v11729_v20 }
 0xcb9   : > { %8476 = vmatmul.msk.f32.gmra.mxu0 %vm1393_vm9, %v11571_v53  ;;  %v8794_v53 = vunpack.i.h.bf16 %v8792_v18 }
 0xcba   : > { %v5423_v12 = vpop.xlane.xlu2 %5422 }
 0xcbb   : > { %9128 = vrcp.f32 %v5423_v12 }
 0xcc1   : > { %v9129_v56 = vpop.eup %9128  ;;  %8477 = vmatmul.msk.f32.gmra.mxu0 %vm1393_vm9, %v11582_v26  ;;  %v11859_v26 = vpop.f32.mrf.mxu0 }
 0xcc2   : > { %v8787_v31 = vpop.permute.xlu2 %8786  ;;  %v5469_v4 = vmul.f32 %v9129_v56, %v11772_v2  ;;  %v5868_v36 = vpop.permute.xlu0 %5867 }
 0xcc3   : > { %v8789_v23 = vunpack.i.h.bf16 %v8787_v31  ;;  %v8788_v62 = vunpack.i.l.bf16 %v8787_v31 }
 0xcc5   : > { %5706 = vmatpush.msra.mxu3 %v8788_v62  ;;  %5732 = vmatpush.msra.mxu1 %v8789_v23 }
 0xcc6   : > { %8522 = vmatmul.msk.f32.vlgmr.msra.gmra.mxu3 %vm1393_vm9, %v5469_v4  ;;  %8523 = vmatmul.msk.f32.vlgmr.msra.gmra.mxu1 %vm1393_vm9, %v5470_v61  ;;  %v13537_v4 = vld [vmem:[#allocation26_spill] sm:$0xff] }
 0xcc7   : > { %5784 = vmatpush.msrb.mxu3 %v8794_v53  ;;  %v3636_v53 = vadd.f32 %v13537_v4, %v11827_v5 }
 0xcc9   : > { %8478 = vmatmul.msk.f32.gmra.mxu0 %vm1393_vm9, %v11575_v10  ;;  %v11864_v59 = vpop.f32.mrf.mxu0 }
 0xcca   : > { %v5526_v27 = vpop.f32.mrf.mxu2 }
 0xccd   : > { %v5432_v7 = vpop.xlane.xlu1 %5431 }
 0xcce   : > { %9130 = vrcp.f32 %v5432_v7  ;;  %v11919_v7 = vld [vmem:[%s13356_s3 + $0x7] ss:$0 sm:$0xff] }
 0xccf   : > { %9132 = vrcp.f32 %v5435_v40 }
 0xcd0   : > { %9134 = vrcp.f32 %v5441_v15 }
 0xcd1   : > { %8479 = vmatmul.msk.f32.gmra.mxu0 %vm1393_vm9, %v11599_v13  ;;  %v11869_v10 = vpop.f32.mrf.mxu0 }
 0xcd4   : > { %v9131_v20 = vpop.eup %9130 }
 0xcd5   : > { %v5472_v2 = vmul.f32 %v9131_v20, %v11786_v50  ;;  %v9133_v17 = vpop.eup %9132 }
 0xcd6   : > { %v5473_v50 = vmul.f32 %v9133_v17, %v11747_v63  ;;  %v9135_v8 = vpop.eup %9134  ;;  %v5893_v63 = vld [vmem:[%s13355_s2 + $0x68] sm:$0xff] }
 0xcd7   : > { %8525 = vmatmul.msk.f32.vlgmr.msrb.gmra.mxu3 %vm1393_vm9, %v5472_v2 }
 0xcd9   : > { %8480 = vmatmul.msk.f32.gmra.mxu0 %vm1393_vm9, %v11579_v16  ;;  %v11890_v41 = vpop.f32.mrf.mxu0 }
 0xce1   : > { %8481 = vmatmul.msk.f32.gmra.mxu0 %vm1393_vm9, %v11608_v30  ;;  %v5475_v30 = vmul.f32 %v9135_v8, %v11762_v6  ;;  %v5500_v6 = vpop.f32.mrf.mxu1  ;;  %v11894_v60 = vpop.f32.mrf.mxu0 }
 0xce2   : > { %v5552_v25 = vpop.f32.mrf.mxu3 }
 0xce5   : > { %v8797_v13 = vpop.permute.xlu1 %8796 }
 0xce6   : > { %v8799_v28 = vunpack.i.h.bf16 %v8797_v13  ;;  %v8798_v57 = vunpack.i.l.bf16 %v8797_v13  ;;  %v3639_v13 = vadd.f32 %v11354_v51, %v11837_v49  ;;  %v13541_v51 = vld [vmem:[#allocation4_spill] sm:$0xff] }
 0xce7   : > { %v13542_v49 = vmax.f32 %v13541_v51, 0.0  ;;  %v13553_v51 = vld [vmem:[#allocation8_spill] sm:$0xff] }
 0xce8   : > { %5810 = vmatpush.msrb.mxu1 %v8798_v57  ;;  %5836 = vmatpush.msra.mxu2 %v8799_v28  ;;  %v13538_v28 = vld [vmem:[#allocation3_spill] sm:$0xff] }
 0xce9   : > { %8526 = vmatmul.msk.f32.vlgmr.msrb.gmra.mxu1 %vm1393_vm9, %v5473_v50  ;;  %v11897_v35 = vpop.f32.mrf.mxu0  ;;  %v13539_v57 = vmax.f32 %v13538_v28, 0.0  ;;  %v13550_v28 = vld [vmem:[#allocation7_spill] sm:$0xff] }
 0xcea   : > { %5888 = vmatpush.msra.mxu1 %v5868_v36 }
 0xcf1   : > { %v11900_v34 = vpop.f32.mrf.mxu0 }
 0xcf9   : > { %v11903_v18 = vpop.f32.mrf.mxu0 }
 0xcfb   : > { %v5429_v16 = vpop.xlane.xlu2 %5428 }
 0xcfc   : > { %9136 = vrcp.f32 %v5429_v16 }
 0xcfd   : > { %9138 = vrcp.f32 %v5438_v54 }
 0xd01   : > { %v11906_v55 = vpop.f32.mrf.mxu0 }
 0xd02   : > { %v9137_v46 = vpop.eup %9136 }
 0xd03   : > { %v5471_v14 = vmul.f32 %v9137_v46, %v11814_v39  ;;  %v5842_v44 = vpop.permute.xlu2 %5841  ;;  %v9139_v29 = vpop.eup %9138 }
 0xd04   : > { %5862 = vmatpush.msra.mxu3 %v5842_v44  ;;  %v5474_v43 = vmul.f32 %v9139_v29, %v11756_v47  ;;  %v5578_v39 = vpop.f32.mrf.mxu1  ;;  %v5604_v47 = vpop.f32.mrf.mxu2 }
 0xd05   : > { %8524 = vmatmul.msk.f32.vlgmr.msrb.gmra.mxu2 %vm1393_vm9, %v5471_v14  ;;  %8528 = vmatmul.msk.f32.vlgmr.msra.gmra.mxu3 %vm1393_vm9, %v5475_v30  ;;  %v13540_v14 = vld [vmem:[#allocation27_spill] sm:$0xff] }
 0xd06   : > { %5957 = vmatpush.msrb.mxu2 %v5893_v63  ;;  %v3642_v44 = vadd.f32 %v13540_v14, %v11841_v11  ;;  %v13544_v11 = vld [vmem:[#allocation5_spill] sm:$0xff]  ;;  %v13552_v14 = vld [vmem:[#allocation28_spill] sm:$0xff] }
 0xd09   : > { %v11908_v12 = vpop.f32.mrf.mxu0 }
 0xd0c   : > { %v5656_v0 = vpop.f32.mrf.mxu1  ;;  %v5682_v19 = vpop.f32.mrf.mxu2 }
 0xd0d   : > { %8527 = vmatmul.msk.f32.vlgmr.msra.gmra.mxu2 %vm1393_vm9, %v5474_v43 }
 0xd0f   : > { %v5630_v45 = vpop.f32.mrf.mxu3 }
 0xd11   : > { %v11910_v37 = vpop.f32.mrf.mxu0 }
 0xd13   : > { %v5444_v42 = vpop.xlane.xlu1 %5443 }
 0xd14   : > { %9140 = vrcp.f32 %v5444_v42 }
 0xd15   : > { %8530 = vmatmul.msk.f32.vlgmr.msrb.gmra.mxu2 %vm1393_vm9, %v5500_v6 }
 0xd19   : > { %v4789_v56 = vpop.f32.mrf.mxu0 }
 0xd1a   : > { %v9141_v58 = vpop.eup %9140  ;;  %v4837_v40 = vadd.f32 %v4789_v56, %v3636_v53 }
 0xd1b   : > { %v5476_v32 = vmul.f32 %v9141_v58, %v11829_v38 }
 0xd1d   : > { %8529 = vmatmul.msk.f32.vlgmr.msra.gmra.mxu1 %vm1393_vm9, %v5476_v32  ;;  %8531 = vmatmul.msk.f32.gmra.mxu2 %vm1393_vm9, %v5526_v27  ;;  %v13543_v27 = vld [vmem:[#allocation38_spill] sm:$0xff] }
 0xd21   : > { %v4792_v23 = vpop.f32.mrf.mxu0 }
 0xd22   : > { %v4838_v50 = vadd.f32 %v4792_v23, %v3639_v13  ;;  %v13546_v23 = vld [vmem:[#allocation39_spill] sm:$0xff] }
 0xd25   : > { %8532 = vmatmul.msk.f32.gmra.mxu2 %vm1393_vm9, %v5552_v25  ;;  %v3645_v25 = vadd.f32 %v13543_v27, %v11847_v33  ;;  %v3648_v33 = vadd.f32 %v13546_v23, %v11851_v3  ;;  %v13555_v27 = vld [vmem:[#allocation30_spill] sm:$0xff] }
 0xd29   : > { %v4795_v15 = vpop.f32.mrf.mxu0 }
 0xd2a   : > { %v4839_v29 = vadd.f32 %v4795_v15, %v3642_v44  ;;  %v3654_v44 = vadd.f32 %v13552_v14, %v11864_v59 }
 0xd2d   : > { %8533 = vmatmul.msk.f32.gmra.mxu2 %vm1393_vm9, %v5578_v39  ;;  %v13545_v39 = vmax.f32 %v13544_v11, 0.0  ;;  %v13556_v11 = vld [vmem:[#allocation9_spill] sm:$0xff] }
 0xd31   : > { %v4798_v30 = vpop.f32.mrf.mxu0 }
 0xd35   : > { %8534 = vmatmul.msk.f32.gmra.mxu2 %vm1393_vm9, %v5604_v47 }
 0xd3d   : > { %8535 = vmatmul.msk.f32.gmra.mxu2 %vm1393_vm9, %v5630_v45  ;;  %v4801_v45 = vpop.f32.mrf.mxu0 }
 0xd3e   : > { %v4841_v53 = vadd.f32 %v4801_v45, %v3648_v33 }
 0xd43   : > { %v5734_v52 = vpop.f32.mrf.mxu1 }
 0xd45   : > { %8536 = vmatmul.msk.f32.gmra.mxu2 %vm1393_vm9, %v5656_v0  ;;  %v4840_v0 = vadd.f32 %v4798_v30, %v3645_v25  ;;  %v3657_v25 = vadd.f32 %v13555_v27, %v11869_v10 }
 0xd49   : > { %v5708_v38 = vpop.f32.mrf.mxu3 }
 0xd4d   : > { %8537 = vmatmul.msk.f32.gmra.mxu2 %vm1393_vm9, %v5682_v19 }
 0xd55   : > { %8538 = vmatmul.msk.f32.gmra.mxu2 %vm1393_vm9, %v5708_v38 }
 0xd5a   : > { %v5786_v62 = vpop.f32.mrf.mxu3 }
 0xd5d   : > { %8539 = vmatmul.msk.f32.gmra.mxu2 %vm1393_vm9, %v5734_v52 }
 0xd66   : > { %v5812_v20 = vpop.f32.mrf.mxu1 }
 0xd88   : > { %v5760_v31 = vpop.f32.mrf.mxu2  ;;  %v5864_v42 = vpop.f32.mrf.mxu3 }
 0xd89   : > { %8540 = vmatmul.msk.f32.gmra.mxu2 %vm1393_vm9, %v5760_v31 }
 0xd90   : > { %v5838_v61 = vpop.f32.mrf.mxu2 }
 0xd91   : > { %8541 = vmatmul.msk.f32.gmra.mxu2 %vm1393_vm9, %v5786_v62  ;;  %v13547_v62 = vld [vmem:[#allocation6_spill] sm:$0xff] }
 0xd98   : > { %v5959_v2 = vpop.f32.mrf.mxu2 }
 0xd99   : > { %v6007_v54 = vadd.f32 %v5959_v2, %v4837_v40  ;;  %8542 = vmatmul.msk.f32.gmra.mxu2 %vm1393_vm9, %v5812_v20  ;;  %v4804_v20 = vpop.f32.mrf.mxu0 }
 0xd9a   : > { %v5890_v38 = vpop.f32.mrf.mxu1 }
 0xd9b   : > { %v6025_v17 = vadd.f32 %v11919_v7, %v6007_v54 }
 0xd9d   : > { %v11927_v5 = vadd.f32 %v6025_v17, %v13539_v57  ;;  %v13549_v17 = vld [vmem:[#allocation44_spill] sm:$0xff]  ;;  %v13551_v57 = vmax.f32 %v13550_v28, 0.0 }
 0xd9e   : > { %v3651_v13 = vadd.f32 %v13549_v17, %v11859_v26 }
 0xd9f   : > { %v6057_v36 = vsel %vm335_vm1, %v11927_v5, 0.0 }
 0xda0   : > { %v5962_v16 = vpop.f32.mrf.mxu2  ;;  %6058 = vadd.xlane.f32.xlu2 %v6057_v36 }
 0xda1   : > { %v6008_v8 = vadd.f32 %v5962_v16, %v4838_v50  ;;  %8543 = vmatmul.msk.f32.gmra.mxu2 %vm1393_vm9, %v5838_v61  ;;  %v13548_v61 = vmax.f32 %v13547_v62, 0.0  ;;  %v4842_v50 = vadd.f32 %v4804_v20, %v3651_v13 }
 0xda3   : > { %v6026_v46 = vadd.f32 %v11919_v7, %v6008_v8 }
 0xda5   : > { %v11937_v63 = vadd.f32 %v6026_v46, %v13542_v49  ;;  %v4807_v46 = vpop.f32.mrf.mxu0  ;;  %v13554_v49 = vmax.f32 %v13553_v51, 0.0 }
 0xda7   : > { %v6060_v43 = vsel %vm335_vm1, %v11937_v63, 0.0 }
 0xda8   : > { %v5965_v6 = vpop.f32.mrf.mxu2  ;;  %6061 = vadd.xlane.f32.xlu0 %v6060_v43 }
 0xda9   : > { %v6009_v58 = vadd.f32 %v5965_v6, %v4839_v29  ;;  %8544 = vmatmul.msk.f32.gmra.mxu2 %vm1393_vm9, %v5864_v42  ;;  %v4843_v29 = vadd.f32 %v4807_v46, %v3654_v44  ;;  %v13563_v44 = vld [vmem:[#allocation11_spill] sm:$0xff] }
 0xdaa   : > { %v13564_v51 = vmax.f32 %v13563_v44, 0.0 }
 0xdab   : > { %v6027_v32 = vadd.f32 %v11919_v7, %v6009_v58 }
 0xdad   : > { %v11947_v47 = vadd.f32 %v6027_v32, %v13545_v39  ;;  %v4810_v32 = vpop.f32.mrf.mxu0  ;;  %v13557_v39 = vmax.f32 %v13556_v11, 0.0 }
 0xdae   : > { %v4844_v45 = vadd.f32 %v4810_v32, %v3657_v25 }
 0xdaf   : > { %v6063_v19 = vsel %vm335_vm1, %v11947_v47, 0.0 }
 0xdb0   : > { %v5968_v52 = vpop.f32.mrf.mxu2  ;;  %6064 = vadd.xlane.f32.xlu1 %v6063_v19 }
 0xdb1   : > { %v6010_v56 = vadd.f32 %v5968_v52, %v4840_v0  ;;  %8545 = vmatmul.msk.f32.gmra.mxu2 %vm1393_vm9, %v5890_v38 }
 0xdb3   : > { %v6028_v31 = vadd.f32 %v11919_v7, %v6010_v56  ;;  %v13558_v56 = vld [vmem:[#allocation10_spill] sm:$0xff] }
 0xdb5   : > { %v11957_v4 = vadd.f32 %v6028_v31, %v13548_v61  ;;  %v13559_v31 = vmax.f32 %v13558_v56, 0.0  ;;  %v4813_v33 = vpop.f32.mrf.mxu0  ;;  %v13560_v61 = vld [vmem:[#allocation43_spill] sm:$0xff] }
 0xdb7   : > { %v6066_v40 = vsel %vm335_vm1, %v11957_v4, 0.0 }
 0xdb8   : > { %v5971_v2 = vpop.f32.mrf.mxu2  ;;  %6067 = vadd.xlane.f32.xlu1 %v6066_v40 }
 0xdb9   : > { %v6011_v54 = vadd.f32 %v5971_v2, %v4841_v53  ;;  %v3660_v53 = vadd.f32 %v13560_v61, %v11890_v41  ;;  %v13561_v2 = vld [vmem:[#allocation2_spill] sm:$0xff] }
 0xdbb   : > { %v6029_v15 = vadd.f32 %v11919_v7, %v6011_v54  ;;  %v4845_v20 = vadd.f32 %v4813_v33, %v3660_v53 }
 0xdbd   : > { %v11966_v3 = vadd.f32 %v6029_v15, %v13551_v57  ;;  %v4816_v13 = vpop.f32.mrf.mxu0  ;;  %v13562_v57 = vld [vmem:[#allocation29_spill] sm:$0xff] }
 0xdbf   : > { %v6069_v36 = vsel %vm335_vm1, %v11966_v3, 0.0 }
 0xdc0   : > { %v5974_v16 = vpop.f32.mrf.mxu2  ;;  %6070 = vadd.xlane.f32.xlu1 %v6069_v36 }
 0xdc1   : > { %v6012_v8 = vadd.f32 %v5974_v16, %v4842_v50  ;;  %v3663_v50 = vadd.f32 %v13562_v57, %v11894_v60 }
 0xdc3   : > { %v6030_v30 = vadd.f32 %v11919_v7, %v6012_v8  ;;  %v4846_v46 = vadd.f32 %v4816_v13, %v3663_v50 }
 0xdc5   : > { %v11975_v26 = vadd.f32 %v6030_v30, %v13554_v49 }
 0xdc7   : > { %v6072_v43 = vsel %vm335_vm1, %v11975_v26, 0.0 }
 0xdc8   : > { %v5977_v42 = vpop.f32.mrf.mxu2  ;;  %6073 = vadd.xlane.f32.xlu2 %v6072_v43  ;;  %v3666_v43 = vadd.f32 %v11423_v9, %v11897_v35 }
 0xdc9   : > { %v6013_v6 = vadd.f32 %v5977_v42, %v4843_v29  ;;  %v4819_v29 = vpop.f32.mrf.mxu0 }
 0xdca   : > { %v4847_v27 = vadd.f32 %v4819_v29, %v3666_v43 }
 0xdcb   : > { %v6031_v58 = vadd.f32 %v11919_v7, %v6013_v6 }
 0xdcd   : > { %v11984_v59 = vadd.f32 %v6031_v58, %v13557_v39 }
 0xdcf   : > { %v6075_v0 = vsel %vm335_vm1, %v11984_v59, 0.0 }
 0xdd0   : > { %v5980_v19 = vpop.f32.mrf.mxu2  ;;  %6076 = vadd.xlane.f32.xlu0 %v6075_v0 }
 0xdd1   : > { %v6014_v38 = vadd.f32 %v5980_v19, %v4844_v45  ;;  %v13565_v45 = vld [vmem:[#allocation13_spill] sm:$0xff]  ;;  %v4822_v56 = vpop.f32.mrf.mxu0 }
 0xdd2   : > { %v13566_v9 = vmax.f32 %v13565_v45, 0.0  ;;  %v13571_v45 = vld [vmem:[#allocation17_spill] sm:$0xff] }
 0xdd3   : > { %v6032_v52 = vadd.f32 %v11919_v7, %v6014_v38 }
 0xdd5   : > { %v11991_v23 = vadd.f32 %v6032_v52, %v13559_v31 }
 0xdd7   : > { %v6078_v10 = vsel %vm335_vm1, %v11991_v23, 0.0 }
 0xdd8   : > { %6079 = vadd.xlane.f32.xlu2 %v6078_v10  ;;  %v5983_v62 = vpop.f32.mrf.mxu2 }
 0xdd9   : > { %v6015_v15 = vadd.f32 %v5983_v62, %v4845_v20  ;;  %v13567_v62 = vld [vmem:[#allocation14_spill] sm:$0xff]  ;;  %v3669_v20 = vadd.f32 %v11437_v21, %v11900_v34  ;;  %v4825_v57 = vpop.f32.mrf.mxu0  ;;  %v3672_v34 = vadd.f32 %v11450_v1, %v11903_v18 }
 0xdda   : > { %v13568_v61 = vmax.f32 %v13567_v62, 0.0 }
 0xddb   : > { %v6033_v36 = vadd.f32 %v11919_v7, %v6015_v15 }
 0xddd   : > { %v12013_v49 = vadd.f32 %v6033_v36, %v13564_v51  ;;  %v13569_v51 = vld [vmem:[#allocation16_spill] sm:$0xff] }
 0xddf   : > { %v6081_v58 = vsel %vm335_vm1, %v12013_v49, 0.0 }
 0xde0   : > { %v5986_v41 = vpop.f32.mrf.mxu2 }
 0xde1   : > { %v6016_v14 = vadd.f32 %v5986_v41, %v4846_v46  ;;  %v4828_v43 = vpop.f32.mrf.mxu0 }
 0xde3   : > { %v6034_v42 = vadd.f32 %v11919_v7, %v6016_v14 }
 0xde5   : > { %v12029_v35 = vadd.f32 %v6034_v42, %v13566_v9  ;;  %v3675_v42 = vadd.f32 %v11458_v24, %v11906_v55  ;;  %v13572_v9 = vmax.f32 %v13571_v45, 0.0 }
 0xde7   : > { %v6084_v52 = vsel %vm335_vm1, %v12029_v35, 0.0 }
 0xe13   : > { %v6059_v40 = vpop.xlane.xlu2 %6058 }
 0xe14   : > { %v6105_v54 = vmul.f32 %v6059_v40, %v13561_v2 }
 0xe16   : > { %v11999_v17 = vsub.f32 %v11927_v5, %v6105_v54 }
 0xe18   : > { %v6137_v28 = vmul.f32 %v11999_v17, %v11999_v17 }
 0xe1a   : > { %v6153_v16 = vsel %vm335_vm1, %v6137_v28, 0.0 }
 0xe1b   : > { %v6062_v8 = vpop.xlane.xlu0 %6061  ;;  %6154 = vadd.xlane.f32.xlu1 %v6153_v16 }
 0xe1c   : > { %v6106_v30 = vmul.f32 %v6062_v8, %v13561_v2 }
 0xe1e   : > { %v12009_v5 = vsub.f32 %v11937_v63, %v6106_v30  ;;  %v5989_v63 = vpop.f32.mrf.mxu2  ;;  %v4849_v30 = vadd.f32 %v4825_v57, %v3672_v34  ;;  %v6445_v34 = vld [vmem:[%s13355_s2 + $0x70] sm:$0xff] }
 0xe1f   : > { %v6017_v11 = vadd.f32 %v5989_v63, %v4847_v27 }
 0xe20   : > { %v6138_v60 = vmul.f32 %v12009_v5, %v12009_v5 }
 0xe21   : > { %v6035_v19 = vadd.f32 %v11919_v7, %v6017_v11 }
 0xe22   : > { %v6156_v6 = vsel %vm335_vm1, %v6138_v60, 0.0  ;;  %v13570_v60 = vmax.f32 %v13569_v51, 0.0 }
 0xe23   : > { %v6065_v32 = vpop.xlane.xlu1 %6064  ;;  %6157 = vadd.xlane.f32.xlu0 %v6156_v6  ;;  %6082 = vadd.xlane.f32.xlu1 %v6081_v58  ;;  %v12043_v53 = vadd.f32 %v6035_v19, %v13568_v61  ;;  %v3678_v19 = vadd.f32 %v11472_v48, %v11908_v12 }
 0xe24   : > { %v6107_v25 = vmul.f32 %v6065_v32, %v13561_v2  ;;  %v4850_v32 = vadd.f32 %v4828_v43, %v3675_v42 }
 0xe25   : > { %v6087_v15 = vsel %vm335_vm1, %v12043_v53, 0.0 }
 0xe26   : > { %v12025_v39 = vsub.f32 %v11947_v47, %v6107_v25  ;;  %v5992_v10 = vpop.f32.mrf.mxu2 }
 0xe28   : > { %v6139_v0 = vmul.f32 %v12025_v39, %v12025_v39 }
 0xe2a   : > { %v6159_v38 = vsel %vm335_vm1, %v6139_v0, 0.0  ;;  %v4831_v0 = vpop.f32.mrf.mxu0 }
 0xe2b   : > { %v6068_v31 = vpop.xlane.xlu1 %6067  ;;  %6160 = vadd.xlane.f32.xlu2 %v6159_v38  ;;  %6085 = vadd.xlane.f32.xlu0 %v6084_v52 }
 0xe2c   : > { %v6108_v47 = vmul.f32 %v6068_v31, %v13561_v2 }
 0xe2e   : > { %v12039_v33 = vsub.f32 %v11957_v4, %v6108_v47  ;;  %v4848_v4 = vadd.f32 %v4822_v56, %v3669_v20  ;;  %v5995_v16 = vpop.f32.mrf.mxu2  ;;  %v4851_v47 = vadd.f32 %v4831_v0, %v3678_v19 }
 0xe2f   : > { %v6019_v44 = vadd.f32 %v5995_v16, %v4849_v30  ;;  %v6447_v16 = vld [vmem:[%s13355_s2 + $0x80] sm:$0xff] }
 0xe30   : > { %v6140_v40 = vmul.f32 %v12039_v33, %v12039_v33  ;;  %v6018_v50 = vadd.f32 %v5992_v10, %v4848_v4  ;;  %v13575_v4 = vld [vmem:[#allocation19_spill] sm:$0xff] }
 0xe31   : > { %v6037_v6 = vadd.f32 %v11919_v7, %v6019_v44 }
 0xe32   : > { %v6162_v54 = vsel %vm335_vm1, %v6140_v40, 0.0  ;;  %v6036_v41 = vadd.f32 %v11919_v7, %v6018_v50  ;;  %v13573_v40 = vld [vmem:[#allocation18_spill] sm:$0xff]  ;;  %v6448_v50 = vld [vmem:[%s13355_s2 + $0x88] sm:$0xff]  ;;  %v4834_v30 = vpop.f32.mrf.mxu0 }
 0xe33   : > { %v6071_v13 = vpop.xlane.xlu1 %6070  ;;  %6163 = vadd.xlane.f32.xlu1 %v6162_v54  ;;  %6088 = vadd.xlane.f32.xlu0 %v6087_v15  ;;  %v12084_v24 = vadd.f32 %v6037_v6, %v13572_v9  ;;  %v13574_v48 = vmax.f32 %v13573_v40, 0.0 }
 0xe34   : > { %v6109_v28 = vmul.f32 %v6071_v13, %v13561_v2  ;;  %v12068_v29 = vadd.f32 %v6036_v41, %v13570_v60  ;;  %6511 = vmatpush.msrb.mxu1 %v6448_v50  ;;  %8620 = vmatpush.msrb.mxu3 %v6448_v50 }
 0xe35   : > { %v6093_v56 = vsel %vm335_vm1, %v12084_v24, 0.0 }
 0xe36   : > { %v12054_v36 = vsub.f32 %v11966_v3, %v6109_v28  ;;  %v5998_v18 = vpop.f32.mrf.mxu2  ;;  %v13576_v28 = vmax.f32 %v13575_v4, 0.0  ;;  %6512 = vmatpush.msrb.mxu1 %v6447_v16  ;;  %8621 = vmatpush.msrb.mxu3 %v6447_v16 }
 0xe37   : > { %v6020_v25 = vadd.f32 %v5998_v18, %v4850_v32 }
 0xe38   : > { %v6141_v21 = vmul.f32 %v12054_v36, %v12054_v36 }
 0xe39   : > { %v6038_v38 = vadd.f32 %v11919_v7, %v6020_v25 }
 0xe3a   : > { %v6165_v8 = vsel %vm335_vm1, %v6141_v21, 0.0  ;;  %v6446_v21 = vld [vmem:[%s13355_s2 + $0x78] sm:$0xff] }
 0xe3b   : > { %v6074_v46 = vpop.xlane.xlu2 %6073  ;;  %6166 = vadd.xlane.f32.xlu2 %v6165_v8  ;;  %v12100_v12 = vadd.f32 %v6038_v38, %v13574_v48  ;;  %6513 = vmatpush.msrb.mxu1 %v6446_v21  ;;  %v12157_v48 = vld [vmem:[%s13356_s3 + $0x9] ss:$0 sm:$0xff] }
 0xe3c   : > { %v6110_v14 = vmul.f32 %v6074_v46, %v13561_v2  ;;  %8622 = vmatpush.msrb.mxu3 %v6446_v21 }
 0xe3d   : > { %v6096_v13 = vsel %vm335_vm1, %v12100_v12, 0.0  ;;  %6514 = vmatpush.msrb.mxu1 %v6445_v34 }
 0xe3e   : > { %v12064_v3 = vsub.f32 %v11975_v26, %v6110_v14  ;;  %v6090_v26 = vsel %vm335_vm1, %v12068_v29, 0.0  ;;  %8623 = vmatpush.msrb.mxu3 %v6445_v34  ;;  %v3681_v14 = vadd.f32 %v11487_v22, %v11910_v37 }
 0xe40   : > { %v6142_v1 = vmul.f32 %v12064_v3, %v12064_v3  ;;  %v4852_v43 = vadd.f32 %v4834_v30, %v3681_v14 }
 0xe42   : > { %v6168_v58 = vsel %vm335_vm1, %v6142_v1, 0.0 }
 0xe43   : > { %v6077_v63 = vpop.xlane.xlu0 %6076  ;;  %6169 = vadd.xlane.f32.xlu1 %v6168_v58  ;;  %6091 = vadd.xlane.f32.xlu2 %v6090_v26 }
 0xe44   : > { %v6111_v27 = vmul.f32 %v6077_v63, %v13561_v2 }
 0xe46   : > { %v12080_v11 = vsub.f32 %v11984_v59, %v6111_v27  ;;  %v6001_v59 = vpop.f32.mrf.mxu2 }
 0xe47   : > { %v6021_v62 = vadd.f32 %v6001_v59, %v4851_v47 }
 0xe48   : > { %v6143_v55 = vmul.f32 %v12080_v11, %v12080_v11 }
 0xe49   : > { %v6039_v54 = vadd.f32 %v11919_v7, %v6021_v62 }
 0xe4a   : > { %v6171_v52 = vsel %vm335_vm1, %v6143_v55, 0.0 }
 0xe4b   : > { %v6080_v31 = vpop.xlane.xlu2 %6079  ;;  %6172 = vadd.xlane.f32.xlu0 %v6171_v52  ;;  %6094 = vadd.xlane.f32.xlu1 %v6093_v56  ;;  %v13577_v56 = vld [vmem:[#allocation20_spill] sm:$0xff] }
 0xe4c   : > { %v6112_v10 = vmul.f32 %v6080_v31, %v13561_v2  ;;  %v13578_v59 = vmax.f32 %v13577_v56, 0.0 }
 0xe4e   : > { %v12096_v61 = vsub.f32 %v11991_v23, %v6112_v10  ;;  %v12110_v23 = vadd.f32 %v6039_v54, %v13576_v28  ;;  %v6004_v44 = vpop.f32.mrf.mxu2  ;;  %v12150_v10 = vld [vmem:[%s13356_s3 + $0x8] ss:$0 sm:$0xff] }
 0xe4f   : > { %v6022_v6 = vadd.f32 %v6004_v44, %v4852_v43 }
 0xe50   : > { %v6144_v20 = vmul.f32 %v12096_v61, %v12096_v61  ;;  %v6099_v57 = vsel %vm335_vm1, %v12110_v23, 0.0 }
 0xe51   : > { %v6040_v37 = vadd.f32 %v11919_v7, %v6022_v6 }
 0xe52   : > { %v6174_v15 = vsel %vm335_vm1, %v6144_v20, 0.0 }
 0xe53   : > { %6175 = vadd.xlane.f32.xlu2 %v6174_v15  ;;  %6097 = vadd.xlane.f32.xlu0 %v6096_v13  ;;  %v12145_v7 = vadd.f32 %v6040_v37, %v13578_v59 }
 0xe55   : > { %v6102_v15 = vsel %vm335_vm1, %v12145_v7, 0.0 }
 0xe5b   : > { %6100 = vadd.xlane.f32.xlu2 %v6099_v57 }
 0xe8e   : > { %v6155_v41 = vpop.xlane.xlu1 %6154 }
 0xe8f   : > { %v6201_v8 = vmul.f32 %v6155_v41, %v13561_v2 }
 0xe91   : > { %v6217_v46 = vadd.f32 1e-05, %v6201_v8 }
 0xe93   : > { %9142 = vrsqrt.f32 %v6217_v46  ;;  %vm6239_vm3 = vweird.f32 %v6217_v46 }
 0xe96   : > { %v6158_v51 = vpop.xlane.xlu0 %6157  ;;  %v6083_v60 = vpop.xlane.xlu1 %6082 }
 0xe97   : > { %v6202_v1 = vmul.f32 %v6158_v51, %v13561_v2  ;;  %v6113_v18 = vmul.f32 %v6083_v60, %v13561_v2 }
 0xe99   : > { %v9143_v42 = vpop.eup %9142  ;;  %v6218_v58 = vadd.f32 1e-05, %v6202_v1  ;;  %v12132_v26 = vsub.f32 %v12013_v49, %v6113_v18 }
 0xe9a   : > { %v6234_v63 = vmul.f32 %v9143_v42, %v6217_v46  ;;  %vm6240_vm2 = vweird.f32 %v9143_v42 }
 0xe9b   : > { %9144 = vrsqrt.f32 %v6218_v58  ;;  %v6145_v32 = vmul.f32 %v12132_v26, %v12132_v26  ;;  %vm6241_vm4 = vmor %vm6239_vm3, %vm6240_vm2  ;;  %vm6249_vm6 = vweird.f32 %v6218_v58 }
 0xe9c   : > { %v6235_v22 = vmul.f32 %v9143_v42, %v6234_v63 }
 0xe9d   : > { %v6177_v27 = vsel %vm335_vm1, %v6145_v32, 0.0 }
 0xe9e   : > { %v6236_v25 = vmul.f32 0.5, %v6235_v22  ;;  %v6161_v45 = vpop.xlane.xlu2 %6160  ;;  %v6086_v9 = vpop.xlane.xlu0 %6085  ;;  %6178 = vadd.xlane.f32.xlu1 %v6177_v27 }
 0xe9f   : > { %v6203_v55 = vmul.f32 %v6161_v45, %v13561_v2  ;;  %v6114_v0 = vmul.f32 %v6086_v9, %v13561_v2 }
 0xea0   : > { %v6237_v49 = vsub.f32 1.5, %v6236_v25 }
 0xea1   : > { %v9145_v19 = vpop.eup %9144  ;;  %v6219_v38 = vadd.f32 1e-05, %v6203_v55  ;;  %v12141_v52 = vsub.f32 %v12029_v35, %v6114_v0 }
 0xea2   : > { %v6238_v31 = vmul.f32 %v9143_v42, %v6237_v49  ;;  %v6244_v47 = vmul.f32 %v9145_v19, %v6218_v58  ;;  %vm6250_vm5 = vweird.f32 %v9145_v19 }
 0xea3   : > { %9146 = vrsqrt.f32 %v6219_v38  ;;  %v6146_v62 = vmul.f32 %v12141_v52, %v12141_v52  ;;  %vm6251_vm7 = vmor %vm6249_vm6, %vm6250_vm5  ;;  %vm6259_vm9 = vweird.f32 %v6219_v38 }
 0xea4   : > { %v6242_v40 = vsel %vm6241_vm4, %v9143_v42, %v6238_v31  ;;  %v6245_v35 = vmul.f32 %v9145_v19, %v6244_v47 }
 0xea5   : > { %v6393_v20 = vmul.f32 %v6242_v40, %v11999_v17  ;;  %v6180_v54 = vsel %vm335_vm1, %v6146_v62, 0.0 }
 0xea6   : > { %v6246_v13 = vmul.f32 0.5, %v6245_v35  ;;  %v6164_v4 = vpop.xlane.xlu1 %6163  ;;  %v6089_v28 = vpop.xlane.xlu0 %6088  ;;  %6181 = vadd.xlane.f32.xlu0 %v6180_v54  ;;  %6103 = vadd.xlane.f32.xlu1 %v6102_v15 }
 0xea7   : > { %v6411_v57 = vmul.f32 %v12150_v10, %v6393_v20  ;;  %v6204_v50 = vmul.f32 %v6164_v4, %v13561_v2  ;;  %v6115_v16 = vmul.f32 %v6089_v28, %v13561_v2 }
 0xea8   : > { %v6247_v21 = vsub.f32 1.5, %v6246_v13 }
 0xea9   : > { %v9147_v34 = vpop.eup %9146  ;;  %v12167_v17 = vadd.f32 %v12157_v48, %v6411_v57  ;;  %v6220_v41 = vadd.f32 1e-05, %v6204_v50  ;;  %v12170_v8 = vsub.f32 %v12043_v53, %v6115_v16 }
 0xeaa   : > { %v6248_v46 = vmul.f32 %v9145_v19, %v6247_v21  ;;  %v6254_v30 = vmul.f32 %v9147_v34, %v6219_v38  ;;  %vm6260_vm8 = vweird.f32 %v9147_v34 }
 0xeab   : > { %9148 = vrsqrt.f32 %v6220_v41  ;;  %8546 = vmatmul.msk.f32.vlgmr.msrb.gmra.mxu1 %vm335_vm1, %v12167_v17  ;;  %v6147_v14 = vmul.f32 %v12170_v8, %v12170_v8  ;;  %vm6261_vm10 = vmor %vm6259_vm9, %vm6260_vm8  ;;  %vm6269_vm12 = vweird.f32 %v6220_v41 }
 0xeac   : > { %v6252_v44 = vsel %vm6251_vm7, %v9145_v19, %v6248_v46  ;;  %v6255_v51 = vmul.f32 %v9147_v34, %v6254_v30 }
 0xead   : > { %v6394_v60 = vmul.f32 %v6252_v44, %v12009_v5  ;;  %v6183_v43 = vsel %vm335_vm1, %v6147_v14, 0.0 }
 0xeae   : > { %v6256_v1 = vmul.f32 0.5, %v6255_v51  ;;  %v6167_v53 = vpop.xlane.xlu2 %6166  ;;  %6184 = vadd.xlane.f32.xlu2 %v6183_v43 }
 0xeaf   : > { %v6205_v18 = vmul.f32 %v6167_v53, %v13561_v2  ;;  %v6412_v42 = vmul.f32 %v12150_v10, %v6394_v60 }
 0xeb0   : > { %v6257_v6 = vsub.f32 1.5, %v6256_v1 }
 0xeb1   : > { %v9149_v58 = vpop.eup %9148  ;;  %v6221_v63 = vadd.f32 1e-05, %v6205_v18  ;;  %v12181_v32 = vadd.f32 %v12157_v48, %v6412_v42 }
 0xeb2   : > { %v6258_v22 = vmul.f32 %v9147_v34, %v6257_v6  ;;  %v6264_v37 = vmul.f32 %v9149_v58, %v6220_v41  ;;  %vm6270_vm11 = vweird.f32 %v9149_v58 }
 0xeb3   : > { %9150 = vrsqrt.f32 %v6221_v63  ;;  %8547 = vmatmul.msk.f32.gmra.mxu1 %vm335_vm1, %v12181_v32  ;;  %vm6271_vm13 = vmor %vm6269_vm12, %vm6270_vm11  ;;  %vm6279_vm15 = vweird.f32 %v6221_v63 }
 0xeb4   : > { %v6262_v5 = vsel %vm6261_vm10, %v9147_v34, %v6258_v22  ;;  %v6265_v27 = vmul.f32 %v9149_v58, %v6264_v37 }
 0xeb5   : > { %v6395_v25 = vmul.f32 %v6262_v5, %v12025_v39 }
 0xeb6   : > { %v6266_v45 = vmul.f32 0.5, %v6265_v27  ;;  %v6170_v9 = vpop.xlane.xlu1 %6169  ;;  %v6092_v55 = vpop.xlane.xlu2 %6091 }
 0xeb7   : > { %v6206_v0 = vmul.f32 %v6170_v9, %v13561_v2  ;;  %v6116_v49 = vmul.f32 %v6092_v55, %v13561_v2  ;;  %v6413_v19 = vmul.f32 %v12150_v10, %v6395_v25 }
 0xeb8   : > { %v6267_v38 = vsub.f32 1.5, %v6266_v45 }
 0xeb9   : > { %v9151_v56 = vpop.eup %9150  ;;  %v6222_v59 = vadd.f32 1e-05, %v6206_v0  ;;  %v12190_v31 = vsub.f32 %v12068_v29, %v6116_v49  ;;  %v12193_v47 = vadd.f32 %v12157_v48, %v6413_v19 }
 0xeba   : > { %v6268_v39 = vmul.f32 %v9149_v58, %v6267_v38  ;;  %v6274_v62 = vmul.f32 %v9151_v56, %v6221_v63  ;;  %vm6280_vm14 = vweird.f32 %v9151_v56 }
 0xebb   : > { %9152 = vrsqrt.f32 %v6222_v59  ;;  %8548 = vmatmul.msk.f32.gmra.mxu1 %vm335_vm1, %v12193_v47  ;;  %v6148_v40 = vmul.f32 %v12190_v31, %v12190_v31  ;;  %vm6281_vm2 = vmor %vm6279_vm15, %vm6280_vm14  ;;  %vm6289_vm4 = vweird.f32 %v6222_v59  ;;  %vm6590_vm15 = vcmask 523264  }
 0xebc   : > { %v6272_v35 = vsel %vm6271_vm13, %v9149_v58, %v6268_v39  ;;  %v6275_v20 = vmul.f32 %v9151_v56, %v6274_v62 }
 0xebd   : > { %v6396_v54 = vmul.f32 %v6272_v35, %v12039_v33  ;;  %v6186_v29 = vsel %vm335_vm1, %v6148_v40, 0.0 }
 0xebe   : > { %v6276_v15 = vmul.f32 0.5, %v6275_v20  ;;  %v6173_v13 = vpop.xlane.xlu0 %6172  ;;  %v6095_v4 = vpop.xlane.xlu1 %6094  ;;  %6187 = vadd.xlane.f32.xlu0 %v6186_v29 }
 0xebf   : > { %v6207_v28 = vmul.f32 %v6173_v13, %v13561_v2  ;;  %v6117_v57 = vmul.f32 %v6095_v4, %v13561_v2  ;;  %v6414_v50 = vmul.f32 %v12150_v10, %v6396_v54 }
 0xec0   : > { %v6277_v16 = vsub.f32 1.5, %v6276_v15 }
 0xec1   : > { %v9153_v21 = vpop.eup %9152  ;;  %v6223_v34 = vadd.f32 1e-05, %v6207_v28  ;;  %v12205_v41 = vsub.f32 %v12084_v24, %v6117_v57  ;;  %v12208_v33 = vadd.f32 %v12157_v48, %v6414_v50 }
 0xec2   : > { %v6278_v46 = vmul.f32 %v9151_v56, %v6277_v16  ;;  %v6284_v30 = vmul.f32 %v9153_v21, %v6222_v59  ;;  %vm6290_vm3 = vweird.f32 %v9153_v21 }
 0xec3   : > { %9154 = vrsqrt.f32 %v6223_v34  ;;  %8549 = vmatmul.msk.f32.gmra.mxu1 %vm335_vm1, %v12208_v33  ;;  %v6149_v14 = vmul.f32 %v12205_v41, %v12205_v41  ;;  %vm6291_vm5 = vmor %vm6289_vm4, %vm6290_vm3  ;;  %vm6299_vm7 = vweird.f32 %v6223_v34 }
 0xec4   : > { %v6282_v44 = vsel %vm6281_vm2, %v9151_v56, %v6278_v46  ;;  %v6285_v51 = vmul.f32 %v9153_v21, %v6284_v30  ;;  %v6586_v46 = vld [vmem:[%s13355_s2 + $0xc0] sm:$0xff]  ;;  %v6584_v30 = vld [vmem:[%s13355_s2 + $0xb0] sm:$0xff] }
 0xec5   : > { %v6397_v60 = vmul.f32 %v6282_v44, %v12054_v36  ;;  %v6189_v24 = vsel %vm335_vm1, %v6149_v14, 0.0  ;;  %v6583_v14 = vld [vmem:[%s13355_s2 + $0xa8] sm:$0xff]  ;;  %v6582_v44 = vld [vmem:[%s13355_s2 + $0xa0] sm:$0xff] }
 0xec6   : > { %v6286_v43 = vmul.f32 0.5, %v6285_v51  ;;  %v6176_v1 = vpop.xlane.xlu2 %6175  ;;  %v6098_v53 = vpop.xlane.xlu0 %6097  ;;  %6190 = vadd.xlane.f32.xlu1 %v6189_v24  ;;  %v6581_v51 = vld [vmem:[%s13355_s2 + $0x98] sm:$0xff] }
 0xec7   : > { %v6415_v18 = vmul.f32 %v12150_v10, %v6397_v60  ;;  %v6208_v42 = vmul.f32 %v6176_v1, %v13561_v2  ;;  %v6118_v6 = vmul.f32 %v6098_v53, %v13561_v2  ;;  %v6580_v60 = vld [vmem:[%s13355_s2 + $0x90] sm:$0xff] }
 0xec8   : > { %v6287_v58 = vsub.f32 1.5, %v6286_v43 }
 0xec9   : > { %v9155_v63 = vpop.eup %9154  ;;  %v12220_v22 = vadd.f32 %v12157_v48, %v6415_v18  ;;  %v6224_v37 = vadd.f32 1e-05, %v6208_v42  ;;  %v12223_v36 = vsub.f32 %v12100_v12, %v6118_v6 }
 0xeca   : > { %v6288_v5 = vmul.f32 %v9153_v21, %v6287_v58  ;;  %v6294_v27 = vmul.f32 %v9155_v63, %v6223_v34  ;;  %vm6300_vm6 = vweird.f32 %v9155_v63  ;;  %v6587_v34 = vld [vmem:[%s13355_s2 + $0xc8] sm:$0xff] }
 0xecb   : > { %9156 = vrsqrt.f32 %v6224_v37  ;;  %8550 = vmatmul.msk.f32.vlgmr.msrb.gmra.mxu3 %vm335_vm1, %v12220_v22  ;;  %v6150_v25 = vmul.f32 %v12223_v36, %v12223_v36  ;;  %vm6301_vm8 = vmor %vm6299_vm7, %vm6300_vm6  ;;  %vm6309_vm10 = vweird.f32 %v6224_v37  ;;  %6647 = vmatpush.msra.mxu1 %v6587_v34 }
 0xecc   : > { %v6292_v45 = vsel %vm6291_vm5, %v9153_v21, %v6288_v5  ;;  %v6295_v9 = vmul.f32 %v9155_v63, %v6294_v27 }
 0xecd   : > { %v6398_v55 = vmul.f32 %v6292_v45, %v12064_v3  ;;  %v6192_v0 = vsel %vm335_vm1, %v6150_v25, 0.0  ;;  %6648 = vmatpush.msra.mxu1 %v6586_v46 }
 0xece   : > { %v6296_v49 = vmul.f32 0.5, %v6295_v9  ;;  %6193 = vadd.xlane.f32.xlu2 %v6192_v0  ;;  %v6101_v12 = vpop.xlane.xlu2 %6100 }
 0xecf   : > { %v6119_v19 = vmul.f32 %v6101_v12, %v13561_v2  ;;  %v6416_v38 = vmul.f32 %v12150_v10, %v6398_v55 }
 0xed0   : > { %v6297_v56 = vsub.f32 1.5, %v6296_v49 }
 0xed1   : > { %v9157_v59 = vpop.eup %9156  ;;  %v12234_v39 = vsub.f32 %v12110_v23, %v6119_v19  ;;  %v12237_v62 = vadd.f32 %v12157_v48, %v6416_v38 }
 0xed2   : > { %v6298_v40 = vmul.f32 %v9155_v63, %v6297_v56  ;;  %v6304_v3 = vmul.f32 %v9157_v59, %v6224_v37  ;;  %vm6310_vm9 = vweird.f32 %v9157_v59  ;;  %v12295_v56 = vld [vmem:[%s13356_s3 + $0xa] ss:$0 sm:$0xff] }
 0xed3   : > { %8551 = vmatmul.msk.f32.gmra.mxu3 %vm335_vm1, %v12237_v62  ;;  %v6151_v35 = vmul.f32 %v12234_v39, %v12234_v39  ;;  %vm6311_vm11 = vmor %vm6309_vm10, %vm6310_vm9 }
 0xed4   : > { %v6302_v20 = vsel %vm6301_vm8, %v9155_v63, %v6298_v40  ;;  %v6305_v54 = vmul.f32 %v9157_v59, %v6304_v3 }
 0xed5   : > { %v6399_v29 = vmul.f32 %v6302_v20, %v12080_v11  ;;  %v6195_v23 = vsel %vm335_vm1, %v6151_v35, 0.0 }
 0xed6   : > { %v6306_v15 = vmul.f32 0.5, %v6305_v54  ;;  %6196 = vadd.xlane.f32.xlu0 %v6195_v23 }
 0xed7   : > { %v6417_v13 = vmul.f32 %v12150_v10, %v6399_v29 }
 0xed8   : > { %v6307_v4 = vsub.f32 1.5, %v6306_v15 }
 0xed9   : > { %v12247_v28 = vadd.f32 %v12157_v48, %v6417_v13 }
 0xeda   : > { %v6308_v57 = vmul.f32 %v9157_v59, %v6307_v4 }
 0xedb   : > { %8552 = vmatmul.msk.f32.gmra.mxu3 %vm335_vm1, %v12247_v28 }
 0xedc   : > { %v6312_v50 = vsel %vm6311_vm11, %v9157_v59, %v6308_v57 }
 0xedd   : > { %v6400_v11 = vmul.f32 %v6312_v50, %v12096_v61  ;;  %v6585_v61 = vld [vmem:[%s13355_s2 + $0xb8] sm:$0xff] }
 0xede   : > { %6649 = vmatpush.msra.mxu1 %v6585_v61 }
 0xedf   : > { %v6418_v16 = vmul.f32 %v12150_v10, %v6400_v11 }
 0xee0   : > { %6650 = vmatpush.msra.mxu1 %v6584_v30 }
 0xee1   : > { %v12254_v21 = vadd.f32 %v12157_v48, %v6418_v16 }
 0xee2   : > { %6651 = vmatpush.msra.mxu1 %v6583_v14 }
 0xee3   : > { %8553 = vmatmul.msk.f32.gmra.mxu3 %vm335_vm1, %v12254_v21 }
 0xee4   : > { %6652 = vmatpush.msra.mxu1 %v6582_v44 }
 0xee6   : > { %6653 = vmatpush.msra.mxu1 %v6581_v51 }
 0xee8   : > { %6654 = vmatpush.msra.mxu1 %v6580_v60 }
 0xf11   : > { %v6179_v24 = vpop.xlane.xlu1 %6178 }
 0xf12   : > { %v6209_v43 = vmul.f32 %v6179_v24, %v13561_v2 }
 0xf14   : > { %v6225_v1 = vadd.f32 1e-05, %v6209_v43 }
 0xf16   : > { %9158 = vrsqrt.f32 %v6225_v1  ;;  %vm6319_vm13 = vweird.f32 %v6225_v1 }
 0xf19   : > { %v6182_v53 = vpop.xlane.xlu0 %6181  ;;  %v6104_v18 = vpop.xlane.xlu1 %6103 }
 0xf1a   : > { %v6210_v42 = vmul.f32 %v6182_v53, %v13561_v2  ;;  %v6120_v6 = vmul.f32 %v6104_v18, %v13561_v2 }
 0xf1c   : > { %v9159_v58 = vpop.eup %9158  ;;  %v6226_v63 = vadd.f32 1e-05, %v6210_v42  ;;  %v12286_v37 = vsub.f32 %v12145_v7, %v6120_v6 }
 0xf1d   : > { %v6314_v5 = vmul.f32 %v9159_v58, %v6225_v1  ;;  %vm6320_vm12 = vweird.f32 %v9159_v58 }
 0xf1e   : > { %9160 = vrsqrt.f32 %v6226_v63  ;;  %v6152_v27 = vmul.f32 %v12286_v37, %v12286_v37  ;;  %vm6321_vm14 = vmor %vm6319_vm13, %vm6320_vm12  ;;  %vm6329_vm3 = vweird.f32 %v6226_v63 }
 0xf1f   : > { %v6315_v25 = vmul.f32 %v9159_v58, %v6314_v5 }
 0xf20   : > { %v6198_v45 = vsel %vm335_vm1, %v6152_v27, 0.0 }
 0xf21   : > { %v6316_v9 = vmul.f32 0.5, %v6315_v25  ;;  %v6185_v55 = vpop.xlane.xlu2 %6184  ;;  %6199 = vadd.xlane.f32.xlu1 %v6198_v45 }
 0xf22   : > { %v6211_v0 = vmul.f32 %v6185_v55, %v13561_v2 }
 0xf23   : > { %v6317_v49 = vsub.f32 1.5, %v6316_v9 }
 0xf24   : > { %v9161_v12 = vpop.eup %9160  ;;  %v6227_v19 = vadd.f32 1e-05, %v6211_v0 }
 0xf25   : > { %v6318_v38 = vmul.f32 %v9159_v58, %v6317_v49  ;;  %v6324_v7 = vmul.f32 %v9161_v12, %v6226_v63  ;;  %vm6330_vm2 = vweird.f32 %v9161_v12 }
 0xf26   : > { %9162 = vrsqrt.f32 %v6227_v19  ;;  %vm6331_vm4 = vmor %vm6329_vm3, %vm6330_vm2  ;;  %vm6339_vm6 = vweird.f32 %v6227_v19 }
 0xf27   : > { %v6322_v59 = vsel %vm6321_vm14, %v9159_v58, %v6318_v38  ;;  %v6325_v40 = vmul.f32 %v9161_v12, %v6324_v7 }
 0xf28   : > { %v6401_v3 = vmul.f32 %v6322_v59, %v12132_v26  ;;  %v6516_v35 = vpop.f32.mrf.mxu1 }
 0xf29   : > { %v6326_v20 = vmul.f32 0.5, %v6325_v40  ;;  %v6517_v54 = vadd.f32 %v12295_v56, %v6516_v35 }
 0xf2a   : > { %v6419_v29 = vmul.f32 %v12150_v10, %v6401_v3 }
 0xf2b   : > { %v6327_v23 = vsub.f32 1.5, %v6326_v20  ;;  %v6564_v15 = vmax.f32 %v6517_v54, 0.0 }
 0xf2c   : > { %v9163_v13 = vpop.eup %9162  ;;  %v12301_v4 = vadd.f32 %v12157_v48, %v6419_v29 }
 0xf2d   : > { %v6328_v57 = vmul.f32 %v9161_v12, %v6327_v23  ;;  %v6334_v50 = vmul.f32 %v9163_v13, %v6227_v19  ;;  %8562 = vmatmul.msk.f32.vlgmr.msra.gmra.mxu1 %vm6590_vm15, %v6564_v15  ;;  %vm6340_vm5 = vweird.f32 %v9163_v13 }
 0xf2e   : > { %8554 = vmatmul.msk.f32.gmra.mxu3 %vm335_vm1, %v12301_v4  ;;  %vm6341_vm7 = vmor %vm6339_vm6, %vm6340_vm5 }
 0xf2f   : > { %v6332_v26 = vsel %vm6331_vm4, %v9161_v12, %v6328_v57  ;;  %v6335_v11 = vmul.f32 %v9163_v13, %v6334_v50 }
 0xf30   : > { %v6402_v16 = vmul.f32 %v6332_v26, %v12141_v52  ;;  %v6519_v34 = vpop.f32.mrf.mxu1 }
 0xf31   : > { %v6336_v46 = vmul.f32 0.5, %v6335_v11  ;;  %v6520_v61 = vadd.f32 %v12295_v56, %v6519_v34  ;;  %v6188_v30 = vpop.xlane.xlu0 %6187 }
 0xf32   : > { %v6212_v14 = vmul.f32 %v6188_v30, %v13561_v2  ;;  %v6420_v44 = vmul.f32 %v12150_v10, %v6402_v16 }
 0xf33   : > { %v6337_v51 = vsub.f32 1.5, %v6336_v46  ;;  %v6565_v60 = vmax.f32 %v6520_v61, 0.0 }
 0xf34   : > { %v6228_v24 = vadd.f32 1e-05, %v6212_v14  ;;  %v12311_v43 = vadd.f32 %v12157_v48, %v6420_v44 }
 0xf35   : > { %v6338_v1 = vmul.f32 %v9163_v13, %v6337_v51  ;;  %8563 = vmatmul.msk.f32.gmra.mxu1 %vm6590_vm15, %v6565_v60 }
 0xf36   : > { %9164 = vrsqrt.f32 %v6228_v24  ;;  %8555 = vmatmul.msk.f32.gmra.mxu3 %vm335_vm1, %v12311_v43  ;;  %vm6349_vm9 = vweird.f32 %v6228_v24 }
 0xf37   : > { %v6342_v52 = vsel %vm6341_vm7, %v9163_v13, %v6338_v1 }
 0xf38   : > { %v6403_v53 = vmul.f32 %v6342_v52, %v12170_v8  ;;  %v6522_v18 = vpop.f32.mrf.mxu1 }
 0xf39   : > { %v6523_v42 = vadd.f32 %v12295_v56, %v6522_v18  ;;  %v6191_v6 = vpop.xlane.xlu1 %6190 }
 0xf3a   : > { %v6213_v58 = vmul.f32 %v6191_v6, %v13561_v2  ;;  %v6421_v63 = vmul.f32 %v12150_v10, %v6403_v53 }
 0xf3b   : > { %v6566_v5 = vmax.f32 %v6523_v42, 0.0 }
 0xf3c   : > { %v9165_v27 = vpop.eup %9164  ;;  %v6229_v25 = vadd.f32 1e-05, %v6213_v58  ;;  %v12321_v45 = vadd.f32 %v12157_v48, %v6421_v63 }
 0xf3d   : > { %v6344_v9 = vmul.f32 %v9165_v27, %v6228_v24  ;;  %8564 = vmatmul.msk.f32.gmra.mxu1 %vm6590_vm15, %v6566_v5  ;;  %vm6350_vm8 = vweird.f32 %v9165_v27 }
 0xf3e   : > { %9166 = vrsqrt.f32 %v6229_v25  ;;  %8556 = vmatmul.msk.f32.gmra.mxu3 %vm335_vm1, %v12321_v45  ;;  %vm6351_vm10 = vmor %vm6349_vm9, %vm6350_vm8  ;;  %vm6359_vm12 = vweird.f32 %v6229_v25 }
 0xf3f   : > { %v6345_v8 = vmul.f32 %v9165_v27, %v6344_v9 }
 0xf40   : > { %v6525_v55 = vpop.f32.mrf.mxu1 }
 0xf41   : > { %v6346_v0 = vmul.f32 0.5, %v6345_v8  ;;  %v6526_v49 = vadd.f32 %v12295_v56, %v6525_v55  ;;  %v6194_v12 = vpop.xlane.xlu2 %6193 }
 0xf42   : > { %v6214_v19 = vmul.f32 %v6194_v12, %v13561_v2 }
 0xf43   : > { %v6347_v38 = vsub.f32 1.5, %v6346_v0  ;;  %v6567_v7 = vmax.f32 %v6526_v49, 0.0 }
 0xf44   : > { %v9167_v59 = vpop.eup %9166  ;;  %v6230_v40 = vadd.f32 1e-05, %v6214_v19 }
 0xf45   : > { %v6348_v3 = vmul.f32 %v9165_v27, %v6347_v38  ;;  %v6354_v35 = vmul.f32 %v9167_v59, %v6229_v25  ;;  %8565 = vmatmul.msk.f32.gmra.mxu1 %vm6590_vm15, %v6567_v7  ;;  %vm6360_vm11 = vweird.f32 %v9167_v59 }
 0xf46   : > { %9168 = vrsqrt.f32 %v6230_v40  ;;  %vm6361_vm13 = vmor %vm6359_vm12, %vm6360_vm11  ;;  %vm6369_vm2 = vweird.f32 %v6230_v40 }
 0xf47   : > { %v6352_v20 = vsel %vm6351_vm10, %v9165_v27, %v6348_v3  ;;  %v6355_v54 = vmul.f32 %v9167_v59, %v6354_v35 }
 0xf48   : > { %v6404_v29 = vmul.f32 %v6352_v20, %v12190_v31 }
 0xf49   : > { %v6356_v23 = vmul.f32 0.5, %v6355_v54  ;;  %v6197_v15 = vpop.xlane.xlu0 %6196 }
 0xf4a   : > { %v6215_v13 = vmul.f32 %v6197_v15, %v13561_v2  ;;  %v6422_v57 = vmul.f32 %v12150_v10, %v6404_v29 }
 0xf4b   : > { %v6357_v50 = vsub.f32 1.5, %v6356_v23 }
 0xf4c   : > { %v9169_v26 = vpop.eup %9168  ;;  %v6231_v11 = vadd.f32 1e-05, %v6215_v13  ;;  %v12333_v16 = vadd.f32 %v12157_v48, %v6422_v57 }
 0xf4d   : > { %v6358_v34 = vmul.f32 %v9167_v59, %v6357_v50  ;;  %v6364_v46 = vmul.f32 %v9169_v26, %v6230_v40  ;;  %vm6370_vm14 = vweird.f32 %v9169_v26  ;;  %v12370_v50 = vld [vmem:[%s13356_s3 + $0xb] ss:$0 sm:$0xff] }
 0xf4e   : > { %9170 = vrsqrt.f32 %v6231_v11  ;;  %v6528_v61 = vpop.f32.mrf.mxu3  ;;  %8557 = vmatmul.msk.f32.gmra.mxu3 %vm335_vm1, %v12333_v16  ;;  %vm6371_vm3 = vmor %vm6369_vm2, %vm6370_vm14  ;;  %vm6379_vm5 = vweird.f32 %v6231_v11 }
 0xf4f   : > { %v6362_v31 = vsel %vm6361_vm13, %v9167_v59, %v6358_v34  ;;  %v6365_v30 = vmul.f32 %v9169_v26, %v6364_v46  ;;  %v6529_v14 = vadd.f32 %v12295_v56, %v6528_v61 }
 0xf50   : > { %v6405_v44 = vmul.f32 %v6362_v31, %v12205_v41 }
 0xf51   : > { %v6366_v51 = vmul.f32 0.5, %v6365_v30  ;;  %v6568_v60 = vmax.f32 %v6529_v14, 0.0 }
 0xf52   : > { %v6423_v24 = vmul.f32 %v12150_v10, %v6405_v44 }
 0xf53   : > { %v6367_v1 = vsub.f32 1.5, %v6366_v51  ;;  %8566 = vmatmul.msk.f32.gmra.mxu1 %vm6590_vm15, %v6568_v60 }
 0xf54   : > { %v9171_v52 = vpop.eup %9170  ;;  %v12342_v53 = vadd.f32 %v12157_v48, %v6423_v24 }
 0xf55   : > { %v6368_v18 = vmul.f32 %v9169_v26, %v6367_v1  ;;  %v6374_v42 = vmul.f32 %v9171_v52, %v6231_v11  ;;  %vm6380_vm4 = vweird.f32 %v9171_v52 }
 0xf56   : > { %v6531_v6 = vpop.f32.mrf.mxu3  ;;  %8558 = vmatmul.msk.f32.gmra.mxu3 %vm335_vm1, %v12342_v53  ;;  %vm6381_vm6 = vmor %vm6379_vm5, %vm6380_vm4 }
 0xf57   : > { %v6372_v41 = vsel %vm6371_vm3, %v9169_v26, %v6368_v18  ;;  %v6375_v58 = vmul.f32 %v9171_v52, %v6374_v42  ;;  %v6532_v63 = vadd.f32 %v12295_v56, %v6531_v6 }
 0xf58   : > { %v6406_v5 = vmul.f32 %v6372_v41, %v12223_v36 }
 0xf59   : > { %v6376_v27 = vmul.f32 0.5, %v6375_v58  ;;  %v6569_v25 = vmax.f32 %v6532_v63, 0.0 }
 0xf5a   : > { %v6424_v9 = vmul.f32 %v12150_v10, %v6406_v5 }
 0xf5b   : > { %v6377_v8 = vsub.f32 1.5, %v6376_v27  ;;  %8567 = vmatmul.msk.f32.gmra.mxu1 %vm6590_vm15, %v6569_v25 }
 0xf5c   : > { %v12351_v55 = vadd.f32 %v12157_v48, %v6424_v9 }
 0xf5d   : > { %v6378_v0 = vmul.f32 %v9171_v52, %v6377_v8 }
 0xf5e   : > { %v6534_v49 = vpop.f32.mrf.mxu3  ;;  %8559 = vmatmul.msk.f32.gmra.mxu3 %vm335_vm1, %v12351_v55 }
 0xf5f   : > { %v6382_v12 = vsel %vm6381_vm6, %v9171_v52, %v6378_v0  ;;  %v6535_v36 = vadd.f32 %v12295_v56, %v6534_v49 }
 0xf60   : > { %v6407_v19 = vmul.f32 %v6382_v12, %v12234_v39 }
 0xf61   : > { %v6570_v38 = vmax.f32 %v6535_v36, 0.0 }
 0xf62   : > { %v6425_v7 = vmul.f32 %v12150_v10, %v6407_v19 }
 0xf63   : > { %8568 = vmatmul.msk.f32.gmra.mxu1 %vm6590_vm15, %v6570_v38 }
 0xf64   : > { %v12360_v59 = vadd.f32 %v12157_v48, %v6425_v7 }
 0xf66   : > { %v6537_v40 = vpop.f32.mrf.mxu3  ;;  %8560 = vmatmul.msk.f32.gmra.mxu3 %vm335_vm1, %v12360_v59 }
 0xf67   : > { %v6538_v3 = vadd.f32 %v12295_v56, %v6537_v40 }
 0xf69   : > { %v6571_v35 = vmax.f32 %v6538_v3, 0.0 }
 0xf6b   : > { %8569 = vmatmul.msk.f32.gmra.mxu1 %vm6590_vm15, %v6571_v35 }
 0xf94   : > { %v6200_v20 = vpop.xlane.xlu1 %6199 }
 0xf95   : > { %v6216_v39 = vmul.f32 %v6200_v20, %v13561_v2 }
 0xf97   : > { %v6232_v54 = vadd.f32 1e-05, %v6216_v39 }
 0xf99   : > { %9172 = vrsqrt.f32 %v6232_v54  ;;  %vm6389_vm8 = vweird.f32 %v6232_v54 }
 0xf9f   : > { %v9173_v29 = vpop.eup %9172 }
 0xfa0   : > { %v6384_v23 = vmul.f32 %v9173_v29, %v6232_v54  ;;  %vm6390_vm7 = vweird.f32 %v9173_v29 }
 0xfa1   : > { %vm6391_vm9 = vmor %vm6389_vm8, %vm6390_vm7 }
 0xfa2   : > { %v6385_v15 = vmul.f32 %v9173_v29, %v6384_v23 }
 0xfa4   : > { %v6386_v13 = vmul.f32 0.5, %v6385_v15 }
 0xfa6   : > { %v6387_v57 = vsub.f32 1.5, %v6386_v13 }
 0xfa8   : > { %v6388_v26 = vmul.f32 %v9173_v29, %v6387_v57 }
 0xfaa   : > { %v6392_v11 = vsel %vm6391_vm9, %v9173_v29, %v6388_v26  ;;  %v6656_v34 = vpop.f32.mrf.mxu1 }
 0xfab   : > { %v6408_v46 = vmul.f32 %v6392_v11, %v12286_v37  ;;  %v6657_v61 = vadd.f32 %v12370_v50, %v6656_v34  ;;  %v7111_v34 = vld [vmem:[%s13355_s2 + $0xe8] sm:$0xff] }
 0xfac   : > { %7174 = vmatpush.msrb.mxu0 %v7111_v34 }
 0xfad   : > { %v12375_v31 = vadd.f32 %v6657_v61, %v12167_v17  ;;  %v6426_v30 = vmul.f32 %v12150_v10, %v6408_v46 }
 0xfaf   : > { %v6720_v14 = vsel %vm335_vm1, %v12375_v31, 0.0  ;;  %v12381_v44 = vadd.f32 %v12157_v48, %v6426_v30 }
 0xfb0   : > { %6721 = vadd.xlane.f32.xlu2 %v6720_v14 }
 0xfb1   : > { %v6540_v51 = vpop.f32.mrf.mxu3  ;;  %8561 = vmatmul.msk.f32.gmra.mxu3 %vm335_vm1, %v12381_v44 }
 0xfb2   : > { %v6541_v37 = vadd.f32 %v12295_v56, %v6540_v51  ;;  %v6659_v60 = vpop.f32.mrf.mxu1 }
 0xfb3   : > { %v6660_v24 = vadd.f32 %v12370_v50, %v6659_v60 }
 0xfb4   : > { %v6572_v17 = vmax.f32 %v6541_v37, 0.0 }
 0xfb5   : > { %v12388_v1 = vadd.f32 %v6660_v24, %v12181_v32 }
 0xfb6   : > { %8570 = vmatmul.msk.f32.gmra.mxu1 %vm6590_vm15, %v6572_v17 }
 0xfb7   : > { %v6723_v10 = vsel %vm335_vm1, %v12388_v1, 0.0 }
 0xfb8   : > { %6724 = vadd.xlane.f32.xlu0 %v6723_v10 }
 0xfb9   : > { %v6543_v48 = vpop.f32.mrf.mxu3 }
 0xfba   : > { %v6544_v52 = vadd.f32 %v12295_v56, %v6543_v48  ;;  %v6662_v18 = vpop.f32.mrf.mxu1 }
 0xfbb   : > { %v6663_v42 = vadd.f32 %v12370_v50, %v6662_v18 }
 0xfbc   : > { %v6573_v6 = vmax.f32 %v6544_v52, 0.0 }
 0xfbd   : > { %v12396_v41 = vadd.f32 %v6663_v42, %v12193_v47 }
 0xfbe   : > { %8571 = vmatmul.msk.f32.gmra.mxu1 %vm6590_vm15, %v6573_v6 }
 0xfbf   : > { %v6726_v32 = vsel %vm335_vm1, %v12396_v41, 0.0 }
 0xfc0   : > { %6727 = vadd.xlane.f32.xlu1 %v6726_v32 }
 0xfc1   : > { %v6546_v58 = vpop.f32.mrf.mxu3 }
 0xfc2   : > { %v6547_v63 = vadd.f32 %v12295_v56, %v6546_v58  ;;  %v6665_v5 = vpop.f32.mrf.mxu1 }
 0xfc3   : > { %v6666_v27 = vadd.f32 %v12370_v50, %v6665_v5 }
 0xfc4   : > { %v6574_v25 = vmax.f32 %v6547_v63, 0.0 }
 0xfc5   : > { %v12404_v9 = vadd.f32 %v6666_v27, %v12208_v33 }
 0xfc6   : > { %8572 = vmatmul.msk.f32.gmra.mxu1 %vm6590_vm15, %v6574_v25 }
 0xfc7   : > { %v6729_v47 = vsel %vm335_vm1, %v12404_v9, 0.0 }
 0xfc8   : > { %6730 = vadd.xlane.f32.xlu2 %v6729_v47 }
 0xfd0   : > { %v6668_v8 = vpop.f32.mrf.mxu1 }
 0xfd1   : > { %v6669_v0 = vadd.f32 %v12370_v50, %v6668_v8  ;;  %v6549_v49 = vpop.f32.mrf.mxu3 }
 0xfd2   : > { %v6550_v12 = vadd.f32 %v12295_v56, %v6549_v49 }
 0xfd3   : > { %v12412_v36 = vadd.f32 %v6669_v0, %v12220_v22 }
 0xfd4   : > { %v6575_v19 = vmax.f32 %v6550_v12, 0.0  ;;  %v7110_v12 = vld [vmem:[%s13355_s2 + $0xe0] sm:$0xff] }
 0xfd5   : > { %v6732_v33 = vsel %vm335_vm1, %v12412_v36, 0.0  ;;  %7175 = vmatpush.msrb.mxu0 %v7110_v12 }
 0xfd6   : > { %6733 = vadd.xlane.f32.xlu0 %v6732_v33  ;;  %8573 = vmatmul.msk.f32.gmra.mxu1 %vm6590_vm15, %v6575_v19 }
 0xfd8   : > { %v6671_v38 = vpop.f32.mrf.mxu1 }
 0xfd9   : > { %v6672_v7 = vadd.f32 %v12370_v50, %v6671_v38  ;;  %v6552_v40 = vpop.f32.mrf.mxu3 }
 0xfda   : > { %v6553_v3 = vadd.f32 %v12295_v56, %v6552_v40 }
 0xfdb   : > { %v12420_v35 = vadd.f32 %v6672_v7, %v12237_v62 }
 0xfdc   : > { %v6576_v20 = vmax.f32 %v6553_v3, 0.0 }
 0xfdd   : > { %v6735_v22 = vsel %vm335_vm1, %v12420_v35, 0.0 }
 0xfde   : > { %6736 = vadd.xlane.f32.xlu1 %v6735_v22  ;;  %8574 = vmatmul.msk.f32.gmra.mxu1 %vm6590_vm15, %v6576_v20 }
 0xfe0   : > { %v6674_v39 = vpop.f32.mrf.mxu1 }
 0xfe1   : > { %v6675_v54 = vadd.f32 %v12370_v50, %v6674_v39  ;;  %v6555_v29 = vpop.f32.mrf.mxu3 }
 0xfe2   : > { %v6556_v23 = vadd.f32 %v12295_v56, %v6555_v29 }
 0xfe3   : > { %v12428_v15 = vadd.f32 %v6675_v54, %v12247_v28  ;;  %v7109_v54 = vld [vmem:[%s13355_s2 + $0xd8] sm:$0xff] }
 0xfe4   : > { %v6577_v13 = vmax.f32 %v6556_v23, 0.0  ;;  %7176 = vmatpush.msrb.mxu0 %v7109_v54 }
 0xfe5   : > { %v6738_v62 = vsel %vm335_vm1, %v12428_v15, 0.0 }
 0xfe6   : > { %6739 = vadd.xlane.f32.xlu0 %v6738_v62  ;;  %8575 = vmatmul.msk.f32.gmra.mxu1 %vm6590_vm15, %v6577_v13 }
 0xfe8   : > { %v6677_v30 = vpop.f32.mrf.mxu1 }
 0xfe9   : > { %v6558_v57 = vpop.f32.mrf.mxu3  ;;  %v6678_v51 = vadd.f32 %v12370_v50, %v6677_v30 }
 0xfea   : > { %v6559_v26 = vadd.f32 %v12295_v56, %v6558_v57 }
 0xfeb   : > { %v12448_v17 = vadd.f32 %v6678_v51, %v12254_v21 }
 0xfec   : > { %v6578_v11 = vmax.f32 %v6559_v26, 0.0 }
 0xfed   : > { %v6741_v48 = vsel %vm335_vm1, %v12448_v17, 0.0 }
 0xfee   : > { %8576 = vmatmul.msk.f32.gmra.mxu1 %vm6590_vm15, %v6578_v11 }
0x1023   : > { %v6722_v28 = vpop.xlane.xlu2 %6721 }
0x1024   : > { %v6768_v46 = vmul.f32 %v6722_v28, %v13561_v2 }
0x1026   : > { %v12440_v61 = vsub.f32 %v12375_v31, %v6768_v46 }
0x1028   : > { %v6800_v14 = vmul.f32 %v12440_v61, %v12440_v61 }
0x102a   : > { %v6816_v37 = vsel %vm335_vm1, %v6800_v14, 0.0 }
0x102b   : > { %v6725_v60 = vpop.xlane.xlu0 %6724  ;;  %6817 = vadd.xlane.f32.xlu2 %v6816_v37 }
0x102c   : > { %v6769_v24 = vmul.f32 %v6725_v60, %v13561_v2 }
0x102e   : > { %v12451_v10 = vsub.f32 %v12388_v1, %v6769_v24 }
0x1030   : > { %v6801_v31 = vmul.f32 %v12451_v10, %v12451_v10 }
0x1032   : > { %v6819_v52 = vsel %vm335_vm1, %v6801_v31, 0.0 }
0x1033   : > { %v6680_v18 = vpop.f32.mrf.mxu1  ;;  %6742 = vadd.xlane.f32.xlu2 %v6741_v48  ;;  %6820 = vadd.xlane.f32.xlu1 %v6819_v52  ;;  %v6728_v42 = vpop.xlane.xlu1 %6727  ;;  %v7108_v48 = vld [vmem:[%s13355_s2 + $0xd0] sm:$0xff] }
0x1034   : > { %v6681_v6 = vadd.f32 %v12370_v50, %v6680_v18  ;;  %v6770_v21 = vmul.f32 %v6728_v42, %v13561_v2  ;;  %v6561_v32 = vpop.f32.mrf.mxu3  ;;  %7177 = vmatpush.msrb.mxu0 %v7108_v48 }
0x1035   : > { %v6562_v1 = vadd.f32 %v12295_v56, %v6561_v32 }
0x1036   : > { %v12462_v58 = vadd.f32 %v6681_v6, %v12301_v4  ;;  %v12465_v63 = vsub.f32 %v12396_v41, %v6770_v21 }
0x1037   : > { %v6579_v5 = vmax.f32 %v6562_v1, 0.0 }
0x1038   : > { %v6802_v27 = vmul.f32 %v12465_v63, %v12465_v63  ;;  %v6744_v25 = vsel %vm335_vm1, %v12462_v58, 0.0 }
0x1039   : > { %8577 = vmatmul.msk.f32.gmra.mxu1 %vm6590_vm15, %v6579_v5 }
0x103a   : > { %v6822_v47 = vsel %vm335_vm1, %v6802_v27, 0.0 }
0x103b   : > { %v6683_v8 = vpop.f32.mrf.mxu1  ;;  %v6731_v0 = vpop.xlane.xlu2 %6730  ;;  %6745 = vadd.xlane.f32.xlu1 %v6744_v25  ;;  %6823 = vadd.xlane.f32.xlu0 %v6822_v47 }
0x103c   : > { %v6684_v56 = vadd.f32 %v12370_v50, %v6683_v8  ;;  %v6771_v4 = vmul.f32 %v6731_v0, %v13561_v2 }
0x103e   : > { %v12476_v41 = vadd.f32 %v6684_v56, %v12311_v43  ;;  %v12479_v49 = vsub.f32 %v12404_v9, %v6771_v4 }
0x1040   : > { %v6803_v19 = vmul.f32 %v12479_v49, %v12479_v49  ;;  %v6747_v38 = vsel %vm335_vm1, %v12476_v41, 0.0 }
0x1042   : > { %v6825_v33 = vsel %vm335_vm1, %v6803_v19, 0.0 }
0x1043   : > { %v6686_v7 = vpop.f32.mrf.mxu1  ;;  %6826 = vadd.xlane.f32.xlu2 %v6825_v33  ;;  %6748 = vadd.xlane.f32.xlu0 %v6747_v38 }
0x1044   : > { %v6687_v43 = vadd.f32 %v12370_v50, %v6686_v7 }
0x1046   : > { %v12491_v9 = vadd.f32 %v6687_v43, %v12321_v45 }
0x1048   : > { %v6750_v20 = vsel %vm335_vm1, %v12491_v9, 0.0 }
0x1049   : > { %v6734_v40 = vpop.xlane.xlu0 %6733 }
0x104a   : > { %v6772_v3 = vmul.f32 %v6734_v40, %v13561_v2 }
0x104b   : > { %6751 = vadd.xlane.f32.xlu2 %v6750_v20 }
0x104c   : > { %v12497_v22 = vsub.f32 %v12412_v36, %v6772_v3 }
0x104e   : > { %v6804_v39 = vmul.f32 %v12497_v22, %v12497_v22 }
0x1050   : > { %v6828_v45 = vsel %vm335_vm1, %v6804_v39, 0.0 }
0x1051   : > { %6829 = vadd.xlane.f32.xlu1 %v6828_v45  ;;  %v6737_v29 = vpop.xlane.xlu1 %6736  ;;  %v12561_v45 = vld [vmem:[%s13356_s3 + $0xc] ss:$0 sm:$0xff] }
0x1052   : > { %v6773_v23 = vmul.f32 %v6737_v29, %v13561_v2 }
0x1053   : > { %v6689_v13 = vpop.f32.mrf.mxu1 }
0x1054   : > { %v12507_v62 = vsub.f32 %v12420_v35, %v6773_v23  ;;  %v6690_v36 = vadd.f32 %v12370_v50, %v6689_v13 }
0x1056   : > { %v12511_v57 = vadd.f32 %v6690_v36, %v12333_v16  ;;  %v6805_v26 = vmul.f32 %v12507_v62, %v12507_v62 }
0x1058   : > { %v6753_v11 = vsel %vm335_vm1, %v12511_v57, 0.0  ;;  %v6831_v34 = vsel %vm335_vm1, %v6805_v26, 0.0 }
0x1059   : > { %v6740_v28 = vpop.xlane.xlu0 %6739  ;;  %6754 = vadd.xlane.f32.xlu1 %v6753_v11  ;;  %6832 = vadd.xlane.f32.xlu0 %v6831_v34 }
0x105a   : > { %v6774_v46 = vmul.f32 %v6740_v28, %v13561_v2 }
0x105b   : > { %v6692_v35 = vpop.f32.mrf.mxu1 }
0x105c   : > { %v12520_v30 = vsub.f32 %v12428_v15, %v6774_v46  ;;  %v6693_v16 = vadd.f32 %v12370_v50, %v6692_v35 }
0x105e   : > { %v12524_v14 = vadd.f32 %v6693_v16, %v12342_v53  ;;  %v6806_v51 = vmul.f32 %v12520_v30, %v12520_v30 }
0x1060   : > { %v6834_v37 = vsel %vm335_vm1, %v6806_v51, 0.0  ;;  %v6756_v60 = vsel %vm335_vm1, %v12524_v14, 0.0 }
0x1061   : > { %6835 = vadd.xlane.f32.xlu2 %v6834_v37  ;;  %6757 = vadd.xlane.f32.xlu0 %v6756_v60 }
0x1063   : > { %v6695_v24 = vpop.f32.mrf.mxu1 }
0x1064   : > { %v6696_v31 = vadd.f32 %v12370_v50, %v6695_v24 }
0x1066   : > { %v12533_v15 = vadd.f32 %v6696_v31, %v12351_v55 }
0x1068   : > { %v6759_v53 = vsel %vm335_vm1, %v12533_v15, 0.0 }
0x1069   : > { %6760 = vadd.xlane.f32.xlu2 %v6759_v53 }
0x106b   : > { %v6698_v25 = vpop.f32.mrf.mxu1 }
0x106c   : > { %v6699_v56 = vadd.f32 %v12370_v50, %v6698_v25 }
0x106e   : > { %v12553_v40 = vadd.f32 %v6699_v56, %v12360_v59 }
0x1070   : > { %v6762_v36 = vsel %vm335_vm1, %v12553_v40, 0.0 }
0x109e   : > { %v6818_v52 = vpop.xlane.xlu2 %6817 }
0x109f   : > { %v6864_v18 = vmul.f32 %v6818_v52, %v13561_v2 }
0x10a1   : > { %v6880_v42 = vadd.f32 1e-05, %v6864_v18 }
0x10a3   : > { %9174 = vrsqrt.f32 %v6880_v42  ;;  %vm6902_vm10 = vweird.f32 %v6880_v42 }
0x10a6   : > { %v6743_v6 = vpop.xlane.xlu2 %6742  ;;  %v6821_v21 = vpop.xlane.xlu1 %6820 }
0x10a7   : > { %v6775_v32 = vmul.f32 %v6743_v6, %v13561_v2  ;;  %v6865_v55 = vmul.f32 %v6821_v21, %v13561_v2 }
0x10a9   : > { %v9175_v1 = vpop.eup %9174  ;;  %v12544_v5 = vsub.f32 %v12448_v17, %v6775_v32  ;;  %v6881_v27 = vadd.f32 1e-05, %v6865_v55 }
0x10aa   : > { %v6897_v47 = vmul.f32 %v9175_v1, %v6880_v42  ;;  %vm6903_vm15 = vweird.f32 %v9175_v1 }
0x10ab   : > { %9176 = vrsqrt.f32 %v6881_v27  ;;  %v6807_v8 = vmul.f32 %v12544_v5, %v12544_v5  ;;  %vm6904_vm11 = vmor %vm6902_vm10, %vm6903_vm15  ;;  %vm6912_vm13 = vweird.f32 %v6881_v27 }
0x10ac   : > { %v6898_v0 = vmul.f32 %v9175_v1, %v6897_v47 }
0x10ad   : > { %v6837_v4 = vsel %vm335_vm1, %v6807_v8, 0.0 }
0x10ae   : > { %v6899_v12 = vmul.f32 0.5, %v6898_v0  ;;  %6838 = vadd.xlane.f32.xlu1 %v6837_v4  ;;  %v6824_v19 = vpop.xlane.xlu0 %6823  ;;  %v6746_v33 = vpop.xlane.xlu1 %6745 }
0x10af   : > { %v6866_v38 = vmul.f32 %v6824_v19, %v13561_v2  ;;  %v6776_v17 = vmul.f32 %v6746_v33, %v13561_v2 }
0x10b0   : > { %v6900_v7 = vsub.f32 1.5, %v6899_v12 }
0x10b1   : > { %v9177_v43 = vpop.eup %9176  ;;  %v6882_v3 = vadd.f32 1e-05, %v6866_v38  ;;  %v12556_v20 = vsub.f32 %v12462_v58, %v6776_v17  ;;  %v12568_v58 = vld [vmem:[%s13356_s3 + $0xd] ss:$0 sm:$0xff] }
0x10b2   : > { %v6901_v39 = vmul.f32 %v9175_v1, %v6900_v7  ;;  %v6907_v54 = vmul.f32 %v9177_v43, %v6881_v27  ;;  %vm6913_vm12 = vweird.f32 %v9177_v43 }
0x10b3   : > { %9178 = vrsqrt.f32 %v6882_v3  ;;  %v6808_v29 = vmul.f32 %v12556_v20, %v12556_v20  ;;  %vm6914_vm14 = vmor %vm6912_vm13, %vm6913_vm12  ;;  %vm6922_vm3 = vweird.f32 %v6882_v3 }
0x10b4   : > { %v6905_v23 = vsel %vm6904_vm11, %v9175_v1, %v6901_v39  ;;  %v6908_v59 = vmul.f32 %v9177_v43, %v6907_v54 }
0x10b5   : > { %v7056_v13 = vmul.f32 %v6905_v23, %v12440_v61  ;;  %v6840_v26 = vsel %vm335_vm1, %v6808_v29, 0.0 }
0x10b6   : > { %v6909_v11 = vmul.f32 0.5, %v6908_v59  ;;  %v6827_v34 = vpop.xlane.xlu2 %6826  ;;  %6763 = vadd.xlane.f32.xlu1 %v6762_v36  ;;  %v6701_v28 = vpop.f32.mrf.mxu1  ;;  %6841 = vadd.xlane.f32.xlu0 %v6840_v26 }
0x10b7   : > { %v7074_v46 = vmul.f32 %v12561_v45, %v7056_v13  ;;  %v6867_v35 = vmul.f32 %v6827_v34, %v13561_v2  ;;  %v6702_v16 = vadd.f32 %v12370_v50, %v6701_v28  ;;  %v6749_v51 = vpop.xlane.xlu0 %6748 }
0x10b8   : > { %v6910_v37 = vsub.f32 1.5, %v6909_v11  ;;  %v6777_v61 = vmul.f32 %v6749_v51, %v13561_v2 }
0x10b9   : > { %v9179_v60 = vpop.eup %9178  ;;  %v7092_v24 = vadd.f32 %v12568_v58, %v7074_v46  ;;  %v6883_v31 = vadd.f32 1e-05, %v6867_v35  ;;  %v12580_v53 = vadd.f32 %v6702_v16, %v12381_v44 }
0x10ba   : > { %v6911_v48 = vmul.f32 %v9177_v43, %v6910_v37  ;;  %v6917_v52 = vmul.f32 %v9179_v60, %v6882_v3  ;;  %v12583_v18 = vsub.f32 %v12476_v41, %v6777_v61  ;;  %vm6923_vm2 = vweird.f32 %v9179_v60 }
0x10bb   : > { %9180 = vrsqrt.f32 %v6883_v31  ;;  %8578 = vmatmul.msk.f32.vlgmr.msrb.gmra.mxu0 %vm335_vm1, %v7092_v24  ;;  %v6765_v44 = vsel %vm335_vm1, %v12580_v53, 0.0  ;;  %vm6924_vm4 = vmor %vm6922_vm3, %vm6923_vm2  ;;  %vm6932_vm6 = vweird.f32 %v6883_v31 }
0x10bc   : > { %v6915_v50 = vsel %vm6914_vm14, %v9177_v43, %v6911_v48  ;;  %v6918_v42 = vmul.f32 %v9179_v60, %v6917_v52  ;;  %v6809_v6 = vmul.f32 %v12583_v18, %v12583_v18 }
0x10bd   : > { %v7057_v21 = vmul.f32 %v6915_v50, %v12451_v10 }
0x10be   : > { %v6919_v32 = vmul.f32 0.5, %v6918_v42  ;;  %v6752_v55 = vpop.xlane.xlu2 %6751  ;;  %v6843_v1 = vsel %vm335_vm1, %v6809_v6, 0.0  ;;  %6766 = vadd.xlane.f32.xlu0 %v6765_v44 }
0x10bf   : > { %v6778_v41 = vmul.f32 %v6752_v55, %v13561_v2  ;;  %6844 = vadd.xlane.f32.xlu2 %v6843_v1  ;;  %v7075_v27 = vmul.f32 %v12561_v45, %v7057_v21 }
0x10c0   : > { %v6920_v25 = vsub.f32 1.5, %v6919_v32 }
0x10c1   : > { %v9181_v47 = vpop.eup %9180  ;;  %v12595_v8 = vsub.f32 %v12491_v9, %v6778_v41  ;;  %v7093_v10 = vadd.f32 %v12568_v58, %v7075_v27 }
0x10c2   : > { %v6921_v0 = vmul.f32 %v9179_v60, %v6920_v25  ;;  %v6927_v56 = vmul.f32 %v9181_v47, %v6883_v31  ;;  %vm6933_vm5 = vweird.f32 %v9181_v47 }
0x10c3   : > { %8579 = vmatmul.msk.f32.gmra.mxu0 %vm335_vm1, %v7093_v10  ;;  %v6810_v4 = vmul.f32 %v12595_v8, %v12595_v8  ;;  %vm6934_vm7 = vmor %vm6932_vm6, %vm6933_vm5 }
0x10c4   : > { %v6925_v12 = vsel %vm6924_vm4, %v9179_v60, %v6921_v0  ;;  %v6928_v19 = vmul.f32 %v9181_v47, %v6927_v56  ;;  %v6830_v33 = vpop.xlane.xlu1 %6829 }
0x10c5   : > { %v7058_v38 = vmul.f32 %v6925_v12, %v12465_v63  ;;  %v6868_v17 = vmul.f32 %v6830_v33, %v13561_v2  ;;  %v6846_v9 = vsel %vm335_vm1, %v6810_v4, 0.0 }
0x10c6   : > { %v6929_v7 = vmul.f32 0.5, %v6928_v19  ;;  %6847 = vadd.xlane.f32.xlu1 %v6846_v9 }
0x10c7   : > { %v6884_v43 = vadd.f32 1e-05, %v6868_v17  ;;  %v7076_v3 = vmul.f32 %v12561_v45, %v7058_v38 }
0x10c8   : > { %v6930_v39 = vsub.f32 1.5, %v6929_v7 }
0x10c9   : > { %9182 = vrsqrt.f32 %v6884_v43  ;;  %v7094_v54 = vadd.f32 %v12568_v58, %v7076_v3  ;;  %vm6942_vm9 = vweird.f32 %v6884_v43 }
0x10ca   : > { %v6931_v29 = vmul.f32 %v9181_v47, %v6930_v39 }
0x10cb   : > { %8580 = vmatmul.msk.f32.gmra.mxu0 %vm335_vm1, %v7094_v54 }
0x10cc   : > { %v6935_v63 = vsel %vm6934_vm7, %v9181_v47, %v6931_v29  ;;  %v6833_v23 = vpop.xlane.xlu0 %6832  ;;  %v6755_v59 = vpop.xlane.xlu1 %6754 }
0x10cd   : > { %v7059_v13 = vmul.f32 %v6935_v63, %v12479_v49  ;;  %v6869_v36 = vmul.f32 %v6833_v23, %v13561_v2  ;;  %v6779_v26 = vmul.f32 %v6755_v59, %v13561_v2 }
0x10cf   : > { %v9183_v11 = vpop.eup %9182  ;;  %v6885_v34 = vadd.f32 1e-05, %v6869_v36  ;;  %v12611_v28 = vsub.f32 %v12511_v57, %v6779_v26  ;;  %v7077_v46 = vmul.f32 %v12561_v45, %v7059_v13 }
0x10d0   : > { %v6937_v35 = vmul.f32 %v9183_v11, %v6884_v43  ;;  %vm6943_vm8 = vweird.f32 %v9183_v11 }
0x10d1   : > { %9184 = vrsqrt.f32 %v6885_v34  ;;  %v7095_v16 = vadd.f32 %v12568_v58, %v7077_v46  ;;  %v6811_v51 = vmul.f32 %v12611_v28, %v12611_v28  ;;  %vm6944_vm15 = vmor %vm6942_vm9, %vm6943_vm8  ;;  %vm6952_vm11 = vweird.f32 %v6885_v34 }
0x10d2   : > { %v6938_v37 = vmul.f32 %v9183_v11, %v6937_v35 }
0x10d3   : > { %8581 = vmatmul.msk.f32.gmra.mxu0 %vm335_vm1, %v7095_v16  ;;  %v6849_v49 = vsel %vm335_vm1, %v6811_v51, 0.0 }
0x10d4   : > { %v6939_v61 = vmul.f32 0.5, %v6938_v37  ;;  %v6836_v60 = vpop.xlane.xlu2 %6835  ;;  %v6758_v24 = vpop.xlane.xlu0 %6757  ;;  %6850 = vadd.xlane.f32.xlu2 %v6849_v49 }
0x10d5   : > { %v6870_v57 = vmul.f32 %v6836_v60, %v13561_v2  ;;  %v6780_v31 = vmul.f32 %v6758_v24, %v13561_v2 }
0x10d6   : > { %v6940_v48 = vsub.f32 1.5, %v6939_v61 }
0x10d7   : > { %v9185_v52 = vpop.eup %9184  ;;  %v6886_v50 = vadd.f32 1e-05, %v6870_v57  ;;  %v12622_v42 = vsub.f32 %v12524_v14, %v6780_v31 }
0x10d8   : > { %v6941_v6 = vmul.f32 %v9183_v11, %v6940_v48  ;;  %v6947_v21 = vmul.f32 %v9185_v52, %v6885_v34  ;;  %vm6953_vm10 = vweird.f32 %v9185_v52 }
0x10d9   : > { %9186 = vrsqrt.f32 %v6886_v50  ;;  %v6812_v44 = vmul.f32 %v12622_v42, %v12622_v42  ;;  %vm6954_vm12 = vmor %vm6952_vm11, %vm6953_vm10  ;;  %vm6962_vm14 = vweird.f32 %v6886_v50 }
0x10da   : > { %v6945_v32 = vsel %vm6944_vm15, %v9183_v11, %v6941_v6  ;;  %v6948_v55 = vmul.f32 %v9185_v52, %v6947_v21 }
0x10db   : > { %v7060_v1 = vmul.f32 %v6945_v32, %v12497_v22  ;;  %v6852_v41 = vsel %vm335_vm1, %v6812_v44, 0.0  ;;  %v12663_v44 = vld [vmem:[%s13356_s3 + $0xe] ss:$0 sm:$0xff] }
0x10dc   : > { %v6949_v27 = vmul.f32 0.5, %v6948_v55  ;;  %v6761_v25 = vpop.xlane.xlu2 %6760  ;;  %6853 = vadd.xlane.f32.xlu0 %v6852_v41 }
0x10dd   : > { %v6781_v14 = vmul.f32 %v6761_v25, %v13561_v2  ;;  %v7078_v47 = vmul.f32 %v12561_v45, %v7060_v1 }
0x10de   : > { %v6950_v10 = vsub.f32 1.5, %v6949_v27 }
0x10df   : > { %v9187_v0 = vpop.eup %9186  ;;  %v12631_v56 = vsub.f32 %v12533_v15, %v6781_v14  ;;  %v7096_v4 = vadd.f32 %v12568_v58, %v7078_v47 }
0x10e0   : > { %v6951_v12 = vmul.f32 %v9185_v52, %v6950_v10  ;;  %v6957_v22 = vmul.f32 %v9187_v0, %v6886_v50  ;;  %vm6963_vm13 = vweird.f32 %v9187_v0 }
0x10e1   : > { %8582 = vmatmul.msk.f32.gmra.mxu0 %vm335_vm1, %v7096_v4  ;;  %v6813_v19 = vmul.f32 %v12631_v56, %v12631_v56  ;;  %vm6964_vm2 = vmor %vm6962_vm14, %vm6963_vm13 }
0x10e2   : > { %v6955_v33 = vsel %vm6954_vm12, %v9185_v52, %v6951_v12  ;;  %v6958_v38 = vmul.f32 %v9187_v0, %v6957_v22 }
0x10e3   : > { %v7061_v17 = vmul.f32 %v6955_v33, %v12507_v62  ;;  %v6855_v9 = vsel %vm335_vm1, %v6813_v19, 0.0 }
0x10e4   : > { %v6959_v7 = vmul.f32 0.5, %v6958_v38  ;;  %6856 = vadd.xlane.f32.xlu1 %v6855_v9 }
0x10e5   : > { %v7079_v15 = vmul.f32 %v12561_v45, %v7061_v17 }
0x10e6   : > { %v6960_v43 = vsub.f32 1.5, %v6959_v7 }
0x10e7   : > { %v7097_v3 = vadd.f32 %v12568_v58, %v7079_v15 }
0x10e8   : > { %v6961_v39 = vmul.f32 %v9187_v0, %v6960_v43 }
0x10e9   : > { %8583 = vmatmul.msk.f32.gmra.mxu0 %vm335_vm1, %v7097_v3 }
0x10ea   : > { %v6965_v54 = vsel %vm6964_vm2, %v9187_v0, %v6961_v39 }
0x10eb   : > { %v7062_v29 = vmul.f32 %v6965_v54, %v12520_v30 }
0x10ed   : > { %v7080_v62 = vmul.f32 %v12561_v45, %v7062_v29 }
0x10ef   : > { %v7098_v63 = vadd.f32 %v12568_v58, %v7080_v62 }
0x10f1   : > { %8584 = vmatmul.msk.f32.gmra.mxu0 %vm335_vm1, %v7098_v63 }
0x1121   : > { %v6839_v23 = vpop.xlane.xlu1 %6838 }
0x1122   : > { %v6871_v59 = vmul.f32 %v6839_v23, %v13561_v2 }
0x1124   : > { %v6887_v13 = vadd.f32 1e-05, %v6871_v59 }
0x1126   : > { %9188 = vrsqrt.f32 %v6887_v13  ;;  %vm6972_vm4 = vweird.f32 %v6887_v13 }
0x1129   : > { %v6842_v36 = vpop.xlane.xlu0 %6841  ;;  %v6764_v26 = vpop.xlane.xlu1 %6763 }
0x112a   : > { %v6872_v11 = vmul.f32 %v6842_v36, %v13561_v2  ;;  %v6782_v34 = vmul.f32 %v6764_v26, %v13561_v2 }
0x112c   : > { %v9189_v46 = vpop.eup %9188  ;;  %v6888_v35 = vadd.f32 1e-05, %v6872_v11  ;;  %v12650_v30 = vsub.f32 %v12553_v40, %v6782_v34 }
0x112d   : > { %v6967_v16 = vmul.f32 %v9189_v46, %v6887_v13  ;;  %vm6973_vm3 = vweird.f32 %v9189_v46 }
0x112e   : > { %9190 = vrsqrt.f32 %v6888_v35  ;;  %v6814_v51 = vmul.f32 %v12650_v30, %v12650_v30  ;;  %vm6974_vm5 = vmor %vm6972_vm4, %vm6973_vm3  ;;  %vm6982_vm7 = vweird.f32 %v6888_v35 }
0x112f   : > { %v6968_v37 = vmul.f32 %v9189_v46, %v6967_v16 }
0x1130   : > { %v6858_v49 = vsel %vm335_vm1, %v6814_v51, 0.0 }
0x1131   : > { %v6969_v61 = vmul.f32 0.5, %v6968_v37  ;;  %v6767_v60 = vpop.xlane.xlu0 %6766  ;;  %6859 = vadd.xlane.f32.xlu2 %v6858_v49 }
0x1132   : > { %v6845_v24 = vpop.xlane.xlu2 %6844  ;;  %v6783_v57 = vmul.f32 %v6767_v60, %v13561_v2 }
0x1133   : > { %v6970_v31 = vsub.f32 1.5, %v6969_v61  ;;  %v6873_v48 = vmul.f32 %v6845_v24, %v13561_v2 }
0x1134   : > { %v9191_v40 = vpop.eup %9190  ;;  %v12658_v52 = vsub.f32 %v12580_v53, %v6783_v57 }
0x1135   : > { %v6971_v50 = vmul.f32 %v9189_v46, %v6970_v31  ;;  %v6977_v6 = vmul.f32 %v9191_v40, %v6888_v35  ;;  %v6889_v21 = vadd.f32 1e-05, %v6873_v48  ;;  %vm6983_vm6 = vweird.f32 %v9191_v40 }
0x1136   : > { %v6815_v32 = vmul.f32 %v12658_v52, %v12658_v52  ;;  %vm6984_vm8 = vmor %vm6982_vm7, %vm6983_vm6 }
0x1137   : > { %v6975_v55 = vsel %vm6974_vm5, %v9189_v46, %v6971_v50  ;;  %v6978_v1 = vmul.f32 %v9191_v40, %v6977_v6  ;;  %9192 = vrsqrt.f32 %v6889_v21  ;;  %vm6992_vm15 = vweird.f32 %v6889_v21 }
0x1138   : > { %v7063_v41 = vmul.f32 %v6975_v55, %v12544_v5  ;;  %v7179_v53 = vpop.f32.mrf.mxu0  ;;  %v6861_v27 = vsel %vm335_vm1, %v6815_v32, 0.0 }
0x1139   : > { %v6979_v25 = vmul.f32 0.5, %v6978_v1  ;;  %v12670_v14 = vadd.f32 %v12663_v44, %v7179_v53  ;;  %6862 = vadd.xlane.f32.xlu0 %v6861_v27  ;;  %v6848_v47 = vpop.xlane.xlu1 %6847 }
0x113a   : > { %v6874_v10 = vmul.f32 %v6848_v47, %v13561_v2  ;;  %v7081_v0 = vmul.f32 %v12561_v45, %v7063_v41 }
0x113b   : > { %v6980_v4 = vsub.f32 1.5, %v6979_v25  ;;  %v7227_v12 = vsel %vm335_vm1, %v12670_v14, 0.0 }
0x113c   : > { %v6890_v22 = vadd.f32 1e-05, %v6874_v10  ;;  %7228 = vadd.xlane.f32.xlu1 %v7227_v12  ;;  %v7099_v5 = vadd.f32 %v12568_v58, %v7081_v0 }
0x113d   : > { %v9193_v19 = vpop.eup %9192  ;;  %v6981_v33 = vmul.f32 %v9191_v40, %v6980_v4 }
0x113e   : > { %v6987_v38 = vmul.f32 %v9193_v19, %v6889_v21  ;;  %9194 = vrsqrt.f32 %v6890_v22  ;;  %8585 = vmatmul.msk.f32.gmra.mxu0 %vm335_vm1, %v7099_v5  ;;  %vm6993_vm9 = vweird.f32 %v9193_v19  ;;  %vm7002_vm12 = vweird.f32 %v6890_v22 }
0x113f   : > { %v6985_v17 = vsel %vm6984_vm8, %v9191_v40, %v6981_v33  ;;  %vm6994_vm10 = vmor %vm6992_vm15, %vm6993_vm9 }
0x1140   : > { %v7064_v9 = vmul.f32 %v6985_v17, %v12556_v20  ;;  %v6988_v7 = vmul.f32 %v9193_v19, %v6987_v38  ;;  %v7182_v15 = vpop.f32.mrf.mxu0 }
0x1141   : > { %v12680_v43 = vadd.f32 %v12663_v44, %v7182_v15 }
0x1142   : > { %v6989_v3 = vmul.f32 0.5, %v6988_v7  ;;  %v7082_v39 = vmul.f32 %v12561_v45, %v7064_v9 }
0x1143   : > { %v7230_v54 = vsel %vm335_vm1, %v12680_v43, 0.0 }
0x1144   : > { %v9195_v29 = vpop.eup %9194  ;;  %v6990_v62 = vsub.f32 1.5, %v6989_v3  ;;  %7231 = vadd.xlane.f32.xlu2 %v7230_v54  ;;  %v7100_v63 = vadd.f32 %v12568_v58, %v7082_v39 }
0x1145   : > { %v6997_v23 = vmul.f32 %v9195_v29, %v6890_v22  ;;  %vm7003_vm11 = vweird.f32 %v9195_v29 }
0x1146   : > { %v6991_v59 = vmul.f32 %v9193_v19, %v6990_v62  ;;  %8586 = vmatmul.msk.f32.gmra.mxu0 %vm335_vm1, %v7100_v63  ;;  %vm7004_vm13 = vmor %vm7002_vm12, %vm7003_vm11 }
0x1147   : > { %v6998_v20 = vmul.f32 %v9195_v29, %v6997_v23  ;;  %v6851_v13 = vpop.xlane.xlu2 %6850 }
0x1148   : > { %v6995_v36 = vsel %vm6994_vm10, %v9193_v19, %v6991_v59  ;;  %v6875_v26 = vmul.f32 %v6851_v13, %v13561_v2  ;;  %v7185_v11 = vpop.f32.mrf.mxu0 }
0x1149   : > { %v7065_v34 = vmul.f32 %v6995_v36, %v12583_v18  ;;  %v6999_v46 = vmul.f32 0.5, %v6998_v20  ;;  %v12690_v35 = vadd.f32 %v12663_v44, %v7185_v11 }
0x114a   : > { %v6891_v16 = vadd.f32 1e-05, %v6875_v26 }
0x114b   : > { %v7000_v51 = vsub.f32 1.5, %v6999_v46  ;;  %v7233_v37 = vsel %vm335_vm1, %v12690_v35, 0.0  ;;  %v7083_v49 = vmul.f32 %v12561_v45, %v7065_v34 }
0x114c   : > { %9196 = vrsqrt.f32 %v6891_v16  ;;  %7234 = vadd.xlane.f32.xlu0 %v7233_v37  ;;  %vm7012_vm2 = vweird.f32 %v6891_v16 }
0x114d   : > { %v7001_v61 = vmul.f32 %v9195_v29, %v7000_v51  ;;  %v7101_v60 = vadd.f32 %v12568_v58, %v7083_v49 }
0x114f   : > { %v7005_v18 = vsel %vm7004_vm13, %v9195_v29, %v7001_v61  ;;  %8587 = vmatmul.msk.f32.gmra.mxu0 %vm335_vm1, %v7101_v60  ;;  %v6854_v24 = vpop.xlane.xlu0 %6853 }
0x1150   : > { %v7066_v57 = vmul.f32 %v7005_v18, %v12595_v8  ;;  %v6876_v31 = vmul.f32 %v6854_v24, %v13561_v2  ;;  %v7188_v48 = vpop.f32.mrf.mxu0 }
0x1151   : > { %v12700_v40 = vadd.f32 %v12663_v44, %v7188_v48 }
0x1152   : > { %v9197_v50 = vpop.eup %9196  ;;  %v6892_v6 = vadd.f32 1e-05, %v6876_v31  ;;  %v7084_v21 = vmul.f32 %v12561_v45, %v7066_v57 }
0x1153   : > { %v7007_v32 = vmul.f32 %v9197_v50, %v6891_v16  ;;  %v7236_v55 = vsel %vm335_vm1, %v12700_v40, 0.0  ;;  %vm7013_vm14 = vweird.f32 %v9197_v50 }
0x1154   : > { %9198 = vrsqrt.f32 %v6892_v6  ;;  %7237 = vadd.xlane.f32.xlu1 %v7236_v55  ;;  %v7102_v1 = vadd.f32 %v12568_v58, %v7084_v21  ;;  %vm7014_vm3 = vmor %vm7012_vm2, %vm7013_vm14  ;;  %vm7022_vm5 = vweird.f32 %v6892_v6 }
0x1155   : > { %v7008_v41 = vmul.f32 %v9197_v50, %v7007_v32 }
0x1157   : > { %v7009_v8 = vmul.f32 0.5, %v7008_v41  ;;  %8588 = vmatmul.msk.f32.gmra.mxu0 %vm335_vm1, %v7102_v1  ;;  %v6857_v53 = vpop.xlane.xlu1 %6856 }
0x1158   : > { %v6877_v27 = vmul.f32 %v6857_v53, %v13561_v2 }
0x1159   : > { %v7010_v25 = vsub.f32 1.5, %v7009_v8 }
0x115a   : > { %v9199_v47 = vpop.eup %9198  ;;  %v6893_v10 = vadd.f32 1e-05, %v6877_v27 }
0x115b   : > { %v7011_v0 = vmul.f32 %v9197_v50, %v7010_v25  ;;  %v7017_v4 = vmul.f32 %v9199_v47, %v6892_v6  ;;  %vm7023_vm4 = vweird.f32 %v9199_v47 }
0x115c   : > { %9200 = vrsqrt.f32 %v6893_v10  ;;  %vm7024_vm6 = vmor %vm7022_vm5, %vm7023_vm4  ;;  %vm7032_vm8 = vweird.f32 %v6893_v10 }
0x115d   : > { %v7015_v12 = vsel %vm7014_vm3, %v9197_v50, %v7011_v0  ;;  %v7018_v22 = vmul.f32 %v9199_v47, %v7017_v4 }
0x115e   : > { %v7067_v5 = vmul.f32 %v7015_v12, %v12611_v28  ;;  %v7191_v19 = vpop.f32.mrf.mxu0 }
0x115f   : > { %v7019_v33 = vmul.f32 0.5, %v7018_v22  ;;  %v12710_v38 = vadd.f32 %v12663_v44, %v7191_v19 }
0x1160   : > { %v7085_v17 = vmul.f32 %v12561_v45, %v7067_v5 }
0x1161   : > { %v7020_v9 = vsub.f32 1.5, %v7019_v33  ;;  %v7239_v7 = vsel %vm335_vm1, %v12710_v38, 0.0 }
0x1162   : > { %v9201_v15 = vpop.eup %9200  ;;  %7240 = vadd.xlane.f32.xlu2 %v7239_v7  ;;  %v7103_v3 = vadd.f32 %v12568_v58, %v7085_v17 }
0x1163   : > { %v7021_v39 = vmul.f32 %v9199_v47, %v7020_v9  ;;  %v7027_v54 = vmul.f32 %v9201_v15, %v6893_v10  ;;  %vm7033_vm7 = vweird.f32 %v9201_v15 }
0x1164   : > { %8589 = vmatmul.msk.f32.gmra.mxu0 %vm335_vm1, %v7103_v3  ;;  %vm7034_vm9 = vmor %vm7032_vm8, %vm7033_vm7 }
0x1165   : > { %v7025_v28 = vsel %vm7024_vm6, %v9199_v47, %v7021_v39  ;;  %v7028_v29 = vmul.f32 %v9201_v15, %v7027_v54 }
0x1166   : > { %v7068_v62 = vmul.f32 %v7025_v28, %v12622_v42  ;;  %v7194_v63 = vpop.f32.mrf.mxu0 }
0x1167   : > { %v7029_v23 = vmul.f32 0.5, %v7028_v29  ;;  %v12719_v59 = vadd.f32 %v12663_v44, %v7194_v63 }
0x1168   : > { %v7086_v20 = vmul.f32 %v12561_v45, %v7068_v62 }
0x1169   : > { %v7030_v13 = vsub.f32 1.5, %v7029_v23  ;;  %v7242_v36 = vsel %vm335_vm1, %v12719_v59, 0.0 }
0x116a   : > { %7243 = vadd.xlane.f32.xlu0 %v7242_v36  ;;  %v7104_v26 = vadd.f32 %v12568_v58, %v7086_v20 }
0x116b   : > { %v7031_v11 = vmul.f32 %v9201_v15, %v7030_v13 }
0x116c   : > { %8590 = vmatmul.msk.f32.gmra.mxu0 %vm335_vm1, %v7104_v26 }
0x116d   : > { %v7035_v42 = vsel %vm7034_vm9, %v9201_v15, %v7031_v11 }
0x116e   : > { %v7069_v34 = vmul.f32 %v7035_v42, %v12631_v56  ;;  %v7197_v46 = vpop.f32.mrf.mxu0 }
0x116f   : > { %v12728_v16 = vadd.f32 %v12663_v44, %v7197_v46 }
0x1170   : > { %v7087_v51 = vmul.f32 %v12561_v45, %v7069_v34 }
0x1171   : > { %v7245_v37 = vsel %vm335_vm1, %v12728_v16, 0.0 }
0x1172   : > { %7246 = vadd.xlane.f32.xlu2 %v7245_v37  ;;  %v7105_v49 = vadd.f32 %v12568_v58, %v7087_v51 }
0x1174   : > { %8591 = vmatmul.msk.f32.gmra.mxu0 %vm335_vm1, %v7105_v49 }
0x11a4   : > { %v6860_v61 = vpop.xlane.xlu2 %6859 }
0x11a5   : > { %v6878_v60 = vmul.f32 %v6860_v61, %v13561_v2 }
0x11a7   : > { %v6894_v18 = vadd.f32 1e-05, %v6878_v60 }
0x11a9   : > { %9202 = vrsqrt.f32 %v6894_v18  ;;  %vm7042_vm10 = vweird.f32 %v6894_v18 }
0x11ac   : > { %v6863_v56 = vpop.xlane.xlu0 %6862 }
0x11ad   : > { %v6879_v24 = vmul.f32 %v6863_v56, %v13561_v2 }
0x11af   : > { %v9203_v57 = vpop.eup %9202  ;;  %v6895_v31 = vadd.f32 1e-05, %v6879_v24  ;;  %v7229_v48 = vpop.xlane.xlu1 %7228 }
0x11b0   : > { %v7037_v50 = vmul.f32 %v9203_v57, %v6894_v18  ;;  %v7275_v6 = vmul.f32 %v7229_v48, %v13561_v2  ;;  %vm7043_vm15 = vweird.f32 %v9203_v57 }
0x11b1   : > { %9204 = vrsqrt.f32 %v6895_v31  ;;  %vm7044_vm11 = vmor %vm7042_vm10, %vm7043_vm15  ;;  %vm7052_vm13 = vweird.f32 %v6895_v31 }
0x11b2   : > { %v7038_v21 = vmul.f32 %v9203_v57, %v7037_v50  ;;  %v12739_v32 = vsub.f32 %v12670_v14, %v7275_v6 }
0x11b4   : > { %v7039_v55 = vmul.f32 0.5, %v7038_v21  ;;  %v7307_v1 = vmul.f32 %v12739_v32, %v12739_v32 }
0x11b6   : > { %v7040_v41 = vsub.f32 1.5, %v7039_v55  ;;  %v7323_v8 = vsel %vm335_vm1, %v7307_v1, 0.0 }
0x11b7   : > { %v9205_v53 = vpop.eup %9204  ;;  %v7232_v27 = vpop.xlane.xlu2 %7231  ;;  %7324 = vadd.xlane.f32.xlu1 %v7323_v8 }
0x11b8   : > { %v7041_v25 = vmul.f32 %v9203_v57, %v7040_v41  ;;  %v7047_v47 = vmul.f32 %v9205_v53, %v6895_v31  ;;  %v7276_v10 = vmul.f32 %v7232_v27, %v13561_v2  ;;  %vm7053_vm12 = vweird.f32 %v9205_v53 }
0x11b9   : > { %vm7054_vm14 = vmor %vm7052_vm13, %vm7053_vm12 }
0x11ba   : > { %v7045_v0 = vsel %vm7044_vm11, %v9203_v57, %v7041_v25  ;;  %v7048_v14 = vmul.f32 %v9205_v53, %v7047_v47  ;;  %v12746_v4 = vsub.f32 %v12680_v43, %v7276_v10 }
0x11bb   : > { %v7070_v12 = vmul.f32 %v7045_v0, %v12650_v30  ;;  %v7200_v22 = vpop.f32.mrf.mxu0  ;;  %v7634_v0 = vld [vmem:[%s13355_s2 + $0x108] sm:$0xff] }
0x11bc   : > { %v7049_v5 = vmul.f32 0.5, %v7048_v14  ;;  %v12750_v19 = vadd.f32 %v12663_v44, %v7200_v22  ;;  %v7308_v33 = vmul.f32 %v12746_v4, %v12746_v4  ;;  %7697 = vmatpush.msra.mxu2 %v7634_v0  ;;  %v7633_v14 = vld [vmem:[%s13355_s2 + $0x100] sm:$0xff]  ;;  %v7631_v22 = vld [vmem:[%s13355_s2 + $0xf0] sm:$0xff] }
0x11bd   : > { %v7088_v17 = vmul.f32 %v12561_v45, %v7070_v12  ;;  %v7632_v12 = vld [vmem:[%s13355_s2 + $0xf8] sm:$0xff] }
0x11be   : > { %v7050_v9 = vsub.f32 1.5, %v7049_v5  ;;  %v7326_v7 = vsel %vm335_vm1, %v7308_v33, 0.0  ;;  %v7248_v43 = vsel %vm335_vm1, %v12750_v19, 0.0  ;;  %7698 = vmatpush.msra.mxu2 %v7633_v14 }
0x11bf   : > { %v7235_v15 = vpop.xlane.xlu0 %7234  ;;  %7327 = vadd.xlane.f32.xlu0 %v7326_v7  ;;  %7249 = vadd.xlane.f32.xlu1 %v7248_v43  ;;  %v7106_v30 = vadd.f32 %v12568_v58, %v7088_v17 }
0x11c0   : > { %v7051_v3 = vmul.f32 %v9205_v53, %v7050_v9  ;;  %v7277_v39 = vmul.f32 %v7235_v15, %v13561_v2  ;;  %7699 = vmatpush.msra.mxu2 %v7632_v12 }
0x11c1   : > { %8592 = vmatmul.msk.f32.gmra.mxu0 %vm335_vm1, %v7106_v30 }
0x11c2   : > { %v7055_v54 = vsel %vm7054_vm14, %v9205_v53, %v7051_v3  ;;  %v12762_v28 = vsub.f32 %v12690_v35, %v7277_v39  ;;  %7700 = vmatpush.msra.mxu2 %v7631_v22 }
0x11c3   : > { %v7071_v29 = vmul.f32 %v7055_v54, %v12658_v52  ;;  %v7203_v62 = vpop.f32.mrf.mxu0 }
0x11c4   : > { %v12766_v63 = vadd.f32 %v12663_v44, %v7203_v62  ;;  %v7309_v23 = vmul.f32 %v12762_v28, %v12762_v28 }
0x11c5   : > { %v7089_v20 = vmul.f32 %v12561_v45, %v7071_v29 }
0x11c6   : > { %v7329_v13 = vsel %vm335_vm1, %v7309_v23, 0.0  ;;  %v7251_v36 = vsel %vm335_vm1, %v12766_v63, 0.0 }
0x11c7   : > { %7330 = vadd.xlane.f32.xlu2 %v7329_v13  ;;  %7252 = vadd.xlane.f32.xlu0 %v7251_v36  ;;  %v7238_v35 = vpop.xlane.xlu1 %7237  ;;  %v7107_v26 = vadd.f32 %v12568_v58, %v7089_v20 }
0x11c8   : > { %v7278_v52 = vmul.f32 %v7238_v35, %v13561_v2 }
0x11c9   : > { %8593 = vmatmul.msk.f32.gmra.mxu0 %vm335_vm1, %v7107_v26 }
0x11ca   : > { %v12778_v11 = vsub.f32 %v12700_v40, %v7278_v52 }
0x11cc   : > { %v7206_v42 = vpop.f32.mrf.mxu0  ;;  %v7310_v45 = vmul.f32 %v12778_v11, %v12778_v11 }
0x11cd   : > { %v12783_v34 = vadd.f32 %v12663_v44, %v7206_v42 }
0x11ce   : > { %v7332_v46 = vsel %vm335_vm1, %v7310_v45, 0.0 }
0x11cf   : > { %v7254_v51 = vsel %vm335_vm1, %v12783_v34, 0.0  ;;  %7333 = vadd.xlane.f32.xlu1 %v7332_v46 }
0x11d0   : > { %7255 = vadd.xlane.f32.xlu2 %v7254_v51 }
0x11d4   : > { %v7209_v58 = vpop.f32.mrf.mxu0 }
0x11d5   : > { %v12789_v37 = vadd.f32 %v12663_v44, %v7209_v58  ;;  %v7241_v40 = vpop.xlane.xlu2 %7240 }
0x11d6   : > { %v7279_v49 = vmul.f32 %v7241_v40, %v13561_v2  ;;  %v12858_v40 = vld [vmem:[%s13356_s3 + $0xf] ss:$0 sm:$0xff] }
0x11d7   : > { %v7257_v61 = vsel %vm335_vm1, %v12789_v37, 0.0 }
0x11d8   : > { %v12795_v60 = vsub.f32 %v12710_v38, %v7279_v49  ;;  %7258 = vadd.xlane.f32.xlu1 %v7257_v61 }
0x11da   : > { %v7311_v18 = vmul.f32 %v12795_v60, %v12795_v60 }
0x11dc   : > { %v7335_v56 = vsel %vm335_vm1, %v7311_v18, 0.0 }
0x11dd   : > { %v7244_v24 = vpop.xlane.xlu0 %7243  ;;  %7336 = vadd.xlane.f32.xlu0 %v7335_v56  ;;  %v12868_v56 = vld [vmem:[%s13356_s3 + $0x10] ss:$0 sm:$0xff] }
0x11de   : > { %v7280_v57 = vmul.f32 %v7244_v24, %v13561_v2 }
0x11e0   : > { %v12802_v31 = vsub.f32 %v12719_v59, %v7280_v57 }
0x11e1   : > { %v7212_v48 = vpop.f32.mrf.mxu0 }
0x11e2   : > { %v12805_v50 = vadd.f32 %v12663_v44, %v7212_v48  ;;  %v7312_v38 = vmul.f32 %v12802_v31, %v12802_v31 }
0x11e4   : > { %v7338_v6 = vsel %vm335_vm1, %v7312_v38, 0.0  ;;  %v7260_v21 = vsel %vm335_vm1, %v12805_v50, 0.0 }
0x11e5   : > { %7339 = vadd.xlane.f32.xlu2 %v7338_v6  ;;  %v7247_v55 = vpop.xlane.xlu2 %7246  ;;  %7261 = vadd.xlane.f32.xlu0 %v7260_v21 }
0x11e6   : > { %v7281_v1 = vmul.f32 %v7247_v55, %v13561_v2 }
0x11e8   : > { %v12814_v59 = vsub.f32 %v12728_v16, %v7281_v1 }
0x11e9   : > { %v7215_v41 = vpop.f32.mrf.mxu0 }
0x11ea   : > { %v12817_v8 = vadd.f32 %v12663_v44, %v7215_v41  ;;  %v7313_v53 = vmul.f32 %v12814_v59, %v12814_v59 }
0x11ec   : > { %v7263_v27 = vsel %vm335_vm1, %v12817_v8, 0.0  ;;  %v7341_v25 = vsel %vm335_vm1, %v7313_v53, 0.0 }
0x11ed   : > { %7264 = vadd.xlane.f32.xlu2 %v7263_v27  ;;  %7342 = vadd.xlane.f32.xlu1 %v7341_v25 }
0x11f1   : > { %v7218_v47 = vpop.f32.mrf.mxu0 }
0x11f2   : > { %v12825_v10 = vadd.f32 %v12663_v44, %v7218_v47 }
0x11f4   : > { %v7266_v16 = vsel %vm335_vm1, %v12825_v10, 0.0 }
0x11f5   : > { %7267 = vadd.xlane.f32.xlu1 %v7266_v16 }
0x122a   : > { %v7325_v5 = vpop.xlane.xlu1 %7324 }
0x122b   : > { %v7371_v33 = vmul.f32 %v7325_v5, %v13561_v2 }
0x122d   : > { %v7387_v17 = vadd.f32 1e-05, %v7371_v33 }
0x122f   : > { %9206 = vrsqrt.f32 %v7387_v17  ;;  %vm7409_vm3 = vweird.f32 %v7387_v17 }
0x1232   : > { %v7328_v9 = vpop.xlane.xlu0 %7327  ;;  %v7250_v7 = vpop.xlane.xlu1 %7249 }
0x1233   : > { %v7372_v43 = vmul.f32 %v7328_v9, %v13561_v2  ;;  %v7282_v15 = vmul.f32 %v7250_v7, %v13561_v2 }
0x1235   : > { %v9207_v30 = vpop.eup %9206  ;;  %v7388_v3 = vadd.f32 1e-05, %v7372_v43  ;;  %v12845_v39 = vsub.f32 %v12750_v19, %v7282_v15 }
0x1236   : > { %v7404_v54 = vmul.f32 %v9207_v30, %v7387_v17  ;;  %vm7410_vm2 = vweird.f32 %v9207_v30 }
0x1237   : > { %9208 = vrsqrt.f32 %v7388_v3  ;;  %v7314_v29 = vmul.f32 %v12845_v39, %v12845_v39  ;;  %vm7411_vm4 = vmor %vm7409_vm3, %vm7410_vm2  ;;  %vm7419_vm6 = vweird.f32 %v7388_v3 }
0x1238   : > { %v7405_v62 = vmul.f32 %v9207_v30, %v7404_v54 }
0x1239   : > { %v7344_v23 = vsel %vm335_vm1, %v7314_v29, 0.0 }
0x123a   : > { %v7406_v20 = vmul.f32 0.5, %v7405_v62  ;;  %v7253_v13 = vpop.xlane.xlu0 %7252  ;;  %v7331_v36 = vpop.xlane.xlu2 %7330  ;;  %7345 = vadd.xlane.f32.xlu0 %v7344_v23 }
0x123b   : > { %v7283_v35 = vmul.f32 %v7253_v13, %v13561_v2  ;;  %v7373_v26 = vmul.f32 %v7331_v36, %v13561_v2 }
0x123c   : > { %v7407_v52 = vsub.f32 1.5, %v7406_v20 }
0x123d   : > { %v9209_v19 = vpop.eup %9208  ;;  %v12853_v42 = vsub.f32 %v12766_v63, %v7283_v35  ;;  %v7389_v45 = vadd.f32 1e-05, %v7373_v26 }
0x123e   : > { %v7408_v46 = vmul.f32 %v9207_v30, %v7407_v52  ;;  %v7414_v51 = vmul.f32 %v9209_v19, %v7388_v3  ;;  %v7221_v58 = vpop.f32.mrf.mxu0  ;;  %vm7420_vm5 = vweird.f32 %v9209_v19 }
0x123f   : > { %9210 = vrsqrt.f32 %v7389_v45  ;;  %v12861_v49 = vadd.f32 %v12663_v44, %v7221_v58  ;;  %v7315_v61 = vmul.f32 %v12853_v42, %v12853_v42  ;;  %vm7421_vm7 = vmor %vm7419_vm6, %vm7420_vm5  ;;  %vm7429_vm9 = vweird.f32 %v7389_v45 }
0x1240   : > { %v7412_v63 = vsel %vm7411_vm4, %v9207_v30, %v7408_v46  ;;  %v7415_v18 = vmul.f32 %v9209_v19, %v7414_v51 }
0x1241   : > { %v7563_v24 = vmul.f32 %v7412_v63, %v12739_v32  ;;  %v7347_v57 = vsel %vm335_vm1, %v7315_v61, 0.0  ;;  %v7269_v48 = vsel %vm335_vm1, %v12861_v49, 0.0 }
0x1242   : > { %v7416_v38 = vmul.f32 0.5, %v7415_v18  ;;  %7348 = vadd.xlane.f32.xlu2 %v7347_v57  ;;  %7270 = vadd.xlane.f32.xlu0 %v7269_v48  ;;  %v7334_v6 = vpop.xlane.xlu1 %7333 }
0x1243   : > { %v7581_v21 = vmul.f32 %v12858_v40, %v7563_v24  ;;  %v7256_v55 = vpop.xlane.xlu2 %7255  ;;  %v7374_v1 = vmul.f32 %v7334_v6, %v13561_v2 }
0x1244   : > { %v7417_v41 = vsub.f32 1.5, %v7416_v38  ;;  %v7284_v53 = vmul.f32 %v7256_v55, %v13561_v2 }
0x1245   : > { %v9211_v27 = vpop.eup %9210  ;;  %v7599_v32 = vadd.f32 %v12868_v56, %v7581_v21  ;;  %v7390_v25 = vadd.f32 1e-05, %v7374_v1 }
0x1246   : > { %v7418_v47 = vmul.f32 %v9209_v19, %v7417_v41  ;;  %v7424_v16 = vmul.f32 %v9211_v27, %v7389_v45  ;;  %v12879_v0 = vsub.f32 %v12783_v34, %v7284_v53  ;;  %v7224_v14 = vpop.f32.mrf.mxu0  ;;  %vm7430_vm8 = vweird.f32 %v9211_v27 }
0x1247   : > { %v7615_v12 = vmax.f32 %v7599_v32, 0.0  ;;  %9212 = vrsqrt.f32 %v7390_v25  ;;  %v12882_v22 = vadd.f32 %v12663_v44, %v7224_v14  ;;  %vm7431_vm15 = vmor %vm7429_vm9, %vm7430_vm8  ;;  %vm7439_vm11 = vweird.f32 %v7390_v25 }
0x1248   : > { %v7422_v5 = vsel %vm7421_vm7, %v9209_v19, %v7418_v47  ;;  %v7425_v33 = vmul.f32 %v9211_v27, %v7424_v16  ;;  %v7316_v17 = vmul.f32 %v12879_v0, %v12879_v0 }
0x1249   : > { %v7564_v9 = vmul.f32 %v7422_v5, %v12746_v4  ;;  %8594 = vmatmul.msk.f32.vlgmr.msra.gmra.mxu2 %vm335_vm1, %v7615_v12  ;;  %v7272_v34 = vsel %vm335_vm1, %v12882_v22, 0.0 }
0x124a   : > { %v7426_v7 = vmul.f32 0.5, %v7425_v33  ;;  %7273 = vadd.xlane.f32.xlu2 %v7272_v34  ;;  %v7350_v43 = vsel %vm335_vm1, %v7316_v17, 0.0 }
0x124b   : > { %7351 = vadd.xlane.f32.xlu1 %v7350_v43  ;;  %v7259_v15 = vpop.xlane.xlu1 %7258  ;;  %v7582_v44 = vmul.f32 %v12858_v40, %v7564_v9 }
0x124c   : > { %v7427_v30 = vsub.f32 1.5, %v7426_v7  ;;  %v7285_v3 = vmul.f32 %v7259_v15, %v13561_v2 }
0x124d   : > { %v9213_v54 = vpop.eup %9212  ;;  %v7600_v4 = vadd.f32 %v12868_v56, %v7582_v44 }
0x124e   : > { %v7428_v29 = vmul.f32 %v9211_v27, %v7427_v30  ;;  %v7434_v62 = vmul.f32 %v9213_v54, %v7390_v25  ;;  %v12895_v23 = vsub.f32 %v12789_v37, %v7285_v3  ;;  %vm7440_vm10 = vweird.f32 %v9213_v54 }
0x124f   : > { %v7616_v20 = vmax.f32 %v7600_v4, 0.0  ;;  %vm7441_vm12 = vmor %vm7439_vm11, %vm7440_vm10 }
0x1250   : > { %v7432_v13 = vsel %vm7431_vm15, %v9211_v27, %v7428_v29  ;;  %v7435_v36 = vmul.f32 %v9213_v54, %v7434_v62  ;;  %v7337_v35 = vpop.xlane.xlu0 %7336  ;;  %v7317_v26 = vmul.f32 %v12895_v23, %v12895_v23 }
0x1251   : > { %v7565_v52 = vmul.f32 %v7432_v13, %v12762_v28  ;;  %v7375_v19 = vmul.f32 %v7337_v35, %v13561_v2  ;;  %8595 = vmatmul.msk.f32.gmra.mxu2 %vm335_vm1, %v7616_v20 }
0x1252   : > { %v7436_v46 = vmul.f32 0.5, %v7435_v36  ;;  %v7353_v45 = vsel %vm335_vm1, %v7317_v26, 0.0 }
0x1253   : > { %v7391_v51 = vadd.f32 1e-05, %v7375_v19  ;;  %7354 = vadd.xlane.f32.xlu0 %v7353_v45  ;;  %v7583_v37 = vmul.f32 %v12858_v40, %v7565_v52 }
0x1254   : > { %v7437_v58 = vsub.f32 1.5, %v7436_v46 }
0x1255   : > { %9214 = vrsqrt.f32 %v7391_v51  ;;  %v7601_v61 = vadd.f32 %v12868_v56, %v7583_v37  ;;  %vm7449_vm14 = vweird.f32 %v7391_v51 }
0x1256   : > { %v7438_v63 = vmul.f32 %v9213_v54, %v7437_v58 }
0x1257   : > { %v7617_v28 = vmax.f32 %v7601_v61, 0.0 }
0x1258   : > { %v7442_v18 = vsel %vm7441_vm12, %v9213_v54, %v7438_v63  ;;  %v7340_v24 = vpop.xlane.xlu2 %7339  ;;  %v7262_v57 = vpop.xlane.xlu0 %7261 }
0x1259   : > { %v7566_v48 = vmul.f32 %v7442_v18, %v12778_v11  ;;  %v7376_v38 = vmul.f32 %v7340_v24, %v13561_v2  ;;  %v7286_v6 = vmul.f32 %v7262_v57, %v13561_v2  ;;  %8596 = vmatmul.msk.f32.gmra.mxu2 %vm335_vm1, %v7617_v28 }
0x125b   : > { %v9215_v21 = vpop.eup %9214  ;;  %v7392_v55 = vadd.f32 1e-05, %v7376_v38  ;;  %v12910_v1 = vsub.f32 %v12805_v50, %v7286_v6  ;;  %v7584_v41 = vmul.f32 %v12858_v40, %v7566_v48 }
0x125c   : > { %v7444_v53 = vmul.f32 %v9215_v21, %v7391_v51  ;;  %vm7450_vm13 = vweird.f32 %v9215_v21 }
0x125d   : > { %9216 = vrsqrt.f32 %v7392_v55  ;;  %v7318_v27 = vmul.f32 %v12910_v1, %v12910_v1  ;;  %v7602_v11 = vadd.f32 %v12868_v56, %v7584_v41  ;;  %vm7451_vm2 = vmor %vm7449_vm14, %vm7450_vm13  ;;  %vm7459_vm4 = vweird.f32 %v7392_v55 }
0x125e   : > { %v7445_v32 = vmul.f32 %v9215_v21, %v7444_v53 }
0x125f   : > { %v7356_v25 = vsel %vm335_vm1, %v7318_v27, 0.0  ;;  %v7618_v47 = vmax.f32 %v7602_v11, 0.0 }
0x1260   : > { %v7446_v16 = vmul.f32 0.5, %v7445_v32  ;;  %v7265_v14 = vpop.xlane.xlu2 %7264  ;;  %7357 = vadd.xlane.f32.xlu1 %v7356_v25  ;;  %v7343_v12 = vpop.xlane.xlu1 %7342 }
0x1261   : > { %v7287_v50 = vmul.f32 %v7265_v14, %v13561_v2  ;;  %v7377_v5 = vmul.f32 %v7343_v12, %v13561_v2  ;;  %8597 = vmatmul.msk.f32.gmra.mxu2 %vm335_vm1, %v7618_v47 }
0x1262   : > { %v7447_v33 = vsub.f32 1.5, %v7446_v16 }
0x1263   : > { %v9217_v17 = vpop.eup %9216  ;;  %v12921_v9 = vsub.f32 %v12817_v8, %v7287_v50  ;;  %v7393_v34 = vadd.f32 1e-05, %v7377_v5 }
0x1264   : > { %v7448_v7 = vmul.f32 %v9215_v21, %v7447_v33  ;;  %v7454_v43 = vmul.f32 %v9217_v17, %v7392_v55  ;;  %vm7460_vm3 = vweird.f32 %v9217_v17 }
0x1265   : > { %9218 = vrsqrt.f32 %v7393_v34  ;;  %v7319_v15 = vmul.f32 %v12921_v9, %v12921_v9  ;;  %vm7461_vm5 = vmor %vm7459_vm4, %vm7460_vm3  ;;  %vm7469_vm7 = vweird.f32 %v7393_v34 }
0x1266   : > { %v7452_v44 = vsel %vm7451_vm2, %v9215_v21, %v7448_v7  ;;  %v7455_v30 = vmul.f32 %v9217_v17, %v7454_v43 }
0x1267   : > { %v7567_v3 = vmul.f32 %v7452_v44, %v12795_v60  ;;  %v7359_v54 = vsel %vm335_vm1, %v7319_v15, 0.0 }
0x1268   : > { %v7456_v4 = vmul.f32 0.5, %v7455_v30  ;;  %7360 = vadd.xlane.f32.xlu2 %v7359_v54  ;;  %v7268_v29 = vpop.xlane.xlu1 %7267 }
0x1269   : > { %v7288_v8 = vmul.f32 %v7268_v29, %v13561_v2  ;;  %v7585_v62 = vmul.f32 %v12858_v40, %v7567_v3 }
0x126a   : > { %v7457_v20 = vsub.f32 1.5, %v7456_v4 }
0x126b   : > { %v9219_v13 = vpop.eup %9218  ;;  %v12930_v36 = vsub.f32 %v12825_v10, %v7288_v8  ;;  %v7603_v35 = vadd.f32 %v12868_v56, %v7585_v62 }
0x126c   : > { %v7458_v26 = vmul.f32 %v9217_v17, %v7457_v20  ;;  %v7464_v60 = vmul.f32 %v9219_v13, %v7393_v34  ;;  %vm7470_vm6 = vweird.f32 %v9219_v13 }
0x126d   : > { %v7619_v52 = vmax.f32 %v7603_v35, 0.0  ;;  %v7320_v19 = vmul.f32 %v12930_v36, %v12930_v36  ;;  %vm7471_vm8 = vmor %vm7469_vm7, %vm7470_vm6 }
0x126e   : > { %v7462_v46 = vsel %vm7461_vm5, %v9217_v17, %v7458_v26  ;;  %v7465_v45 = vmul.f32 %v9219_v13, %v7464_v60 }
0x126f   : > { %v7568_v51 = vmul.f32 %v7462_v46, %v12802_v31  ;;  %8598 = vmatmul.msk.f32.gmra.mxu2 %vm335_vm1, %v7619_v52  ;;  %v7362_v37 = vsel %vm335_vm1, %v7320_v19, 0.0 }
0x1270   : > { %v7466_v10 = vmul.f32 0.5, %v7465_v45  ;;  %7363 = vadd.xlane.f32.xlu0 %v7362_v37 }
0x1271   : > { %v7586_v58 = vmul.f32 %v12858_v40, %v7568_v51 }
0x1272   : > { %v7467_v61 = vsub.f32 1.5, %v7466_v10 }
0x1273   : > { %v7604_v63 = vadd.f32 %v12868_v56, %v7586_v58 }
0x1274   : > { %v7468_v28 = vmul.f32 %v9219_v13, %v7467_v61 }
0x1275   : > { %v7620_v18 = vmax.f32 %v7604_v63, 0.0 }
0x1276   : > { %v7472_v24 = vsel %vm7471_vm8, %v9219_v13, %v7468_v28 }
0x1277   : > { %v7569_v57 = vmul.f32 %v7472_v24, %v12814_v59  ;;  %8599 = vmatmul.msk.f32.gmra.mxu2 %vm335_vm1, %v7620_v18 }
0x1279   : > { %v7587_v31 = vmul.f32 %v12858_v40, %v7569_v57 }
0x127b   : > { %v7605_v48 = vadd.f32 %v12868_v56, %v7587_v31 }
0x127d   : > { %v7621_v38 = vmax.f32 %v7605_v48, 0.0 }
0x127f   : > { %8600 = vmatmul.msk.f32.gmra.mxu2 %vm335_vm1, %v7621_v38 }
0x12ad   : > { %v7346_v6 = vpop.xlane.xlu0 %7345 }
0x12ae   : > { %v7378_v21 = vmul.f32 %v7346_v6, %v13561_v2 }
0x12b0   : > { %v7394_v55 = vadd.f32 1e-05, %v7378_v21 }
0x12b2   : > { %9220 = vrsqrt.f32 %v7394_v55  ;;  %vm7479_vm15 = vweird.f32 %v7394_v55 }
0x12b5   : > { %v7349_v41 = vpop.xlane.xlu2 %7348  ;;  %v7271_v53 = vpop.xlane.xlu0 %7270 }
0x12b6   : > { %v7379_v27 = vmul.f32 %v7349_v41, %v13561_v2  ;;  %v7289_v59 = vmul.f32 %v7271_v53, %v13561_v2 }
0x12b8   : > { %v9221_v11 = vpop.eup %9220  ;;  %v7395_v32 = vadd.f32 1e-05, %v7379_v27  ;;  %v12949_v25 = vsub.f32 %v12861_v49, %v7289_v59 }
0x12b9   : > { %v7474_v47 = vmul.f32 %v9221_v11, %v7394_v55  ;;  %vm7480_vm9 = vweird.f32 %v9221_v11 }
0x12ba   : > { %9222 = vrsqrt.f32 %v7395_v32  ;;  %v7321_v16 = vmul.f32 %v12949_v25, %v12949_v25  ;;  %vm7481_vm10 = vmor %vm7479_vm15, %vm7480_vm9  ;;  %vm7489_vm12 = vweird.f32 %v7395_v32 }
0x12bb   : > { %v7475_v14 = vmul.f32 %v9221_v11, %v7474_v47 }
0x12bc   : > { %v7365_v12 = vsel %vm335_vm1, %v7321_v16, 0.0 }
0x12bd   : > { %v7476_v50 = vmul.f32 0.5, %v7475_v14  ;;  %v7274_v5 = vpop.xlane.xlu2 %7273  ;;  %7366 = vadd.xlane.f32.xlu1 %v7365_v12 }
0x12be   : > { %v7290_v33 = vmul.f32 %v7274_v5, %v13561_v2  ;;  %v7352_v17 = vpop.xlane.xlu1 %7351 }
0x12bf   : > { %v7477_v34 = vsub.f32 1.5, %v7476_v50  ;;  %v7380_v7 = vmul.f32 %v7352_v17, %v13561_v2 }
0x12c0   : > { %v9223_v49 = vpop.eup %9222  ;;  %v12957_v43 = vsub.f32 %v12882_v22, %v7290_v33 }
0x12c1   : > { %v7478_v15 = vmul.f32 %v9221_v11, %v7477_v34  ;;  %v7484_v44 = vmul.f32 %v9223_v49, %v7395_v32  ;;  %v7396_v30 = vadd.f32 1e-05, %v7380_v7  ;;  %vm7490_vm11 = vweird.f32 %v9223_v49 }
0x12c2   : > { %v7322_v3 = vmul.f32 %v12957_v43, %v12957_v43  ;;  %vm7491_vm13 = vmor %vm7489_vm12, %vm7490_vm11 }
0x12c3   : > { %v7482_v54 = vsel %vm7481_vm10, %v9221_v11, %v7478_v15  ;;  %v7485_v4 = vmul.f32 %v9223_v49, %v7484_v44  ;;  %9224 = vrsqrt.f32 %v7396_v30  ;;  %vm7499_vm2 = vweird.f32 %v7396_v30 }
0x12c4   : > { %v7570_v29 = vmul.f32 %v7482_v54, %v12845_v39  ;;  %v7368_v8 = vsel %vm335_vm1, %v7322_v3, 0.0  ;;  %v12969_v39 = vld [vmem:[%s13356_s3 + $0x11] ss:$0 sm:$0xff] }
0x12c5   : > { %v7486_v62 = vmul.f32 0.5, %v7485_v4  ;;  %7369 = vadd.xlane.f32.xlu2 %v7368_v8 }
0x12c6   : > { %v7355_v20 = vpop.xlane.xlu0 %7354  ;;  %v7588_v22 = vmul.f32 %v12858_v40, %v7570_v29 }
0x12c7   : > { %v7487_v13 = vsub.f32 1.5, %v7486_v62  ;;  %v7381_v35 = vmul.f32 %v7355_v20, %v13561_v2 }
0x12c8   : > { %v7606_v26 = vadd.f32 %v12868_v56, %v7588_v22 }
0x12c9   : > { %v9225_v60 = vpop.eup %9224  ;;  %v7488_v52 = vmul.f32 %v9223_v49, %v7487_v13  ;;  %v7397_v19 = vadd.f32 1e-05, %v7381_v35 }
0x12ca   : > { %v7494_v46 = vmul.f32 %v9225_v60, %v7396_v30  ;;  %v7622_v45 = vmax.f32 %v7606_v26, 0.0  ;;  %vm7500_vm14 = vweird.f32 %v9225_v60 }
0x12cb   : > { %v7492_v51 = vsel %vm7491_vm13, %v9223_v49, %v7488_v52  ;;  %9226 = vrsqrt.f32 %v7397_v19  ;;  %vm7501_vm3 = vmor %vm7499_vm2, %vm7500_vm14  ;;  %vm7509_vm5 = vweird.f32 %v7397_v19 }
0x12cc   : > { %v7571_v37 = vmul.f32 %v7492_v51, %v12853_v42  ;;  %v7495_v10 = vmul.f32 %v9225_v60, %v7494_v46  ;;  %v7702_v58 = vpop.f32.mrf.mxu2  ;;  %8601 = vmatmul.msk.f32.gmra.mxu2 %vm335_vm1, %v7622_v45 }
0x12cd   : > { %v12974_v61 = vadd.f32 %v12969_v39, %v7702_v58 }
0x12ce   : > { %v7496_v63 = vmul.f32 0.5, %v7495_v10  ;;  %v7589_v28 = vmul.f32 %v12858_v40, %v7571_v37 }
0x12cf   : > { %v7750_v18 = vsel %vm221_vm0, %v12974_v61, 0.0 }
0x12d0   : > { %v7497_v24 = vsub.f32 1.5, %v7496_v63  ;;  %7751 = vadd.xlane.f32.xlu0 %v7750_v18  ;;  %v7607_v57 = vadd.f32 %v12868_v56, %v7589_v28 }
0x12d1   : > { %v9227_v31 = vpop.eup %9226 }
0x12d2   : > { %v7498_v42 = vmul.f32 %v9225_v60, %v7497_v24  ;;  %v7504_v48 = vmul.f32 %v9227_v31, %v7397_v19  ;;  %v7623_v38 = vmax.f32 %v7607_v57, 0.0  ;;  %vm7510_vm4 = vweird.f32 %v9227_v31 }
0x12d3   : > { %v7358_v6 = vpop.xlane.xlu1 %7357  ;;  %vm7511_vm6 = vmor %vm7509_vm5, %vm7510_vm4 }
0x12d4   : > { %v7502_v21 = vsel %vm7501_vm3, %v9225_v60, %v7498_v42  ;;  %v7505_v55 = vmul.f32 %v9227_v31, %v7504_v48  ;;  %v7382_v41 = vmul.f32 %v7358_v6, %v13561_v2  ;;  %v7705_v53 = vpop.f32.mrf.mxu2  ;;  %8602 = vmatmul.msk.f32.gmra.mxu2 %vm335_vm1, %v7623_v38 }
0x12d5   : > { %v7572_v27 = vmul.f32 %v7502_v21, %v12879_v0  ;;  %v12984_v59 = vadd.f32 %v12969_v39, %v7705_v53 }
0x12d6   : > { %v7506_v11 = vmul.f32 0.5, %v7505_v55  ;;  %v7398_v32 = vadd.f32 1e-05, %v7382_v41 }
0x12d7   : > { %v7753_v47 = vsel %vm221_vm0, %v12984_v59, 0.0  ;;  %v7590_v16 = vmul.f32 %v12858_v40, %v7572_v27 }
0x12d8   : > { %v7507_v14 = vsub.f32 1.5, %v7506_v11  ;;  %9228 = vrsqrt.f32 %v7398_v32  ;;  %7754 = vadd.xlane.f32.xlu1 %v7753_v47  ;;  %vm7519_vm8 = vweird.f32 %v7398_v32 }
0x12d9   : > { %v7608_v12 = vadd.f32 %v12868_v56, %v7590_v16 }
0x12da   : > { %v7508_v50 = vmul.f32 %v9227_v31, %v7507_v14 }
0x12db   : > { %v7361_v0 = vpop.xlane.xlu2 %7360  ;;  %v7624_v5 = vmax.f32 %v7608_v12, 0.0 }
0x12dc   : > { %v7512_v33 = vsel %vm7511_vm6, %v9227_v31, %v7508_v50  ;;  %v7383_v17 = vmul.f32 %v7361_v0, %v13561_v2  ;;  %v7708_v34 = vpop.f32.mrf.mxu2 }
0x12dd   : > { %v7573_v7 = vmul.f32 %v7512_v33, %v12895_v23  ;;  %v12993_v49 = vadd.f32 %v12969_v39, %v7708_v34  ;;  %8603 = vmatmul.msk.f32.gmra.mxu2 %vm335_vm1, %v7624_v5 }
0x12de   : > { %v9229_v15 = vpop.eup %9228  ;;  %v7399_v44 = vadd.f32 1e-05, %v7383_v17 }
0x12df   : > { %v7514_v30 = vmul.f32 %v9229_v15, %v7398_v32  ;;  %v7756_v3 = vsel %vm221_vm0, %v12993_v49, 0.0  ;;  %v7591_v54 = vmul.f32 %v12858_v40, %v7573_v7  ;;  %vm7520_vm7 = vweird.f32 %v9229_v15 }
0x12e0   : > { %9230 = vrsqrt.f32 %v7399_v44  ;;  %7757 = vadd.xlane.f32.xlu2 %v7756_v3  ;;  %vm7521_vm9 = vmor %vm7519_vm8, %vm7520_vm7  ;;  %vm7529_vm10 = vweird.f32 %v7399_v44 }
0x12e1   : > { %v7515_v4 = vmul.f32 %v9229_v15, %v7514_v30  ;;  %v7609_v29 = vadd.f32 %v12868_v56, %v7591_v54 }
0x12e3   : > { %v7516_v8 = vmul.f32 0.5, %v7515_v4  ;;  %v7364_v23 = vpop.xlane.xlu0 %7363  ;;  %v7625_v62 = vmax.f32 %v7609_v29, 0.0 }
0x12e4   : > { %v7384_v20 = vmul.f32 %v7364_v23, %v13561_v2  ;;  %v7711_v22 = vpop.f32.mrf.mxu2 }
0x12e5   : > { %v7517_v13 = vsub.f32 1.5, %v7516_v8  ;;  %v13002_v35 = vadd.f32 %v12969_v39, %v7711_v22  ;;  %8604 = vmatmul.msk.f32.gmra.mxu2 %vm335_vm1, %v7625_v62 }
0x12e6   : > { %v9231_v26 = vpop.eup %9230  ;;  %v7400_v60 = vadd.f32 1e-05, %v7384_v20 }
0x12e7   : > { %v7518_v52 = vmul.f32 %v9229_v15, %v7517_v13  ;;  %v7524_v19 = vmul.f32 %v9231_v26, %v7399_v44  ;;  %v7759_v46 = vsel %vm221_vm0, %v13002_v35, 0.0  ;;  %vm7530_vm15 = vweird.f32 %v9231_v26 }
0x12e8   : > { %9232 = vrsqrt.f32 %v7400_v60  ;;  %7760 = vadd.xlane.f32.xlu0 %v7759_v46  ;;  %vm7531_vm11 = vmor %vm7529_vm10, %vm7530_vm15  ;;  %vm7539_vm13 = vweird.f32 %v7400_v60 }
0x12e9   : > { %v7522_v45 = vsel %vm7521_vm9, %v9229_v15, %v7518_v52  ;;  %v7525_v51 = vmul.f32 %v9231_v26, %v7524_v19 }
0x12ea   : > { %v7574_v37 = vmul.f32 %v7522_v45, %v12910_v1 }
0x12eb   : > { %v7526_v10 = vmul.f32 0.5, %v7525_v51 }
0x12ec   : > { %v7592_v58 = vmul.f32 %v12858_v40, %v7574_v37 }
0x12ed   : > { %v7527_v63 = vsub.f32 1.5, %v7526_v10 }
0x12ee   : > { %v9233_v28 = vpop.eup %9232  ;;  %v7610_v18 = vadd.f32 %v12868_v56, %v7592_v58 }
0x12ef   : > { %v7528_v24 = vmul.f32 %v9231_v26, %v7527_v63  ;;  %v7534_v57 = vmul.f32 %v9233_v28, %v7400_v60  ;;  %vm7540_vm12 = vweird.f32 %v9233_v28 }
0x12f0   : > { %v7626_v31 = vmax.f32 %v7610_v18, 0.0  ;;  %vm7541_vm14 = vmor %vm7539_vm13, %vm7540_vm12 }
0x12f1   : > { %v7532_v42 = vsel %vm7531_vm11, %v9231_v26, %v7528_v24  ;;  %v7535_v48 = vmul.f32 %v9233_v28, %v7534_v57 }
0x12f2   : > { %v7575_v38 = vmul.f32 %v7532_v42, %v12921_v9  ;;  %v7714_v6 = vpop.f32.mrf.mxu2  ;;  %8605 = vmatmul.msk.f32.gmra.mxu2 %vm335_vm1, %v7626_v31 }
0x12f3   : > { %v7536_v1 = vmul.f32 0.5, %v7535_v48  ;;  %v13013_v21 = vadd.f32 %v12969_v39, %v7714_v6 }
0x12f4   : > { %v7593_v55 = vmul.f32 %v12858_v40, %v7575_v38  ;;  %v9294_v38 = vmov 16.0  }
0x12f5   : > { %v7537_v41 = vsub.f32 1.5, %v7536_v1  ;;  %v7762_v53 = vsel %vm221_vm0, %v13013_v21, 0.0 }
0x12f6   : > { %7763 = vadd.xlane.f32.xlu1 %v7762_v53  ;;  %v7611_v27 = vadd.f32 %v12868_v56, %v7593_v55 }
0x12f7   : > { %v7538_v11 = vmul.f32 %v9233_v28, %v7537_v41 }
0x12f8   : > { %v7627_v9 = vmax.f32 %v7611_v27, 0.0 }
0x12f9   : > { %v7542_v32 = vsel %vm7541_vm14, %v9233_v28, %v7538_v11 }
0x12fa   : > { %v7576_v47 = vmul.f32 %v7542_v32, %v12930_v36  ;;  %v7717_v16 = vpop.f32.mrf.mxu2  ;;  %8606 = vmatmul.msk.f32.gmra.mxu2 %vm335_vm1, %v7627_v9 }
0x12fb   : > { %v13022_v14 = vadd.f32 %v12969_v39, %v7717_v16 }
0x12fc   : > { %v7594_v12 = vmul.f32 %v12858_v40, %v7576_v47 }
0x12fd   : > { %v7765_v50 = vsel %vm221_vm0, %v13022_v14, 0.0 }
0x12fe   : > { %7766 = vadd.xlane.f32.xlu2 %v7765_v50  ;;  %v7612_v0 = vadd.f32 %v12868_v56, %v7594_v12 }
0x1300   : > { %v7628_v5 = vmax.f32 %v7612_v0, 0.0 }
0x1302   : > { %v7720_v33 = vpop.f32.mrf.mxu2  ;;  %8607 = vmatmul.msk.f32.gmra.mxu2 %vm335_vm1, %v7628_v5 }
0x1303   : > { %v13030_v36 = vadd.f32 %v12969_v39, %v7720_v33 }
0x1305   : > { %v7768_v17 = vsel %vm221_vm0, %v13030_v36, 0.0 }
0x1306   : > { %7769 = vadd.xlane.f32.xlu0 %v7768_v17 }
0x1330   : > { %v7367_v34 = vpop.xlane.xlu1 %7366 }
0x1331   : > { %v7385_v7 = vmul.f32 %v7367_v34, %v13561_v2 }
0x1333   : > { %v7401_v15 = vadd.f32 1e-05, %v7385_v7 }
0x1335   : > { %9234 = vrsqrt.f32 %v7401_v15  ;;  %vm7549_vm3 = vweird.f32 %v7401_v15 }
0x1338   : > { %v7370_v44 = vpop.xlane.xlu2 %7369 }
0x1339   : > { %v7386_v30 = vmul.f32 %v7370_v44, %v13561_v2 }
0x133b   : > { %v9235_v3 = vpop.eup %9234  ;;  %v7402_v54 = vadd.f32 1e-05, %v7386_v30 }
0x133c   : > { %v7544_v4 = vmul.f32 %v9235_v3, %v7401_v15  ;;  %vm7550_vm2 = vweird.f32 %v9235_v3 }
0x133d   : > { %9236 = vrsqrt.f32 %v7402_v54  ;;  %vm7551_vm4 = vmor %vm7549_vm3, %vm7550_vm2  ;;  %vm7559_vm6 = vweird.f32 %v7402_v54 }
0x133e   : > { %v7545_v29 = vmul.f32 %v9235_v3, %v7544_v4  ;;  %9238 = vrcp.f32 %v9294_v38 }
0x1340   : > { %v7546_v8 = vmul.f32 0.5, %v7545_v29 }
0x1342   : > { %v7547_v23 = vsub.f32 1.5, %v7546_v8 }
0x1343   : > { %v9237_v62 = vpop.eup %9236  ;;  %v7752_v5 = vpop.xlane.xlu0 %7751 }
0x1344   : > { %v7548_v20 = vmul.f32 %v9235_v3, %v7547_v23  ;;  %v7554_v22 = vmul.f32 %v9237_v62, %v7402_v54  ;;  %vm7560_vm5 = vweird.f32 %v9237_v62  ;;  %v9239_v55 = vpop.eup %9238 }
0x1345   : > { %vm7561_vm7 = vmor %vm7559_vm6, %vm7560_vm5  ;;  %v7799_v41 = vmul.f32 16.0, %v9239_v55 }
0x1346   : > { %v7552_v13 = vsel %vm7551_vm4, %v9235_v3, %v7548_v20  ;;  %v7555_v26 = vmul.f32 %v9237_v62, %v7554_v22 }
0x1347   : > { %v7577_v60 = vmul.f32 %v7552_v13, %v12949_v25  ;;  %v7800_v53 = vsub.f32 1.0, %v7799_v41 }
0x1348   : > { %v7556_v52 = vmul.f32 0.5, %v7555_v26 }
0x1349   : > { %v7595_v2 = vmul.f32 %v12858_v40, %v7577_v60  ;;  %v7801_v32 = vmul.f32 %v9239_v55, %v7800_v53 }
0x134a   : > { %v7557_v19 = vsub.f32 1.5, %v7556_v52 }
0x134b   : > { %v7613_v46 = vadd.f32 %v12868_v56, %v7595_v2  ;;  %v7802_v47 = vadd.f32 %v9239_v55, %v7801_v32  ;;  %v7755_v22 = vpop.xlane.xlu1 %7754 }
0x134c   : > { %v7558_v45 = vmul.f32 %v9237_v62, %v7557_v19 }
0x134d   : > { %v7629_v51 = vmax.f32 %v7613_v46, 0.0 }
0x134e   : > { %v7562_v37 = vsel %vm7561_vm7, %v9237_v62, %v7558_v45 }
0x134f   : > { %v7578_v10 = vmul.f32 %v7562_v37, %v12957_v43  ;;  %v7723_v58 = vpop.f32.mrf.mxu2  ;;  %8608 = vmatmul.msk.f32.gmra.mxu2 %vm335_vm1, %v7629_v51 }
0x1350   : > { %v13042_v63 = vadd.f32 %v12969_v39, %v7723_v58 }
0x1351   : > { %v7596_v25 = vmul.f32 %v12858_v40, %v7578_v10 }
0x1352   : > { %v7771_v28 = vsel %vm221_vm0, %v13042_v63, 0.0 }
0x1353   : > { %7772 = vadd.xlane.f32.xlu1 %v7771_v28  ;;  %v7614_v18 = vadd.f32 %v12868_v56, %v7596_v25  ;;  %v7758_v2 = vpop.xlane.xlu2 %7757 }
0x1355   : > { %v7630_v24 = vmax.f32 %v7614_v18, 0.0 }
0x1357   : > { %v7726_v57 = vpop.f32.mrf.mxu2  ;;  %8609 = vmatmul.msk.f32.gmra.mxu2 %vm335_vm1, %v7630_v24  ;;  %vm7803_vm1 = vweird.f32 %v9239_v55 }
0x1358   : > { %v13050_v43 = vadd.f32 %v12969_v39, %v7726_v57  ;;  %v13071_v0 = vsel %vm7803_vm1, %v9239_v55, %v7802_v47 }
0x1359   : > { %v7805_v33 = vmul.f32 %v13071_v0, %v7752_v5  ;;  %v7806_v13 = vmul.f32 %v13071_v0, %v7755_v22  ;;  %v7807_v51 = vmul.f32 %v13071_v0, %v7758_v2 }
0x135a   : > { %v7774_v31 = vsel %vm221_vm0, %v13050_v43, 0.0 }
0x135b   : > { %7775 = vadd.xlane.f32.xlu2 %v7774_v31  ;;  %v13078_v7 = vsub.f32 %v12974_v61, %v7805_v33  ;;  %v7761_v44 = vpop.xlane.xlu0 %7760  ;;  %v13104_v52 = vsub.f32 %v12984_v59, %v7806_v13  ;;  %v13121_v18 = vsub.f32 %v12993_v49, %v7807_v51 }
0x135c   : > { %v7808_v30 = vmul.f32 %v13071_v0, %v7761_v44 }
0x135d   : > { %v7837_v3 = vmul.f32 %v13078_v7, %v13078_v7  ;;  %v7838_v10 = vmul.f32 %v13104_v52, %v13104_v52 }
0x135e   : > { %v13086_v54 = vsub.f32 %v13002_v35, %v7808_v30 }
0x135f   : > { %v7853_v4 = vsel %vm221_vm0, %v7837_v3, 0.0  ;;  %v7856_v31 = vsel %vm221_vm0, %v7838_v10, 0.0 }
0x1360   : > { %v7729_v42 = vpop.f32.mrf.mxu2  ;;  %v7840_v8 = vmul.f32 %v13086_v54, %v13086_v54 }
0x1361   : > { %v7730_v40 = vadd.f32 %v12969_v39, %v7729_v42 }
0x1362   : > { %v7862_v62 = vsel %vm221_vm0, %v7840_v8, 0.0 }
0x1363   : > { %v7777_v48 = vsel %vm221_vm0, %v7730_v40, 0.0 }
0x1364   : > { %7778 = vadd.xlane.f32.xlu0 %v7777_v48 }
0x1368   : > { %v7732_v56 = vpop.f32.mrf.mxu2 }
0x1369   : > { %v13057_v6 = vadd.f32 %v12969_v39, %v7732_v56  ;;  %v7764_v19 = vpop.xlane.xlu1 %7763 }
0x136a   : > { %v7809_v37 = vmul.f32 %v13071_v0, %v7764_v19 }
0x136b   : > { %v7780_v1 = vsel %vm221_vm0, %v13057_v6, 0.0 }
0x136c   : > { %7781 = vadd.xlane.f32.xlu1 %v7780_v1  ;;  %v13124_v24 = vsub.f32 %v13013_v21, %v7809_v37  ;;  %v7839_v21 = vmul.f32 %v13121_v18, %v13121_v18 }
0x136e   : > { %v7841_v38 = vmul.f32 %v13124_v24, %v13124_v24  ;;  %v7859_v55 = vsel %vm221_vm0, %v7839_v21, 0.0 }
0x1370   : > { %v7865_v41 = vsel %vm221_vm0, %v7841_v38, 0.0  ;;  %v13196_v38 = vld [vmem:[%s13356_s3 + $0x13] ss:$0 sm:$0xff] }
0x1371   : > { %v7767_v42 = vpop.xlane.xlu2 %7766 }
0x1375   : > { %v7735_v27 = vpop.f32.mrf.mxu2 }
0x1376   : > { %v13062_v11 = vadd.f32 %v12969_v39, %v7735_v27 }
0x1378   : > { %v7783_v9 = vsel %vm221_vm0, %v13062_v11, 0.0 }
0x1379   : > { %7784 = vadd.xlane.f32.xlu2 %v7783_v9  ;;  %v7770_v29 = vpop.xlane.xlu0 %7769 }
0x137a   : > { %v7811_v61 = vmul.f32 %v13071_v0, %v7770_v29 }
0x137c   : > { %v13093_v23 = vsub.f32 %v13030_v36, %v7811_v61 }
0x137d   : > { %v7738_v16 = vpop.f32.mrf.mxu2 }
0x137e   : > { %v13067_v12 = vadd.f32 %v12969_v39, %v7738_v16  ;;  %v7843_v20 = vmul.f32 %v13093_v23, %v13093_v23 }
0x1380   : > { %v7786_v50 = vsel %vm221_vm0, %v13067_v12, 0.0  ;;  %v7871_v35 = vsel %vm221_vm0, %v7843_v20, 0.0 }
0x1381   : > { %7787 = vadd.xlane.f32.xlu0 %v7786_v50 }
0x1385   : > { %v7741_v17 = vpop.f32.mrf.mxu2 }
0x1386   : > { %v13075_v34 = vadd.f32 %v12969_v39, %v7741_v17 }
0x1388   : > { %v7789_v15 = vsel %vm221_vm0, %v13075_v34, 0.0 }
0x1389   : > { %7790 = vadd.xlane.f32.xlu1 %v7789_v15 }
0x1391   : > { %7854 = vadd.xlane.f32.xlu1 %v7853_v4 }
0x1399   : > { %7863 = vadd.xlane.f32.xlu1 %v7862_v62 }
0x13a1   : > { %7872 = vadd.xlane.f32.xlu1 %v7871_v35 }
0x13ce   : > { %v7776_v53 = vpop.xlane.xlu2 %7775 }
0x13cf   : > { %v7813_v9 = vmul.f32 %v13071_v0, %v7776_v53 }
0x13d2   : > { %v7744_v26 = vpop.f32.mrf.mxu2 }
0x13d3   : > { %v13101_v60 = vadd.f32 %v12969_v39, %v7744_v26 }
0x13d5   : > { %v7792_v36 = vsel %vm221_vm0, %v13101_v60, 0.0 }
0x13d6   : > { %7793 = vadd.xlane.f32.xlu2 %v7792_v36 }
0x13d7   : > { %v7779_v46 = vpop.xlane.xlu0 %7778 }
0x13d8   : > { %v7814_v45 = vmul.f32 %v13071_v0, %v7779_v46 }
0x13da   : > { %v13113_v58 = vsub.f32 %v7730_v40, %v7814_v45  ;;  %v7747_v59 = vpop.f32.mrf.mxu2  ;;  %v7773_v40 = vpop.xlane.xlu1 %7772 }
0x13db   : > { %v13116_v25 = vadd.f32 %v12969_v39, %v7747_v59  ;;  %v7810_v39 = vmul.f32 %v13071_v0, %v7767_v42  ;;  %v7812_v49 = vmul.f32 %v13071_v0, %v7773_v40 }
0x13dc   : > { %v7846_v28 = vmul.f32 %v13113_v58, %v13113_v58 }
0x13dd   : > { %v7795_v57 = vsel %vm221_vm0, %v13116_v25, 0.0  ;;  %v13137_v56 = vsub.f32 %v13022_v14, %v7810_v39  ;;  %v13140_v1 = vsub.f32 %v13042_v63, %v7812_v49  ;;  %v13151_v63 = vsub.f32 %v13050_v43, %v7813_v9  ;;  %v13191_v39 = vld [vmem:[%s13356_s3 + $0x12] ss:$0 sm:$0xff] }
0x13de   : > { %v7880_v48 = vsel %vm221_vm0, %v7846_v28, 0.0  ;;  %7796 = vadd.xlane.f32.xlu0 %v7795_v57  ;;  %7857 = vadd.xlane.f32.xlu2 %v7856_v31 }
0x13df   : > { %7881 = vadd.xlane.f32.xlu1 %v7880_v48  ;;  %v7842_v47 = vmul.f32 %v13137_v56, %v13137_v56  ;;  %v7844_v14 = vmul.f32 %v13140_v1, %v13140_v1  ;;  %v7845_v15 = vmul.f32 %v13151_v63, %v13151_v63 }
0x13e1   : > { %v7868_v50 = vsel %vm221_vm0, %v7842_v47, 0.0  ;;  %v7874_v5 = vsel %vm221_vm0, %v7844_v14, 0.0  ;;  %v7877_v3 = vsel %vm221_vm0, %v7845_v15, 0.0 }
0x13e2   : > { %v7782_v27 = vpop.xlane.xlu1 %7781 }
0x13e3   : > { %v7815_v32 = vmul.f32 %v13071_v0, %v7782_v27 }
0x13e5   : > { %v13154_v16 = vsub.f32 %v13057_v6, %v7815_v32 }
0x13e6   : > { %7860 = vadd.xlane.f32.xlu0 %v7859_v55  ;;  %7866 = vadd.xlane.f32.xlu2 %v7865_v41 }
0x13e7   : > { %v7847_v44 = vmul.f32 %v13154_v16, %v13154_v16 }
0x13e9   : > { %v7883_v4 = vsel %vm221_vm0, %v7847_v44, 0.0 }
0x13ec   : > { %v7785_v33 = vpop.xlane.xlu2 %7784 }
0x13ed   : > { %v7816_v17 = vmul.f32 %v13071_v0, %v7785_v33 }
0x13ee   : > { %7869 = vadd.xlane.f32.xlu0 %v7868_v50  ;;  %7875 = vadd.xlane.f32.xlu2 %v7874_v5 }
0x13ef   : > { %v13164_v30 = vsub.f32 %v13062_v11, %v7816_v17 }
0x13f1   : > { %v7848_v8 = vmul.f32 %v13164_v30, %v13164_v30 }
0x13f3   : > { %v7886_v35 = vsel %vm221_vm0, %v7848_v8, 0.0 }
0x13f4   : > { %v7788_v43 = vpop.xlane.xlu0 %7787 }
0x13f5   : > { %v7817_v6 = vmul.f32 %v13071_v0, %v7788_v43 }
0x13f6   : > { %7878 = vadd.xlane.f32.xlu0 %v7877_v3  ;;  %7884 = vadd.xlane.f32.xlu2 %v7883_v4 }
0x13f7   : > { %v13170_v29 = vsub.f32 %v13067_v12, %v7817_v6 }
0x13f9   : > { %v7849_v61 = vmul.f32 %v13170_v29, %v13170_v29 }
0x13fb   : > { %v7889_v11 = vsel %vm221_vm0, %v7849_v61, 0.0 }
0x13fc   : > { %7890 = vadd.xlane.f32.xlu1 %v7889_v11  ;;  %v7791_v62 = vpop.xlane.xlu1 %7790 }
0x13fd   : > { %v7818_v20 = vmul.f32 %v13071_v0, %v7791_v62 }
0x13fe   : > { %7887 = vadd.xlane.f32.xlu0 %v7886_v35 }
0x13ff   : > { %v13180_v22 = vsub.f32 %v13075_v34, %v7818_v20 }
0x1401   : > { %v7850_v12 = vmul.f32 %v13180_v22, %v13180_v22 }
0x1403   : > { %v7892_v13 = vsel %vm221_vm0, %v7850_v12, 0.0 }
0x1404   : > { %7893 = vadd.xlane.f32.xlu2 %v7892_v13  ;;  %v7855_v26 = vpop.xlane.xlu1 %7854 }
0x1405   : > { %v7901_v36 = vmul.f32 %v7855_v26, %v13071_v0 }
0x1407   : > { %v7917_v2 = vadd.f32 1e-05, %v7901_v36 }
0x1409   : > { %9240 = vrsqrt.f32 %v7917_v2  ;;  %vm7939_vm9 = vweird.f32 %v7917_v2 }
0x140c   : > { %v7864_v19 = vpop.xlane.xlu1 %7863 }
0x140d   : > { %v7904_v46 = vmul.f32 %v7864_v19, %v13071_v0 }
0x140f   : > { %v9241_v45 = vpop.eup %9240  ;;  %v7920_v51 = vadd.f32 1e-05, %v7904_v46 }
0x1410   : > { %v7934_v37 = vmul.f32 %v9241_v45, %v7917_v2  ;;  %vm7940_vm8 = vweird.f32 %v9241_v45 }
0x1411   : > { %9242 = vrsqrt.f32 %v7920_v51  ;;  %vm7941_vm15 = vmor %vm7939_vm9, %vm7940_vm8  ;;  %vm7969_vm11 = vweird.f32 %v7920_v51 }
0x1412   : > { %v7935_v34 = vmul.f32 %v9241_v45, %v7934_v37 }
0x1414   : > { %v7936_v10 = vmul.f32 0.5, %v7935_v34  ;;  %v7873_v59 = vpop.xlane.xlu1 %7872 }
0x1415   : > { %v7907_v28 = vmul.f32 %v7873_v59, %v13071_v0 }
0x1416   : > { %v7937_v57 = vsub.f32 1.5, %v7936_v10 }
0x1417   : > { %v9243_v31 = vpop.eup %9242  ;;  %v7923_v42 = vadd.f32 1e-05, %v7907_v28 }
0x1418   : > { %v7938_v40 = vmul.f32 %v9241_v45, %v7937_v57  ;;  %v7964_v48 = vmul.f32 %v9243_v31, %v7920_v51  ;;  %vm7970_vm10 = vweird.f32 %v9243_v31 }
0x1419   : > { %9244 = vrsqrt.f32 %v7923_v42  ;;  %vm7971_vm12 = vmor %vm7969_vm11, %vm7970_vm10  ;;  %vm7999_vm14 = vweird.f32 %v7923_v42 }
0x141a   : > { %v7942_v49 = vsel %vm7941_vm15, %v9241_v45, %v7938_v40  ;;  %v7965_v21 = vmul.f32 %v9243_v31, %v7964_v48 }
0x141b   : > { %v8093_v55 = vmul.f32 %v7942_v49, %v13078_v7 }
0x141c   : > { %v7966_v41 = vmul.f32 0.5, %v7965_v21 }
0x141d   : > { %v8111_v53 = vmul.f32 %v13191_v39, %v8093_v55 }
0x141e   : > { %v7967_v27 = vsub.f32 1.5, %v7966_v41 }
0x141f   : > { %v9245_v9 = vpop.eup %9244  ;;  %v8129_v32 = vadd.f32 %v13196_v38, %v8111_v53 }
0x1420   : > { %v7968_v47 = vmul.f32 %v9243_v31, %v7967_v27  ;;  %v7994_v14 = vmul.f32 %v9245_v9, %v7923_v42  ;;  %vm8000_vm13 = vweird.f32 %v9245_v9 }
0x1421   : > { %v8145_v50 = vmax.f32 %v8129_v32, 0.0  ;;  %vm8001_vm2 = vmor %vm7999_vm14, %vm8000_vm13 }
0x1422   : > { %v7972_v7 = vsel %vm7971_vm12, %v9243_v31, %v7968_v47  ;;  %v7995_v5 = vmul.f32 %v9245_v9, %v7994_v14 }
0x1423   : > { %8161 = vst.msk [vmem:[%s13206_s8] sm:$0xff] %vm221_vm0, %v8145_v50  ;;  %v8096_v33 = vmul.f32 %v7972_v7, %v13086_v54 }
0x1424   : > { %v7996_v17 = vmul.f32 0.5, %v7995_v5 }
0x1425   : > { %v8114_v15 = vmul.f32 %v13191_v39, %v8096_v33 }
0x1426   : > { %v7997_v44 = vsub.f32 1.5, %v7996_v17 }
0x1427   : > { %v8132_v43 = vadd.f32 %v13196_v38, %v8114_v15 }
0x1428   : > { %v7998_v6 = vmul.f32 %v9245_v9, %v7997_v44 }
0x1429   : > { %v8148_v3 = vmax.f32 %v8132_v43, 0.0 }
0x142a   : > { %v8002_v4 = vsel %vm8001_vm2, %v9245_v9, %v7998_v6 }
0x142b   : > { %8164 = vst.msk [vmem:[%s13206_s8 + $0x18] sm:$0xff] %vm221_vm0, %v8148_v3  ;;  %v8099_v61 = vmul.f32 %v8002_v4, %v13093_v23 }
0x142d   : > { %v8117_v8 = vmul.f32 %v13191_v39, %v8099_v61 }
0x142f   : > { %v8135_v54 = vadd.f32 %v13196_v38, %v8117_v8 }
0x1431   : > { %v8151_v11 = vmax.f32 %v8135_v54, 0.0 }
0x1433   : > { %8167 = vst.msk [vmem:[%s13206_s8 + $0x30] sm:$0xff] %vm221_vm0, %v8151_v11 }
0x1449   : > { %v7794_v62 = vpop.xlane.xlu2 %7793 }
0x144a   : > { %v7819_v20 = vmul.f32 %v13071_v0, %v7794_v62 }
0x144c   : > { %v13222_v35 = vsub.f32 %v13101_v60, %v7819_v20 }
0x144e   : > { %v7851_v12 = vmul.f32 %v13222_v35, %v13222_v35 }
0x1450   : > { %v7895_v13 = vsel %vm221_vm0, %v7851_v12, 0.0 }
0x1451   : > { %v7797_v26 = vpop.xlane.xlu0 %7796  ;;  %7896 = vadd.xlane.f32.xlu0 %v7895_v13  ;;  %v7858_v23 = vpop.xlane.xlu2 %7857 }
0x1452   : > { %v7820_v36 = vmul.f32 %v13071_v0, %v7797_v26  ;;  %v7902_v2 = vmul.f32 %v7858_v23, %v13071_v0  ;;  %v7882_v19 = vpop.xlane.xlu1 %7881 }
0x1453   : > { %v7910_v46 = vmul.f32 %v7882_v19, %v13071_v0 }
0x1454   : > { %v13231_v45 = vsub.f32 %v13116_v25, %v7820_v36  ;;  %v7918_v60 = vadd.f32 1e-05, %v7902_v2 }
0x1455   : > { %v7926_v51 = vadd.f32 1e-05, %v7910_v46 }
0x1456   : > { %9246 = vrsqrt.f32 %v7918_v60  ;;  %v7852_v37 = vmul.f32 %v13231_v45, %v13231_v45  ;;  %vm7949_vm5 = vweird.f32 %v7918_v60 }
0x1457   : > { %9248 = vrsqrt.f32 %v7926_v51  ;;  %vm8029_vm7 = vweird.f32 %v7926_v51 }
0x1458   : > { %v7898_v34 = vsel %vm221_vm0, %v7852_v37, 0.0 }
0x1459   : > { %7899 = vadd.xlane.f32.xlu1 %v7898_v34  ;;  %v7861_v10 = vpop.xlane.xlu0 %7860  ;;  %v7867_v59 = vpop.xlane.xlu2 %7866 }
0x145a   : > { %v7903_v28 = vmul.f32 %v7861_v10, %v13071_v0  ;;  %v7905_v57 = vmul.f32 %v7867_v59, %v13071_v0 }
0x145c   : > { %v9247_v31 = vpop.eup %9246  ;;  %v7919_v42 = vadd.f32 1e-05, %v7903_v28  ;;  %v13238_v25 = vadd.f32 1e-05, %v7905_v57 }
0x145d   : > { %v9249_v40 = vpop.eup %9248  ;;  %v7944_v48 = vmul.f32 %v9247_v31, %v7918_v60  ;;  %vm7950_vm3 = vweird.f32 %v9247_v31 }
0x145e   : > { %v8024_v49 = vmul.f32 %v9249_v40, %v7926_v51  ;;  %9250 = vrsqrt.f32 %v7919_v42  ;;  %vm8030_vm4 = vweird.f32 %v9249_v40  ;;  %vm7951_vm6 = vmor %vm7949_vm5, %vm7950_vm3  ;;  %vm7959_vm8 = vweird.f32 %v7919_v42 }
0x145f   : > { %v7945_v21 = vmul.f32 %v9247_v31, %v7944_v48  ;;  %9252 = vrsqrt.f32 %v13238_v25  ;;  %vm8031_vm1 = vmor %vm8029_vm7, %vm8030_vm4  ;;  %vm7979_vm11 = vweird.f32 %v13238_v25 }
0x1460   : > { %v8025_v55 = vmul.f32 %v9249_v40, %v8024_v49 }
0x1461   : > { %v7946_v41 = vmul.f32 0.5, %v7945_v21  ;;  %v7870_v53 = vpop.xlane.xlu0 %7869  ;;  %v7876_v27 = vpop.xlane.xlu2 %7875 }
0x1462   : > { %v8026_v9 = vmul.f32 0.5, %v8025_v55  ;;  %v7906_v32 = vmul.f32 %v7870_v53, %v13071_v0  ;;  %v7908_v47 = vmul.f32 %v7876_v27, %v13071_v0 }
0x1463   : > { %v7947_v14 = vsub.f32 1.5, %v7946_v41 }
0x1464   : > { %v9251_v50 = vpop.eup %9250  ;;  %v8027_v7 = vsub.f32 1.5, %v8026_v9  ;;  %v13243_v5 = vadd.f32 1e-05, %v7906_v32  ;;  %v13245_v33 = vadd.f32 1e-05, %v7908_v47 }
0x1465   : > { %v9253_v17 = vpop.eup %9252  ;;  %v7948_v15 = vmul.f32 %v9247_v31, %v7947_v14  ;;  %v7954_v44 = vmul.f32 %v9251_v50, %v7919_v42  ;;  %vm7960_vm9 = vweird.f32 %v9251_v50 }
0x1466   : > { %v8028_v43 = vmul.f32 %v9249_v40, %v8027_v7  ;;  %v7974_v6 = vmul.f32 %v9253_v17, %v13238_v25  ;;  %9254 = vrsqrt.f32 %v13243_v5  ;;  %vm7980_vm15 = vweird.f32 %v9253_v17  ;;  %vm7961_vm10 = vmor %vm7959_vm8, %vm7960_vm9 }
0x1467   : > { %v7952_v3 = vsel %vm7951_vm6, %v9247_v31, %v7948_v15  ;;  %v7955_v4 = vmul.f32 %v9251_v50, %v7954_v44  ;;  %9256 = vrsqrt.f32 %v13245_v33  ;;  %vm7981_vm12 = vmor %vm7979_vm11, %vm7980_vm15  ;;  %vm7989_vm2 = vweird.f32 %v13243_v5 }
0x1468   : > { %v8094_v61 = vmul.f32 %v7952_v3, %v13104_v52  ;;  %v8032_v8 = vsel %vm8031_vm1, %v9249_v40, %v8028_v43  ;;  %v7975_v54 = vmul.f32 %v9253_v17, %v7974_v6  ;;  %vm8009_vm4 = vweird.f32 %v13245_v33 }
0x1469   : > { %v8102_v11 = vmul.f32 %v8032_v8, %v13113_v58  ;;  %v7956_v62 = vmul.f32 0.5, %v7955_v4  ;;  %v7879_v20 = vpop.xlane.xlu0 %7878  ;;  %v7885_v12 = vpop.xlane.xlu2 %7884 }
0x146a   : > { %v8112_v13 = vmul.f32 %v13191_v39, %v8094_v61  ;;  %v7976_v26 = vmul.f32 0.5, %v7975_v54  ;;  %v7909_v23 = vmul.f32 %v7879_v20, %v13071_v0  ;;  %v7911_v36 = vmul.f32 %v7885_v12, %v13071_v0 }
0x146b   : > { %v8120_v2 = vmul.f32 %v13191_v39, %v8102_v11  ;;  %v7957_v19 = vsub.f32 1.5, %v7956_v62 }
0x146c   : > { %v9255_v52 = vpop.eup %9254  ;;  %v8130_v46 = vadd.f32 %v13196_v38, %v8112_v13  ;;  %v7977_v60 = vsub.f32 1.5, %v7976_v26  ;;  %v13257_v58 = vadd.f32 1e-05, %v7909_v23  ;;  %v13261_v59 = vadd.f32 1e-05, %v7911_v36 }
0x146d   : > { %v9257_v51 = vpop.eup %9256  ;;  %v8138_v37 = vadd.f32 %v13196_v38, %v8120_v2  ;;  %v7958_v34 = vmul.f32 %v9251_v50, %v7957_v19  ;;  %v7984_v10 = vmul.f32 %v9255_v52, %v13243_v5  ;;  %vm7990_vm13 = vweird.f32 %v9255_v52 }
0x146e   : > { %v8146_v28 = vmax.f32 %v8130_v46, 0.0  ;;  %v7978_v57 = vmul.f32 %v9253_v17, %v7977_v60  ;;  %v8004_v31 = vmul.f32 %v9257_v51, %v13245_v33  ;;  %9258 = vrsqrt.f32 %v13257_v58  ;;  %vm7991_vm3 = vmor %vm7989_vm2, %vm7990_vm13 }
0x146f   : > { %v8154_v42 = vmax.f32 %v8138_v37, 0.0  ;;  %v7962_v40 = vsel %vm7961_vm10, %v9251_v50, %v7958_v34  ;;  %v7985_v48 = vmul.f32 %v9255_v52, %v7984_v10  ;;  %v7891_v49 = vpop.xlane.xlu1 %7890  ;;  %9260 = vrsqrt.f32 %v13261_v59 }
0x1470   : > { %8162 = vst.msk [vmem:[%s13206_s8 + $0x8] sm:$0xff] %vm221_vm0, %v8146_v28  ;;  %v8095_v21 = vmul.f32 %v7962_v40, %v13121_v18  ;;  %v7982_v55 = vsel %vm7981_vm12, %v9253_v17, %v7978_v57  ;;  %v8005_v41 = vmul.f32 %v9257_v51, %v8004_v31  ;;  %v7913_v47 = vmul.f32 %v7891_v49, %v13071_v0 }
0x1471   : > { %8170 = vst.msk [vmem:[%s13206_s8 + $0x48] sm:$0xff] %vm221_vm0, %v8154_v42  ;;  %v8097_v53 = vmul.f32 %v7982_v55, %v13124_v24  ;;  %v7986_v25 = vmul.f32 0.5, %v7985_v48  ;;  %v7888_v27 = vpop.xlane.xlu0 %7887  ;;  %vm8010_vm14 = vweird.f32 %v9257_v51  ;;  %vm8019_vm7 = vweird.f32 %v13257_v58 }
0x1472   : > { %v8113_v9 = vmul.f32 %v13191_v39, %v8095_v21  ;;  %v8006_v32 = vmul.f32 0.5, %v8005_v41  ;;  %v7912_v14 = vmul.f32 %v7888_v27, %v13071_v0  ;;  %v13278_v24 = vadd.f32 1e-05, %v7913_v47  ;;  %vm8011_vm5 = vmor %vm8009_vm4, %vm8010_vm14 }
0x1473   : > { %v8115_v50 = vmul.f32 %v13191_v39, %v8097_v53  ;;  %v7987_v18 = vsub.f32 1.5, %v7986_v25  ;;  %vm8039_vm9 = vweird.f32 %v13261_v59 }
0x1474   : > { %v8131_v7 = vadd.f32 %v13196_v38, %v8113_v9  ;;  %v8007_v17 = vsub.f32 1.5, %v8006_v32  ;;  %v9259_v15 = vpop.eup %9258  ;;  %v13282_v6 = vadd.f32 1e-05, %v7912_v14  ;;  %9262 = vrsqrt.f32 %v13278_v24 }
0x1475   : > { %v8133_v44 = vadd.f32 %v13196_v38, %v8115_v50  ;;  %v7988_v43 = vmul.f32 %v9255_v52, %v7987_v18  ;;  %v8014_v61 = vmul.f32 %v9259_v15, %v13257_v58  ;;  %v9261_v8 = vpop.eup %9260  ;;  %vm8020_vm6 = vweird.f32 %v9259_v15 }
0x1476   : > { %v8147_v3 = vmax.f32 %v8131_v7, 0.0  ;;  %v8008_v4 = vmul.f32 %v9257_v51, %v8007_v17  ;;  %v8034_v13 = vmul.f32 %v9261_v8, %v13261_v59  ;;  %9264 = vrsqrt.f32 %v13282_v6  ;;  %vm8021_vm8 = vmor %vm8019_vm7, %vm8020_vm6 }
0x1477   : > { %v8149_v54 = vmax.f32 %v8133_v44, 0.0  ;;  %v7992_v11 = vsel %vm7991_vm3, %v9255_v52, %v7988_v43  ;;  %v7894_v62 = vpop.xlane.xlu2 %7893  ;;  %v8015_v12 = vmul.f32 %v9259_v15, %v8014_v61  ;;  %vm8040_vm1 = vweird.f32 %v9261_v8 }
0x1478   : > { %8163 = vst.msk [vmem:[%s13206_s8 + $0x10] sm:$0xff] %vm221_vm0, %v8147_v3  ;;  %v8098_v5 = vmul.f32 %v7992_v11, %v13137_v56  ;;  %v8012_v20 = vsel %vm8011_vm5, %v9257_v51, %v8008_v4  ;;  %v8035_v36 = vmul.f32 %v9261_v8, %v8034_v13  ;;  %v7914_v2 = vmul.f32 %v7894_v62, %v13071_v0  ;;  %vm8041_vm15 = vmor %vm8039_vm9, %vm8040_vm1 }
0x1479   : > { %8165 = vst.msk [vmem:[%s13206_s8 + $0x20] sm:$0xff] %vm221_vm0, %v8149_v54  ;;  %v8100_v33 = vmul.f32 %v8012_v20, %v13140_v1  ;;  %v8016_v23 = vmul.f32 0.5, %v8015_v12  ;;  %vm8059_vm11 = vweird.f32 %v13278_v24  ;;  %vm8049_vm14 = vweird.f32 %v13282_v6 }
0x147a   : > { %v8116_v26 = vmul.f32 %v13191_v39, %v8098_v5  ;;  %v8036_v46 = vmul.f32 0.5, %v8035_v36  ;;  %v7930_v60 = vadd.f32 1e-05, %v7914_v2  ;;  %v9263_v51 = vpop.eup %9262 }
0x147b   : > { %v8118_v19 = vmul.f32 %v13191_v39, %v8100_v33  ;;  %v8017_v52 = vsub.f32 1.5, %v8016_v23  ;;  %v8054_v28 = vmul.f32 %v9263_v51, %v13278_v24  ;;  %vm8060_vm10 = vweird.f32 %v9263_v51 }
0x147c   : > { %v8134_v56 = vadd.f32 %v13196_v38, %v8116_v26  ;;  %v8037_v10 = vsub.f32 1.5, %v8036_v46  ;;  %v9265_v57 = vpop.eup %9264  ;;  %9266 = vrsqrt.f32 %v7930_v60  ;;  %vm8061_vm13 = vmor %vm8059_vm11, %vm8060_vm10  ;;  %vm8069_vm4 = vweird.f32 %v7930_v60 }
0x147d   : > { %v8136_v1 = vadd.f32 %v13196_v38, %v8118_v19  ;;  %v8018_v34 = vmul.f32 %v9259_v15, %v8017_v52  ;;  %v8055_v48 = vmul.f32 %v9263_v51, %v8054_v28  ;;  %v8044_v58 = vmul.f32 %v9265_v57, %v13282_v6 }
0x147e   : > { %v8150_v37 = vmax.f32 %v8134_v56, 0.0  ;;  %v8038_v40 = vmul.f32 %v9261_v8, %v8037_v10  ;;  %vm8050_vm12 = vweird.f32 %v9265_v57 }
0x147f   : > { %v8152_v31 = vmax.f32 %v8136_v1, 0.0  ;;  %v8022_v42 = vsel %vm8021_vm8, %v9259_v15, %v8018_v34  ;;  %v8056_v55 = vmul.f32 0.5, %v8055_v48  ;;  %v8045_v41 = vmul.f32 %v9265_v57, %v8044_v58  ;;  %vm8051_vm2 = vmor %vm8049_vm14, %vm8050_vm12 }
0x1480   : > { %8166 = vst.msk [vmem:[%s13206_s8 + $0x28] sm:$0xff] %vm221_vm0, %v8150_v37  ;;  %v8101_v49 = vmul.f32 %v8022_v42, %v13151_v63  ;;  %v8042_v21 = vsel %vm8041_vm15, %v9261_v8, %v8038_v40 }
0x1481   : > { %8168 = vst.msk [vmem:[%s13206_s8 + $0x38] sm:$0xff] %vm221_vm0, %v8152_v31  ;;  %v8103_v59 = vmul.f32 %v8042_v21, %v13154_v16  ;;  %v8057_v25 = vsub.f32 1.5, %v8056_v55  ;;  %v8046_v27 = vmul.f32 0.5, %v8045_v41 }
0x1482   : > { %v8119_v53 = vmul.f32 %v13191_v39, %v8101_v49  ;;  %v9267_v9 = vpop.eup %9266 }
0x1483   : > { %v8121_v47 = vmul.f32 %v13191_v39, %v8103_v59  ;;  %v8058_v63 = vmul.f32 %v9263_v51, %v8057_v25  ;;  %v8047_v14 = vsub.f32 1.5, %v8046_v27  ;;  %v8064_v50 = vmul.f32 %v9267_v9, %v7930_v60 }
0x1484   : > { %v8137_v32 = vadd.f32 %v13196_v38, %v8119_v53  ;;  %vm8070_vm3 = vweird.f32 %v9267_v9 }
0x1485   : > { %v8139_v7 = vadd.f32 %v13196_v38, %v8121_v47  ;;  %v8062_v16 = vsel %vm8061_vm13, %v9263_v51, %v8058_v63  ;;  %v8048_v17 = vmul.f32 %v9265_v57, %v8047_v14  ;;  %v8065_v15 = vmul.f32 %v9267_v9, %v8064_v50  ;;  %vm8071_vm5 = vmor %vm8069_vm4, %vm8070_vm3 }
0x1486   : > { %v8153_v18 = vmax.f32 %v8137_v32, 0.0  ;;  %v8105_v43 = vmul.f32 %v8062_v16, %v13170_v29 }
0x1487   : > { %v8155_v44 = vmax.f32 %v8139_v7, 0.0  ;;  %v8052_v24 = vsel %vm8051_vm2, %v9265_v57, %v8048_v17  ;;  %v8066_v3 = vmul.f32 0.5, %v8065_v15 }
0x1488   : > { %8169 = vst.msk [vmem:[%s13206_s8 + $0x40] sm:$0xff] %vm221_vm0, %v8153_v18  ;;  %v8123_v4 = vmul.f32 %v13191_v39, %v8105_v43  ;;  %v8104_v61 = vmul.f32 %v8052_v24, %v13164_v30 }
0x1489   : > { %8171 = vst.msk [vmem:[%s13206_s8 + $0x50] sm:$0xff] %vm221_vm0, %v8155_v44  ;;  %v8067_v8 = vsub.f32 1.5, %v8066_v3 }
0x148a   : > { %v8141_v6 = vadd.f32 %v13196_v38, %v8123_v4  ;;  %v8122_v54 = vmul.f32 %v13191_v39, %v8104_v61 }
0x148b   : > { %v8068_v11 = vmul.f32 %v9267_v9, %v8067_v8 }
0x148c   : > { %v8157_v29 = vmax.f32 %v8141_v6, 0.0  ;;  %v8140_v62 = vadd.f32 %v13196_v38, %v8122_v54 }
0x148d   : > { %v8072_v5 = vsel %vm8071_vm5, %v9267_v9, %v8068_v11 }
0x148e   : > { %8173 = vst.msk [vmem:[%s13206_s8 + $0x60] sm:$0xff] %vm221_vm0, %v8157_v29  ;;  %v8156_v20 = vmax.f32 %v8140_v62, 0.0  ;;  %v8106_v12 = vmul.f32 %v8072_v5, %v13180_v22 }
0x1490   : > { %8172 = vst.msk [vmem:[%s13206_s8 + $0x58] sm:$0xff] %vm221_vm0, %v8156_v20  ;;  %v8124_v30 = vmul.f32 %v13191_v39, %v8106_v12 }
0x1492   : > { %v8142_v13 = vadd.f32 %v13196_v38, %v8124_v30 }
0x1494   : > { %v8158_v33 = vmax.f32 %v8142_v13, 0.0 }
0x1496   : > { %8174 = vst.msk [vmem:[%s13206_s8 + $0x68] sm:$0xff] %vm221_vm0, %v8158_v33 }
0x14c4   : > { %v7897_v26 = vpop.xlane.xlu0 %7896 }
0x14c5   : > { %v7915_v23 = vmul.f32 %v7897_v26, %v13071_v0 }
0x14c7   : > { %v7931_v36 = vadd.f32 1e-05, %v7915_v23 }
0x14c9   : > { %9268 = vrsqrt.f32 %v7931_v36  ;;  %vm8079_vm7 = vweird.f32 %v7931_v36 }
0x14cc   : > { %v7900_v2 = vpop.xlane.xlu1 %7899 }
0x14cd   : > { %v7916_v19 = vmul.f32 %v7900_v2, %v13071_v0 }
0x14cf   : > { %v9269_v56 = vpop.eup %9268  ;;  %v7932_v52 = vadd.f32 1e-05, %v7916_v19 }
0x14d0   : > { %v8074_v22 = vmul.f32 %v9269_v56, %v7931_v36  ;;  %vm8080_vm6 = vweird.f32 %v9269_v56 }
0x14d1   : > { %9270 = vrsqrt.f32 %v7932_v52  ;;  %vm8081_vm1 = vmor %vm8079_vm7, %vm8080_vm6  ;;  %vm8089_vm9 = vweird.f32 %v7932_v52 }
0x14d2   : > { %v8075_v46 = vmul.f32 %v9269_v56, %v8074_v22 }
0x14d4   : > { %v8076_v60 = vmul.f32 0.5, %v8075_v46 }
0x14d6   : > { %v8077_v51 = vsub.f32 1.5, %v8076_v60 }
0x14d7   : > { %v9271_v1 = vpop.eup %9270 }
0x14d8   : > { %v8078_v37 = vmul.f32 %v9269_v56, %v8077_v51  ;;  %v8084_v34 = vmul.f32 %v9271_v1, %v7932_v52  ;;  %vm8090_vm8 = vweird.f32 %v9271_v1 }
0x14d9   : > { %vm8091_vm15 = vmor %vm8089_vm9, %vm8090_vm8 }
0x14da   : > { %v8082_v10 = vsel %vm8081_vm1, %v9269_v56, %v8078_v37  ;;  %v8085_v28 = vmul.f32 %v9271_v1, %v8084_v34 }
0x14db   : > { %v8107_v57 = vmul.f32 %v8082_v10, %v13222_v35 }
0x14dc   : > { %v8086_v0 = vmul.f32 0.5, %v8085_v28 }
0x14dd   : > { %v8125_v31 = vmul.f32 %v13191_v39, %v8107_v57 }
0x14de   : > { %v8087_v42 = vsub.f32 1.5, %v8086_v0 }
0x14df   : > { %v8143_v40 = vadd.f32 %v13196_v38, %v8125_v31 }
0x14e0   : > { %v8088_v48 = vmul.f32 %v9271_v1, %v8087_v42 }
0x14e1   : > { %v8159_v58 = vmax.f32 %v8143_v40, 0.0 }
0x14e2   : > { %v8092_v49 = vsel %vm8091_vm15, %v9271_v1, %v8088_v48 }
0x14e3   : > { %8175 = vst.msk [vmem:[%s13206_s8 + $0x70] sm:$0xff] %vm221_vm0, %v8159_v58  ;;  %v8108_v21 = vmul.f32 %v8092_v49, %v13231_v45 }
0x14e5   : > { %v8126_v55 = vmul.f32 %v13191_v39, %v8108_v21 }
0x14e7   : > { %v8144_v35 = vadd.f32 %v13196_v38, %v8126_v55 }
0x14e9   : > { %v8160_v41 = vmax.f32 %v8144_v35, 0.0 }
0x14eb   : > { %8176 = vst.msk [vmem:[%s13206_s8 + $0x78] sm:$0xff] %vm221_vm0, %v8160_v41 }
0x14ec PF: > { %s14_s15 = sadd.s32 1, %s9280_s15  }
0x14ed   : > { %p11_p4 = scmp.ge.s32.totalorder %s14_s15, 6  }
0x14ef   :  { %13 = sbr.rel (!%p11_p4) target bundleno = 1 (0x1), region = 66 }

</bundles_post_ra>
